<compile_context>
chip_gen: v6e
topology: v6e:2x2x1
jax: 0.10.0
libtpu: 0.0.40
codegen_flags: <defaults>
</compile_context>

<pallas_src>
import math
import jax
import jax.numpy as jnp
from jax.experimental import pallas as pl
from jax.experimental.pallas import tpu as pltpu

HIDDEN = 32
NUM_HEADS = 8
HEAD_DIM = HIDDEN // NUM_HEADS
NUM_LAYERS = 4
FF_DIM = HIDDEN * 4
LN_EPS = 1e-5
NEG_INF = -1e10


def _layer_norm(x, gamma, beta):
    mean = jnp.mean(x, axis=-1, keepdims=True)
    var = jnp.mean((x - mean) ** 2, axis=-1, keepdims=True)
    return (x - mean) * jax.lax.rsqrt(var + LN_EPS) * gamma + beta


def transformer_stack_kernel(x_ref, mask_att_ref, mask_pool_ref, pe_ref,
                             wqkv_ref, bqkv_ref, wo_ref, bo_ref,
                             w1_ref, b1_ref, w2_ref, b2_ref,
                             ln_ref, fln_ref, out_ref):
    BT, S, H = x_ref.shape
    M = BT * S
    num_layers = wqkv_ref.shape[0]
    inv_scale = jnp.float32(1.0 / math.sqrt(HEAD_DIM))

    # Additive attention bias, hoisted ONCE out of the head/layer loops.
    mask_att = mask_att_ref[...]                          # (BT, 1, S); 1.0 keep, 0.0 masked
    bias = jnp.where(mask_att == 0.0, jnp.float32(NEG_INF), jnp.float32(0.0))

    # positional encoding + (identity) dropout, then flatten tokens -> (BT*S, H)
    x = (x_ref[...] + pe_ref[...]).reshape(M, H)

    # TODO(synk): on v6e/v7x the matmul operands could be cast to bf16 (f32 accumulation) for
    # extra MXU/DMA headroom; kept f32 here since LayerNorm over 32 elements is precision-
    # sensitive and the kernel is issue-bound, not MXU-bound.
    for i in range(num_layers):               # static unroll; all weights resident in VMEM
        # ---- fused QKV projection over all tokens: (M, H) @ (H, 3H) ----
        qkv = jnp.dot(x, wqkv_ref[i], preferred_element_type=jnp.float32) + bqkv_ref[i]
        qkv3 = qkv.reshape(BT, S, 3 * H)
        q3 = qkv3[:, :, 0:H] * inv_scale      # fold 1/sqrt(head_dim) into Q once
        k3 = qkv3[:, :, H:2 * H]
        v3 = qkv3[:, :, 2 * H:3 * H]
        wo_i = wo_ref[i]                      # (H, H)

        # ---- multi-head attention: per-head softmax, output projection folded per head ----
        # (no lane concatenate, no 8 live head-context tensors)
        attn_out = jnp.zeros((M, H), jnp.float32)
        for h in range(NUM_HEADS):
            sl = slice(h * HEAD_DIM, (h + 1) * HEAD_DIM)
            e = jnp.einsum('bqd,bkd->bqk', q3[:, :, sl], k3[:, :, sl],
                           preferred_element_type=jnp.float32)        # (BT, S, S)
            e = e + bias                                              # hoisted mask bias
            e = e - jnp.max(e, axis=-1, keepdims=True)
            p = jnp.exp(e)
            attn = p / jnp.sum(p, axis=-1, keepdims=True)             # exact divide (parity)
            ctx_h = jnp.einsum('bqk,bkd->bqd', attn, v3[:, :, sl],
                               preferred_element_type=jnp.float32)    # (BT, S, HD)
            attn_out = attn_out + jnp.dot(ctx_h.reshape(M, HEAD_DIM), wo_i[sl, :],
                                          preferred_element_type=jnp.float32)
        attn_out = attn_out + bo_ref[i]

        ln_p = ln_ref[i]                      # (4, H): [gamma1, beta1, gamma2, beta2]
        x = _layer_norm(x + attn_out, ln_p[0:1, :], ln_p[1:2, :])

        # ---- feed-forward over all tokens ----
        h1 = jnp.maximum(
            jnp.dot(x, w1_ref[i], preferred_element_type=jnp.float32) + b1_ref[i], 0.0)
        ff = jnp.dot(h1, w2_ref[i], preferred_element_type=jnp.float32) + b2_ref[i]
        x = _layer_norm(x + ff, ln_p[2:3, :], ln_p[3:4, :])

    # ---- final LayerNorm + masked mean pooling (VPU multiply + sublane reduce) ----
    fln = fln_ref[...]                        # (2, H): [gamma, beta]
    xn = _layer_norm(x, fln[0:1, :], fln[1:2, :]).reshape(BT, S, H)
    mask_pool = mask_pool_ref[...]            # (BT, S, 1)
    summed = jnp.sum(xn * mask_pool, axis=1, keepdims=True)           # (BT, 1, H)
    denom = jnp.maximum(jnp.sum(mask_pool, axis=1, keepdims=True), 1e-9)
    out_ref[...] = summed / denom             # exact divide (parity with torch)


def positional_encoding(seq_len, d_model):
    pos = jnp.arange(seq_len, dtype=jnp.float32)[:, None]
    div = jnp.exp(jnp.arange(0, d_model, 2, dtype=jnp.float32)
                  * (-math.log(10000.0) / d_model))
    pe = jnp.zeros((seq_len, d_model), jnp.float32)
    pe = pe.at[:, 0::2].set(jnp.sin(pos * div))
    pe = pe.at[:, 1::2].set(jnp.cos(pos * div))
    return pe


def init_params(key, hidden=HIDDEN, ff_dim=FF_DIM, num_layers=NUM_LAYERS):
    """PyTorch-like init (uniform +-1/sqrt(fan_in)); weights stored pre-transposed (in, out),
    QKV fused to (H, 3H), all per-layer params stacked along a leading layer axis."""
    def linear(k, fan_in, fan_out):
        k1, k2 = jax.random.split(k)
        bound = 1.0 / math.sqrt(fan_in)
        w = jax.random.uniform(k1, (fan_in, fan_out), jnp.float32, -bound, bound)
        b = jax.random.uniform(k2, (1, fan_out), jnp.float32, -bound, bound)
        return w, b

    wqkv_l, bqkv_l, wo_l, bo_l = [], [], [], []
    w1_l, b1_l, w2_l, b2_l, ln_l = [], [], [], [], []
    for i in range(num_layers):
        ks = jax.random.split(jax.random.fold_in(key, i), 6)
        wq, bq = linear(ks[0], hidden, hidden)
        wk, bk = linear(ks[1], hidden, hidden)
        wv, bv = linear(ks[2], hidden, hidden)
        wo, bo = linear(ks[3], hidden, hidden)
        w1, b1 = linear(ks[4], hidden, ff_dim)
        w2, b2 = linear(ks[5], ff_dim, hidden)
        wqkv_l.append(jnp.concatenate([wq, wk, wv], axis=1))     # (H, 3H)
        bqkv_l.append(jnp.concatenate([bq, bk, bv], axis=1))     # (1, 3H)
        wo_l.append(wo); bo_l.append(bo)
        w1_l.append(w1); b1_l.append(b1)
        w2_l.append(w2); b2_l.append(b2)
        ln_l.append(jnp.stack([jnp.ones((hidden,), jnp.float32),
                               jnp.zeros((hidden,), jnp.float32),
                               jnp.ones((hidden,), jnp.float32),
                               jnp.zeros((hidden,), jnp.float32)], axis=0))  # (4, H)
    final_ln = jnp.stack([jnp.ones((hidden,), jnp.float32),
                          jnp.zeros((hidden,), jnp.float32)], axis=0)        # (2, H)
    return (jnp.stack(wqkv_l), jnp.stack(bqkv_l), jnp.stack(wo_l), jnp.stack(bo_l),
            jnp.stack(w1_l), jnp.stack(b1_l), jnp.stack(w2_l), jnp.stack(b2_l),
            jnp.stack(ln_l), final_ln)


def _pick_block_b(B, S):
    """Sequences per grid step.

    Single-TC chips (v5e/v6e): fewest grid steps that keep <= ~4096 tokens per step
    (amortizes the ~0.35 us/step pipeline overhead and fills the matmul M dimension).
    Multi-TC chips (v7x, 2 TensorCores/chip): additionally cap BT at ceil(B/2) so the
    'parallel' grid axis has >= 2 steps and both cores get work.
    """
    target_tokens = 4096
    bb = min(B, max(1, target_tokens // max(S, 1)))
    try:
        kind = jax.devices()[0].device_kind.lower()
    except Exception:
        kind = ""
    if "v7" in kind and B >= 2:
        bb = min(bb, -(-B // 2))              # ceil(B/2) -> at least 2 grid steps
    bb = max(1, bb)
    while B % bb != 0:
        bb -= 1
    return bb


def transformer1_forward(x, mask, params):
    """x: [B, S, H] float32, mask: [B, S] (1=keep, 0=pad) or None. Returns [B, H]."""
    (wqkv, bqkv, wo, bo, w1, b1, w2, b2, ln, fln) = params
    B, S, H = x.shape
    if mask is None:
        mask = jnp.ones((B, S), jnp.float32)
    maskf = mask.astype(jnp.float32)
    mask_att = maskf.reshape(B, 1, S)         # key-dim layout for attention bias
    mask_pool = maskf.reshape(B, S, 1)        # token-dim layout for pooling
    pe = positional_encoding(S, H)

    BT = _pick_block_b(B, S)

    def full(a):
        return pl.BlockSpec(a.shape, lambda b, nd=a.ndim: (0,) * nd)

    out = pl.pallas_call(
        transformer_stack_kernel,
        out_shape=jax.ShapeDtypeStruct((B, 1, H), jnp.float32),
        grid_spec=pltpu.PrefetchScalarGridSpec(
            num_scalar_prefetch=0,
            grid=(B // BT,),
            in_specs=[pl.BlockSpec((BT, S, H), lambda b: (b, 0, 0)),
                      pl.BlockSpec((BT, 1, S), lambda b: (b, 0, 0)),
                      pl.BlockSpec((BT, S, 1), lambda b: (b, 0, 0)),
                      full(pe),
                      full(wqkv), full(bqkv), full(wo), full(bo),
                      full(w1), full(b1), full(w2), full(b2),
                      full(ln), full(fln)],
            out_specs=pl.BlockSpec((BT, 1, H), lambda b: (b, 0, 0))),
        compiler_params=pltpu.CompilerParams(
            dimension_semantics=("parallel",),
            vmem_limit_bytes=48 * 1024 * 1024),
    )(x, mask_att, mask_pool, pe, wqkv, bqkv, wo, bo, w1, b1, w2, b2, ln, fln)
    return out[:, 0, :]


if __name__ == "__main__":
    key = jax.random.PRNGKey(0)
    kx, kp = jax.random.split(key)
    B, S, H = 2, 8, HIDDEN
    x = jax.random.normal(kx, (B, S, H), jnp.float32)
    params = init_params(kp)

    # mask=None path (plain mean pooling, no attention masking)
    out = jax.block_until_ready(transformer1_forward(x, None, params))
    assert out.shape == (B, H)
    assert bool(jnp.all(jnp.isfinite(out)))

    # masked path
    mask = jnp.array([[1, 1, 1, 1, 1, 0, 0, 0],
                      [1, 1, 1, 1, 1, 1, 1, 1]], jnp.float32)
    out_m = jax.block_until_ready(transformer1_forward(x, mask, params))
    assert out_m.shape == (B, H)
    assert bool(jnp.all(jnp.isfinite(out_m)))

    print("KERNEL_OK")
</pallas_src>

<mosaic_0001>
module attributes {stable_mosaic.version = 11 : i64} {
  func.func @transformer_stack_kernel(%arg0: i32, %arg1: memref<2x8x32xf32, #tpu.memory_space<vmem>>, %arg2: memref<2x1x8xf32, #tpu.memory_space<vmem>>, %arg3: memref<2x8x1xf32, #tpu.memory_space<vmem>>, %arg4: memref<8x32xf32, #tpu.memory_space<vmem>>, %arg5: memref<4x32x96xf32, #tpu.memory_space<vmem>>, %arg6: memref<4x1x96xf32, #tpu.memory_space<vmem>>, %arg7: memref<4x32x32xf32, #tpu.memory_space<vmem>>, %arg8: memref<4x1x32xf32, #tpu.memory_space<vmem>>, %arg9: memref<4x32x128xf32, #tpu.memory_space<vmem>>, %arg10: memref<4x1x128xf32, #tpu.memory_space<vmem>>, %arg11: memref<4x128x32xf32, #tpu.memory_space<vmem>>, %arg12: memref<4x1x32xf32, #tpu.memory_space<vmem>>, %arg13: memref<4x4x32xf32, #tpu.memory_space<vmem>>, %arg14: memref<2x32xf32, #tpu.memory_space<vmem>>, %arg15: memref<2x1x32xf32, #tpu.memory_space<vmem>>) attributes {dimension_semantics = [#tpu.dimension_semantics<parallel>], iteration_bounds = array<i64: 1>, scalar_prefetch = 0 : i64, scratch_operands = 0 : i64, tpu.core_type = #tpu.core_type<tc>, window_params = [{transform_indices = @transform_0, window_bounds = array<i64: 2, 8, 32>}, {transform_indices = @transform_1, window_bounds = array<i64: 2, 1, 8>}, {transform_indices = @transform_2, window_bounds = array<i64: 2, 8, 1>}, {pipeline_mode = #tpu.pipeline_mode<synchronous>, transform_indices = @transform_3, window_bounds = array<i64: 8, 32>}, {pipeline_mode = #tpu.pipeline_mode<synchronous>, transform_indices = @transform_4, window_bounds = array<i64: 4, 32, 96>}, {pipeline_mode = #tpu.pipeline_mode<synchronous>, transform_indices = @transform_5, window_bounds = array<i64: 4, 1, 96>}, {pipeline_mode = #tpu.pipeline_mode<synchronous>, transform_indices = @transform_6, window_bounds = array<i64: 4, 32, 32>}, {pipeline_mode = #tpu.pipeline_mode<synchronous>, transform_indices = @transform_7, window_bounds = array<i64: 4, 1, 32>}, {pipeline_mode = #tpu.pipeline_mode<synchronous>, transform_indices = @transform_8, window_bounds = array<i64: 4, 32, 128>}, {pipeline_mode = #tpu.pipeline_mode<synchronous>, transform_indices = @transform_9, window_bounds = array<i64: 4, 1, 128>}, {pipeline_mode = #tpu.pipeline_mode<synchronous>, transform_indices = @transform_10, window_bounds = array<i64: 4, 128, 32>}, {pipeline_mode = #tpu.pipeline_mode<synchronous>, transform_indices = @transform_11, window_bounds = array<i64: 4, 1, 32>}, {pipeline_mode = #tpu.pipeline_mode<synchronous>, transform_indices = @transform_12, window_bounds = array<i64: 4, 4, 32>}, {pipeline_mode = #tpu.pipeline_mode<synchronous>, transform_indices = @transform_13, window_bounds = array<i64: 2, 32>}, {transform_indices = @transform_14, window_bounds = array<i64: 2, 1, 32>}]} {
    %c0 = arith.constant 0 : index
    %c0_0 = arith.constant 0 : index
    %c0_1 = arith.constant 0 : index
    %0 = vector.load %arg2[%c0, %c0_0, %c0_1] : memref<2x1x8xf32, #tpu.memory_space<vmem>>, vector<2x1x8xf32>
    %cst = arith.constant 0.000000e+00 : f32
    %1 = vector.broadcast %cst : f32 to vector<2x1x8xf32>
    %2 = arith.cmpf oeq, %0, %1 : vector<2x1x8xf32>
    %cst_2 = arith.constant -1.000000e+10 : f32
    %cst_3 = arith.constant 0.000000e+00 : f32
    %3 = vector.broadcast %cst_2 : f32 to vector<2x1x8xf32>
    %4 = vector.broadcast %cst_3 : f32 to vector<2x1x8xf32>
    %5 = arith.select %2, %3, %4 : vector<2x1x8xi1>, vector<2x1x8xf32>
    %c0_4 = arith.constant 0 : index
    %c0_5 = arith.constant 0 : index
    %c0_6 = arith.constant 0 : index
    %6 = vector.load %arg1[%c0_4, %c0_5, %c0_6] : memref<2x8x32xf32, #tpu.memory_space<vmem>>, vector<2x8x32xf32>
    %c0_7 = arith.constant 0 : index
    %c0_8 = arith.constant 0 : index
    %7 = vector.load %arg4[%c0_7, %c0_8] : memref<8x32xf32, #tpu.memory_space<vmem>>, vector<8x32xf32>
    %8 = vector.shape_cast %7 : vector<8x32xf32> to vector<1x8x32xf32>
    %9 = vector.broadcast %8 : vector<1x8x32xf32> to vector<2x8x32xf32>
    %10 = arith.addf %6, %9 : vector<2x8x32xf32>
    %11 = vector.shape_cast %10 : vector<2x8x32xf32> to vector<16x32xf32>
    %c0_9 = arith.constant 0 : index
    %c0_10 = arith.constant 0 : index
    %c0_11 = arith.constant 0 : index
    %12 = vector.load %arg5[%c0_9, %c0_10, %c0_11] : memref<4x32x96xf32, #tpu.memory_space<vmem>>, vector<1x32x96xf32>
    %13 = vector.shape_cast %12 : vector<1x32x96xf32> to vector<32x96xf32>
    %cst_12 = arith.constant dense<0.000000e+00> : vector<16x96xf32>
    %14 = tpu.matmul %11, %13, %cst_12 {dimension_numbers = #tpu.dot_dimension_numbers<[1], [0], [0], [1], [0, 0, 1, 1], [], []>} : vector<16x32xf32>, vector<32x96xf32>, vector<16x96xf32> -> vector<16x96xf32>
    %c0_13 = arith.constant 0 : index
    %c0_14 = arith.constant 0 : index
    %c0_15 = arith.constant 0 : index
    %15 = vector.load %arg6[%c0_13, %c0_14, %c0_15] : memref<4x1x96xf32, #tpu.memory_space<vmem>>, vector<1x1x96xf32>
    %16 = vector.shape_cast %15 : vector<1x1x96xf32> to vector<1x96xf32>
    %17 = vector.broadcast %16 : vector<1x96xf32> to vector<16x96xf32>
    %18 = arith.addf %14, %17 : vector<16x96xf32>
    %19 = vector.shape_cast %18 : vector<16x96xf32> to vector<2x8x96xf32>
    %20 = vector.extract_strided_slice %19 {offsets = [0, 0, 0], sizes = [2, 8, 32], strides = [1, 1, 1]} : vector<2x8x96xf32> to vector<2x8x32xf32>
    %cst_16 = arith.constant 5.000000e-01 : f32
    %21 = vector.broadcast %cst_16 : f32 to vector<2x8x32xf32>
    %22 = arith.mulf %20, %21 : vector<2x8x32xf32>
    %23 = vector.extract_strided_slice %19 {offsets = [0, 0, 32], sizes = [2, 8, 32], strides = [1, 1, 1]} : vector<2x8x96xf32> to vector<2x8x32xf32>
    %24 = vector.extract_strided_slice %19 {offsets = [0, 0, 64], sizes = [2, 8, 32], strides = [1, 1, 1]} : vector<2x8x96xf32> to vector<2x8x32xf32>
    %c0_17 = arith.constant 0 : index
    %c0_18 = arith.constant 0 : index
    %c0_19 = arith.constant 0 : index
    %25 = vector.load %arg7[%c0_17, %c0_18, %c0_19] : memref<4x32x32xf32, #tpu.memory_space<vmem>>, vector<1x32x32xf32>
    %26 = vector.shape_cast %25 : vector<1x32x32xf32> to vector<32x32xf32>
    %cst_20 = arith.constant 0.000000e+00 : f32
    %27 = vector.broadcast %cst_20 : f32 to vector<16x32xf32>
    %28 = vector.extract_strided_slice %22 {offsets = [0, 0, 0], sizes = [2, 8, 4], strides = [1, 1, 1]} : vector<2x8x32xf32> to vector<2x8x4xf32>
    %29 = vector.extract_strided_slice %23 {offsets = [0, 0, 0], sizes = [2, 8, 4], strides = [1, 1, 1]} : vector<2x8x32xf32> to vector<2x8x4xf32>
    "tpu.trace_start"() <{level = 10 : i32, message = "bqd,bkd->bqk"}> : () -> ()
    %cst_21 = arith.constant dense<0.000000e+00> : vector<2x8x8xf32>
    %30 = tpu.matmul %28, %29, %cst_21 {dimension_numbers = #tpu.dot_dimension_numbers<[2], [2], [1], [1], [0, 0, 0, 1, 1, 1], [0], [0]>} : vector<2x8x4xf32>, vector<2x8x4xf32>, vector<2x8x8xf32> -> vector<2x8x8xf32>
    "tpu.trace_stop"() : () -> ()
    %31 = vector.broadcast %5 : vector<2x1x8xf32> to vector<2x8x8xf32>
    %32 = arith.addf %30, %31 : vector<2x8x8xf32>
    %cst_22 = arith.constant dense<0xFF800000> : vector<2x8xf32>
    %33 = vector.multi_reduction <maximumf>, %32, %cst_22 [2] : vector<2x8x8xf32> to vector<2x8xf32>
    %34 = vector.shape_cast %33 : vector<2x8xf32> to vector<2x8x1xf32>
    %35 = vector.broadcast %34 : vector<2x8x1xf32> to vector<2x8x8xf32>
    %36 = arith.subf %32, %35 : vector<2x8x8xf32>
    %37 = math.exp %36 : vector<2x8x8xf32>
    %cst_23 = arith.constant dense<0.000000e+00> : vector<2x8xf32>
    %38 = vector.multi_reduction <add>, %37, %cst_23 [2] : vector<2x8x8xf32> to vector<2x8xf32>
    %39 = vector.shape_cast %38 : vector<2x8xf32> to vector<2x8x1xf32>
    %40 = vector.broadcast %39 : vector<2x8x1xf32> to vector<2x8x8xf32>
    %41 = arith.divf %37, %40 : vector<2x8x8xf32>
    %42 = vector.extract_strided_slice %24 {offsets = [0, 0, 0], sizes = [2, 8, 4], strides = [1, 1, 1]} : vector<2x8x32xf32> to vector<2x8x4xf32>
    "tpu.trace_start"() <{level = 10 : i32, message = "bqk,bkd->bqd"}> : () -> ()
    %cst_24 = arith.constant dense<0.000000e+00> : vector<2x8x4xf32>
    %43 = tpu.matmul %41, %42, %cst_24 {dimension_numbers = #tpu.dot_dimension_numbers<[2], [1], [1], [2], [0, 0, 0, 1, 1, 2], [0], [0]>} : vector<2x8x8xf32>, vector<2x8x4xf32>, vector<2x8x4xf32> -> vector<2x8x4xf32>
    "tpu.trace_stop"() : () -> ()
    %44 = vector.shape_cast %43 : vector<2x8x4xf32> to vector<16x4xf32>
    %45 = vector.extract_strided_slice %26 {offsets = [0, 0], sizes = [4, 32], strides = [1, 1]} : vector<32x32xf32> to vector<4x32xf32>
    %cst_25 = arith.constant dense<0.000000e+00> : vector<16x32xf32>
    %46 = tpu.matmul %44, %45, %cst_25 {dimension_numbers = #tpu.dot_dimension_numbers<[1], [0], [0], [1], [0, 0, 1, 1], [], []>} : vector<16x4xf32>, vector<4x32xf32>, vector<16x32xf32> -> vector<16x32xf32>
    %47 = arith.addf %27, %46 : vector<16x32xf32>
    %48 = vector.extract_strided_slice %22 {offsets = [0, 0, 4], sizes = [2, 8, 4], strides = [1, 1, 1]} : vector<2x8x32xf32> to vector<2x8x4xf32>
    %49 = vector.extract_strided_slice %23 {offsets = [0, 0, 4], sizes = [2, 8, 4], strides = [1, 1, 1]} : vector<2x8x32xf32> to vector<2x8x4xf32>
    "tpu.trace_start"() <{level = 10 : i32, message = "bqd,bkd->bqk"}> : () -> ()
    %cst_26 = arith.constant dense<0.000000e+00> : vector<2x8x8xf32>
    %50 = tpu.matmul %48, %49, %cst_26 {dimension_numbers = #tpu.dot_dimension_numbers<[2], [2], [1], [1], [0, 0, 0, 1, 1, 1], [0], [0]>} : vector<2x8x4xf32>, vector<2x8x4xf32>, vector<2x8x8xf32> -> vector<2x8x8xf32>
    "tpu.trace_stop"() : () -> ()
    %51 = vector.broadcast %5 : vector<2x1x8xf32> to vector<2x8x8xf32>
    %52 = arith.addf %50, %51 : vector<2x8x8xf32>
    %cst_27 = arith.constant dense<0xFF800000> : vector<2x8xf32>
    %53 = vector.multi_reduction <maximumf>, %52, %cst_27 [2] : vector<2x8x8xf32> to vector<2x8xf32>
    %54 = vector.shape_cast %53 : vector<2x8xf32> to vector<2x8x1xf32>
    %55 = vector.broadcast %54 : vector<2x8x1xf32> to vector<2x8x8xf32>
    %56 = arith.subf %52, %55 : vector<2x8x8xf32>
    %57 = math.exp %56 : vector<2x8x8xf32>
    %cst_28 = arith.constant dense<0.000000e+00> : vector<2x8xf32>
    %58 = vector.multi_reduction <add>, %57, %cst_28 [2] : vector<2x8x8xf32> to vector<2x8xf32>
    %59 = vector.shape_cast %58 : vector<2x8xf32> to vector<2x8x1xf32>
    %60 = vector.broadcast %59 : vector<2x8x1xf32> to vector<2x8x8xf32>
    %61 = arith.divf %57, %60 : vector<2x8x8xf32>
    %62 = vector.extract_strided_slice %24 {offsets = [0, 0, 4], sizes = [2, 8, 4], strides = [1, 1, 1]} : vector<2x8x32xf32> to vector<2x8x4xf32>
    "tpu.trace_start"() <{level = 10 : i32, message = "bqk,bkd->bqd"}> : () -> ()
    %cst_29 = arith.constant dense<0.000000e+00> : vector<2x8x4xf32>
    %63 = tpu.matmul %61, %62, %cst_29 {dimension_numbers = #tpu.dot_dimension_numbers<[2], [1], [1], [2], [0, 0, 0, 1, 1, 2], [0], [0]>} : vector<2x8x8xf32>, vector<2x8x4xf32>, vector<2x8x4xf32> -> vector<2x8x4xf32>
    "tpu.trace_stop"() : () -> ()
    %64 = vector.shape_cast %63 : vector<2x8x4xf32> to vector<16x4xf32>
    %65 = vector.extract_strided_slice %26 {offsets = [4, 0], sizes = [4, 32], strides = [1, 1]} : vector<32x32xf32> to vector<4x32xf32>
    %cst_30 = arith.constant dense<0.000000e+00> : vector<16x32xf32>
    %66 = tpu.matmul %64, %65, %cst_30 {dimension_numbers = #tpu.dot_dimension_numbers<[1], [0], [0], [1], [0, 0, 1, 1], [], []>} : vector<16x4xf32>, vector<4x32xf32>, vector<16x32xf32> -> vector<16x32xf32>
    %67 = arith.addf %47, %66 : vector<16x32xf32>
    %68 = vector.extract_strided_slice %22 {offsets = [0, 0, 8], sizes = [2, 8, 4], strides = [1, 1, 1]} : vector<2x8x32xf32> to vector<2x8x4xf32>
    %69 = vector.extract_strided_slice %23 {offsets = [0, 0, 8], sizes = [2, 8, 4], strides = [1, 1, 1]} : vector<2x8x32xf32> to vector<2x8x4xf32>
    "tpu.trace_start"() <{level = 10 : i32, message = "bqd,bkd->bqk"}> : () -> ()
    %cst_31 = arith.constant dense<0.000000e+00> : vector<2x8x8xf32>
    %70 = tpu.matmul %68, %69, %cst_31 {dimension_numbers = #tpu.dot_dimension_numbers<[2], [2], [1], [1], [0, 0, 0, 1, 1, 1], [0], [0]>} : vector<2x8x4xf32>, vector<2x8x4xf32>, vector<2x8x8xf32> -> vector<2x8x8xf32>
    "tpu.trace_stop"() : () -> ()
    %71 = vector.broadcast %5 : vector<2x1x8xf32> to vector<2x8x8xf32>
    %72 = arith.addf %70, %71 : vector<2x8x8xf32>
    %cst_32 = arith.constant dense<0xFF800000> : vector<2x8xf32>
    %73 = vector.multi_reduction <maximumf>, %72, %cst_32 [2] : vector<2x8x8xf32> to vector<2x8xf32>
    %74 = vector.shape_cast %73 : vector<2x8xf32> to vector<2x8x1xf32>
    %75 = vector.broadcast %74 : vector<2x8x1xf32> to vector<2x8x8xf32>
    %76 = arith.subf %72, %75 : vector<2x8x8xf32>
    %77 = math.exp %76 : vector<2x8x8xf32>
    %cst_33 = arith.constant dense<0.000000e+00> : vector<2x8xf32>
    %78 = vector.multi_reduction <add>, %77, %cst_33 [2] : vector<2x8x8xf32> to vector<2x8xf32>
    %79 = vector.shape_cast %78 : vector<2x8xf32> to vector<2x8x1xf32>
    %80 = vector.broadcast %79 : vector<2x8x1xf32> to vector<2x8x8xf32>
    %81 = arith.divf %77, %80 : vector<2x8x8xf32>
    %82 = vector.extract_strided_slice %24 {offsets = [0, 0, 8], sizes = [2, 8, 4], strides = [1, 1, 1]} : vector<2x8x32xf32> to vector<2x8x4xf32>
    "tpu.trace_start"() <{level = 10 : i32, message = "bqk,bkd->bqd"}> : () -> ()
    %cst_34 = arith.constant dense<0.000000e+00> : vector<2x8x4xf32>
    %83 = tpu.matmul %81, %82, %cst_34 {dimension_numbers = #tpu.dot_dimension_numbers<[2], [1], [1], [2], [0, 0, 0, 1, 1, 2], [0], [0]>} : vector<2x8x8xf32>, vector<2x8x4xf32>, vector<2x8x4xf32> -> vector<2x8x4xf32>
    "tpu.trace_stop"() : () -> ()
    %84 = vector.shape_cast %83 : vector<2x8x4xf32> to vector<16x4xf32>
    %85 = vector.extract_strided_slice %26 {offsets = [8, 0], sizes = [4, 32], strides = [1, 1]} : vector<32x32xf32> to vector<4x32xf32>
    %cst_35 = arith.constant dense<0.000000e+00> : vector<16x32xf32>
    %86 = tpu.matmul %84, %85, %cst_35 {dimension_numbers = #tpu.dot_dimension_numbers<[1], [0], [0], [1], [0, 0, 1, 1], [], []>} : vector<16x4xf32>, vector<4x32xf32>, vector<16x32xf32> -> vector<16x32xf32>
    %87 = arith.addf %67, %86 : vector<16x32xf32>
    %88 = vector.extract_strided_slice %22 {offsets = [0, 0, 12], sizes = [2, 8, 4], strides = [1, 1, 1]} : vector<2x8x32xf32> to vector<2x8x4xf32>
    %89 = vector.extract_strided_slice %23 {offsets = [0, 0, 12], sizes = [2, 8, 4], strides = [1, 1, 1]} : vector<2x8x32xf32> to vector<2x8x4xf32>
    "tpu.trace_start"() <{level = 10 : i32, message = "bqd,bkd->bqk"}> : () -> ()
    %cst_36 = arith.constant dense<0.000000e+00> : vector<2x8x8xf32>
    %90 = tpu.matmul %88, %89, %cst_36 {dimension_numbers = #tpu.dot_dimension_numbers<[2], [2], [1], [1], [0, 0, 0, 1, 1, 1], [0], [0]>} : vector<2x8x4xf32>, vector<2x8x4xf32>, vector<2x8x8xf32> -> vector<2x8x8xf32>
    "tpu.trace_stop"() : () -> ()
    %91 = vector.broadcast %5 : vector<2x1x8xf32> to vector<2x8x8xf32>
    %92 = arith.addf %90, %91 : vector<2x8x8xf32>
    %cst_37 = arith.constant dense<0xFF800000> : vector<2x8xf32>
    %93 = vector.multi_reduction <maximumf>, %92, %cst_37 [2] : vector<2x8x8xf32> to vector<2x8xf32>
    %94 = vector.shape_cast %93 : vector<2x8xf32> to vector<2x8x1xf32>
    %95 = vector.broadcast %94 : vector<2x8x1xf32> to vector<2x8x8xf32>
    %96 = arith.subf %92, %95 : vector<2x8x8xf32>
    %97 = math.exp %96 : vector<2x8x8xf32>
    %cst_38 = arith.constant dense<0.000000e+00> : vector<2x8xf32>
    %98 = vector.multi_reduction <add>, %97, %cst_38 [2] : vector<2x8x8xf32> to vector<2x8xf32>
    %99 = vector.shape_cast %98 : vector<2x8xf32> to vector<2x8x1xf32>
    %100 = vector.broadcast %99 : vector<2x8x1xf32> to vector<2x8x8xf32>
    %101 = arith.divf %97, %100 : vector<2x8x8xf32>
    %102 = vector.extract_strided_slice %24 {offsets = [0, 0, 12], sizes = [2, 8, 4], strides = [1, 1, 1]} : vector<2x8x32xf32> to vector<2x8x4xf32>
    "tpu.trace_start"() <{level = 10 : i32, message = "bqk,bkd->bqd"}> : () -> ()
    %cst_39 = arith.constant dense<0.000000e+00> : vector<2x8x4xf32>
    %103 = tpu.matmul %101, %102, %cst_39 {dimension_numbers = #tpu.dot_dimension_numbers<[2], [1], [1], [2], [0, 0, 0, 1, 1, 2], [0], [0]>} : vector<2x8x8xf32>, vector<2x8x4xf32>, vector<2x8x4xf32> -> vector<2x8x4xf32>
    "tpu.trace_stop"() : () -> ()
    %104 = vector.shape_cast %103 : vector<2x8x4xf32> to vector<16x4xf32>
    %105 = vector.extract_strided_slice %26 {offsets = [12, 0], sizes = [4, 32], strides = [1, 1]} : vector<32x32xf32> to vector<4x32xf32>
    %cst_40 = arith.constant dense<0.000000e+00> : vector<16x32xf32>
    %106 = tpu.matmul %104, %105, %cst_40 {dimension_numbers = #tpu.dot_dimension_numbers<[1], [0], [0], [1], [0, 0, 1, 1], [], []>} : vector<16x4xf32>, vector<4x32xf32>, vector<16x32xf32> -> vector<16x32xf32>
    %107 = arith.addf %87, %106 : vector<16x32xf32>
    %108 = vector.extract_strided_slice %22 {offsets = [0, 0, 16], sizes = [2, 8, 4], strides = [1, 1, 1]} : vector<2x8x32xf32> to vector<2x8x4xf32>
    %109 = vector.extract_strided_slice %23 {offsets = [0, 0, 16], sizes = [2, 8, 4], strides = [1, 1, 1]} : vector<2x8x32xf32> to vector<2x8x4xf32>
    "tpu.trace_start"() <{level = 10 : i32, message = "bqd,bkd->bqk"}> : () -> ()
    %cst_41 = arith.constant dense<0.000000e+00> : vector<2x8x8xf32>
    %110 = tpu.matmul %108, %109, %cst_41 {dimension_numbers = #tpu.dot_dimension_numbers<[2], [2], [1], [1], [0, 0, 0, 1, 1, 1], [0], [0]>} : vector<2x8x4xf32>, vector<2x8x4xf32>, vector<2x8x8xf32> -> vector<2x8x8xf32>
    "tpu.trace_stop"() : () -> ()
    %111 = vector.broadcast %5 : vector<2x1x8xf32> to vector<2x8x8xf32>
    %112 = arith.addf %110, %111 : vector<2x8x8xf32>
    %cst_42 = arith.constant dense<0xFF800000> : vector<2x8xf32>
    %113 = vector.multi_reduction <maximumf>, %112, %cst_42 [2] : vector<2x8x8xf32> to vector<2x8xf32>
    %114 = vector.shape_cast %113 : vector<2x8xf32> to vector<2x8x1xf32>
    %115 = vector.broadcast %114 : vector<2x8x1xf32> to vector<2x8x8xf32>
    %116 = arith.subf %112, %115 : vector<2x8x8xf32>
    %117 = math.exp %116 : vector<2x8x8xf32>
    %cst_43 = arith.constant dense<0.000000e+00> : vector<2x8xf32>
    %118 = vector.multi_reduction <add>, %117, %cst_43 [2] : vector<2x8x8xf32> to vector<2x8xf32>
    %119 = vector.shape_cast %118 : vector<2x8xf32> to vector<2x8x1xf32>
    %120 = vector.broadcast %119 : vector<2x8x1xf32> to vector<2x8x8xf32>
    %121 = arith.divf %117, %120 : vector<2x8x8xf32>
    %122 = vector.extract_strided_slice %24 {offsets = [0, 0, 16], sizes = [2, 8, 4], strides = [1, 1, 1]} : vector<2x8x32xf32> to vector<2x8x4xf32>
    "tpu.trace_start"() <{level = 10 : i32, message = "bqk,bkd->bqd"}> : () -> ()
    %cst_44 = arith.constant dense<0.000000e+00> : vector<2x8x4xf32>
    %123 = tpu.matmul %121, %122, %cst_44 {dimension_numbers = #tpu.dot_dimension_numbers<[2], [1], [1], [2], [0, 0, 0, 1, 1, 2], [0], [0]>} : vector<2x8x8xf32>, vector<2x8x4xf32>, vector<2x8x4xf32> -> vector<2x8x4xf32>
    "tpu.trace_stop"() : () -> ()
    %124 = vector.shape_cast %123 : vector<2x8x4xf32> to vector<16x4xf32>
    %125 = vector.extract_strided_slice %26 {offsets = [16, 0], sizes = [4, 32], strides = [1, 1]} : vector<32x32xf32> to vector<4x32xf32>
    %cst_45 = arith.constant dense<0.000000e+00> : vector<16x32xf32>
    %126 = tpu.matmul %124, %125, %cst_45 {dimension_numbers = #tpu.dot_dimension_numbers<[1], [0], [0], [1], [0, 0, 1, 1], [], []>} : vector<16x4xf32>, vector<4x32xf32>, vector<16x32xf32> -> vector<16x32xf32>
    %127 = arith.addf %107, %126 : vector<16x32xf32>
    %128 = vector.extract_strided_slice %22 {offsets = [0, 0, 20], sizes = [2, 8, 4], strides = [1, 1, 1]} : vector<2x8x32xf32> to vector<2x8x4xf32>
    %129 = vector.extract_strided_slice %23 {offsets = [0, 0, 20], sizes = [2, 8, 4], strides = [1, 1, 1]} : vector<2x8x32xf32> to vector<2x8x4xf32>
    "tpu.trace_start"() <{level = 10 : i32, message = "bqd,bkd->bqk"}> : () -> ()
    %cst_46 = arith.constant dense<0.000000e+00> : vector<2x8x8xf32>
    %130 = tpu.matmul %128, %129, %cst_46 {dimension_numbers = #tpu.dot_dimension_numbers<[2], [2], [1], [1], [0, 0, 0, 1, 1, 1], [0], [0]>} : vector<2x8x4xf32>, vector<2x8x4xf32>, vector<2x8x8xf32> -> vector<2x8x8xf32>
    "tpu.trace_stop"() : () -> ()
    %131 = vector.broadcast %5 : vector<2x1x8xf32> to vector<2x8x8xf32>
    %132 = arith.addf %130, %131 : vector<2x8x8xf32>
    %cst_47 = arith.constant dense<0xFF800000> : vector<2x8xf32>
    %133 = vector.multi_reduction <maximumf>, %132, %cst_47 [2] : vector<2x8x8xf32> to vector<2x8xf32>
    %134 = vector.shape_cast %133 : vector<2x8xf32> to vector<2x8x1xf32>
    %135 = vector.broadcast %134 : vector<2x8x1xf32> to vector<2x8x8xf32>
    %136 = arith.subf %132, %135 : vector<2x8x8xf32>
    %137 = math.exp %136 : vector<2x8x8xf32>
    %cst_48 = arith.constant dense<0.000000e+00> : vector<2x8xf32>
    %138 = vector.multi_reduction <add>, %137, %cst_48 [2] : vector<2x8x8xf32> to vector<2x8xf32>
    %139 = vector.shape_cast %138 : vector<2x8xf32> to vector<2x8x1xf32>
    %140 = vector.broadcast %139 : vector<2x8x1xf32> to vector<2x8x8xf32>
    %141 = arith.divf %137, %140 : vector<2x8x8xf32>
    %142 = vector.extract_strided_slice %24 {offsets = [0, 0, 20], sizes = [2, 8, 4], strides = [1, 1, 1]} : vector<2x8x32xf32> to vector<2x8x4xf32>
    "tpu.trace_start"() <{level = 10 : i32, message = "bqk,bkd->bqd"}> : () -> ()
    %cst_49 = arith.constant dense<0.000000e+00> : vector<2x8x4xf32>
    %143 = tpu.matmul %141, %142, %cst_49 {dimension_numbers = #tpu.dot_dimension_numbers<[2], [1], [1], [2], [0, 0, 0, 1, 1, 2], [0], [0]>} : vector<2x8x8xf32>, vector<2x8x4xf32>, vector<2x8x4xf32> -> vector<2x8x4xf32>
    "tpu.trace_stop"() : () -> ()
    %144 = vector.shape_cast %143 : vector<2x8x4xf32> to vector<16x4xf32>
    %145 = vector.extract_strided_slice %26 {offsets = [20, 0], sizes = [4, 32], strides = [1, 1]} : vector<32x32xf32> to vector<4x32xf32>
    %cst_50 = arith.constant dense<0.000000e+00> : vector<16x32xf32>
    %146 = tpu.matmul %144, %145, %cst_50 {dimension_numbers = #tpu.dot_dimension_numbers<[1], [0], [0], [1], [0, 0, 1, 1], [], []>} : vector<16x4xf32>, vector<4x32xf32>, vector<16x32xf32> -> vector<16x32xf32>
    %147 = arith.addf %127, %146 : vector<16x32xf32>
    %148 = vector.extract_strided_slice %22 {offsets = [0, 0, 24], sizes = [2, 8, 4], strides = [1, 1, 1]} : vector<2x8x32xf32> to vector<2x8x4xf32>
    %149 = vector.extract_strided_slice %23 {offsets = [0, 0, 24], sizes = [2, 8, 4], strides = [1, 1, 1]} : vector<2x8x32xf32> to vector<2x8x4xf32>
    "tpu.trace_start"() <{level = 10 : i32, message = "bqd,bkd->bqk"}> : () -> ()
    %cst_51 = arith.constant dense<0.000000e+00> : vector<2x8x8xf32>
    %150 = tpu.matmul %148, %149, %cst_51 {dimension_numbers = #tpu.dot_dimension_numbers<[2], [2], [1], [1], [0, 0, 0, 1, 1, 1], [0], [0]>} : vector<2x8x4xf32>, vector<2x8x4xf32>, vector<2x8x8xf32> -> vector<2x8x8xf32>
    "tpu.trace_stop"() : () -> ()
    %151 = vector.broadcast %5 : vector<2x1x8xf32> to vector<2x8x8xf32>
    %152 = arith.addf %150, %151 : vector<2x8x8xf32>
    %cst_52 = arith.constant dense<0xFF800000> : vector<2x8xf32>
    %153 = vector.multi_reduction <maximumf>, %152, %cst_52 [2] : vector<2x8x8xf32> to vector<2x8xf32>
    %154 = vector.shape_cast %153 : vector<2x8xf32> to vector<2x8x1xf32>
    %155 = vector.broadcast %154 : vector<2x8x1xf32> to vector<2x8x8xf32>
    %156 = arith.subf %152, %155 : vector<2x8x8xf32>
    %157 = math.exp %156 : vector<2x8x8xf32>
    %cst_53 = arith.constant dense<0.000000e+00> : vector<2x8xf32>
    %158 = vector.multi_reduction <add>, %157, %cst_53 [2] : vector<2x8x8xf32> to vector<2x8xf32>
    %159 = vector.shape_cast %158 : vector<2x8xf32> to vector<2x8x1xf32>
    %160 = vector.broadcast %159 : vector<2x8x1xf32> to vector<2x8x8xf32>
    %161 = arith.divf %157, %160 : vector<2x8x8xf32>
    %162 = vector.extract_strided_slice %24 {offsets = [0, 0, 24], sizes = [2, 8, 4], strides = [1, 1, 1]} : vector<2x8x32xf32> to vector<2x8x4xf32>
    "tpu.trace_start"() <{level = 10 : i32, message = "bqk,bkd->bqd"}> : () -> ()
    %cst_54 = arith.constant dense<0.000000e+00> : vector<2x8x4xf32>
    %163 = tpu.matmul %161, %162, %cst_54 {dimension_numbers = #tpu.dot_dimension_numbers<[2], [1], [1], [2], [0, 0, 0, 1, 1, 2], [0], [0]>} : vector<2x8x8xf32>, vector<2x8x4xf32>, vector<2x8x4xf32> -> vector<2x8x4xf32>
    "tpu.trace_stop"() : () -> ()
    %164 = vector.shape_cast %163 : vector<2x8x4xf32> to vector<16x4xf32>
    %165 = vector.extract_strided_slice %26 {offsets = [24, 0], sizes = [4, 32], strides = [1, 1]} : vector<32x32xf32> to vector<4x32xf32>
    %cst_55 = arith.constant dense<0.000000e+00> : vector<16x32xf32>
    %166 = tpu.matmul %164, %165, %cst_55 {dimension_numbers = #tpu.dot_dimension_numbers<[1], [0], [0], [1], [0, 0, 1, 1], [], []>} : vector<16x4xf32>, vector<4x32xf32>, vector<16x32xf32> -> vector<16x32xf32>
    %167 = arith.addf %147, %166 : vector<16x32xf32>
    %168 = vector.extract_strided_slice %22 {offsets = [0, 0, 28], sizes = [2, 8, 4], strides = [1, 1, 1]} : vector<2x8x32xf32> to vector<2x8x4xf32>
    %169 = vector.extract_strided_slice %23 {offsets = [0, 0, 28], sizes = [2, 8, 4], strides = [1, 1, 1]} : vector<2x8x32xf32> to vector<2x8x4xf32>
    "tpu.trace_start"() <{level = 10 : i32, message = "bqd,bkd->bqk"}> : () -> ()
    %cst_56 = arith.constant dense<0.000000e+00> : vector<2x8x8xf32>
    %170 = tpu.matmul %168, %169, %cst_56 {dimension_numbers = #tpu.dot_dimension_numbers<[2], [2], [1], [1], [0, 0, 0, 1, 1, 1], [0], [0]>} : vector<2x8x4xf32>, vector<2x8x4xf32>, vector<2x8x8xf32> -> vector<2x8x8xf32>
    "tpu.trace_stop"() : () -> ()
    %171 = vector.broadcast %5 : vector<2x1x8xf32> to vector<2x8x8xf32>
    %172 = arith.addf %170, %171 : vector<2x8x8xf32>
    %cst_57 = arith.constant dense<0xFF800000> : vector<2x8xf32>
    %173 = vector.multi_reduction <maximumf>, %172, %cst_57 [2] : vector<2x8x8xf32> to vector<2x8xf32>
    %174 = vector.shape_cast %173 : vector<2x8xf32> to vector<2x8x1xf32>
    %175 = vector.broadcast %174 : vector<2x8x1xf32> to vector<2x8x8xf32>
    %176 = arith.subf %172, %175 : vector<2x8x8xf32>
    %177 = math.exp %176 : vector<2x8x8xf32>
    %cst_58 = arith.constant dense<0.000000e+00> : vector<2x8xf32>
    %178 = vector.multi_reduction <add>, %177, %cst_58 [2] : vector<2x8x8xf32> to vector<2x8xf32>
    %179 = vector.shape_cast %178 : vector<2x8xf32> to vector<2x8x1xf32>
    %180 = vector.broadcast %179 : vector<2x8x1xf32> to vector<2x8x8xf32>
    %181 = arith.divf %177, %180 : vector<2x8x8xf32>
    %182 = vector.extract_strided_slice %24 {offsets = [0, 0, 28], sizes = [2, 8, 4], strides = [1, 1, 1]} : vector<2x8x32xf32> to vector<2x8x4xf32>
    "tpu.trace_start"() <{level = 10 : i32, message = "bqk,bkd->bqd"}> : () -> ()
    %cst_59 = arith.constant dense<0.000000e+00> : vector<2x8x4xf32>
    %183 = tpu.matmul %181, %182, %cst_59 {dimension_numbers = #tpu.dot_dimension_numbers<[2], [1], [1], [2], [0, 0, 0, 1, 1, 2], [0], [0]>} : vector<2x8x8xf32>, vector<2x8x4xf32>, vector<2x8x4xf32> -> vector<2x8x4xf32>
    "tpu.trace_stop"() : () -> ()
    %184 = vector.shape_cast %183 : vector<2x8x4xf32> to vector<16x4xf32>
    %185 = vector.extract_strided_slice %26 {offsets = [28, 0], sizes = [4, 32], strides = [1, 1]} : vector<32x32xf32> to vector<4x32xf32>
    %cst_60 = arith.constant dense<0.000000e+00> : vector<16x32xf32>
    %186 = tpu.matmul %184, %185, %cst_60 {dimension_numbers = #tpu.dot_dimension_numbers<[1], [0], [0], [1], [0, 0, 1, 1], [], []>} : vector<16x4xf32>, vector<4x32xf32>, vector<16x32xf32> -> vector<16x32xf32>
    %187 = arith.addf %167, %186 : vector<16x32xf32>
    %c0_61 = arith.constant 0 : index
    %c0_62 = arith.constant 0 : index
    %c0_63 = arith.constant 0 : index
    %188 = vector.load %arg8[%c0_61, %c0_62, %c0_63] : memref<4x1x32xf32, #tpu.memory_space<vmem>>, vector<1x1x32xf32>
    %189 = vector.shape_cast %188 : vector<1x1x32xf32> to vector<1x32xf32>
    %190 = vector.broadcast %189 : vector<1x32xf32> to vector<16x32xf32>
    %191 = arith.addf %187, %190 : vector<16x32xf32>
    %c0_64 = arith.constant 0 : index
    %c0_65 = arith.constant 0 : index
    %c0_66 = arith.constant 0 : index
    %192 = vector.load %arg13[%c0_64, %c0_65, %c0_66] : memref<4x4x32xf32, #tpu.memory_space<vmem>>, vector<1x4x32xf32>
    %193 = vector.shape_cast %192 : vector<1x4x32xf32> to vector<4x32xf32>
    %194 = arith.addf %11, %191 : vector<16x32xf32>
    %195 = vector.extract_strided_slice %193 {offsets = [0, 0], sizes = [1, 32], strides = [1, 1]} : vector<4x32xf32> to vector<1x32xf32>
    %196 = vector.extract_strided_slice %193 {offsets = [1, 0], sizes = [1, 32], strides = [1, 1]} : vector<4x32xf32> to vector<1x32xf32>
    %cst_67 = arith.constant dense<0.000000e+00> : vector<16xf32>
    %197 = vector.multi_reduction <add>, %194, %cst_67 [1] : vector<16x32xf32> to vector<16xf32>
    %198 = vector.shape_cast %197 : vector<16xf32> to vector<16x1xf32>
    %cst_68 = arith.constant 3.200000e+01 : f32
    %199 = vector.broadcast %cst_68 : f32 to vector<16x1xf32>
    %200 = arith.divf %198, %199 : vector<16x1xf32>
    %201 = vector.broadcast %200 : vector<16x1xf32> to vector<16x32xf32>
    %202 = arith.subf %194, %201 : vector<16x32xf32>
    %203 = arith.mulf %202, %202 : vector<16x32xf32>
    %cst_69 = arith.constant dense<0.000000e+00> : vector<16xf32>
    %204 = vector.multi_reduction <add>, %203, %cst_69 [1] : vector<16x32xf32> to vector<16xf32>
    %205 = vector.shape_cast %204 : vector<16xf32> to vector<16x1xf32>
    %cst_70 = arith.constant 3.200000e+01 : f32
    %206 = vector.broadcast %cst_70 : f32 to vector<16x1xf32>
    %207 = arith.divf %205, %206 : vector<16x1xf32>
    %208 = vector.broadcast %200 : vector<16x1xf32> to vector<16x32xf32>
    %209 = arith.subf %194, %208 : vector<16x32xf32>
    %cst_71 = arith.constant 9.99999974E-6 : f32
    %210 = vector.broadcast %cst_71 : f32 to vector<16x1xf32>
    %211 = arith.addf %207, %210 : vector<16x1xf32>
    %212 = math.rsqrt %211 : vector<16x1xf32>
    %213 = vector.broadcast %212 : vector<16x1xf32> to vector<16x32xf32>
    %214 = arith.mulf %209, %213 : vector<16x32xf32>
    %215 = vector.broadcast %195 : vector<1x32xf32> to vector<16x32xf32>
    %216 = arith.mulf %214, %215 : vector<16x32xf32>
    %217 = vector.broadcast %196 : vector<1x32xf32> to vector<16x32xf32>
    %218 = arith.addf %216, %217 : vector<16x32xf32>
    %c0_72 = arith.constant 0 : index
    %c0_73 = arith.constant 0 : index
    %c0_74 = arith.constant 0 : index
    %219 = vector.load %arg9[%c0_72, %c0_73, %c0_74] : memref<4x32x128xf32, #tpu.memory_space<vmem>>, vector<1x32x128xf32>
    %220 = vector.shape_cast %219 : vector<1x32x128xf32> to vector<32x128xf32>
    %cst_75 = arith.constant dense<0.000000e+00> : vector<16x128xf32>
    %221 = tpu.matmul %218, %220, %cst_75 {dimension_numbers = #tpu.dot_dimension_numbers<[1], [0], [0], [1], [0, 0, 1, 1], [], []>} : vector<16x32xf32>, vector<32x128xf32>, vector<16x128xf32> -> vector<16x128xf32>
    %c0_76 = arith.constant 0 : index
    %c0_77 = arith.constant 0 : index
    %c0_78 = arith.constant 0 : index
    %222 = vector.load %arg10[%c0_76, %c0_77, %c0_78] : memref<4x1x128xf32, #tpu.memory_space<vmem>>, vector<1x1x128xf32>
    %223 = vector.shape_cast %222 : vector<1x1x128xf32> to vector<1x128xf32>
    %224 = vector.broadcast %223 : vector<1x128xf32> to vector<16x128xf32>
    %225 = arith.addf %221, %224 : vector<16x128xf32>
    %cst_79 = arith.constant 0.000000e+00 : f32
    %226 = vector.broadcast %cst_79 : f32 to vector<16x128xf32>
    %227 = arith.maximumf %225, %226 : vector<16x128xf32>
    %c0_80 = arith.constant 0 : index
    %c0_81 = arith.constant 0 : index
    %c0_82 = arith.constant 0 : index
    %228 = vector.load %arg11[%c0_80, %c0_81, %c0_82] : memref<4x128x32xf32, #tpu.memory_space<vmem>>, vector<1x128x32xf32>
    %229 = vector.shape_cast %228 : vector<1x128x32xf32> to vector<128x32xf32>
    %cst_83 = arith.constant dense<0.000000e+00> : vector<16x32xf32>
    %230 = tpu.matmul %227, %229, %cst_83 {dimension_numbers = #tpu.dot_dimension_numbers<[1], [0], [0], [1], [0, 0, 1, 1], [], []>} : vector<16x128xf32>, vector<128x32xf32>, vector<16x32xf32> -> vector<16x32xf32>
    %c0_84 = arith.constant 0 : index
    %c0_85 = arith.constant 0 : index
    %c0_86 = arith.constant 0 : index
    %231 = vector.load %arg12[%c0_84, %c0_85, %c0_86] : memref<4x1x32xf32, #tpu.memory_space<vmem>>, vector<1x1x32xf32>
    %232 = vector.shape_cast %231 : vector<1x1x32xf32> to vector<1x32xf32>
    %233 = vector.broadcast %232 : vector<1x32xf32> to vector<16x32xf32>
    %234 = arith.addf %230, %233 : vector<16x32xf32>
    %235 = arith.addf %218, %234 : vector<16x32xf32>
    %236 = vector.extract_strided_slice %193 {offsets = [2, 0], sizes = [1, 32], strides = [1, 1]} : vector<4x32xf32> to vector<1x32xf32>
    %237 = vector.extract_strided_slice %193 {offsets = [3, 0], sizes = [1, 32], strides = [1, 1]} : vector<4x32xf32> to vector<1x32xf32>
    %cst_87 = arith.constant dense<0.000000e+00> : vector<16xf32>
    %238 = vector.multi_reduction <add>, %235, %cst_87 [1] : vector<16x32xf32> to vector<16xf32>
    %239 = vector.shape_cast %238 : vector<16xf32> to vector<16x1xf32>
    %cst_88 = arith.constant 3.200000e+01 : f32
    %240 = vector.broadcast %cst_88 : f32 to vector<16x1xf32>
    %241 = arith.divf %239, %240 : vector<16x1xf32>
    %242 = vector.broadcast %241 : vector<16x1xf32> to vector<16x32xf32>
    %243 = arith.subf %235, %242 : vector<16x32xf32>
    %244 = arith.mulf %243, %243 : vector<16x32xf32>
    %cst_89 = arith.constant dense<0.000000e+00> : vector<16xf32>
    %245 = vector.multi_reduction <add>, %244, %cst_89 [1] : vector<16x32xf32> to vector<16xf32>
    %246 = vector.shape_cast %245 : vector<16xf32> to vector<16x1xf32>
    %cst_90 = arith.constant 3.200000e+01 : f32
    %247 = vector.broadcast %cst_90 : f32 to vector<16x1xf32>
    %248 = arith.divf %246, %247 : vector<16x1xf32>
    %249 = vector.broadcast %241 : vector<16x1xf32> to vector<16x32xf32>
    %250 = arith.subf %235, %249 : vector<16x32xf32>
    %cst_91 = arith.constant 9.99999974E-6 : f32
    %251 = vector.broadcast %cst_91 : f32 to vector<16x1xf32>
    %252 = arith.addf %248, %251 : vector<16x1xf32>
    %253 = math.rsqrt %252 : vector<16x1xf32>
    %254 = vector.broadcast %253 : vector<16x1xf32> to vector<16x32xf32>
    %255 = arith.mulf %250, %254 : vector<16x32xf32>
    %256 = vector.broadcast %236 : vector<1x32xf32> to vector<16x32xf32>
    %257 = arith.mulf %255, %256 : vector<16x32xf32>
    %258 = vector.broadcast %237 : vector<1x32xf32> to vector<16x32xf32>
    %259 = arith.addf %257, %258 : vector<16x32xf32>
    %c1 = arith.constant 1 : index
    %c0_92 = arith.constant 0 : index
    %c0_93 = arith.constant 0 : index
    %260 = vector.load %arg5[%c1, %c0_92, %c0_93] : memref<4x32x96xf32, #tpu.memory_space<vmem>>, vector<1x32x96xf32>
    %261 = vector.shape_cast %260 : vector<1x32x96xf32> to vector<32x96xf32>
    %cst_94 = arith.constant dense<0.000000e+00> : vector<16x96xf32>
    %262 = tpu.matmul %259, %261, %cst_94 {dimension_numbers = #tpu.dot_dimension_numbers<[1], [0], [0], [1], [0, 0, 1, 1], [], []>} : vector<16x32xf32>, vector<32x96xf32>, vector<16x96xf32> -> vector<16x96xf32>
    %c1_95 = arith.constant 1 : index
    %c0_96 = arith.constant 0 : index
    %c0_97 = arith.constant 0 : index
    %263 = vector.load %arg6[%c1_95, %c0_96, %c0_97] : memref<4x1x96xf32, #tpu.memory_space<vmem>>, vector<1x1x96xf32>
    %264 = vector.shape_cast %263 : vector<1x1x96xf32> to vector<1x96xf32>
    %265 = vector.broadcast %264 : vector<1x96xf32> to vector<16x96xf32>
    %266 = arith.addf %262, %265 : vector<16x96xf32>
    %267 = vector.shape_cast %266 : vector<16x96xf32> to vector<2x8x96xf32>
    %268 = vector.extract_strided_slice %267 {offsets = [0, 0, 0], sizes = [2, 8, 32], strides = [1, 1, 1]} : vector<2x8x96xf32> to vector<2x8x32xf32>
    %cst_98 = arith.constant 5.000000e-01 : f32
    %269 = vector.broadcast %cst_98 : f32 to vector<2x8x32xf32>
    %270 = arith.mulf %268, %269 : vector<2x8x32xf32>
    %271 = vector.extract_strided_slice %267 {offsets = [0, 0, 32], sizes = [2, 8, 32], strides = [1, 1, 1]} : vector<2x8x96xf32> to vector<2x8x32xf32>
    %272 = vector.extract_strided_slice %267 {offsets = [0, 0, 64], sizes = [2, 8, 32], strides = [1, 1, 1]} : vector<2x8x96xf32> to vector<2x8x32xf32>
    %c1_99 = arith.constant 1 : index
    %c0_100 = arith.constant 0 : index
    %c0_101 = arith.constant 0 : index
    %273 = vector.load %arg7[%c1_99, %c0_100, %c0_101] : memref<4x32x32xf32, #tpu.memory_space<vmem>>, vector<1x32x32xf32>
    %274 = vector.shape_cast %273 : vector<1x32x32xf32> to vector<32x32xf32>
    %cst_102 = arith.constant 0.000000e+00 : f32
    %275 = vector.broadcast %cst_102 : f32 to vector<16x32xf32>
    %276 = vector.extract_strided_slice %270 {offsets = [0, 0, 0], sizes = [2, 8, 4], strides = [1, 1, 1]} : vector<2x8x32xf32> to vector<2x8x4xf32>
    %277 = vector.extract_strided_slice %271 {offsets = [0, 0, 0], sizes = [2, 8, 4], strides = [1, 1, 1]} : vector<2x8x32xf32> to vector<2x8x4xf32>
    "tpu.trace_start"() <{level = 10 : i32, message = "bqd,bkd->bqk"}> : () -> ()
    %cst_103 = arith.constant dense<0.000000e+00> : vector<2x8x8xf32>
    %278 = tpu.matmul %276, %277, %cst_103 {dimension_numbers = #tpu.dot_dimension_numbers<[2], [2], [1], [1], [0, 0, 0, 1, 1, 1], [0], [0]>} : vector<2x8x4xf32>, vector<2x8x4xf32>, vector<2x8x8xf32> -> vector<2x8x8xf32>
    "tpu.trace_stop"() : () -> ()
    %279 = vector.broadcast %5 : vector<2x1x8xf32> to vector<2x8x8xf32>
    %280 = arith.addf %278, %279 : vector<2x8x8xf32>
    %cst_104 = arith.constant dense<0xFF800000> : vector<2x8xf32>
    %281 = vector.multi_reduction <maximumf>, %280, %cst_104 [2] : vector<2x8x8xf32> to vector<2x8xf32>
    %282 = vector.shape_cast %281 : vector<2x8xf32> to vector<2x8x1xf32>
    %283 = vector.broadcast %282 : vector<2x8x1xf32> to vector<2x8x8xf32>
    %284 = arith.subf %280, %283 : vector<2x8x8xf32>
    %285 = math.exp %284 : vector<2x8x8xf32>
    %cst_105 = arith.constant dense<0.000000e+00> : vector<2x8xf32>
    %286 = vector.multi_reduction <add>, %285, %cst_105 [2] : vector<2x8x8xf32> to vector<2x8xf32>
    %287 = vector.shape_cast %286 : vector<2x8xf32> to vector<2x8x1xf32>
    %288 = vector.broadcast %287 : vector<2x8x1xf32> to vector<2x8x8xf32>
    %289 = arith.divf %285, %288 : vector<2x8x8xf32>
    %290 = vector.extract_strided_slice %272 {offsets = [0, 0, 0], sizes = [2, 8, 4], strides = [1, 1, 1]} : vector<2x8x32xf32> to vector<2x8x4xf32>
    "tpu.trace_start"() <{level = 10 : i32, message = "bqk,bkd->bqd"}> : () -> ()
    %cst_106 = arith.constant dense<0.000000e+00> : vector<2x8x4xf32>
    %291 = tpu.matmul %289, %290, %cst_106 {dimension_numbers = #tpu.dot_dimension_numbers<[2], [1], [1], [2], [0, 0, 0, 1, 1, 2], [0], [0]>} : vector<2x8x8xf32>, vector<2x8x4xf32>, vector<2x8x4xf32> -> vector<2x8x4xf32>
    "tpu.trace_stop"() : () -> ()
    %292 = vector.shape_cast %291 : vector<2x8x4xf32> to vector<16x4xf32>
    %293 = vector.extract_strided_slice %274 {offsets = [0, 0], sizes = [4, 32], strides = [1, 1]} : vector<32x32xf32> to vector<4x32xf32>
    %cst_107 = arith.constant dense<0.000000e+00> : vector<16x32xf32>
    %294 = tpu.matmul %292, %293, %cst_107 {dimension_numbers = #tpu.dot_dimension_numbers<[1], [0], [0], [1], [0, 0, 1, 1], [], []>} : vector<16x4xf32>, vector<4x32xf32>, vector<16x32xf32> -> vector<16x32xf32>
    %295 = arith.addf %275, %294 : vector<16x32xf32>
    %296 = vector.extract_strided_slice %270 {offsets = [0, 0, 4], sizes = [2, 8, 4], strides = [1, 1, 1]} : vector<2x8x32xf32> to vector<2x8x4xf32>
    %297 = vector.extract_strided_slice %271 {offsets = [0, 0, 4], sizes = [2, 8, 4], strides = [1, 1, 1]} : vector<2x8x32xf32> to vector<2x8x4xf32>
    "tpu.trace_start"() <{level = 10 : i32, message = "bqd,bkd->bqk"}> : () -> ()
    %cst_108 = arith.constant dense<0.000000e+00> : vector<2x8x8xf32>
    %298 = tpu.matmul %296, %297, %cst_108 {dimension_numbers = #tpu.dot_dimension_numbers<[2], [2], [1], [1], [0, 0, 0, 1, 1, 1], [0], [0]>} : vector<2x8x4xf32>, vector<2x8x4xf32>, vector<2x8x8xf32> -> vector<2x8x8xf32>
    "tpu.trace_stop"() : () -> ()
    %299 = vector.broadcast %5 : vector<2x1x8xf32> to vector<2x8x8xf32>
    %300 = arith.addf %298, %299 : vector<2x8x8xf32>
    %cst_109 = arith.constant dense<0xFF800000> : vector<2x8xf32>
    %301 = vector.multi_reduction <maximumf>, %300, %cst_109 [2] : vector<2x8x8xf32> to vector<2x8xf32>
    %302 = vector.shape_cast %301 : vector<2x8xf32> to vector<2x8x1xf32>
    %303 = vector.broadcast %302 : vector<2x8x1xf32> to vector<2x8x8xf32>
    %304 = arith.subf %300, %303 : vector<2x8x8xf32>
    %305 = math.exp %304 : vector<2x8x8xf32>
    %cst_110 = arith.constant dense<0.000000e+00> : vector<2x8xf32>
    %306 = vector.multi_reduction <add>, %305, %cst_110 [2] : vector<2x8x8xf32> to vector<2x8xf32>
    %307 = vector.shape_cast %306 : vector<2x8xf32> to vector<2x8x1xf32>
    %308 = vector.broadcast %307 : vector<2x8x1xf32> to vector<2x8x8xf32>
    %309 = arith.divf %305, %308 : vector<2x8x8xf32>
    %310 = vector.extract_strided_slice %272 {offsets = [0, 0, 4], sizes = [2, 8, 4], strides = [1, 1, 1]} : vector<2x8x32xf32> to vector<2x8x4xf32>
    "tpu.trace_start"() <{level = 10 : i32, message = "bqk,bkd->bqd"}> : () -> ()
    %cst_111 = arith.constant dense<0.000000e+00> : vector<2x8x4xf32>
    %311 = tpu.matmul %309, %310, %cst_111 {dimension_numbers = #tpu.dot_dimension_numbers<[2], [1], [1], [2], [0, 0, 0, 1, 1, 2], [0], [0]>} : vector<2x8x8xf32>, vector<2x8x4xf32>, vector<2x8x4xf32> -> vector<2x8x4xf32>
    "tpu.trace_stop"() : () -> ()
    %312 = vector.shape_cast %311 : vector<2x8x4xf32> to vector<16x4xf32>
    %313 = vector.extract_strided_slice %274 {offsets = [4, 0], sizes = [4, 32], strides = [1, 1]} : vector<32x32xf32> to vector<4x32xf32>
    %cst_112 = arith.constant dense<0.000000e+00> : vector<16x32xf32>
    %314 = tpu.matmul %312, %313, %cst_112 {dimension_numbers = #tpu.dot_dimension_numbers<[1], [0], [0], [1], [0, 0, 1, 1], [], []>} : vector<16x4xf32>, vector<4x32xf32>, vector<16x32xf32> -> vector<16x32xf32>
    %315 = arith.addf %295, %314 : vector<16x32xf32>
    %316 = vector.extract_strided_slice %270 {offsets = [0, 0, 8], sizes = [2, 8, 4], strides = [1, 1, 1]} : vector<2x8x32xf32> to vector<2x8x4xf32>
    %317 = vector.extract_strided_slice %271 {offsets = [0, 0, 8], sizes = [2, 8, 4], strides = [1, 1, 1]} : vector<2x8x32xf32> to vector<2x8x4xf32>
    "tpu.trace_start"() <{level = 10 : i32, message = "bqd,bkd->bqk"}> : () -> ()
    %cst_113 = arith.constant dense<0.000000e+00> : vector<2x8x8xf32>
    %318 = tpu.matmul %316, %317, %cst_113 {dimension_numbers = #tpu.dot_dimension_numbers<[2], [2], [1], [1], [0, 0, 0, 1, 1, 1], [0], [0]>} : vector<2x8x4xf32>, vector<2x8x4xf32>, vector<2x8x8xf32> -> vector<2x8x8xf32>
    "tpu.trace_stop"() : () -> ()
    %319 = vector.broadcast %5 : vector<2x1x8xf32> to vector<2x8x8xf32>
    %320 = arith.addf %318, %319 : vector<2x8x8xf32>
    %cst_114 = arith.constant dense<0xFF800000> : vector<2x8xf32>
    %321 = vector.multi_reduction <maximumf>, %320, %cst_114 [2] : vector<2x8x8xf32> to vector<2x8xf32>
    %322 = vector.shape_cast %321 : vector<2x8xf32> to vector<2x8x1xf32>
    %323 = vector.broadcast %322 : vector<2x8x1xf32> to vector<2x8x8xf32>
    %324 = arith.subf %320, %323 : vector<2x8x8xf32>
    %325 = math.exp %324 : vector<2x8x8xf32>
    %cst_115 = arith.constant dense<0.000000e+00> : vector<2x8xf32>
    %326 = vector.multi_reduction <add>, %325, %cst_115 [2] : vector<2x8x8xf32> to vector<2x8xf32>
    %327 = vector.shape_cast %326 : vector<2x8xf32> to vector<2x8x1xf32>
    %328 = vector.broadcast %327 : vector<2x8x1xf32> to vector<2x8x8xf32>
    %329 = arith.divf %325, %328 : vector<2x8x8xf32>
    %330 = vector.extract_strided_slice %272 {offsets = [0, 0, 8], sizes = [2, 8, 4], strides = [1, 1, 1]} : vector<2x8x32xf32> to vector<2x8x4xf32>
    "tpu.trace_start"() <{level = 10 : i32, message = "bqk,bkd->bqd"}> : () -> ()
    %cst_116 = arith.constant dense<0.000000e+00> : vector<2x8x4xf32>
    %331 = tpu.matmul %329, %330, %cst_116 {dimension_numbers = #tpu.dot_dimension_numbers<[2], [1], [1], [2], [0, 0, 0, 1, 1, 2], [0], [0]>} : vector<2x8x8xf32>, vector<2x8x4xf32>, vector<2x8x4xf32> -> vector<2x8x4xf32>
    "tpu.trace_stop"() : () -> ()
    %332 = vector.shape_cast %331 : vector<2x8x4xf32> to vector<16x4xf32>
    %333 = vector.extract_strided_slice %274 {offsets = [8, 0], sizes = [4, 32], strides = [1, 1]} : vector<32x32xf32> to vector<4x32xf32>
    %cst_117 = arith.constant dense<0.000000e+00> : vector<16x32xf32>
    %334 = tpu.matmul %332, %333, %cst_117 {dimension_numbers = #tpu.dot_dimension_numbers<[1], [0], [0], [1], [0, 0, 1, 1], [], []>} : vector<16x4xf32>, vector<4x32xf32>, vector<16x32xf32> -> vector<16x32xf32>
    %335 = arith.addf %315, %334 : vector<16x32xf32>
    %336 = vector.extract_strided_slice %270 {offsets = [0, 0, 12], sizes = [2, 8, 4], strides = [1, 1, 1]} : vector<2x8x32xf32> to vector<2x8x4xf32>
    %337 = vector.extract_strided_slice %271 {offsets = [0, 0, 12], sizes = [2, 8, 4], strides = [1, 1, 1]} : vector<2x8x32xf32> to vector<2x8x4xf32>
    "tpu.trace_start"() <{level = 10 : i32, message = "bqd,bkd->bqk"}> : () -> ()
    %cst_118 = arith.constant dense<0.000000e+00> : vector<2x8x8xf32>
    %338 = tpu.matmul %336, %337, %cst_118 {dimension_numbers = #tpu.dot_dimension_numbers<[2], [2], [1], [1], [0, 0, 0, 1, 1, 1], [0], [0]>} : vector<2x8x4xf32>, vector<2x8x4xf32>, vector<2x8x8xf32> -> vector<2x8x8xf32>
    "tpu.trace_stop"() : () -> ()
    %339 = vector.broadcast %5 : vector<2x1x8xf32> to vector<2x8x8xf32>
    %340 = arith.addf %338, %339 : vector<2x8x8xf32>
    %cst_119 = arith.constant dense<0xFF800000> : vector<2x8xf32>
    %341 = vector.multi_reduction <maximumf>, %340, %cst_119 [2] : vector<2x8x8xf32> to vector<2x8xf32>
    %342 = vector.shape_cast %341 : vector<2x8xf32> to vector<2x8x1xf32>
    %343 = vector.broadcast %342 : vector<2x8x1xf32> to vector<2x8x8xf32>
    %344 = arith.subf %340, %343 : vector<2x8x8xf32>
    %345 = math.exp %344 : vector<2x8x8xf32>
    %cst_120 = arith.constant dense<0.000000e+00> : vector<2x8xf32>
    %346 = vector.multi_reduction <add>, %345, %cst_120 [2] : vector<2x8x8xf32> to vector<2x8xf32>
    %347 = vector.shape_cast %346 : vector<2x8xf32> to vector<2x8x1xf32>
    %348 = vector.broadcast %347 : vector<2x8x1xf32> to vector<2x8x8xf32>
    %349 = arith.divf %345, %348 : vector<2x8x8xf32>
    %350 = vector.extract_strided_slice %272 {offsets = [0, 0, 12], sizes = [2, 8, 4], strides = [1, 1, 1]} : vector<2x8x32xf32> to vector<2x8x4xf32>
    "tpu.trace_start"() <{level = 10 : i32, message = "bqk,bkd->bqd"}> : () -> ()
    %cst_121 = arith.constant dense<0.000000e+00> : vector<2x8x4xf32>
    %351 = tpu.matmul %349, %350, %cst_121 {dimension_numbers = #tpu.dot_dimension_numbers<[2], [1], [1], [2], [0, 0, 0, 1, 1, 2], [0], [0]>} : vector<2x8x8xf32>, vector<2x8x4xf32>, vector<2x8x4xf32> -> vector<2x8x4xf32>
    "tpu.trace_stop"() : () -> ()
    %352 = vector.shape_cast %351 : vector<2x8x4xf32> to vector<16x4xf32>
    %353 = vector.extract_strided_slice %274 {offsets = [12, 0], sizes = [4, 32], strides = [1, 1]} : vector<32x32xf32> to vector<4x32xf32>
    %cst_122 = arith.constant dense<0.000000e+00> : vector<16x32xf32>
    %354 = tpu.matmul %352, %353, %cst_122 {dimension_numbers = #tpu.dot_dimension_numbers<[1], [0], [0], [1], [0, 0, 1, 1], [], []>} : vector<16x4xf32>, vector<4x32xf32>, vector<16x32xf32> -> vector<16x32xf32>
    %355 = arith.addf %335, %354 : vector<16x32xf32>
    %356 = vector.extract_strided_slice %270 {offsets = [0, 0, 16], sizes = [2, 8, 4], strides = [1, 1, 1]} : vector<2x8x32xf32> to vector<2x8x4xf32>
    %357 = vector.extract_strided_slice %271 {offsets = [0, 0, 16], sizes = [2, 8, 4], strides = [1, 1, 1]} : vector<2x8x32xf32> to vector<2x8x4xf32>
    "tpu.trace_start"() <{level = 10 : i32, message = "bqd,bkd->bqk"}> : () -> ()
    %cst_123 = arith.constant dense<0.000000e+00> : vector<2x8x8xf32>
    %358 = tpu.matmul %356, %357, %cst_123 {dimension_numbers = #tpu.dot_dimension_numbers<[2], [2], [1], [1], [0, 0, 0, 1, 1, 1], [0], [0]>} : vector<2x8x4xf32>, vector<2x8x4xf32>, vector<2x8x8xf32> -> vector<2x8x8xf32>
    "tpu.trace_stop"() : () -> ()
    %359 = vector.broadcast %5 : vector<2x1x8xf32> to vector<2x8x8xf32>
    %360 = arith.addf %358, %359 : vector<2x8x8xf32>
    %cst_124 = arith.constant dense<0xFF800000> : vector<2x8xf32>
    %361 = vector.multi_reduction <maximumf>, %360, %cst_124 [2] : vector<2x8x8xf32> to vector<2x8xf32>
    %362 = vector.shape_cast %361 : vector<2x8xf32> to vector<2x8x1xf32>
    %363 = vector.broadcast %362 : vector<2x8x1xf32> to vector<2x8x8xf32>
    %364 = arith.subf %360, %363 : vector<2x8x8xf32>
    %365 = math.exp %364 : vector<2x8x8xf32>
    %cst_125 = arith.constant dense<0.000000e+00> : vector<2x8xf32>
    %366 = vector.multi_reduction <add>, %365, %cst_125 [2] : vector<2x8x8xf32> to vector<2x8xf32>
    %367 = vector.shape_cast %366 : vector<2x8xf32> to vector<2x8x1xf32>
    %368 = vector.broadcast %367 : vector<2x8x1xf32> to vector<2x8x8xf32>
    %369 = arith.divf %365, %368 : vector<2x8x8xf32>
    %370 = vector.extract_strided_slice %272 {offsets = [0, 0, 16], sizes = [2, 8, 4], strides = [1, 1, 1]} : vector<2x8x32xf32> to vector<2x8x4xf32>
    "tpu.trace_start"() <{level = 10 : i32, message = "bqk,bkd->bqd"}> : () -> ()
    %cst_126 = arith.constant dense<0.000000e+00> : vector<2x8x4xf32>
    %371 = tpu.matmul %369, %370, %cst_126 {dimension_numbers = #tpu.dot_dimension_numbers<[2], [1], [1], [2], [0, 0, 0, 1, 1, 2], [0], [0]>} : vector<2x8x8xf32>, vector<2x8x4xf32>, vector<2x8x4xf32> -> vector<2x8x4xf32>
    "tpu.trace_stop"() : () -> ()
    %372 = vector.shape_cast %371 : vector<2x8x4xf32> to vector<16x4xf32>
    %373 = vector.extract_strided_slice %274 {offsets = [16, 0], sizes = [4, 32], strides = [1, 1]} : vector<32x32xf32> to vector<4x32xf32>
    %cst_127 = arith.constant dense<0.000000e+00> : vector<16x32xf32>
    %374 = tpu.matmul %372, %373, %cst_127 {dimension_numbers = #tpu.dot_dimension_numbers<[1], [0], [0], [1], [0, 0, 1, 1], [], []>} : vector<16x4xf32>, vector<4x32xf32>, vector<16x32xf32> -> vector<16x32xf32>
    %375 = arith.addf %355, %374 : vector<16x32xf32>
    %376 = vector.extract_strided_slice %270 {offsets = [0, 0, 20], sizes = [2, 8, 4], strides = [1, 1, 1]} : vector<2x8x32xf32> to vector<2x8x4xf32>
    %377 = vector.extract_strided_slice %271 {offsets = [0, 0, 20], sizes = [2, 8, 4], strides = [1, 1, 1]} : vector<2x8x32xf32> to vector<2x8x4xf32>
    "tpu.trace_start"() <{level = 10 : i32, message = "bqd,bkd->bqk"}> : () -> ()
    %cst_128 = arith.constant dense<0.000000e+00> : vector<2x8x8xf32>
    %378 = tpu.matmul %376, %377, %cst_128 {dimension_numbers = #tpu.dot_dimension_numbers<[2], [2], [1], [1], [0, 0, 0, 1, 1, 1], [0], [0]>} : vector<2x8x4xf32>, vector<2x8x4xf32>, vector<2x8x8xf32> -> vector<2x8x8xf32>
    "tpu.trace_stop"() : () -> ()
    %379 = vector.broadcast %5 : vector<2x1x8xf32> to vector<2x8x8xf32>
    %380 = arith.addf %378, %379 : vector<2x8x8xf32>
    %cst_129 = arith.constant dense<0xFF800000> : vector<2x8xf32>
    %381 = vector.multi_reduction <maximumf>, %380, %cst_129 [2] : vector<2x8x8xf32> to vector<2x8xf32>
    %382 = vector.shape_cast %381 : vector<2x8xf32> to vector<2x8x1xf32>
    %383 = vector.broadcast %382 : vector<2x8x1xf32> to vector<2x8x8xf32>
    %384 = arith.subf %380, %383 : vector<2x8x8xf32>
    %385 = math.exp %384 : vector<2x8x8xf32>
    %cst_130 = arith.constant dense<0.000000e+00> : vector<2x8xf32>
    %386 = vector.multi_reduction <add>, %385, %cst_130 [2] : vector<2x8x8xf32> to vector<2x8xf32>
    %387 = vector.shape_cast %386 : vector<2x8xf32> to vector<2x8x1xf32>
    %388 = vector.broadcast %387 : vector<2x8x1xf32> to vector<2x8x8xf32>
    %389 = arith.divf %385, %388 : vector<2x8x8xf32>
    %390 = vector.extract_strided_slice %272 {offsets = [0, 0, 20], sizes = [2, 8, 4], strides = [1, 1, 1]} : vector<2x8x32xf32> to vector<2x8x4xf32>
    "tpu.trace_start"() <{level = 10 : i32, message = "bqk,bkd->bqd"}> : () -> ()
    %cst_131 = arith.constant dense<0.000000e+00> : vector<2x8x4xf32>
    %391 = tpu.matmul %389, %390, %cst_131 {dimension_numbers = #tpu.dot_dimension_numbers<[2], [1], [1], [2], [0, 0, 0, 1, 1, 2], [0], [0]>} : vector<2x8x8xf32>, vector<2x8x4xf32>, vector<2x8x4xf32> -> vector<2x8x4xf32>
    "tpu.trace_stop"() : () -> ()
    %392 = vector.shape_cast %391 : vector<2x8x4xf32> to vector<16x4xf32>
    %393 = vector.extract_strided_slice %274 {offsets = [20, 0], sizes = [4, 32], strides = [1, 1]} : vector<32x32xf32> to vector<4x32xf32>
    %cst_132 = arith.constant dense<0.000000e+00> : vector<16x32xf32>
    %394 = tpu.matmul %392, %393, %cst_132 {dimension_numbers = #tpu.dot_dimension_numbers<[1], [0], [0], [1], [0, 0, 1, 1], [], []>} : vector<16x4xf32>, vector<4x32xf32>, vector<16x32xf32> -> vector<16x32xf32>
    %395 = arith.addf %375, %394 : vector<16x32xf32>
    %396 = vector.extract_strided_slice %270 {offsets = [0, 0, 24], sizes = [2, 8, 4], strides = [1, 1, 1]} : vector<2x8x32xf32> to vector<2x8x4xf32>
    %397 = vector.extract_strided_slice %271 {offsets = [0, 0, 24], sizes = [2, 8, 4], strides = [1, 1, 1]} : vector<2x8x32xf32> to vector<2x8x4xf32>
    "tpu.trace_start"() <{level = 10 : i32, message = "bqd,bkd->bqk"}> : () -> ()
    %cst_133 = arith.constant dense<0.000000e+00> : vector<2x8x8xf32>
    %398 = tpu.matmul %396, %397, %cst_133 {dimension_numbers = #tpu.dot_dimension_numbers<[2], [2], [1], [1], [0, 0, 0, 1, 1, 1], [0], [0]>} : vector<2x8x4xf32>, vector<2x8x4xf32>, vector<2x8x8xf32> -> vector<2x8x8xf32>
    "tpu.trace_stop"() : () -> ()
    %399 = vector.broadcast %5 : vector<2x1x8xf32> to vector<2x8x8xf32>
    %400 = arith.addf %398, %399 : vector<2x8x8xf32>
    %cst_134 = arith.constant dense<0xFF800000> : vector<2x8xf32>
    %401 = vector.multi_reduction <maximumf>, %400, %cst_134 [2] : vector<2x8x8xf32> to vector<2x8xf32>
    %402 = vector.shape_cast %401 : vector<2x8xf32> to vector<2x8x1xf32>
    %403 = vector.broadcast %402 : vector<2x8x1xf32> to vector<2x8x8xf32>
    %404 = arith.subf %400, %403 : vector<2x8x8xf32>
    %405 = math.exp %404 : vector<2x8x8xf32>
    %cst_135 = arith.constant dense<0.000000e+00> : vector<2x8xf32>
    %406 = vector.multi_reduction <add>, %405, %cst_135 [2] : vector<2x8x8xf32> to vector<2x8xf32>
    %407 = vector.shape_cast %406 : vector<2x8xf32> to vector<2x8x1xf32>
    %408 = vector.broadcast %407 : vector<2x8x1xf32> to vector<2x8x8xf32>
    %409 = arith.divf %405, %408 : vector<2x8x8xf32>
    %410 = vector.extract_strided_slice %272 {offsets = [0, 0, 24], sizes = [2, 8, 4], strides = [1, 1, 1]} : vector<2x8x32xf32> to vector<2x8x4xf32>
    "tpu.trace_start"() <{level = 10 : i32, message = "bqk,bkd->bqd"}> : () -> ()
    %cst_136 = arith.constant dense<0.000000e+00> : vector<2x8x4xf32>
    %411 = tpu.matmul %409, %410, %cst_136 {dimension_numbers = #tpu.dot_dimension_numbers<[2], [1], [1], [2], [0, 0, 0, 1, 1, 2], [0], [0]>} : vector<2x8x8xf32>, vector<2x8x4xf32>, vector<2x8x4xf32> -> vector<2x8x4xf32>
    "tpu.trace_stop"() : () -> ()
    %412 = vector.shape_cast %411 : vector<2x8x4xf32> to vector<16x4xf32>
    %413 = vector.extract_strided_slice %274 {offsets = [24, 0], sizes = [4, 32], strides = [1, 1]} : vector<32x32xf32> to vector<4x32xf32>
    %cst_137 = arith.constant dense<0.000000e+00> : vector<16x32xf32>
    %414 = tpu.matmul %412, %413, %cst_137 {dimension_numbers = #tpu.dot_dimension_numbers<[1], [0], [0], [1], [0, 0, 1, 1], [], []>} : vector<16x4xf32>, vector<4x32xf32>, vector<16x32xf32> -> vector<16x32xf32>
    %415 = arith.addf %395, %414 : vector<16x32xf32>
    %416 = vector.extract_strided_slice %270 {offsets = [0, 0, 28], sizes = [2, 8, 4], strides = [1, 1, 1]} : vector<2x8x32xf32> to vector<2x8x4xf32>
    %417 = vector.extract_strided_slice %271 {offsets = [0, 0, 28], sizes = [2, 8, 4], strides = [1, 1, 1]} : vector<2x8x32xf32> to vector<2x8x4xf32>
    "tpu.trace_start"() <{level = 10 : i32, message = "bqd,bkd->bqk"}> : () -> ()
    %cst_138 = arith.constant dense<0.000000e+00> : vector<2x8x8xf32>
    %418 = tpu.matmul %416, %417, %cst_138 {dimension_numbers = #tpu.dot_dimension_numbers<[2], [2], [1], [1], [0, 0, 0, 1, 1, 1], [0], [0]>} : vector<2x8x4xf32>, vector<2x8x4xf32>, vector<2x8x8xf32> -> vector<2x8x8xf32>
    "tpu.trace_stop"() : () -> ()
    %419 = vector.broadcast %5 : vector<2x1x8xf32> to vector<2x8x8xf32>
    %420 = arith.addf %418, %419 : vector<2x8x8xf32>
    %cst_139 = arith.constant dense<0xFF800000> : vector<2x8xf32>
    %421 = vector.multi_reduction <maximumf>, %420, %cst_139 [2] : vector<2x8x8xf32> to vector<2x8xf32>
    %422 = vector.shape_cast %421 : vector<2x8xf32> to vector<2x8x1xf32>
    %423 = vector.broadcast %422 : vector<2x8x1xf32> to vector<2x8x8xf32>
    %424 = arith.subf %420, %423 : vector<2x8x8xf32>
    %425 = math.exp %424 : vector<2x8x8xf32>
    %cst_140 = arith.constant dense<0.000000e+00> : vector<2x8xf32>
    %426 = vector.multi_reduction <add>, %425, %cst_140 [2] : vector<2x8x8xf32> to vector<2x8xf32>
    %427 = vector.shape_cast %426 : vector<2x8xf32> to vector<2x8x1xf32>
    %428 = vector.broadcast %427 : vector<2x8x1xf32> to vector<2x8x8xf32>
    %429 = arith.divf %425, %428 : vector<2x8x8xf32>
    %430 = vector.extract_strided_slice %272 {offsets = [0, 0, 28], sizes = [2, 8, 4], strides = [1, 1, 1]} : vector<2x8x32xf32> to vector<2x8x4xf32>
    "tpu.trace_start"() <{level = 10 : i32, message = "bqk,bkd->bqd"}> : () -> ()
    %cst_141 = arith.constant dense<0.000000e+00> : vector<2x8x4xf32>
    %431 = tpu.matmul %429, %430, %cst_141 {dimension_numbers = #tpu.dot_dimension_numbers<[2], [1], [1], [2], [0, 0, 0, 1, 1, 2], [0], [0]>} : vector<2x8x8xf32>, vector<2x8x4xf32>, vector<2x8x4xf32> -> vector<2x8x4xf32>
    "tpu.trace_stop"() : () -> ()
    %432 = vector.shape_cast %431 : vector<2x8x4xf32> to vector<16x4xf32>
    %433 = vector.extract_strided_slice %274 {offsets = [28, 0], sizes = [4, 32], strides = [1, 1]} : vector<32x32xf32> to vector<4x32xf32>
    %cst_142 = arith.constant dense<0.000000e+00> : vector<16x32xf32>
    %434 = tpu.matmul %432, %433, %cst_142 {dimension_numbers = #tpu.dot_dimension_numbers<[1], [0], [0], [1], [0, 0, 1, 1], [], []>} : vector<16x4xf32>, vector<4x32xf32>, vector<16x32xf32> -> vector<16x32xf32>
    %435 = arith.addf %415, %434 : vector<16x32xf32>
    %c1_143 = arith.constant 1 : index
    %c0_144 = arith.constant 0 : index
    %c0_145 = arith.constant 0 : index
    %436 = vector.load %arg8[%c1_143, %c0_144, %c0_145] : memref<4x1x32xf32, #tpu.memory_space<vmem>>, vector<1x1x32xf32>
    %437 = vector.shape_cast %436 : vector<1x1x32xf32> to vector<1x32xf32>
    %438 = vector.broadcast %437 : vector<1x32xf32> to vector<16x32xf32>
    %439 = arith.addf %435, %438 : vector<16x32xf32>
    %c1_146 = arith.constant 1 : index
    %c0_147 = arith.constant 0 : index
    %c0_148 = arith.constant 0 : index
    %440 = vector.load %arg13[%c1_146, %c0_147, %c0_148] : memref<4x4x32xf32, #tpu.memory_space<vmem>>, vector<1x4x32xf32>
    %441 = vector.shape_cast %440 : vector<1x4x32xf32> to vector<4x32xf32>
    %442 = arith.addf %259, %439 : vector<16x32xf32>
    %443 = vector.extract_strided_slice %441 {offsets = [0, 0], sizes = [1, 32], strides = [1, 1]} : vector<4x32xf32> to vector<1x32xf32>
    %444 = vector.extract_strided_slice %441 {offsets = [1, 0], sizes = [1, 32], strides = [1, 1]} : vector<4x32xf32> to vector<1x32xf32>
    %cst_149 = arith.constant dense<0.000000e+00> : vector<16xf32>
    %445 = vector.multi_reduction <add>, %442, %cst_149 [1] : vector<16x32xf32> to vector<16xf32>
    %446 = vector.shape_cast %445 : vector<16xf32> to vector<16x1xf32>
    %cst_150 = arith.constant 3.200000e+01 : f32
    %447 = vector.broadcast %cst_150 : f32 to vector<16x1xf32>
    %448 = arith.divf %446, %447 : vector<16x1xf32>
    %449 = vector.broadcast %448 : vector<16x1xf32> to vector<16x32xf32>
    %450 = arith.subf %442, %449 : vector<16x32xf32>
    %451 = arith.mulf %450, %450 : vector<16x32xf32>
    %cst_151 = arith.constant dense<0.000000e+00> : vector<16xf32>
    %452 = vector.multi_reduction <add>, %451, %cst_151 [1] : vector<16x32xf32> to vector<16xf32>
    %453 = vector.shape_cast %452 : vector<16xf32> to vector<16x1xf32>
    %cst_152 = arith.constant 3.200000e+01 : f32
    %454 = vector.broadcast %cst_152 : f32 to vector<16x1xf32>
    %455 = arith.divf %453, %454 : vector<16x1xf32>
    %456 = vector.broadcast %448 : vector<16x1xf32> to vector<16x32xf32>
    %457 = arith.subf %442, %456 : vector<16x32xf32>
    %cst_153 = arith.constant 9.99999974E-6 : f32
    %458 = vector.broadcast %cst_153 : f32 to vector<16x1xf32>
    %459 = arith.addf %455, %458 : vector<16x1xf32>
    %460 = math.rsqrt %459 : vector<16x1xf32>
    %461 = vector.broadcast %460 : vector<16x1xf32> to vector<16x32xf32>
    %462 = arith.mulf %457, %461 : vector<16x32xf32>
    %463 = vector.broadcast %443 : vector<1x32xf32> to vector<16x32xf32>
    %464 = arith.mulf %462, %463 : vector<16x32xf32>
    %465 = vector.broadcast %444 : vector<1x32xf32> to vector<16x32xf32>
    %466 = arith.addf %464, %465 : vector<16x32xf32>
    %c1_154 = arith.constant 1 : index
    %c0_155 = arith.constant 0 : index
    %c0_156 = arith.constant 0 : index
    %467 = vector.load %arg9[%c1_154, %c0_155, %c0_156] : memref<4x32x128xf32, #tpu.memory_space<vmem>>, vector<1x32x128xf32>
    %468 = vector.shape_cast %467 : vector<1x32x128xf32> to vector<32x128xf32>
    %cst_157 = arith.constant dense<0.000000e+00> : vector<16x128xf32>
    %469 = tpu.matmul %466, %468, %cst_157 {dimension_numbers = #tpu.dot_dimension_numbers<[1], [0], [0], [1], [0, 0, 1, 1], [], []>} : vector<16x32xf32>, vector<32x128xf32>, vector<16x128xf32> -> vector<16x128xf32>
    %c1_158 = arith.constant 1 : index
    %c0_159 = arith.constant 0 : index
    %c0_160 = arith.constant 0 : index
    %470 = vector.load %arg10[%c1_158, %c0_159, %c0_160] : memref<4x1x128xf32, #tpu.memory_space<vmem>>, vector<1x1x128xf32>
    %471 = vector.shape_cast %470 : vector<1x1x128xf32> to vector<1x128xf32>
    %472 = vector.broadcast %471 : vector<1x128xf32> to vector<16x128xf32>
    %473 = arith.addf %469, %472 : vector<16x128xf32>
    %cst_161 = arith.constant 0.000000e+00 : f32
    %474 = vector.broadcast %cst_161 : f32 to vector<16x128xf32>
    %475 = arith.maximumf %473, %474 : vector<16x128xf32>
    %c1_162 = arith.constant 1 : index
    %c0_163 = arith.constant 0 : index
    %c0_164 = arith.constant 0 : index
    %476 = vector.load %arg11[%c1_162, %c0_163, %c0_164] : memref<4x128x32xf32, #tpu.memory_space<vmem>>, vector<1x128x32xf32>
    %477 = vector.shape_cast %476 : vector<1x128x32xf32> to vector<128x32xf32>
    %cst_165 = arith.constant dense<0.000000e+00> : vector<16x32xf32>
    %478 = tpu.matmul %475, %477, %cst_165 {dimension_numbers = #tpu.dot_dimension_numbers<[1], [0], [0], [1], [0, 0, 1, 1], [], []>} : vector<16x128xf32>, vector<128x32xf32>, vector<16x32xf32> -> vector<16x32xf32>
    %c1_166 = arith.constant 1 : index
    %c0_167 = arith.constant 0 : index
    %c0_168 = arith.constant 0 : index
    %479 = vector.load %arg12[%c1_166, %c0_167, %c0_168] : memref<4x1x32xf32, #tpu.memory_space<vmem>>, vector<1x1x32xf32>
    %480 = vector.shape_cast %479 : vector<1x1x32xf32> to vector<1x32xf32>
    %481 = vector.broadcast %480 : vector<1x32xf32> to vector<16x32xf32>
    %482 = arith.addf %478, %481 : vector<16x32xf32>
    %483 = arith.addf %466, %482 : vector<16x32xf32>
    %484 = vector.extract_strided_slice %441 {offsets = [2, 0], sizes = [1, 32], strides = [1, 1]} : vector<4x32xf32> to vector<1x32xf32>
    %485 = vector.extract_strided_slice %441 {offsets = [3, 0], sizes = [1, 32], strides = [1, 1]} : vector<4x32xf32> to vector<1x32xf32>
    %cst_169 = arith.constant dense<0.000000e+00> : vector<16xf32>
    %486 = vector.multi_reduction <add>, %483, %cst_169 [1] : vector<16x32xf32> to vector<16xf32>
    %487 = vector.shape_cast %486 : vector<16xf32> to vector<16x1xf32>
    %cst_170 = arith.constant 3.200000e+01 : f32
    %488 = vector.broadcast %cst_170 : f32 to vector<16x1xf32>
    %489 = arith.divf %487, %488 : vector<16x1xf32>
    %490 = vector.broadcast %489 : vector<16x1xf32> to vector<16x32xf32>
    %491 = arith.subf %483, %490 : vector<16x32xf32>
    %492 = arith.mulf %491, %491 : vector<16x32xf32>
    %cst_171 = arith.constant dense<0.000000e+00> : vector<16xf32>
    %493 = vector.multi_reduction <add>, %492, %cst_171 [1] : vector<16x32xf32> to vector<16xf32>
    %494 = vector.shape_cast %493 : vector<16xf32> to vector<16x1xf32>
    %cst_172 = arith.constant 3.200000e+01 : f32
    %495 = vector.broadcast %cst_172 : f32 to vector<16x1xf32>
    %496 = arith.divf %494, %495 : vector<16x1xf32>
    %497 = vector.broadcast %489 : vector<16x1xf32> to vector<16x32xf32>
    %498 = arith.subf %483, %497 : vector<16x32xf32>
    %cst_173 = arith.constant 9.99999974E-6 : f32
    %499 = vector.broadcast %cst_173 : f32 to vector<16x1xf32>
    %500 = arith.addf %496, %499 : vector<16x1xf32>
    %501 = math.rsqrt %500 : vector<16x1xf32>
    %502 = vector.broadcast %501 : vector<16x1xf32> to vector<16x32xf32>
    %503 = arith.mulf %498, %502 : vector<16x32xf32>
    %504 = vector.broadcast %484 : vector<1x32xf32> to vector<16x32xf32>
    %505 = arith.mulf %503, %504 : vector<16x32xf32>
    %506 = vector.broadcast %485 : vector<1x32xf32> to vector<16x32xf32>
    %507 = arith.addf %505, %506 : vector<16x32xf32>
    %c2 = arith.constant 2 : index
    %c0_174 = arith.constant 0 : index
    %c0_175 = arith.constant 0 : index
    %508 = vector.load %arg5[%c2, %c0_174, %c0_175] : memref<4x32x96xf32, #tpu.memory_space<vmem>>, vector<1x32x96xf32>
    %509 = vector.shape_cast %508 : vector<1x32x96xf32> to vector<32x96xf32>
    %cst_176 = arith.constant dense<0.000000e+00> : vector<16x96xf32>
    %510 = tpu.matmul %507, %509, %cst_176 {dimension_numbers = #tpu.dot_dimension_numbers<[1], [0], [0], [1], [0, 0, 1, 1], [], []>} : vector<16x32xf32>, vector<32x96xf32>, vector<16x96xf32> -> vector<16x96xf32>
    %c2_177 = arith.constant 2 : index
    %c0_178 = arith.constant 0 : index
    %c0_179 = arith.constant 0 : index
    %511 = vector.load %arg6[%c2_177, %c0_178, %c0_179] : memref<4x1x96xf32, #tpu.memory_space<vmem>>, vector<1x1x96xf32>
    %512 = vector.shape_cast %511 : vector<1x1x96xf32> to vector<1x96xf32>
    %513 = vector.broadcast %512 : vector<1x96xf32> to vector<16x96xf32>
    %514 = arith.addf %510, %513 : vector<16x96xf32>
    %515 = vector.shape_cast %514 : vector<16x96xf32> to vector<2x8x96xf32>
    %516 = vector.extract_strided_slice %515 {offsets = [0, 0, 0], sizes = [2, 8, 32], strides = [1, 1, 1]} : vector<2x8x96xf32> to vector<2x8x32xf32>
    %cst_180 = arith.constant 5.000000e-01 : f32
    %517 = vector.broadcast %cst_180 : f32 to vector<2x8x32xf32>
    %518 = arith.mulf %516, %517 : vector<2x8x32xf32>
    %519 = vector.extract_strided_slice %515 {offsets = [0, 0, 32], sizes = [2, 8, 32], strides = [1, 1, 1]} : vector<2x8x96xf32> to vector<2x8x32xf32>
    %520 = vector.extract_strided_slice %515 {offsets = [0, 0, 64], sizes = [2, 8, 32], strides = [1, 1, 1]} : vector<2x8x96xf32> to vector<2x8x32xf32>
    %c2_181 = arith.constant 2 : index
    %c0_182 = arith.constant 0 : index
    %c0_183 = arith.constant 0 : index
    %521 = vector.load %arg7[%c2_181, %c0_182, %c0_183] : memref<4x32x32xf32, #tpu.memory_space<vmem>>, vector<1x32x32xf32>
    %522 = vector.shape_cast %521 : vector<1x32x32xf32> to vector<32x32xf32>
    %cst_184 = arith.constant 0.000000e+00 : f32
    %523 = vector.broadcast %cst_184 : f32 to vector<16x32xf32>
    %524 = vector.extract_strided_slice %518 {offsets = [0, 0, 0], sizes = [2, 8, 4], strides = [1, 1, 1]} : vector<2x8x32xf32> to vector<2x8x4xf32>
    %525 = vector.extract_strided_slice %519 {offsets = [0, 0, 0], sizes = [2, 8, 4], strides = [1, 1, 1]} : vector<2x8x32xf32> to vector<2x8x4xf32>
    "tpu.trace_start"() <{level = 10 : i32, message = "bqd,bkd->bqk"}> : () -> ()
    %cst_185 = arith.constant dense<0.000000e+00> : vector<2x8x8xf32>
    %526 = tpu.matmul %524, %525, %cst_185 {dimension_numbers = #tpu.dot_dimension_numbers<[2], [2], [1], [1], [0, 0, 0, 1, 1, 1], [0], [0]>} : vector<2x8x4xf32>, vector<2x8x4xf32>, vector<2x8x8xf32> -> vector<2x8x8xf32>
    "tpu.trace_stop"() : () -> ()
    %527 = vector.broadcast %5 : vector<2x1x8xf32> to vector<2x8x8xf32>
    %528 = arith.addf %526, %527 : vector<2x8x8xf32>
    %cst_186 = arith.constant dense<0xFF800000> : vector<2x8xf32>
    %529 = vector.multi_reduction <maximumf>, %528, %cst_186 [2] : vector<2x8x8xf32> to vector<2x8xf32>
    %530 = vector.shape_cast %529 : vector<2x8xf32> to vector<2x8x1xf32>
    %531 = vector.broadcast %530 : vector<2x8x1xf32> to vector<2x8x8xf32>
    %532 = arith.subf %528, %531 : vector<2x8x8xf32>
    %533 = math.exp %532 : vector<2x8x8xf32>
    %cst_187 = arith.constant dense<0.000000e+00> : vector<2x8xf32>
    %534 = vector.multi_reduction <add>, %533, %cst_187 [2] : vector<2x8x8xf32> to vector<2x8xf32>
    %535 = vector.shape_cast %534 : vector<2x8xf32> to vector<2x8x1xf32>
    %536 = vector.broadcast %535 : vector<2x8x1xf32> to vector<2x8x8xf32>
    %537 = arith.divf %533, %536 : vector<2x8x8xf32>
    %538 = vector.extract_strided_slice %520 {offsets = [0, 0, 0], sizes = [2, 8, 4], strides = [1, 1, 1]} : vector<2x8x32xf32> to vector<2x8x4xf32>
    "tpu.trace_start"() <{level = 10 : i32, message = "bqk,bkd->bqd"}> : () -> ()
    %cst_188 = arith.constant dense<0.000000e+00> : vector<2x8x4xf32>
    %539 = tpu.matmul %537, %538, %cst_188 {dimension_numbers = #tpu.dot_dimension_numbers<[2], [1], [1], [2], [0, 0, 0, 1, 1, 2], [0], [0]>} : vector<2x8x8xf32>, vector<2x8x4xf32>, vector<2x8x4xf32> -> vector<2x8x4xf32>
    "tpu.trace_stop"() : () -> ()
    %540 = vector.shape_cast %539 : vector<2x8x4xf32> to vector<16x4xf32>
    %541 = vector.extract_strided_slice %522 {offsets = [0, 0], sizes = [4, 32], strides = [1, 1]} : vector<32x32xf32> to vector<4x32xf32>
    %cst_189 = arith.constant dense<0.000000e+00> : vector<16x32xf32>
    %542 = tpu.matmul %540, %541, %cst_189 {dimension_numbers = #tpu.dot_dimension_numbers<[1], [0], [0], [1], [0, 0, 1, 1], [], []>} : vector<16x4xf32>, vector<4x32xf32>, vector<16x32xf32> -> vector<16x32xf32>
    %543 = arith.addf %523, %542 : vector<16x32xf32>
    %544 = vector.extract_strided_slice %518 {offsets = [0, 0, 4], sizes = [2, 8, 4], strides = [1, 1, 1]} : vector<2x8x32xf32> to vector<2x8x4xf32>
    %545 = vector.extract_strided_slice %519 {offsets = [0, 0, 4], sizes = [2, 8, 4], strides = [1, 1, 1]} : vector<2x8x32xf32> to vector<2x8x4xf32>
    "tpu.trace_start"() <{level = 10 : i32, message = "bqd,bkd->bqk"}> : () -> ()
    %cst_190 = arith.constant dense<0.000000e+00> : vector<2x8x8xf32>
    %546 = tpu.matmul %544, %545, %cst_190 {dimension_numbers = #tpu.dot_dimension_numbers<[2], [2], [1], [1], [0, 0, 0, 1, 1, 1], [0], [0]>} : vector<2x8x4xf32>, vector<2x8x4xf32>, vector<2x8x8xf32> -> vector<2x8x8xf32>
    "tpu.trace_stop"() : () -> ()
    %547 = vector.broadcast %5 : vector<2x1x8xf32> to vector<2x8x8xf32>
    %548 = arith.addf %546, %547 : vector<2x8x8xf32>
    %cst_191 = arith.constant dense<0xFF800000> : vector<2x8xf32>
    %549 = vector.multi_reduction <maximumf>, %548, %cst_191 [2] : vector<2x8x8xf32> to vector<2x8xf32>
    %550 = vector.shape_cast %549 : vector<2x8xf32> to vector<2x8x1xf32>
    %551 = vector.broadcast %550 : vector<2x8x1xf32> to vector<2x8x8xf32>
    %552 = arith.subf %548, %551 : vector<2x8x8xf32>
    %553 = math.exp %552 : vector<2x8x8xf32>
    %cst_192 = arith.constant dense<0.000000e+00> : vector<2x8xf32>
    %554 = vector.multi_reduction <add>, %553, %cst_192 [2] : vector<2x8x8xf32> to vector<2x8xf32>
    %555 = vector.shape_cast %554 : vector<2x8xf32> to vector<2x8x1xf32>
    %556 = vector.broadcast %555 : vector<2x8x1xf32> to vector<2x8x8xf32>
    %557 = arith.divf %553, %556 : vector<2x8x8xf32>
    %558 = vector.extract_strided_slice %520 {offsets = [0, 0, 4], sizes = [2, 8, 4], strides = [1, 1, 1]} : vector<2x8x32xf32> to vector<2x8x4xf32>
    "tpu.trace_start"() <{level = 10 : i32, message = "bqk,bkd->bqd"}> : () -> ()
    %cst_193 = arith.constant dense<0.000000e+00> : vector<2x8x4xf32>
    %559 = tpu.matmul %557, %558, %cst_193 {dimension_numbers = #tpu.dot_dimension_numbers<[2], [1], [1], [2], [0, 0, 0, 1, 1, 2], [0], [0]>} : vector<2x8x8xf32>, vector<2x8x4xf32>, vector<2x8x4xf32> -> vector<2x8x4xf32>
    "tpu.trace_stop"() : () -> ()
    %560 = vector.shape_cast %559 : vector<2x8x4xf32> to vector<16x4xf32>
    %561 = vector.extract_strided_slice %522 {offsets = [4, 0], sizes = [4, 32], strides = [1, 1]} : vector<32x32xf32> to vector<4x32xf32>
    %cst_194 = arith.constant dense<0.000000e+00> : vector<16x32xf32>
    %562 = tpu.matmul %560, %561, %cst_194 {dimension_numbers = #tpu.dot_dimension_numbers<[1], [0], [0], [1], [0, 0, 1, 1], [], []>} : vector<16x4xf32>, vector<4x32xf32>, vector<16x32xf32> -> vector<16x32xf32>
    %563 = arith.addf %543, %562 : vector<16x32xf32>
    %564 = vector.extract_strided_slice %518 {offsets = [0, 0, 8], sizes = [2, 8, 4], strides = [1, 1, 1]} : vector<2x8x32xf32> to vector<2x8x4xf32>
    %565 = vector.extract_strided_slice %519 {offsets = [0, 0, 8], sizes = [2, 8, 4], strides = [1, 1, 1]} : vector<2x8x32xf32> to vector<2x8x4xf32>
    "tpu.trace_start"() <{level = 10 : i32, message = "bqd,bkd->bqk"}> : () -> ()
    %cst_195 = arith.constant dense<0.000000e+00> : vector<2x8x8xf32>
    %566 = tpu.matmul %564, %565, %cst_195 {dimension_numbers = #tpu.dot_dimension_numbers<[2], [2], [1], [1], [0, 0, 0, 1, 1, 1], [0], [0]>} : vector<2x8x4xf32>, vector<2x8x4xf32>, vector<2x8x8xf32> -> vector<2x8x8xf32>
    "tpu.trace_stop"() : () -> ()
    %567 = vector.broadcast %5 : vector<2x1x8xf32> to vector<2x8x8xf32>
    %568 = arith.addf %566, %567 : vector<2x8x8xf32>
    %cst_196 = arith.constant dense<0xFF800000> : vector<2x8xf32>
    %569 = vector.multi_reduction <maximumf>, %568, %cst_196 [2] : vector<2x8x8xf32> to vector<2x8xf32>
    %570 = vector.shape_cast %569 : vector<2x8xf32> to vector<2x8x1xf32>
    %571 = vector.broadcast %570 : vector<2x8x1xf32> to vector<2x8x8xf32>
    %572 = arith.subf %568, %571 : vector<2x8x8xf32>
    %573 = math.exp %572 : vector<2x8x8xf32>
    %cst_197 = arith.constant dense<0.000000e+00> : vector<2x8xf32>
    %574 = vector.multi_reduction <add>, %573, %cst_197 [2] : vector<2x8x8xf32> to vector<2x8xf32>
    %575 = vector.shape_cast %574 : vector<2x8xf32> to vector<2x8x1xf32>
    %576 = vector.broadcast %575 : vector<2x8x1xf32> to vector<2x8x8xf32>
    %577 = arith.divf %573, %576 : vector<2x8x8xf32>
    %578 = vector.extract_strided_slice %520 {offsets = [0, 0, 8], sizes = [2, 8, 4], strides = [1, 1, 1]} : vector<2x8x32xf32> to vector<2x8x4xf32>
    "tpu.trace_start"() <{level = 10 : i32, message = "bqk,bkd->bqd"}> : () -> ()
    %cst_198 = arith.constant dense<0.000000e+00> : vector<2x8x4xf32>
    %579 = tpu.matmul %577, %578, %cst_198 {dimension_numbers = #tpu.dot_dimension_numbers<[2], [1], [1], [2], [0, 0, 0, 1, 1, 2], [0], [0]>} : vector<2x8x8xf32>, vector<2x8x4xf32>, vector<2x8x4xf32> -> vector<2x8x4xf32>
    "tpu.trace_stop"() : () -> ()
    %580 = vector.shape_cast %579 : vector<2x8x4xf32> to vector<16x4xf32>
    %581 = vector.extract_strided_slice %522 {offsets = [8, 0], sizes = [4, 32], strides = [1, 1]} : vector<32x32xf32> to vector<4x32xf32>
    %cst_199 = arith.constant dense<0.000000e+00> : vector<16x32xf32>
    %582 = tpu.matmul %580, %581, %cst_199 {dimension_numbers = #tpu.dot_dimension_numbers<[1], [0], [0], [1], [0, 0, 1, 1], [], []>} : vector<16x4xf32>, vector<4x32xf32>, vector<16x32xf32> -> vector<16x32xf32>
    %583 = arith.addf %563, %582 : vector<16x32xf32>
    %584 = vector.extract_strided_slice %518 {offsets = [0, 0, 12], sizes = [2, 8, 4], strides = [1, 1, 1]} : vector<2x8x32xf32> to vector<2x8x4xf32>
    %585 = vector.extract_strided_slice %519 {offsets = [0, 0, 12], sizes = [2, 8, 4], strides = [1, 1, 1]} : vector<2x8x32xf32> to vector<2x8x4xf32>
    "tpu.trace_start"() <{level = 10 : i32, message = "bqd,bkd->bqk"}> : () -> ()
    %cst_200 = arith.constant dense<0.000000e+00> : vector<2x8x8xf32>
    %586 = tpu.matmul %584, %585, %cst_200 {dimension_numbers = #tpu.dot_dimension_numbers<[2], [2], [1], [1], [0, 0, 0, 1, 1, 1], [0], [0]>} : vector<2x8x4xf32>, vector<2x8x4xf32>, vector<2x8x8xf32> -> vector<2x8x8xf32>
    "tpu.trace_stop"() : () -> ()
    %587 = vector.broadcast %5 : vector<2x1x8xf32> to vector<2x8x8xf32>
    %588 = arith.addf %586, %587 : vector<2x8x8xf32>
    %cst_201 = arith.constant dense<0xFF800000> : vector<2x8xf32>
    %589 = vector.multi_reduction <maximumf>, %588, %cst_201 [2] : vector<2x8x8xf32> to vector<2x8xf32>
    %590 = vector.shape_cast %589 : vector<2x8xf32> to vector<2x8x1xf32>
    %591 = vector.broadcast %590 : vector<2x8x1xf32> to vector<2x8x8xf32>
    %592 = arith.subf %588, %591 : vector<2x8x8xf32>
    %593 = math.exp %592 : vector<2x8x8xf32>
    %cst_202 = arith.constant dense<0.000000e+00> : vector<2x8xf32>
    %594 = vector.multi_reduction <add>, %593, %cst_202 [2] : vector<2x8x8xf32> to vector<2x8xf32>
    %595 = vector.shape_cast %594 : vector<2x8xf32> to vector<2x8x1xf32>
    %596 = vector.broadcast %595 : vector<2x8x1xf32> to vector<2x8x8xf32>
    %597 = arith.divf %593, %596 : vector<2x8x8xf32>
    %598 = vector.extract_strided_slice %520 {offsets = [0, 0, 12], sizes = [2, 8, 4], strides = [1, 1, 1]} : vector<2x8x32xf32> to vector<2x8x4xf32>
    "tpu.trace_start"() <{level = 10 : i32, message = "bqk,bkd->bqd"}> : () -> ()
    %cst_203 = arith.constant dense<0.000000e+00> : vector<2x8x4xf32>
    %599 = tpu.matmul %597, %598, %cst_203 {dimension_numbers = #tpu.dot_dimension_numbers<[2], [1], [1], [2], [0, 0, 0, 1, 1, 2], [0], [0]>} : vector<2x8x8xf32>, vector<2x8x4xf32>, vector<2x8x4xf32> -> vector<2x8x4xf32>
    "tpu.trace_stop"() : () -> ()
    %600 = vector.shape_cast %599 : vector<2x8x4xf32> to vector<16x4xf32>
    %601 = vector.extract_strided_slice %522 {offsets = [12, 0], sizes = [4, 32], strides = [1, 1]} : vector<32x32xf32> to vector<4x32xf32>
    %cst_204 = arith.constant dense<0.000000e+00> : vector<16x32xf32>
    %602 = tpu.matmul %600, %601, %cst_204 {dimension_numbers = #tpu.dot_dimension_numbers<[1], [0], [0], [1], [0, 0, 1, 1], [], []>} : vector<16x4xf32>, vector<4x32xf32>, vector<16x32xf32> -> vector<16x32xf32>
    %603 = arith.addf %583, %602 : vector<16x32xf32>
    %604 = vector.extract_strided_slice %518 {offsets = [0, 0, 16], sizes = [2, 8, 4], strides = [1, 1, 1]} : vector<2x8x32xf32> to vector<2x8x4xf32>
    %605 = vector.extract_strided_slice %519 {offsets = [0, 0, 16], sizes = [2, 8, 4], strides = [1, 1, 1]} : vector<2x8x32xf32> to vector<2x8x4xf32>
    "tpu.trace_start"() <{level = 10 : i32, message = "bqd,bkd->bqk"}> : () -> ()
    %cst_205 = arith.constant dense<0.000000e+00> : vector<2x8x8xf32>
    %606 = tpu.matmul %604, %605, %cst_205 {dimension_numbers = #tpu.dot_dimension_numbers<[2], [2], [1], [1], [0, 0, 0, 1, 1, 1], [0], [0]>} : vector<2x8x4xf32>, vector<2x8x4xf32>, vector<2x8x8xf32> -> vector<2x8x8xf32>
    "tpu.trace_stop"() : () -> ()
    %607 = vector.broadcast %5 : vector<2x1x8xf32> to vector<2x8x8xf32>
    %608 = arith.addf %606, %607 : vector<2x8x8xf32>
    %cst_206 = arith.constant dense<0xFF800000> : vector<2x8xf32>
    %609 = vector.multi_reduction <maximumf>, %608, %cst_206 [2] : vector<2x8x8xf32> to vector<2x8xf32>
    %610 = vector.shape_cast %609 : vector<2x8xf32> to vector<2x8x1xf32>
    %611 = vector.broadcast %610 : vector<2x8x1xf32> to vector<2x8x8xf32>
    %612 = arith.subf %608, %611 : vector<2x8x8xf32>
    %613 = math.exp %612 : vector<2x8x8xf32>
    %cst_207 = arith.constant dense<0.000000e+00> : vector<2x8xf32>
    %614 = vector.multi_reduction <add>, %613, %cst_207 [2] : vector<2x8x8xf32> to vector<2x8xf32>
    %615 = vector.shape_cast %614 : vector<2x8xf32> to vector<2x8x1xf32>
    %616 = vector.broadcast %615 : vector<2x8x1xf32> to vector<2x8x8xf32>
    %617 = arith.divf %613, %616 : vector<2x8x8xf32>
    %618 = vector.extract_strided_slice %520 {offsets = [0, 0, 16], sizes = [2, 8, 4], strides = [1, 1, 1]} : vector<2x8x32xf32> to vector<2x8x4xf32>
    "tpu.trace_start"() <{level = 10 : i32, message = "bqk,bkd->bqd"}> : () -> ()
    %cst_208 = arith.constant dense<0.000000e+00> : vector<2x8x4xf32>
    %619 = tpu.matmul %617, %618, %cst_208 {dimension_numbers = #tpu.dot_dimension_numbers<[2], [1], [1], [2], [0, 0, 0, 1, 1, 2], [0], [0]>} : vector<2x8x8xf32>, vector<2x8x4xf32>, vector<2x8x4xf32> -> vector<2x8x4xf32>
    "tpu.trace_stop"() : () -> ()
    %620 = vector.shape_cast %619 : vector<2x8x4xf32> to vector<16x4xf32>
    %621 = vector.extract_strided_slice %522 {offsets = [16, 0], sizes = [4, 32], strides = [1, 1]} : vector<32x32xf32> to vector<4x32xf32>
    %cst_209 = arith.constant dense<0.000000e+00> : vector<16x32xf32>
    %622 = tpu.matmul %620, %621, %cst_209 {dimension_numbers = #tpu.dot_dimension_numbers<[1], [0], [0], [1], [0, 0, 1, 1], [], []>} : vector<16x4xf32>, vector<4x32xf32>, vector<16x32xf32> -> vector<16x32xf32>
    %623 = arith.addf %603, %622 : vector<16x32xf32>
    %624 = vector.extract_strided_slice %518 {offsets = [0, 0, 20], sizes = [2, 8, 4], strides = [1, 1, 1]} : vector<2x8x32xf32> to vector<2x8x4xf32>
    %625 = vector.extract_strided_slice %519 {offsets = [0, 0, 20], sizes = [2, 8, 4], strides = [1, 1, 1]} : vector<2x8x32xf32> to vector<2x8x4xf32>
    "tpu.trace_start"() <{level = 10 : i32, message = "bqd,bkd->bqk"}> : () -> ()
    %cst_210 = arith.constant dense<0.000000e+00> : vector<2x8x8xf32>
    %626 = tpu.matmul %624, %625, %cst_210 {dimension_numbers = #tpu.dot_dimension_numbers<[2], [2], [1], [1], [0, 0, 0, 1, 1, 1], [0], [0]>} : vector<2x8x4xf32>, vector<2x8x4xf32>, vector<2x8x8xf32> -> vector<2x8x8xf32>
    "tpu.trace_stop"() : () -> ()
    %627 = vector.broadcast %5 : vector<2x1x8xf32> to vector<2x8x8xf32>
    %628 = arith.addf %626, %627 : vector<2x8x8xf32>
    %cst_211 = arith.constant dense<0xFF800000> : vector<2x8xf32>
    %629 = vector.multi_reduction <maximumf>, %628, %cst_211 [2] : vector<2x8x8xf32> to vector<2x8xf32>
    %630 = vector.shape_cast %629 : vector<2x8xf32> to vector<2x8x1xf32>
    %631 = vector.broadcast %630 : vector<2x8x1xf32> to vector<2x8x8xf32>
    %632 = arith.subf %628, %631 : vector<2x8x8xf32>
    %633 = math.exp %632 : vector<2x8x8xf32>
    %cst_212 = arith.constant dense<0.000000e+00> : vector<2x8xf32>
    %634 = vector.multi_reduction <add>, %633, %cst_212 [2] : vector<2x8x8xf32> to vector<2x8xf32>
    %635 = vector.shape_cast %634 : vector<2x8xf32> to vector<2x8x1xf32>
    %636 = vector.broadcast %635 : vector<2x8x1xf32> to vector<2x8x8xf32>
    %637 = arith.divf %633, %636 : vector<2x8x8xf32>
    %638 = vector.extract_strided_slice %520 {offsets = [0, 0, 20], sizes = [2, 8, 4], strides = [1, 1, 1]} : vector<2x8x32xf32> to vector<2x8x4xf32>
    "tpu.trace_start"() <{level = 10 : i32, message = "bqk,bkd->bqd"}> : () -> ()
    %cst_213 = arith.constant dense<0.000000e+00> : vector<2x8x4xf32>
    %639 = tpu.matmul %637, %638, %cst_213 {dimension_numbers = #tpu.dot_dimension_numbers<[2], [1], [1], [2], [0, 0, 0, 1, 1, 2], [0], [0]>} : vector<2x8x8xf32>, vector<2x8x4xf32>, vector<2x8x4xf32> -> vector<2x8x4xf32>
    "tpu.trace_stop"() : () -> ()
    %640 = vector.shape_cast %639 : vector<2x8x4xf32> to vector<16x4xf32>
    %641 = vector.extract_strided_slice %522 {offsets = [20, 0], sizes = [4, 32], strides = [1, 1]} : vector<32x32xf32> to vector<4x32xf32>
    %cst_214 = arith.constant dense<0.000000e+00> : vector<16x32xf32>
    %642 = tpu.matmul %640, %641, %cst_214 {dimension_numbers = #tpu.dot_dimension_numbers<[1], [0], [0], [1], [0, 0, 1, 1], [], []>} : vector<16x4xf32>, vector<4x32xf32>, vector<16x32xf32> -> vector<16x32xf32>
    %643 = arith.addf %623, %642 : vector<16x32xf32>
    %644 = vector.extract_strided_slice %518 {offsets = [0, 0, 24], sizes = [2, 8, 4], strides = [1, 1, 1]} : vector<2x8x32xf32> to vector<2x8x4xf32>
    %645 = vector.extract_strided_slice %519 {offsets = [0, 0, 24], sizes = [2, 8, 4], strides = [1, 1, 1]} : vector<2x8x32xf32> to vector<2x8x4xf32>
    "tpu.trace_start"() <{level = 10 : i32, message = "bqd,bkd->bqk"}> : () -> ()
    %cst_215 = arith.constant dense<0.000000e+00> : vector<2x8x8xf32>
    %646 = tpu.matmul %644, %645, %cst_215 {dimension_numbers = #tpu.dot_dimension_numbers<[2], [2], [1], [1], [0, 0, 0, 1, 1, 1], [0], [0]>} : vector<2x8x4xf32>, vector<2x8x4xf32>, vector<2x8x8xf32> -> vector<2x8x8xf32>
    "tpu.trace_stop"() : () -> ()
    %647 = vector.broadcast %5 : vector<2x1x8xf32> to vector<2x8x8xf32>
    %648 = arith.addf %646, %647 : vector<2x8x8xf32>
    %cst_216 = arith.constant dense<0xFF800000> : vector<2x8xf32>
    %649 = vector.multi_reduction <maximumf>, %648, %cst_216 [2] : vector<2x8x8xf32> to vector<2x8xf32>
    %650 = vector.shape_cast %649 : vector<2x8xf32> to vector<2x8x1xf32>
    %651 = vector.broadcast %650 : vector<2x8x1xf32> to vector<2x8x8xf32>
    %652 = arith.subf %648, %651 : vector<2x8x8xf32>
    %653 = math.exp %652 : vector<2x8x8xf32>
    %cst_217 = arith.constant dense<0.000000e+00> : vector<2x8xf32>
    %654 = vector.multi_reduction <add>, %653, %cst_217 [2] : vector<2x8x8xf32> to vector<2x8xf32>
    %655 = vector.shape_cast %654 : vector<2x8xf32> to vector<2x8x1xf32>
    %656 = vector.broadcast %655 : vector<2x8x1xf32> to vector<2x8x8xf32>
    %657 = arith.divf %653, %656 : vector<2x8x8xf32>
    %658 = vector.extract_strided_slice %520 {offsets = [0, 0, 24], sizes = [2, 8, 4], strides = [1, 1, 1]} : vector<2x8x32xf32> to vector<2x8x4xf32>
    "tpu.trace_start"() <{level = 10 : i32, message = "bqk,bkd->bqd"}> : () -> ()
    %cst_218 = arith.constant dense<0.000000e+00> : vector<2x8x4xf32>
    %659 = tpu.matmul %657, %658, %cst_218 {dimension_numbers = #tpu.dot_dimension_numbers<[2], [1], [1], [2], [0, 0, 0, 1, 1, 2], [0], [0]>} : vector<2x8x8xf32>, vector<2x8x4xf32>, vector<2x8x4xf32> -> vector<2x8x4xf32>
    "tpu.trace_stop"() : () -> ()
    %660 = vector.shape_cast %659 : vector<2x8x4xf32> to vector<16x4xf32>
    %661 = vector.extract_strided_slice %522 {offsets = [24, 0], sizes = [4, 32], strides = [1, 1]} : vector<32x32xf32> to vector<4x32xf32>
    %cst_219 = arith.constant dense<0.000000e+00> : vector<16x32xf32>
    %662 = tpu.matmul %660, %661, %cst_219 {dimension_numbers = #tpu.dot_dimension_numbers<[1], [0], [0], [1], [0, 0, 1, 1], [], []>} : vector<16x4xf32>, vector<4x32xf32>, vector<16x32xf32> -> vector<16x32xf32>
    %663 = arith.addf %643, %662 : vector<16x32xf32>
    %664 = vector.extract_strided_slice %518 {offsets = [0, 0, 28], sizes = [2, 8, 4], strides = [1, 1, 1]} : vector<2x8x32xf32> to vector<2x8x4xf32>
    %665 = vector.extract_strided_slice %519 {offsets = [0, 0, 28], sizes = [2, 8, 4], strides = [1, 1, 1]} : vector<2x8x32xf32> to vector<2x8x4xf32>
    "tpu.trace_start"() <{level = 10 : i32, message = "bqd,bkd->bqk"}> : () -> ()
    %cst_220 = arith.constant dense<0.000000e+00> : vector<2x8x8xf32>
    %666 = tpu.matmul %664, %665, %cst_220 {dimension_numbers = #tpu.dot_dimension_numbers<[2], [2], [1], [1], [0, 0, 0, 1, 1, 1], [0], [0]>} : vector<2x8x4xf32>, vector<2x8x4xf32>, vector<2x8x8xf32> -> vector<2x8x8xf32>
    "tpu.trace_stop"() : () -> ()
    %667 = vector.broadcast %5 : vector<2x1x8xf32> to vector<2x8x8xf32>
    %668 = arith.addf %666, %667 : vector<2x8x8xf32>
    %cst_221 = arith.constant dense<0xFF800000> : vector<2x8xf32>
    %669 = vector.multi_reduction <maximumf>, %668, %cst_221 [2] : vector<2x8x8xf32> to vector<2x8xf32>
    %670 = vector.shape_cast %669 : vector<2x8xf32> to vector<2x8x1xf32>
    %671 = vector.broadcast %670 : vector<2x8x1xf32> to vector<2x8x8xf32>
    %672 = arith.subf %668, %671 : vector<2x8x8xf32>
    %673 = math.exp %672 : vector<2x8x8xf32>
    %cst_222 = arith.constant dense<0.000000e+00> : vector<2x8xf32>
    %674 = vector.multi_reduction <add>, %673, %cst_222 [2] : vector<2x8x8xf32> to vector<2x8xf32>
    %675 = vector.shape_cast %674 : vector<2x8xf32> to vector<2x8x1xf32>
    %676 = vector.broadcast %675 : vector<2x8x1xf32> to vector<2x8x8xf32>
    %677 = arith.divf %673, %676 : vector<2x8x8xf32>
    %678 = vector.extract_strided_slice %520 {offsets = [0, 0, 28], sizes = [2, 8, 4], strides = [1, 1, 1]} : vector<2x8x32xf32> to vector<2x8x4xf32>
    "tpu.trace_start"() <{level = 10 : i32, message = "bqk,bkd->bqd"}> : () -> ()
    %cst_223 = arith.constant dense<0.000000e+00> : vector<2x8x4xf32>
    %679 = tpu.matmul %677, %678, %cst_223 {dimension_numbers = #tpu.dot_dimension_numbers<[2], [1], [1], [2], [0, 0, 0, 1, 1, 2], [0], [0]>} : vector<2x8x8xf32>, vector<2x8x4xf32>, vector<2x8x4xf32> -> vector<2x8x4xf32>
    "tpu.trace_stop"() : () -> ()
    %680 = vector.shape_cast %679 : vector<2x8x4xf32> to vector<16x4xf32>
    %681 = vector.extract_strided_slice %522 {offsets = [28, 0], sizes = [4, 32], strides = [1, 1]} : vector<32x32xf32> to vector<4x32xf32>
    %cst_224 = arith.constant dense<0.000000e+00> : vector<16x32xf32>
    %682 = tpu.matmul %680, %681, %cst_224 {dimension_numbers = #tpu.dot_dimension_numbers<[1], [0], [0], [1], [0, 0, 1, 1], [], []>} : vector<16x4xf32>, vector<4x32xf32>, vector<16x32xf32> -> vector<16x32xf32>
    %683 = arith.addf %663, %682 : vector<16x32xf32>
    %c2_225 = arith.constant 2 : index
    %c0_226 = arith.constant 0 : index
    %c0_227 = arith.constant 0 : index
    %684 = vector.load %arg8[%c2_225, %c0_226, %c0_227] : memref<4x1x32xf32, #tpu.memory_space<vmem>>, vector<1x1x32xf32>
    %685 = vector.shape_cast %684 : vector<1x1x32xf32> to vector<1x32xf32>
    %686 = vector.broadcast %685 : vector<1x32xf32> to vector<16x32xf32>
    %687 = arith.addf %683, %686 : vector<16x32xf32>
    %c2_228 = arith.constant 2 : index
    %c0_229 = arith.constant 0 : index
    %c0_230 = arith.constant 0 : index
    %688 = vector.load %arg13[%c2_228, %c0_229, %c0_230] : memref<4x4x32xf32, #tpu.memory_space<vmem>>, vector<1x4x32xf32>
    %689 = vector.shape_cast %688 : vector<1x4x32xf32> to vector<4x32xf32>
    %690 = arith.addf %507, %687 : vector<16x32xf32>
    %691 = vector.extract_strided_slice %689 {offsets = [0, 0], sizes = [1, 32], strides = [1, 1]} : vector<4x32xf32> to vector<1x32xf32>
    %692 = vector.extract_strided_slice %689 {offsets = [1, 0], sizes = [1, 32], strides = [1, 1]} : vector<4x32xf32> to vector<1x32xf32>
    %cst_231 = arith.constant dense<0.000000e+00> : vector<16xf32>
    %693 = vector.multi_reduction <add>, %690, %cst_231 [1] : vector<16x32xf32> to vector<16xf32>
    %694 = vector.shape_cast %693 : vector<16xf32> to vector<16x1xf32>
    %cst_232 = arith.constant 3.200000e+01 : f32
    %695 = vector.broadcast %cst_232 : f32 to vector<16x1xf32>
    %696 = arith.divf %694, %695 : vector<16x1xf32>
    %697 = vector.broadcast %696 : vector<16x1xf32> to vector<16x32xf32>
    %698 = arith.subf %690, %697 : vector<16x32xf32>
    %699 = arith.mulf %698, %698 : vector<16x32xf32>
    %cst_233 = arith.constant dense<0.000000e+00> : vector<16xf32>
    %700 = vector.multi_reduction <add>, %699, %cst_233 [1] : vector<16x32xf32> to vector<16xf32>
    %701 = vector.shape_cast %700 : vector<16xf32> to vector<16x1xf32>
    %cst_234 = arith.constant 3.200000e+01 : f32
    %702 = vector.broadcast %cst_234 : f32 to vector<16x1xf32>
    %703 = arith.divf %701, %702 : vector<16x1xf32>
    %704 = vector.broadcast %696 : vector<16x1xf32> to vector<16x32xf32>
    %705 = arith.subf %690, %704 : vector<16x32xf32>
    %cst_235 = arith.constant 9.99999974E-6 : f32
    %706 = vector.broadcast %cst_235 : f32 to vector<16x1xf32>
    %707 = arith.addf %703, %706 : vector<16x1xf32>
    %708 = math.rsqrt %707 : vector<16x1xf32>
    %709 = vector.broadcast %708 : vector<16x1xf32> to vector<16x32xf32>
    %710 = arith.mulf %705, %709 : vector<16x32xf32>
    %711 = vector.broadcast %691 : vector<1x32xf32> to vector<16x32xf32>
    %712 = arith.mulf %710, %711 : vector<16x32xf32>
    %713 = vector.broadcast %692 : vector<1x32xf32> to vector<16x32xf32>
    %714 = arith.addf %712, %713 : vector<16x32xf32>
    %c2_236 = arith.constant 2 : index
    %c0_237 = arith.constant 0 : index
    %c0_238 = arith.constant 0 : index
    %715 = vector.load %arg9[%c2_236, %c0_237, %c0_238] : memref<4x32x128xf32, #tpu.memory_space<vmem>>, vector<1x32x128xf32>
    %716 = vector.shape_cast %715 : vector<1x32x128xf32> to vector<32x128xf32>
    %cst_239 = arith.constant dense<0.000000e+00> : vector<16x128xf32>
    %717 = tpu.matmul %714, %716, %cst_239 {dimension_numbers = #tpu.dot_dimension_numbers<[1], [0], [0], [1], [0, 0, 1, 1], [], []>} : vector<16x32xf32>, vector<32x128xf32>, vector<16x128xf32> -> vector<16x128xf32>
    %c2_240 = arith.constant 2 : index
    %c0_241 = arith.constant 0 : index
    %c0_242 = arith.constant 0 : index
    %718 = vector.load %arg10[%c2_240, %c0_241, %c0_242] : memref<4x1x128xf32, #tpu.memory_space<vmem>>, vector<1x1x128xf32>
    %719 = vector.shape_cast %718 : vector<1x1x128xf32> to vector<1x128xf32>
    %720 = vector.broadcast %719 : vector<1x128xf32> to vector<16x128xf32>
    %721 = arith.addf %717, %720 : vector<16x128xf32>
    %cst_243 = arith.constant 0.000000e+00 : f32
    %722 = vector.broadcast %cst_243 : f32 to vector<16x128xf32>
    %723 = arith.maximumf %721, %722 : vector<16x128xf32>
    %c2_244 = arith.constant 2 : index
    %c0_245 = arith.constant 0 : index
    %c0_246 = arith.constant 0 : index
    %724 = vector.load %arg11[%c2_244, %c0_245, %c0_246] : memref<4x128x32xf32, #tpu.memory_space<vmem>>, vector<1x128x32xf32>
    %725 = vector.shape_cast %724 : vector<1x128x32xf32> to vector<128x32xf32>
    %cst_247 = arith.constant dense<0.000000e+00> : vector<16x32xf32>
    %726 = tpu.matmul %723, %725, %cst_247 {dimension_numbers = #tpu.dot_dimension_numbers<[1], [0], [0], [1], [0, 0, 1, 1], [], []>} : vector<16x128xf32>, vector<128x32xf32>, vector<16x32xf32> -> vector<16x32xf32>
    %c2_248 = arith.constant 2 : index
    %c0_249 = arith.constant 0 : index
    %c0_250 = arith.constant 0 : index
    %727 = vector.load %arg12[%c2_248, %c0_249, %c0_250] : memref<4x1x32xf32, #tpu.memory_space<vmem>>, vector<1x1x32xf32>
    %728 = vector.shape_cast %727 : vector<1x1x32xf32> to vector<1x32xf32>
    %729 = vector.broadcast %728 : vector<1x32xf32> to vector<16x32xf32>
    %730 = arith.addf %726, %729 : vector<16x32xf32>
    %731 = arith.addf %714, %730 : vector<16x32xf32>
    %732 = vector.extract_strided_slice %689 {offsets = [2, 0], sizes = [1, 32], strides = [1, 1]} : vector<4x32xf32> to vector<1x32xf32>
    %733 = vector.extract_strided_slice %689 {offsets = [3, 0], sizes = [1, 32], strides = [1, 1]} : vector<4x32xf32> to vector<1x32xf32>
    %cst_251 = arith.constant dense<0.000000e+00> : vector<16xf32>
    %734 = vector.multi_reduction <add>, %731, %cst_251 [1] : vector<16x32xf32> to vector<16xf32>
    %735 = vector.shape_cast %734 : vector<16xf32> to vector<16x1xf32>
    %cst_252 = arith.constant 3.200000e+01 : f32
    %736 = vector.broadcast %cst_252 : f32 to vector<16x1xf32>
    %737 = arith.divf %735, %736 : vector<16x1xf32>
    %738 = vector.broadcast %737 : vector<16x1xf32> to vector<16x32xf32>
    %739 = arith.subf %731, %738 : vector<16x32xf32>
    %740 = arith.mulf %739, %739 : vector<16x32xf32>
    %cst_253 = arith.constant dense<0.000000e+00> : vector<16xf32>
    %741 = vector.multi_reduction <add>, %740, %cst_253 [1] : vector<16x32xf32> to vector<16xf32>
    %742 = vector.shape_cast %741 : vector<16xf32> to vector<16x1xf32>
    %cst_254 = arith.constant 3.200000e+01 : f32
    %743 = vector.broadcast %cst_254 : f32 to vector<16x1xf32>
    %744 = arith.divf %742, %743 : vector<16x1xf32>
    %745 = vector.broadcast %737 : vector<16x1xf32> to vector<16x32xf32>
    %746 = arith.subf %731, %745 : vector<16x32xf32>
    %cst_255 = arith.constant 9.99999974E-6 : f32
    %747 = vector.broadcast %cst_255 : f32 to vector<16x1xf32>
    %748 = arith.addf %744, %747 : vector<16x1xf32>
    %749 = math.rsqrt %748 : vector<16x1xf32>
    %750 = vector.broadcast %749 : vector<16x1xf32> to vector<16x32xf32>
    %751 = arith.mulf %746, %750 : vector<16x32xf32>
    %752 = vector.broadcast %732 : vector<1x32xf32> to vector<16x32xf32>
    %753 = arith.mulf %751, %752 : vector<16x32xf32>
    %754 = vector.broadcast %733 : vector<1x32xf32> to vector<16x32xf32>
    %755 = arith.addf %753, %754 : vector<16x32xf32>
    %c3 = arith.constant 3 : index
    %c0_256 = arith.constant 0 : index
    %c0_257 = arith.constant 0 : index
    %756 = vector.load %arg5[%c3, %c0_256, %c0_257] : memref<4x32x96xf32, #tpu.memory_space<vmem>>, vector<1x32x96xf32>
    %757 = vector.shape_cast %756 : vector<1x32x96xf32> to vector<32x96xf32>
    %cst_258 = arith.constant dense<0.000000e+00> : vector<16x96xf32>
    %758 = tpu.matmul %755, %757, %cst_258 {dimension_numbers = #tpu.dot_dimension_numbers<[1], [0], [0], [1], [0, 0, 1, 1], [], []>} : vector<16x32xf32>, vector<32x96xf32>, vector<16x96xf32> -> vector<16x96xf32>
    %c3_259 = arith.constant 3 : index
    %c0_260 = arith.constant 0 : index
    %c0_261 = arith.constant 0 : index
    %759 = vector.load %arg6[%c3_259, %c0_260, %c0_261] : memref<4x1x96xf32, #tpu.memory_space<vmem>>, vector<1x1x96xf32>
    %760 = vector.shape_cast %759 : vector<1x1x96xf32> to vector<1x96xf32>
    %761 = vector.broadcast %760 : vector<1x96xf32> to vector<16x96xf32>
    %762 = arith.addf %758, %761 : vector<16x96xf32>
    %763 = vector.shape_cast %762 : vector<16x96xf32> to vector<2x8x96xf32>
    %764 = vector.extract_strided_slice %763 {offsets = [0, 0, 0], sizes = [2, 8, 32], strides = [1, 1, 1]} : vector<2x8x96xf32> to vector<2x8x32xf32>
    %cst_262 = arith.constant 5.000000e-01 : f32
    %765 = vector.broadcast %cst_262 : f32 to vector<2x8x32xf32>
    %766 = arith.mulf %764, %765 : vector<2x8x32xf32>
    %767 = vector.extract_strided_slice %763 {offsets = [0, 0, 32], sizes = [2, 8, 32], strides = [1, 1, 1]} : vector<2x8x96xf32> to vector<2x8x32xf32>
    %768 = vector.extract_strided_slice %763 {offsets = [0, 0, 64], sizes = [2, 8, 32], strides = [1, 1, 1]} : vector<2x8x96xf32> to vector<2x8x32xf32>
    %c3_263 = arith.constant 3 : index
    %c0_264 = arith.constant 0 : index
    %c0_265 = arith.constant 0 : index
    %769 = vector.load %arg7[%c3_263, %c0_264, %c0_265] : memref<4x32x32xf32, #tpu.memory_space<vmem>>, vector<1x32x32xf32>
    %770 = vector.shape_cast %769 : vector<1x32x32xf32> to vector<32x32xf32>
    %cst_266 = arith.constant 0.000000e+00 : f32
    %771 = vector.broadcast %cst_266 : f32 to vector<16x32xf32>
    %772 = vector.extract_strided_slice %766 {offsets = [0, 0, 0], sizes = [2, 8, 4], strides = [1, 1, 1]} : vector<2x8x32xf32> to vector<2x8x4xf32>
    %773 = vector.extract_strided_slice %767 {offsets = [0, 0, 0], sizes = [2, 8, 4], strides = [1, 1, 1]} : vector<2x8x32xf32> to vector<2x8x4xf32>
    "tpu.trace_start"() <{level = 10 : i32, message = "bqd,bkd->bqk"}> : () -> ()
    %cst_267 = arith.constant dense<0.000000e+00> : vector<2x8x8xf32>
    %774 = tpu.matmul %772, %773, %cst_267 {dimension_numbers = #tpu.dot_dimension_numbers<[2], [2], [1], [1], [0, 0, 0, 1, 1, 1], [0], [0]>} : vector<2x8x4xf32>, vector<2x8x4xf32>, vector<2x8x8xf32> -> vector<2x8x8xf32>
    "tpu.trace_stop"() : () -> ()
    %775 = vector.broadcast %5 : vector<2x1x8xf32> to vector<2x8x8xf32>
    %776 = arith.addf %774, %775 : vector<2x8x8xf32>
    %cst_268 = arith.constant dense<0xFF800000> : vector<2x8xf32>
    %777 = vector.multi_reduction <maximumf>, %776, %cst_268 [2] : vector<2x8x8xf32> to vector<2x8xf32>
    %778 = vector.shape_cast %777 : vector<2x8xf32> to vector<2x8x1xf32>
    %779 = vector.broadcast %778 : vector<2x8x1xf32> to vector<2x8x8xf32>
    %780 = arith.subf %776, %779 : vector<2x8x8xf32>
    %781 = math.exp %780 : vector<2x8x8xf32>
    %cst_269 = arith.constant dense<0.000000e+00> : vector<2x8xf32>
    %782 = vector.multi_reduction <add>, %781, %cst_269 [2] : vector<2x8x8xf32> to vector<2x8xf32>
    %783 = vector.shape_cast %782 : vector<2x8xf32> to vector<2x8x1xf32>
    %784 = vector.broadcast %783 : vector<2x8x1xf32> to vector<2x8x8xf32>
    %785 = arith.divf %781, %784 : vector<2x8x8xf32>
    %786 = vector.extract_strided_slice %768 {offsets = [0, 0, 0], sizes = [2, 8, 4], strides = [1, 1, 1]} : vector<2x8x32xf32> to vector<2x8x4xf32>
    "tpu.trace_start"() <{level = 10 : i32, message = "bqk,bkd->bqd"}> : () -> ()
    %cst_270 = arith.constant dense<0.000000e+00> : vector<2x8x4xf32>
    %787 = tpu.matmul %785, %786, %cst_270 {dimension_numbers = #tpu.dot_dimension_numbers<[2], [1], [1], [2], [0, 0, 0, 1, 1, 2], [0], [0]>} : vector<2x8x8xf32>, vector<2x8x4xf32>, vector<2x8x4xf32> -> vector<2x8x4xf32>
    "tpu.trace_stop"() : () -> ()
    %788 = vector.shape_cast %787 : vector<2x8x4xf32> to vector<16x4xf32>
    %789 = vector.extract_strided_slice %770 {offsets = [0, 0], sizes = [4, 32], strides = [1, 1]} : vector<32x32xf32> to vector<4x32xf32>
    %cst_271 = arith.constant dense<0.000000e+00> : vector<16x32xf32>
    %790 = tpu.matmul %788, %789, %cst_271 {dimension_numbers = #tpu.dot_dimension_numbers<[1], [0], [0], [1], [0, 0, 1, 1], [], []>} : vector<16x4xf32>, vector<4x32xf32>, vector<16x32xf32> -> vector<16x32xf32>
    %791 = arith.addf %771, %790 : vector<16x32xf32>
    %792 = vector.extract_strided_slice %766 {offsets = [0, 0, 4], sizes = [2, 8, 4], strides = [1, 1, 1]} : vector<2x8x32xf32> to vector<2x8x4xf32>
    %793 = vector.extract_strided_slice %767 {offsets = [0, 0, 4], sizes = [2, 8, 4], strides = [1, 1, 1]} : vector<2x8x32xf32> to vector<2x8x4xf32>
    "tpu.trace_start"() <{level = 10 : i32, message = "bqd,bkd->bqk"}> : () -> ()
    %cst_272 = arith.constant dense<0.000000e+00> : vector<2x8x8xf32>
    %794 = tpu.matmul %792, %793, %cst_272 {dimension_numbers = #tpu.dot_dimension_numbers<[2], [2], [1], [1], [0, 0, 0, 1, 1, 1], [0], [0]>} : vector<2x8x4xf32>, vector<2x8x4xf32>, vector<2x8x8xf32> -> vector<2x8x8xf32>
    "tpu.trace_stop"() : () -> ()
    %795 = vector.broadcast %5 : vector<2x1x8xf32> to vector<2x8x8xf32>
    %796 = arith.addf %794, %795 : vector<2x8x8xf32>
    %cst_273 = arith.constant dense<0xFF800000> : vector<2x8xf32>
    %797 = vector.multi_reduction <maximumf>, %796, %cst_273 [2] : vector<2x8x8xf32> to vector<2x8xf32>
    %798 = vector.shape_cast %797 : vector<2x8xf32> to vector<2x8x1xf32>
    %799 = vector.broadcast %798 : vector<2x8x1xf32> to vector<2x8x8xf32>
    %800 = arith.subf %796, %799 : vector<2x8x8xf32>
    %801 = math.exp %800 : vector<2x8x8xf32>
    %cst_274 = arith.constant dense<0.000000e+00> : vector<2x8xf32>
    %802 = vector.multi_reduction <add>, %801, %cst_274 [2] : vector<2x8x8xf32> to vector<2x8xf32>
    %803 = vector.shape_cast %802 : vector<2x8xf32> to vector<2x8x1xf32>
    %804 = vector.broadcast %803 : vector<2x8x1xf32> to vector<2x8x8xf32>
    %805 = arith.divf %801, %804 : vector<2x8x8xf32>
    %806 = vector.extract_strided_slice %768 {offsets = [0, 0, 4], sizes = [2, 8, 4], strides = [1, 1, 1]} : vector<2x8x32xf32> to vector<2x8x4xf32>
    "tpu.trace_start"() <{level = 10 : i32, message = "bqk,bkd->bqd"}> : () -> ()
    %cst_275 = arith.constant dense<0.000000e+00> : vector<2x8x4xf32>
    %807 = tpu.matmul %805, %806, %cst_275 {dimension_numbers = #tpu.dot_dimension_numbers<[2], [1], [1], [2], [0, 0, 0, 1, 1, 2], [0], [0]>} : vector<2x8x8xf32>, vector<2x8x4xf32>, vector<2x8x4xf32> -> vector<2x8x4xf32>
    "tpu.trace_stop"() : () -> ()
    %808 = vector.shape_cast %807 : vector<2x8x4xf32> to vector<16x4xf32>
    %809 = vector.extract_strided_slice %770 {offsets = [4, 0], sizes = [4, 32], strides = [1, 1]} : vector<32x32xf32> to vector<4x32xf32>
    %cst_276 = arith.constant dense<0.000000e+00> : vector<16x32xf32>
    %810 = tpu.matmul %808, %809, %cst_276 {dimension_numbers = #tpu.dot_dimension_numbers<[1], [0], [0], [1], [0, 0, 1, 1], [], []>} : vector<16x4xf32>, vector<4x32xf32>, vector<16x32xf32> -> vector<16x32xf32>
    %811 = arith.addf %791, %810 : vector<16x32xf32>
    %812 = vector.extract_strided_slice %766 {offsets = [0, 0, 8], sizes = [2, 8, 4], strides = [1, 1, 1]} : vector<2x8x32xf32> to vector<2x8x4xf32>
    %813 = vector.extract_strided_slice %767 {offsets = [0, 0, 8], sizes = [2, 8, 4], strides = [1, 1, 1]} : vector<2x8x32xf32> to vector<2x8x4xf32>
    "tpu.trace_start"() <{level = 10 : i32, message = "bqd,bkd->bqk"}> : () -> ()
    %cst_277 = arith.constant dense<0.000000e+00> : vector<2x8x8xf32>
    %814 = tpu.matmul %812, %813, %cst_277 {dimension_numbers = #tpu.dot_dimension_numbers<[2], [2], [1], [1], [0, 0, 0, 1, 1, 1], [0], [0]>} : vector<2x8x4xf32>, vector<2x8x4xf32>, vector<2x8x8xf32> -> vector<2x8x8xf32>
    "tpu.trace_stop"() : () -> ()
    %815 = vector.broadcast %5 : vector<2x1x8xf32> to vector<2x8x8xf32>
    %816 = arith.addf %814, %815 : vector<2x8x8xf32>
    %cst_278 = arith.constant dense<0xFF800000> : vector<2x8xf32>
    %817 = vector.multi_reduction <maximumf>, %816, %cst_278 [2] : vector<2x8x8xf32> to vector<2x8xf32>
    %818 = vector.shape_cast %817 : vector<2x8xf32> to vector<2x8x1xf32>
    %819 = vector.broadcast %818 : vector<2x8x1xf32> to vector<2x8x8xf32>
    %820 = arith.subf %816, %819 : vector<2x8x8xf32>
    %821 = math.exp %820 : vector<2x8x8xf32>
    %cst_279 = arith.constant dense<0.000000e+00> : vector<2x8xf32>
    %822 = vector.multi_reduction <add>, %821, %cst_279 [2] : vector<2x8x8xf32> to vector<2x8xf32>
    %823 = vector.shape_cast %822 : vector<2x8xf32> to vector<2x8x1xf32>
    %824 = vector.broadcast %823 : vector<2x8x1xf32> to vector<2x8x8xf32>
    %825 = arith.divf %821, %824 : vector<2x8x8xf32>
    %826 = vector.extract_strided_slice %768 {offsets = [0, 0, 8], sizes = [2, 8, 4], strides = [1, 1, 1]} : vector<2x8x32xf32> to vector<2x8x4xf32>
    "tpu.trace_start"() <{level = 10 : i32, message = "bqk,bkd->bqd"}> : () -> ()
    %cst_280 = arith.constant dense<0.000000e+00> : vector<2x8x4xf32>
    %827 = tpu.matmul %825, %826, %cst_280 {dimension_numbers = #tpu.dot_dimension_numbers<[2], [1], [1], [2], [0, 0, 0, 1, 1, 2], [0], [0]>} : vector<2x8x8xf32>, vector<2x8x4xf32>, vector<2x8x4xf32> -> vector<2x8x4xf32>
    "tpu.trace_stop"() : () -> ()
    %828 = vector.shape_cast %827 : vector<2x8x4xf32> to vector<16x4xf32>
    %829 = vector.extract_strided_slice %770 {offsets = [8, 0], sizes = [4, 32], strides = [1, 1]} : vector<32x32xf32> to vector<4x32xf32>
    %cst_281 = arith.constant dense<0.000000e+00> : vector<16x32xf32>
    %830 = tpu.matmul %828, %829, %cst_281 {dimension_numbers = #tpu.dot_dimension_numbers<[1], [0], [0], [1], [0, 0, 1, 1], [], []>} : vector<16x4xf32>, vector<4x32xf32>, vector<16x32xf32> -> vector<16x32xf32>
    %831 = arith.addf %811, %830 : vector<16x32xf32>
    %832 = vector.extract_strided_slice %766 {offsets = [0, 0, 12], sizes = [2, 8, 4], strides = [1, 1, 1]} : vector<2x8x32xf32> to vector<2x8x4xf32>
    %833 = vector.extract_strided_slice %767 {offsets = [0, 0, 12], sizes = [2, 8, 4], strides = [1, 1, 1]} : vector<2x8x32xf32> to vector<2x8x4xf32>
    "tpu.trace_start"() <{level = 10 : i32, message = "bqd,bkd->bqk"}> : () -> ()
    %cst_282 = arith.constant dense<0.000000e+00> : vector<2x8x8xf32>
    %834 = tpu.matmul %832, %833, %cst_282 {dimension_numbers = #tpu.dot_dimension_numbers<[2], [2], [1], [1], [0, 0, 0, 1, 1, 1], [0], [0]>} : vector<2x8x4xf32>, vector<2x8x4xf32>, vector<2x8x8xf32> -> vector<2x8x8xf32>
    "tpu.trace_stop"() : () -> ()
    %835 = vector.broadcast %5 : vector<2x1x8xf32> to vector<2x8x8xf32>
    %836 = arith.addf %834, %835 : vector<2x8x8xf32>
    %cst_283 = arith.constant dense<0xFF800000> : vector<2x8xf32>
    %837 = vector.multi_reduction <maximumf>, %836, %cst_283 [2] : vector<2x8x8xf32> to vector<2x8xf32>
    %838 = vector.shape_cast %837 : vector<2x8xf32> to vector<2x8x1xf32>
    %839 = vector.broadcast %838 : vector<2x8x1xf32> to vector<2x8x8xf32>
    %840 = arith.subf %836, %839 : vector<2x8x8xf32>
    %841 = math.exp %840 : vector<2x8x8xf32>
    %cst_284 = arith.constant dense<0.000000e+00> : vector<2x8xf32>
    %842 = vector.multi_reduction <add>, %841, %cst_284 [2] : vector<2x8x8xf32> to vector<2x8xf32>
    %843 = vector.shape_cast %842 : vector<2x8xf32> to vector<2x8x1xf32>
    %844 = vector.broadcast %843 : vector<2x8x1xf32> to vector<2x8x8xf32>
    %845 = arith.divf %841, %844 : vector<2x8x8xf32>
    %846 = vector.extract_strided_slice %768 {offsets = [0, 0, 12], sizes = [2, 8, 4], strides = [1, 1, 1]} : vector<2x8x32xf32> to vector<2x8x4xf32>
    "tpu.trace_start"() <{level = 10 : i32, message = "bqk,bkd->bqd"}> : () -> ()
    %cst_285 = arith.constant dense<0.000000e+00> : vector<2x8x4xf32>
    %847 = tpu.matmul %845, %846, %cst_285 {dimension_numbers = #tpu.dot_dimension_numbers<[2], [1], [1], [2], [0, 0, 0, 1, 1, 2], [0], [0]>} : vector<2x8x8xf32>, vector<2x8x4xf32>, vector<2x8x4xf32> -> vector<2x8x4xf32>
    "tpu.trace_stop"() : () -> ()
    %848 = vector.shape_cast %847 : vector<2x8x4xf32> to vector<16x4xf32>
    %849 = vector.extract_strided_slice %770 {offsets = [12, 0], sizes = [4, 32], strides = [1, 1]} : vector<32x32xf32> to vector<4x32xf32>
    %cst_286 = arith.constant dense<0.000000e+00> : vector<16x32xf32>
    %850 = tpu.matmul %848, %849, %cst_286 {dimension_numbers = #tpu.dot_dimension_numbers<[1], [0], [0], [1], [0, 0, 1, 1], [], []>} : vector<16x4xf32>, vector<4x32xf32>, vector<16x32xf32> -> vector<16x32xf32>
    %851 = arith.addf %831, %850 : vector<16x32xf32>
    %852 = vector.extract_strided_slice %766 {offsets = [0, 0, 16], sizes = [2, 8, 4], strides = [1, 1, 1]} : vector<2x8x32xf32> to vector<2x8x4xf32>
    %853 = vector.extract_strided_slice %767 {offsets = [0, 0, 16], sizes = [2, 8, 4], strides = [1, 1, 1]} : vector<2x8x32xf32> to vector<2x8x4xf32>
    "tpu.trace_start"() <{level = 10 : i32, message = "bqd,bkd->bqk"}> : () -> ()
    %cst_287 = arith.constant dense<0.000000e+00> : vector<2x8x8xf32>
    %854 = tpu.matmul %852, %853, %cst_287 {dimension_numbers = #tpu.dot_dimension_numbers<[2], [2], [1], [1], [0, 0, 0, 1, 1, 1], [0], [0]>} : vector<2x8x4xf32>, vector<2x8x4xf32>, vector<2x8x8xf32> -> vector<2x8x8xf32>
    "tpu.trace_stop"() : () -> ()
    %855 = vector.broadcast %5 : vector<2x1x8xf32> to vector<2x8x8xf32>
    %856 = arith.addf %854, %855 : vector<2x8x8xf32>
    %cst_288 = arith.constant dense<0xFF800000> : vector<2x8xf32>
    %857 = vector.multi_reduction <maximumf>, %856, %cst_288 [2] : vector<2x8x8xf32> to vector<2x8xf32>
    %858 = vector.shape_cast %857 : vector<2x8xf32> to vector<2x8x1xf32>
    %859 = vector.broadcast %858 : vector<2x8x1xf32> to vector<2x8x8xf32>
    %860 = arith.subf %856, %859 : vector<2x8x8xf32>
    %861 = math.exp %860 : vector<2x8x8xf32>
    %cst_289 = arith.constant dense<0.000000e+00> : vector<2x8xf32>
    %862 = vector.multi_reduction <add>, %861, %cst_289 [2] : vector<2x8x8xf32> to vector<2x8xf32>
    %863 = vector.shape_cast %862 : vector<2x8xf32> to vector<2x8x1xf32>
    %864 = vector.broadcast %863 : vector<2x8x1xf32> to vector<2x8x8xf32>
    %865 = arith.divf %861, %864 : vector<2x8x8xf32>
    %866 = vector.extract_strided_slice %768 {offsets = [0, 0, 16], sizes = [2, 8, 4], strides = [1, 1, 1]} : vector<2x8x32xf32> to vector<2x8x4xf32>
    "tpu.trace_start"() <{level = 10 : i32, message = "bqk,bkd->bqd"}> : () -> ()
    %cst_290 = arith.constant dense<0.000000e+00> : vector<2x8x4xf32>
    %867 = tpu.matmul %865, %866, %cst_290 {dimension_numbers = #tpu.dot_dimension_numbers<[2], [1], [1], [2], [0, 0, 0, 1, 1, 2], [0], [0]>} : vector<2x8x8xf32>, vector<2x8x4xf32>, vector<2x8x4xf32> -> vector<2x8x4xf32>
    "tpu.trace_stop"() : () -> ()
    %868 = vector.shape_cast %867 : vector<2x8x4xf32> to vector<16x4xf32>
    %869 = vector.extract_strided_slice %770 {offsets = [16, 0], sizes = [4, 32], strides = [1, 1]} : vector<32x32xf32> to vector<4x32xf32>
    %cst_291 = arith.constant dense<0.000000e+00> : vector<16x32xf32>
    %870 = tpu.matmul %868, %869, %cst_291 {dimension_numbers = #tpu.dot_dimension_numbers<[1], [0], [0], [1], [0, 0, 1, 1], [], []>} : vector<16x4xf32>, vector<4x32xf32>, vector<16x32xf32> -> vector<16x32xf32>
    %871 = arith.addf %851, %870 : vector<16x32xf32>
    %872 = vector.extract_strided_slice %766 {offsets = [0, 0, 20], sizes = [2, 8, 4], strides = [1, 1, 1]} : vector<2x8x32xf32> to vector<2x8x4xf32>
    %873 = vector.extract_strided_slice %767 {offsets = [0, 0, 20], sizes = [2, 8, 4], strides = [1, 1, 1]} : vector<2x8x32xf32> to vector<2x8x4xf32>
    "tpu.trace_start"() <{level = 10 : i32, message = "bqd,bkd->bqk"}> : () -> ()
    %cst_292 = arith.constant dense<0.000000e+00> : vector<2x8x8xf32>
    %874 = tpu.matmul %872, %873, %cst_292 {dimension_numbers = #tpu.dot_dimension_numbers<[2], [2], [1], [1], [0, 0, 0, 1, 1, 1], [0], [0]>} : vector<2x8x4xf32>, vector<2x8x4xf32>, vector<2x8x8xf32> -> vector<2x8x8xf32>
    "tpu.trace_stop"() : () -> ()
    %875 = vector.broadcast %5 : vector<2x1x8xf32> to vector<2x8x8xf32>
    %876 = arith.addf %874, %875 : vector<2x8x8xf32>
    %cst_293 = arith.constant dense<0xFF800000> : vector<2x8xf32>
    %877 = vector.multi_reduction <maximumf>, %876, %cst_293 [2] : vector<2x8x8xf32> to vector<2x8xf32>
    %878 = vector.shape_cast %877 : vector<2x8xf32> to vector<2x8x1xf32>
    %879 = vector.broadcast %878 : vector<2x8x1xf32> to vector<2x8x8xf32>
    %880 = arith.subf %876, %879 : vector<2x8x8xf32>
    %881 = math.exp %880 : vector<2x8x8xf32>
    %cst_294 = arith.constant dense<0.000000e+00> : vector<2x8xf32>
    %882 = vector.multi_reduction <add>, %881, %cst_294 [2] : vector<2x8x8xf32> to vector<2x8xf32>
    %883 = vector.shape_cast %882 : vector<2x8xf32> to vector<2x8x1xf32>
    %884 = vector.broadcast %883 : vector<2x8x1xf32> to vector<2x8x8xf32>
    %885 = arith.divf %881, %884 : vector<2x8x8xf32>
    %886 = vector.extract_strided_slice %768 {offsets = [0, 0, 20], sizes = [2, 8, 4], strides = [1, 1, 1]} : vector<2x8x32xf32> to vector<2x8x4xf32>
    "tpu.trace_start"() <{level = 10 : i32, message = "bqk,bkd->bqd"}> : () -> ()
    %cst_295 = arith.constant dense<0.000000e+00> : vector<2x8x4xf32>
    %887 = tpu.matmul %885, %886, %cst_295 {dimension_numbers = #tpu.dot_dimension_numbers<[2], [1], [1], [2], [0, 0, 0, 1, 1, 2], [0], [0]>} : vector<2x8x8xf32>, vector<2x8x4xf32>, vector<2x8x4xf32> -> vector<2x8x4xf32>
    "tpu.trace_stop"() : () -> ()
    %888 = vector.shape_cast %887 : vector<2x8x4xf32> to vector<16x4xf32>
    %889 = vector.extract_strided_slice %770 {offsets = [20, 0], sizes = [4, 32], strides = [1, 1]} : vector<32x32xf32> to vector<4x32xf32>
    %cst_296 = arith.constant dense<0.000000e+00> : vector<16x32xf32>
    %890 = tpu.matmul %888, %889, %cst_296 {dimension_numbers = #tpu.dot_dimension_numbers<[1], [0], [0], [1], [0, 0, 1, 1], [], []>} : vector<16x4xf32>, vector<4x32xf32>, vector<16x32xf32> -> vector<16x32xf32>
    %891 = arith.addf %871, %890 : vector<16x32xf32>
    %892 = vector.extract_strided_slice %766 {offsets = [0, 0, 24], sizes = [2, 8, 4], strides = [1, 1, 1]} : vector<2x8x32xf32> to vector<2x8x4xf32>
    %893 = vector.extract_strided_slice %767 {offsets = [0, 0, 24], sizes = [2, 8, 4], strides = [1, 1, 1]} : vector<2x8x32xf32> to vector<2x8x4xf32>
    "tpu.trace_start"() <{level = 10 : i32, message = "bqd,bkd->bqk"}> : () -> ()
    %cst_297 = arith.constant dense<0.000000e+00> : vector<2x8x8xf32>
    %894 = tpu.matmul %892, %893, %cst_297 {dimension_numbers = #tpu.dot_dimension_numbers<[2], [2], [1], [1], [0, 0, 0, 1, 1, 1], [0], [0]>} : vector<2x8x4xf32>, vector<2x8x4xf32>, vector<2x8x8xf32> -> vector<2x8x8xf32>
    "tpu.trace_stop"() : () -> ()
    %895 = vector.broadcast %5 : vector<2x1x8xf32> to vector<2x8x8xf32>
    %896 = arith.addf %894, %895 : vector<2x8x8xf32>
    %cst_298 = arith.constant dense<0xFF800000> : vector<2x8xf32>
    %897 = vector.multi_reduction <maximumf>, %896, %cst_298 [2] : vector<2x8x8xf32> to vector<2x8xf32>
    %898 = vector.shape_cast %897 : vector<2x8xf32> to vector<2x8x1xf32>
    %899 = vector.broadcast %898 : vector<2x8x1xf32> to vector<2x8x8xf32>
    %900 = arith.subf %896, %899 : vector<2x8x8xf32>
    %901 = math.exp %900 : vector<2x8x8xf32>
    %cst_299 = arith.constant dense<0.000000e+00> : vector<2x8xf32>
    %902 = vector.multi_reduction <add>, %901, %cst_299 [2] : vector<2x8x8xf32> to vector<2x8xf32>
    %903 = vector.shape_cast %902 : vector<2x8xf32> to vector<2x8x1xf32>
    %904 = vector.broadcast %903 : vector<2x8x1xf32> to vector<2x8x8xf32>
    %905 = arith.divf %901, %904 : vector<2x8x8xf32>
    %906 = vector.extract_strided_slice %768 {offsets = [0, 0, 24], sizes = [2, 8, 4], strides = [1, 1, 1]} : vector<2x8x32xf32> to vector<2x8x4xf32>
    "tpu.trace_start"() <{level = 10 : i32, message = "bqk,bkd->bqd"}> : () -> ()
    %cst_300 = arith.constant dense<0.000000e+00> : vector<2x8x4xf32>
    %907 = tpu.matmul %905, %906, %cst_300 {dimension_numbers = #tpu.dot_dimension_numbers<[2], [1], [1], [2], [0, 0, 0, 1, 1, 2], [0], [0]>} : vector<2x8x8xf32>, vector<2x8x4xf32>, vector<2x8x4xf32> -> vector<2x8x4xf32>
    "tpu.trace_stop"() : () -> ()
    %908 = vector.shape_cast %907 : vector<2x8x4xf32> to vector<16x4xf32>
    %909 = vector.extract_strided_slice %770 {offsets = [24, 0], sizes = [4, 32], strides = [1, 1]} : vector<32x32xf32> to vector<4x32xf32>
    %cst_301 = arith.constant dense<0.000000e+00> : vector<16x32xf32>
    %910 = tpu.matmul %908, %909, %cst_301 {dimension_numbers = #tpu.dot_dimension_numbers<[1], [0], [0], [1], [0, 0, 1, 1], [], []>} : vector<16x4xf32>, vector<4x32xf32>, vector<16x32xf32> -> vector<16x32xf32>
    %911 = arith.addf %891, %910 : vector<16x32xf32>
    %912 = vector.extract_strided_slice %766 {offsets = [0, 0, 28], sizes = [2, 8, 4], strides = [1, 1, 1]} : vector<2x8x32xf32> to vector<2x8x4xf32>
    %913 = vector.extract_strided_slice %767 {offsets = [0, 0, 28], sizes = [2, 8, 4], strides = [1, 1, 1]} : vector<2x8x32xf32> to vector<2x8x4xf32>
    "tpu.trace_start"() <{level = 10 : i32, message = "bqd,bkd->bqk"}> : () -> ()
    %cst_302 = arith.constant dense<0.000000e+00> : vector<2x8x8xf32>
    %914 = tpu.matmul %912, %913, %cst_302 {dimension_numbers = #tpu.dot_dimension_numbers<[2], [2], [1], [1], [0, 0, 0, 1, 1, 1], [0], [0]>} : vector<2x8x4xf32>, vector<2x8x4xf32>, vector<2x8x8xf32> -> vector<2x8x8xf32>
    "tpu.trace_stop"() : () -> ()
    %915 = vector.broadcast %5 : vector<2x1x8xf32> to vector<2x8x8xf32>
    %916 = arith.addf %914, %915 : vector<2x8x8xf32>
    %cst_303 = arith.constant dense<0xFF800000> : vector<2x8xf32>
    %917 = vector.multi_reduction <maximumf>, %916, %cst_303 [2] : vector<2x8x8xf32> to vector<2x8xf32>
    %918 = vector.shape_cast %917 : vector<2x8xf32> to vector<2x8x1xf32>
    %919 = vector.broadcast %918 : vector<2x8x1xf32> to vector<2x8x8xf32>
    %920 = arith.subf %916, %919 : vector<2x8x8xf32>
    %921 = math.exp %920 : vector<2x8x8xf32>
    %cst_304 = arith.constant dense<0.000000e+00> : vector<2x8xf32>
    %922 = vector.multi_reduction <add>, %921, %cst_304 [2] : vector<2x8x8xf32> to vector<2x8xf32>
    %923 = vector.shape_cast %922 : vector<2x8xf32> to vector<2x8x1xf32>
    %924 = vector.broadcast %923 : vector<2x8x1xf32> to vector<2x8x8xf32>
    %925 = arith.divf %921, %924 : vector<2x8x8xf32>
    %926 = vector.extract_strided_slice %768 {offsets = [0, 0, 28], sizes = [2, 8, 4], strides = [1, 1, 1]} : vector<2x8x32xf32> to vector<2x8x4xf32>
    "tpu.trace_start"() <{level = 10 : i32, message = "bqk,bkd->bqd"}> : () -> ()
    %cst_305 = arith.constant dense<0.000000e+00> : vector<2x8x4xf32>
    %927 = tpu.matmul %925, %926, %cst_305 {dimension_numbers = #tpu.dot_dimension_numbers<[2], [1], [1], [2], [0, 0, 0, 1, 1, 2], [0], [0]>} : vector<2x8x8xf32>, vector<2x8x4xf32>, vector<2x8x4xf32> -> vector<2x8x4xf32>
    "tpu.trace_stop"() : () -> ()
    %928 = vector.shape_cast %927 : vector<2x8x4xf32> to vector<16x4xf32>
    %929 = vector.extract_strided_slice %770 {offsets = [28, 0], sizes = [4, 32], strides = [1, 1]} : vector<32x32xf32> to vector<4x32xf32>
    %cst_306 = arith.constant dense<0.000000e+00> : vector<16x32xf32>
    %930 = tpu.matmul %928, %929, %cst_306 {dimension_numbers = #tpu.dot_dimension_numbers<[1], [0], [0], [1], [0, 0, 1, 1], [], []>} : vector<16x4xf32>, vector<4x32xf32>, vector<16x32xf32> -> vector<16x32xf32>
    %931 = arith.addf %911, %930 : vector<16x32xf32>
    %c3_307 = arith.constant 3 : index
    %c0_308 = arith.constant 0 : index
    %c0_309 = arith.constant 0 : index
    %932 = vector.load %arg8[%c3_307, %c0_308, %c0_309] : memref<4x1x32xf32, #tpu.memory_space<vmem>>, vector<1x1x32xf32>
    %933 = vector.shape_cast %932 : vector<1x1x32xf32> to vector<1x32xf32>
    %934 = vector.broadcast %933 : vector<1x32xf32> to vector<16x32xf32>
    %935 = arith.addf %931, %934 : vector<16x32xf32>
    %c3_310 = arith.constant 3 : index
    %c0_311 = arith.constant 0 : index
    %c0_312 = arith.constant 0 : index
    %936 = vector.load %arg13[%c3_310, %c0_311, %c0_312] : memref<4x4x32xf32, #tpu.memory_space<vmem>>, vector<1x4x32xf32>
    %937 = vector.shape_cast %936 : vector<1x4x32xf32> to vector<4x32xf32>
    %938 = arith.addf %755, %935 : vector<16x32xf32>
    %939 = vector.extract_strided_slice %937 {offsets = [0, 0], sizes = [1, 32], strides = [1, 1]} : vector<4x32xf32> to vector<1x32xf32>
    %940 = vector.extract_strided_slice %937 {offsets = [1, 0], sizes = [1, 32], strides = [1, 1]} : vector<4x32xf32> to vector<1x32xf32>
    %cst_313 = arith.constant dense<0.000000e+00> : vector<16xf32>
    %941 = vector.multi_reduction <add>, %938, %cst_313 [1] : vector<16x32xf32> to vector<16xf32>
    %942 = vector.shape_cast %941 : vector<16xf32> to vector<16x1xf32>
    %cst_314 = arith.constant 3.200000e+01 : f32
    %943 = vector.broadcast %cst_314 : f32 to vector<16x1xf32>
    %944 = arith.divf %942, %943 : vector<16x1xf32>
    %945 = vector.broadcast %944 : vector<16x1xf32> to vector<16x32xf32>
    %946 = arith.subf %938, %945 : vector<16x32xf32>
    %947 = arith.mulf %946, %946 : vector<16x32xf32>
    %cst_315 = arith.constant dense<0.000000e+00> : vector<16xf32>
    %948 = vector.multi_reduction <add>, %947, %cst_315 [1] : vector<16x32xf32> to vector<16xf32>
    %949 = vector.shape_cast %948 : vector<16xf32> to vector<16x1xf32>
    %cst_316 = arith.constant 3.200000e+01 : f32
    %950 = vector.broadcast %cst_316 : f32 to vector<16x1xf32>
    %951 = arith.divf %949, %950 : vector<16x1xf32>
    %952 = vector.broadcast %944 : vector<16x1xf32> to vector<16x32xf32>
    %953 = arith.subf %938, %952 : vector<16x32xf32>
    %cst_317 = arith.constant 9.99999974E-6 : f32
    %954 = vector.broadcast %cst_317 : f32 to vector<16x1xf32>
    %955 = arith.addf %951, %954 : vector<16x1xf32>
    %956 = math.rsqrt %955 : vector<16x1xf32>
    %957 = vector.broadcast %956 : vector<16x1xf32> to vector<16x32xf32>
    %958 = arith.mulf %953, %957 : vector<16x32xf32>
    %959 = vector.broadcast %939 : vector<1x32xf32> to vector<16x32xf32>
    %960 = arith.mulf %958, %959 : vector<16x32xf32>
    %961 = vector.broadcast %940 : vector<1x32xf32> to vector<16x32xf32>
    %962 = arith.addf %960, %961 : vector<16x32xf32>
    %c3_318 = arith.constant 3 : index
    %c0_319 = arith.constant 0 : index
    %c0_320 = arith.constant 0 : index
    %963 = vector.load %arg9[%c3_318, %c0_319, %c0_320] : memref<4x32x128xf32, #tpu.memory_space<vmem>>, vector<1x32x128xf32>
    %964 = vector.shape_cast %963 : vector<1x32x128xf32> to vector<32x128xf32>
    %cst_321 = arith.constant dense<0.000000e+00> : vector<16x128xf32>
    %965 = tpu.matmul %962, %964, %cst_321 {dimension_numbers = #tpu.dot_dimension_numbers<[1], [0], [0], [1], [0, 0, 1, 1], [], []>} : vector<16x32xf32>, vector<32x128xf32>, vector<16x128xf32> -> vector<16x128xf32>
    %c3_322 = arith.constant 3 : index
    %c0_323 = arith.constant 0 : index
    %c0_324 = arith.constant 0 : index
    %966 = vector.load %arg10[%c3_322, %c0_323, %c0_324] : memref<4x1x128xf32, #tpu.memory_space<vmem>>, vector<1x1x128xf32>
    %967 = vector.shape_cast %966 : vector<1x1x128xf32> to vector<1x128xf32>
    %968 = vector.broadcast %967 : vector<1x128xf32> to vector<16x128xf32>
    %969 = arith.addf %965, %968 : vector<16x128xf32>
    %cst_325 = arith.constant 0.000000e+00 : f32
    %970 = vector.broadcast %cst_325 : f32 to vector<16x128xf32>
    %971 = arith.maximumf %969, %970 : vector<16x128xf32>
    %c3_326 = arith.constant 3 : index
    %c0_327 = arith.constant 0 : index
    %c0_328 = arith.constant 0 : index
    %972 = vector.load %arg11[%c3_326, %c0_327, %c0_328] : memref<4x128x32xf32, #tpu.memory_space<vmem>>, vector<1x128x32xf32>
    %973 = vector.shape_cast %972 : vector<1x128x32xf32> to vector<128x32xf32>
    %cst_329 = arith.constant dense<0.000000e+00> : vector<16x32xf32>
    %974 = tpu.matmul %971, %973, %cst_329 {dimension_numbers = #tpu.dot_dimension_numbers<[1], [0], [0], [1], [0, 0, 1, 1], [], []>} : vector<16x128xf32>, vector<128x32xf32>, vector<16x32xf32> -> vector<16x32xf32>
    %c3_330 = arith.constant 3 : index
    %c0_331 = arith.constant 0 : index
    %c0_332 = arith.constant 0 : index
    %975 = vector.load %arg12[%c3_330, %c0_331, %c0_332] : memref<4x1x32xf32, #tpu.memory_space<vmem>>, vector<1x1x32xf32>
    %976 = vector.shape_cast %975 : vector<1x1x32xf32> to vector<1x32xf32>
    %977 = vector.broadcast %976 : vector<1x32xf32> to vector<16x32xf32>
    %978 = arith.addf %974, %977 : vector<16x32xf32>
    %979 = arith.addf %962, %978 : vector<16x32xf32>
    %980 = vector.extract_strided_slice %937 {offsets = [2, 0], sizes = [1, 32], strides = [1, 1]} : vector<4x32xf32> to vector<1x32xf32>
    %981 = vector.extract_strided_slice %937 {offsets = [3, 0], sizes = [1, 32], strides = [1, 1]} : vector<4x32xf32> to vector<1x32xf32>
    %cst_333 = arith.constant dense<0.000000e+00> : vector<16xf32>
    %982 = vector.multi_reduction <add>, %979, %cst_333 [1] : vector<16x32xf32> to vector<16xf32>
    %983 = vector.shape_cast %982 : vector<16xf32> to vector<16x1xf32>
    %cst_334 = arith.constant 3.200000e+01 : f32
    %984 = vector.broadcast %cst_334 : f32 to vector<16x1xf32>
    %985 = arith.divf %983, %984 : vector<16x1xf32>
    %986 = vector.broadcast %985 : vector<16x1xf32> to vector<16x32xf32>
    %987 = arith.subf %979, %986 : vector<16x32xf32>
    %988 = arith.mulf %987, %987 : vector<16x32xf32>
    %cst_335 = arith.constant dense<0.000000e+00> : vector<16xf32>
    %989 = vector.multi_reduction <add>, %988, %cst_335 [1] : vector<16x32xf32> to vector<16xf32>
    %990 = vector.shape_cast %989 : vector<16xf32> to vector<16x1xf32>
    %cst_336 = arith.constant 3.200000e+01 : f32
    %991 = vector.broadcast %cst_336 : f32 to vector<16x1xf32>
    %992 = arith.divf %990, %991 : vector<16x1xf32>
    %993 = vector.broadcast %985 : vector<16x1xf32> to vector<16x32xf32>
    %994 = arith.subf %979, %993 : vector<16x32xf32>
    %cst_337 = arith.constant 9.99999974E-6 : f32
    %995 = vector.broadcast %cst_337 : f32 to vector<16x1xf32>
    %996 = arith.addf %992, %995 : vector<16x1xf32>
    %997 = math.rsqrt %996 : vector<16x1xf32>
    %998 = vector.broadcast %997 : vector<16x1xf32> to vector<16x32xf32>
    %999 = arith.mulf %994, %998 : vector<16x32xf32>
    %1000 = vector.broadcast %980 : vector<1x32xf32> to vector<16x32xf32>
    %1001 = arith.mulf %999, %1000 : vector<16x32xf32>
    %1002 = vector.broadcast %981 : vector<1x32xf32> to vector<16x32xf32>
    %1003 = arith.addf %1001, %1002 : vector<16x32xf32>
    %c0_338 = arith.constant 0 : index
    %c0_339 = arith.constant 0 : index
    %1004 = vector.load %arg14[%c0_338, %c0_339] : memref<2x32xf32, #tpu.memory_space<vmem>>, vector<2x32xf32>
    %1005 = vector.extract_strided_slice %1004 {offsets = [0, 0], sizes = [1, 32], strides = [1, 1]} : vector<2x32xf32> to vector<1x32xf32>
    %1006 = vector.extract_strided_slice %1004 {offsets = [1, 0], sizes = [1, 32], strides = [1, 1]} : vector<2x32xf32> to vector<1x32xf32>
    %cst_340 = arith.constant dense<0.000000e+00> : vector<16xf32>
    %1007 = vector.multi_reduction <add>, %1003, %cst_340 [1] : vector<16x32xf32> to vector<16xf32>
    %1008 = vector.shape_cast %1007 : vector<16xf32> to vector<16x1xf32>
    %cst_341 = arith.constant 3.200000e+01 : f32
    %1009 = vector.broadcast %cst_341 : f32 to vector<16x1xf32>
    %1010 = arith.divf %1008, %1009 : vector<16x1xf32>
    %1011 = vector.broadcast %1010 : vector<16x1xf32> to vector<16x32xf32>
    %1012 = arith.subf %1003, %1011 : vector<16x32xf32>
    %1013 = arith.mulf %1012, %1012 : vector<16x32xf32>
    %cst_342 = arith.constant dense<0.000000e+00> : vector<16xf32>
    %1014 = vector.multi_reduction <add>, %1013, %cst_342 [1] : vector<16x32xf32> to vector<16xf32>
    %1015 = vector.shape_cast %1014 : vector<16xf32> to vector<16x1xf32>
    %cst_343 = arith.constant 3.200000e+01 : f32
    %1016 = vector.broadcast %cst_343 : f32 to vector<16x1xf32>
    %1017 = arith.divf %1015, %1016 : vector<16x1xf32>
    %1018 = vector.broadcast %1010 : vector<16x1xf32> to vector<16x32xf32>
    %1019 = arith.subf %1003, %1018 : vector<16x32xf32>
    %cst_344 = arith.constant 9.99999974E-6 : f32
    %1020 = vector.broadcast %cst_344 : f32 to vector<16x1xf32>
    %1021 = arith.addf %1017, %1020 : vector<16x1xf32>
    %1022 = math.rsqrt %1021 : vector<16x1xf32>
    %1023 = vector.broadcast %1022 : vector<16x1xf32> to vector<16x32xf32>
    %1024 = arith.mulf %1019, %1023 : vector<16x32xf32>
    %1025 = vector.broadcast %1005 : vector<1x32xf32> to vector<16x32xf32>
    %1026 = arith.mulf %1024, %1025 : vector<16x32xf32>
    %1027 = vector.broadcast %1006 : vector<1x32xf32> to vector<16x32xf32>
    %1028 = arith.addf %1026, %1027 : vector<16x32xf32>
    %1029 = vector.shape_cast %1028 : vector<16x32xf32> to vector<2x8x32xf32>
    %c0_345 = arith.constant 0 : index
    %c0_346 = arith.constant 0 : index
    %c0_347 = arith.constant 0 : index
    %1030 = vector.load %arg3[%c0_345, %c0_346, %c0_347] : memref<2x8x1xf32, #tpu.memory_space<vmem>>, vector<2x8x1xf32>
    %1031 = vector.broadcast %1030 : vector<2x8x1xf32> to vector<2x8x32xf32>
    %1032 = arith.mulf %1029, %1031 : vector<2x8x32xf32>
    %cst_348 = arith.constant dense<0.000000e+00> : vector<2x32xf32>
    %1033 = vector.multi_reduction <add>, %1032, %cst_348 [1] : vector<2x8x32xf32> to vector<2x32xf32>
    %1034 = vector.shape_cast %1033 : vector<2x32xf32> to vector<2x1x32xf32>
    %cst_349 = arith.constant dense<0.000000e+00> : vector<2x1xf32>
    %1035 = vector.multi_reduction <add>, %1030, %cst_349 [1] : vector<2x8x1xf32> to vector<2x1xf32>
    %1036 = vector.shape_cast %1035 : vector<2x1xf32> to vector<2x1x1xf32>
    %cst_350 = arith.constant 9.99999971E-10 : f32
    %1037 = vector.broadcast %cst_350 : f32 to vector<2x1x1xf32>
    %1038 = arith.maximumf %1036, %1037 : vector<2x1x1xf32>
    %1039 = vector.broadcast %1038 : vector<2x1x1xf32> to vector<2x1x32xf32>
    %1040 = arith.divf %1034, %1039 : vector<2x1x32xf32>
    %c0_351 = arith.constant 0 : index
    %c0_352 = arith.constant 0 : index
    %c0_353 = arith.constant 0 : index
    %1041 = vector.load %arg15[%c0_351, %c0_352, %c0_353] : memref<2x1x32xf32, #tpu.memory_space<vmem>>, vector<2x1x32xf32>
    tpu.vector_store %arg15[%c0_351, %c0_352, %c0_353], %1040 {strides = array<i32>} : memref<2x1x32xf32, #tpu.memory_space<vmem>>, vector<2x1x32xf32>,
    return
  }
  func.func @transform_0(%arg0: i32) -> (i32, i32, i32) {
    %c0_i32 = arith.constant 0 : i32
    %c0_i32_0 = arith.constant 0 : i32
    %c0_i32_1 = arith.constant 0 : i32
    return %arg0, %c0_i32, %c0_i32_0 : i32, i32, i32
  }
  func.func @transform_1(%arg0: i32) -> (i32, i32, i32) {
    %c0_i32 = arith.constant 0 : i32
    %c0_i32_0 = arith.constant 0 : i32
    %c0_i32_1 = arith.constant 0 : i32
    return %arg0, %c0_i32, %c0_i32_0 : i32, i32, i32
  }
  func.func @transform_2(%arg0: i32) -> (i32, i32, i32) {
    %c0_i32 = arith.constant 0 : i32
    %c0_i32_0 = arith.constant 0 : i32
    %c0_i32_1 = arith.constant 0 : i32
    return %arg0, %c0_i32, %c0_i32_0 : i32, i32, i32
  }
  func.func @transform_3(%arg0: i32) -> (i32, i32) {
    %c0_i32 = arith.constant 0 : i32
    %c0_i32_0 = arith.constant 0 : i32
    %c0_i32_1 = arith.constant 0 : i32
    return %c0_i32, %c0_i32_0 : i32, i32
  }
  func.func @transform_4(%arg0: i32) -> (i32, i32, i32) {
    %c0_i32 = arith.constant 0 : i32
    %c0_i32_0 = arith.constant 0 : i32
    %c0_i32_1 = arith.constant 0 : i32
    %c0_i32_2 = arith.constant 0 : i32
    return %c0_i32, %c0_i32_0, %c0_i32_1 : i32, i32, i32
  }
  func.func @transform_5(%arg0: i32) -> (i32, i32, i32) {
    %c0_i32 = arith.constant 0 : i32
    %c0_i32_0 = arith.constant 0 : i32
    %c0_i32_1 = arith.constant 0 : i32
    %c0_i32_2 = arith.constant 0 : i32
    return %c0_i32, %c0_i32_0, %c0_i32_1 : i32, i32, i32
  }
  func.func @transform_6(%arg0: i32) -> (i32, i32, i32) {
    %c0_i32 = arith.constant 0 : i32
    %c0_i32_0 = arith.constant 0 : i32
    %c0_i32_1 = arith.constant 0 : i32
    %c0_i32_2 = arith.constant 0 : i32
    return %c0_i32, %c0_i32_0, %c0_i32_1 : i32, i32, i32
  }
  func.func @transform_7(%arg0: i32) -> (i32, i32, i32) {
    %c0_i32 = arith.constant 0 : i32
    %c0_i32_0 = arith.constant 0 : i32
    %c0_i32_1 = arith.constant 0 : i32
    %c0_i32_2 = arith.constant 0 : i32
    return %c0_i32, %c0_i32_0, %c0_i32_1 : i32, i32, i32
  }
  func.func @transform_8(%arg0: i32) -> (i32, i32, i32) {
    %c0_i32 = arith.constant 0 : i32
    %c0_i32_0 = arith.constant 0 : i32
    %c0_i32_1 = arith.constant 0 : i32
    %c0_i32_2 = arith.constant 0 : i32
    return %c0_i32, %c0_i32_0, %c0_i32_1 : i32, i32, i32
  }
  func.func @transform_9(%arg0: i32) -> (i32, i32, i32) {
    %c0_i32 = arith.constant 0 : i32
    %c0_i32_0 = arith.constant 0 : i32
    %c0_i32_1 = arith.constant 0 : i32
    %c0_i32_2 = arith.constant 0 : i32
    return %c0_i32, %c0_i32_0, %c0_i32_1 : i32, i32, i32
  }
  func.func @transform_10(%arg0: i32) -> (i32, i32, i32) {
    %c0_i32 = arith.constant 0 : i32
    %c0_i32_0 = arith.constant 0 : i32
    %c0_i32_1 = arith.constant 0 : i32
    %c0_i32_2 = arith.constant 0 : i32
    return %c0_i32, %c0_i32_0, %c0_i32_1 : i32, i32, i32
  }
  func.func @transform_11(%arg0: i32) -> (i32, i32, i32) {
    %c0_i32 = arith.constant 0 : i32
    %c0_i32_0 = arith.constant 0 : i32
    %c0_i32_1 = arith.constant 0 : i32
    %c0_i32_2 = arith.constant 0 : i32
    return %c0_i32, %c0_i32_0, %c0_i32_1 : i32, i32, i32
  }
  func.func @transform_12(%arg0: i32) -> (i32, i32, i32) {
    %c0_i32 = arith.constant 0 : i32
    %c0_i32_0 = arith.constant 0 : i32
    %c0_i32_1 = arith.constant 0 : i32
    %c0_i32_2 = arith.constant 0 : i32
    return %c0_i32, %c0_i32_0, %c0_i32_1 : i32, i32, i32
  }
  func.func @transform_13(%arg0: i32) -> (i32, i32) {
    %c0_i32 = arith.constant 0 : i32
    %c0_i32_0 = arith.constant 0 : i32
    %c0_i32_1 = arith.constant 0 : i32
    return %c0_i32, %c0_i32_0 : i32, i32
  }
  func.func @transform_14(%arg0: i32) -> (i32, i32, i32) {
    %c0_i32 = arith.constant 0 : i32
    %c0_i32_0 = arith.constant 0 : i32
    %c0_i32_1 = arith.constant 0 : i32
    return %arg0, %c0_i32, %c0_i32_0 : i32, i32, i32
  }
}

</mosaic_0001>

<bundles_post_ra>
// kernel: tpu_custom_call.1
= control target key start
LH: loop header
LB: loop body
LE: loop exit
PB: predicated region body
PF: predicated region fallthrough
CT: control target
= control target key end

     0   :  { %s19519_s0 = inlined_call_operand.vmem [shape: f32[2,8,32], index: 0, kind: input, shape index: {}]   ;;  %s19520_s1 = inlined_call_operand.vmem [shape: f32[2,1,8], index: 1, kind: input, shape index: {}]   ;;  %s19521_s2 = inlined_call_operand.vmem [shape: f32[2,8,1], index: 2, kind: input, shape index: {}]   ;;  %s19522_s3 = inlined_call_operand.vmem [shape: f32[8,32], index: 3, kind: input, shape index: {}]   ;;  %s19523_s4 = inlined_call_operand.vmem [shape: f32[4,32,96], index: 4, kind: input, shape index: {}]   ;;  %s19524_s5 = inlined_call_operand.vmem [shape: f32[4,1,96], index: 5, kind: input, shape index: {}]   ;;  %s19525_s6 = inlined_call_operand.vmem [shape: f32[4,32,32], index: 6, kind: input, shape index: {}]   ;;  %s19526_s7 = inlined_call_operand.vmem [shape: f32[4,1,32], index: 7, kind: input, shape index: {}]   ;;  %s19527_s8 = inlined_call_operand.vmem [shape: f32[4,32,128], index: 8, kind: input, shape index: {}]   ;;  %s19528_s9 = inlined_call_operand.vmem [shape: f32[4,1,128], index: 9, kind: input, shape index: {}]   ;;  %s19529_s10 = inlined_call_operand.vmem [shape: f32[4,128,32], index: 10, kind: input, shape index: {}]   ;;  %s19530_s11 = inlined_call_operand.vmem [shape: f32[4,1,32], index: 11, kind: input, shape index: {}]   ;;  %s19531_s12 = inlined_call_operand.vmem [shape: f32[4,4,32], index: 12, kind: input, shape index: {}]   ;;  %s19532_s13 = inlined_call_operand.vmem [shape: f32[2,32], index: 13, kind: input, shape index: {}]   ;;  %s19533_s14 = inlined_call_operand.hbm [shape: f32[2,1,32], index: 14, kind: output, shape index: {}]  }
   0x1   :  { %19590 = sst [smem:[#allocation5_spill]] %s19521_s2 }
   0x2   :  { %19591 = sst [smem:[#allocation6_spill]] %s19526_s7 }
   0x3   :  { %19592 = sst [smem:[#allocation7_spill]] %s19532_s13 }
   0x4   :  { %19593 = sst [smem:[#allocation8_spill]] %s19533_s14 }
   0x5   :  { %v62_v0 = vld [vmem:[%s19523_s4 + $0x18] sm:$0xff]  ;;  %v61_v1 = vld [vmem:[%s19523_s4 + $0x10] sm:$0xff]  ;;  %v60_v2 = vld [vmem:[%s19523_s4 + $0x8] sm:$0xff]  ;;  %vm70_vm0 = vcmask 261120  }
   0x6   :  { %15927 = vmatprep.subr.mxu0 %v62_v0  ;;  %v54_v3 = vld [vmem:[%s19519_s0] sm:$0xff]  ;;  %v55_v4 = vld [vmem:[%s19519_s0 + $0x8] sm:$0xff] }
   0x7   :  { %15928 = vmatpush3.msra.mxu0 %v62_v0  ;;  %v56_v5 = vld [vmem:[%s19522_s3] sm:$0xff] }
   0x8   :  { %19 = vsyncpa [#allocation3], 0  ;;  %15929 = vmatprep.subr.mxu0 %v61_v1  ;;  %v17426_v6 = vadd.f32 %v56_v5, %v54_v3  ;;  %v59_v7 = vld [vmem:[%s19523_s4] sm:$0xff]  ;;  %v17431_v8 = vadd.f32 %v56_v5, %v55_v4  ;;  %v17304_v9 = vmov 0.0   ;;  %vm17305_vm1 = vmmov 0   ;;  %s19578_s27 = smov 96  }
   0x9   :  { %15930 = vmatpush3.msra.mxu0 %v61_v1  ;;  %15963 = vmatprep.subr.mxu1 %v17304_v9  ;;  %v15036_v11 = vld [vmem:[%s19524_s5] ss:$0 sm:$0xff]  ;;  %vm173_vm2 = vcmask 31744   ;;  %v160_v19 = vlaneseq  ;;  %v49_v22 = vld [vmem:[%s19520_s1 + $0x1] sm:$0x1]  ;;  %vm327_vm5 = vcmask 64512  }
   0xa   :  { %15931 = vmatprep.subr.mxu0 %v60_v2  ;;  %15935 = vmatprep.mubr.msk.f32.mxu0 %vm70_vm0, %v17426_v6  ;;  %v48_v20 = vld [vmem:[%s19520_s1] sm:$0x1]  ;;  %vm51_vm4 = vcmp.eq.f32.partialorder %v49_v22, 0.0  ;;  %s19576_s1 = smov 64   ;;  %s19574_s16 = smov 92   ;;  %vm840_vm6 = vcmask 1043456  }
   0xb   :  { %15932 = vmatpush3.msra.mxu0 %v60_v2  ;;  %15965 = vmatprep.mubr.msk.f32.mxu1 %vm17305_vm1, %v17304_v9  ;;  %v17475_v21 = vshrl.u32 %v160_v19, 7  ;;  %vm50_vm3 = vcmp.eq.f32.partialorder %v48_v20, 0.0  ;;  %v53_v26 = vsel %vm51_vm4, -1e+10, %v17304_v9  ;;  %s19572_s17 = smov 124   ;;  %s19570_s18 = smov 60  }
   0xc   :  { %15933 = vmatprep.subr.mxu0 %v59_v7  ;;  %v52_v24 = vsel %vm50_vm3, -1e+10, %v17304_v9  ;;  %s19566_s19 = smov 120   ;;  %s19568_s22 = smov 88   ;;  %vm14986_vm7 = vcmask 7168   ;;  %vm15017_vm8 = vcmask 253952  }
   0xd   :  { %15934 = vmatpush3.msra.mxu0 %v59_v7  ;;  %v17481_v23 = vsub.s32 0, %v17475_v21  ;;  %s19564_s23 = smov 56   ;;  %s19562_s24 = smov 84  }
   0xe   :  { %15936 = vmatmul.mubr.msk.f32.vlgmr.msra.gmra.mxu0 %vm70_vm0, %v17431_v8  ;;  %15938 = vmatprep.subr.mxu0 %v17304_v9  ;;  %s19560_s25 = smov 116   ;;  %s19558_s3 = smov 52  }
   0xf   :  { %15940 = vmatprep.mubr.msk.f32.mxu0 %vm17305_vm1, %v17304_v9  ;;  %v17485_v25 = vrot.slane %v52_v24, %v17481_v23  ;;  %v17490_v29 = vrot.slane %v53_v26, %v17481_v23  ;;  %s19556_s28 = smov 80   ;;  %s19554_s29 = smov 112  }
  0x10   :  { %s19552_s30 = smov 48   ;;  %s19550_s15 = smov 76  }
  0x11   :  { %s19542_s20 = smov 108   ;;  %s19538_s0 = smov 44  }
  0x12   :  { %s19536_s21 = smov 72   ;;  %s19534_s26 = smov 104  }
  0x13   :  { %s19612_s14 = smov 120   ;;  %s19613_s13 = smov 56  }
  0x14   :  { %s19615_s2 = smov 116  }
  0xce   :  { %v15937_v10 = vpop.f32.mrf.mxu0 }
  0xcf   :  { %v17450_v14 = vadd.f32 %v15937_v10, %v15036_v11 }
  0xd0   :  { %v143_v12 = vpop.f32.mrf.mxu0 }
  0xd1   :  { %v17446_v13 = vadd.f32 %v15036_v11, %v143_v12  ;;  %v17465_v18 = vmul.f32 0.5, %v17450_v14 }
  0xd3   :  { %171 = vrot.lane.b32.xlu0 %v17446_v13, %s19578_s27  ;;  %v17456_v16 = vmul.f32 0.5, %v17446_v13 }
  0xd7   :  { %250 = vrot.lane.b32.xlu0 %v17450_v14, %s19578_s27 }
 0x145   :  { %v172_v15 = vpop.permute.xlu0 %171 }
 0x146   :  { %15939 = vmatpush3.xpose.msk.msra.mxu0 %vm173_vm2, %v172_v15 }
 0x147   :  { %15943 = vmatprep.subr.mxu0 %v17304_v9 }
 0x149   :  { %v251_v17 = vpop.permute.xlu0 %250  ;;  %15941 = vmatmul.mubr.msk.f32.vlgmr.msra.gmra.mxu0 %vm173_vm2, %v17456_v16 }
 0x14a   :  { %15944 = vmatpush3.xpose.msk.msra.mxu0 %vm173_vm2, %v251_v17  ;;  %15945 = vmatprep.mubr.msk.f32.mxu0 %vm17305_vm1, %v17304_v9 }
 0x14b   :  { %15948 = vmatprep.subr.mxu0 %v17304_v9 }
 0x14d   :  { %15946 = vmatmul.mubr.msk.f32.vlgmr.msra.gmra.mxu0 %vm173_vm2, %v17465_v18 }
 0x14e   :  { %15950 = vmatprep.mubr.msk.f32.mxu0 %vm17305_vm1, %v17304_v9 }
 0x209   :  { %v245_v27 = vpop.f32.mrf.mxu0 }
 0x20a   :  { %v246_v28 = vadd.f32 %v245_v27, %v17485_v25  ;;  %v154_v27 = vld [vmem:[%s19525_s6] sm:$0xff] }
 0x20b   :  { %v15942_v30 = vpop.f32.mrf.mxu0 }
 0x20c   :  { %v328_v31 = vsel %vm327_vm5, %v246_v28, -inf }
 0x20d   :  { %v323_v32 = vpop.f32.mrf.mxu0  ;;  %329 = vmax.xlane.f32.xlu1 %v328_v31 }
 0x20e   :  { %v324_v33 = vadd.f32 %v323_v32, %v17490_v29 }
 0x20f   :  { %v15947_v34 = vpop.f32.mrf.mxu0 }
 0x210   :  { %v331_v35 = vsel %vm327_vm5, %v324_v33, -inf }
 0x211   :  { %332 = vmax.xlane.f32.xlu1 %v331_v35 }
 0x222   :  { %350 = vrot.lane.b32.xlu1 %v17446_v13, %s19576_s1 }
 0x226   :  { %426 = vrot.lane.b32.xlu1 %v17450_v14, %s19576_s1 }
 0x22a   :  { %504 = vrot.lane.b32.xlu1 %v17446_v13, %s19574_s16 }
 0x22e   :  { %582 = vrot.lane.b32.xlu1 %v17450_v14, %s19574_s16 }
 0x296   :  { %v330_v36 = vpop.xlane.xlu1 %329 }
 0x297   :  { %v334_v37 = vsub.f32 %v246_v28, %v330_v36 }
 0x299   :  { %v336_v38 = vmul.f32 1.442695, %v334_v37 }
 0x29a   :  { %v333_v39 = vpop.xlane.xlu1 %332 }
 0x29b   :  { %16986 = vpow2.f32 %v336_v38  ;;  %v335_v40 = vsub.f32 %v324_v33, %v333_v39  ;;  %v833_v33 = vrot.slane %v154_v27, 4 }
 0x29d   :  { %v338_v41 = vmul.f32 1.442695, %v335_v40 }
 0x29e   :  { %v351_v42 = vpop.permute.xlu1 %350 }
 0x29f   :  { %16988 = vpow2.f32 %v338_v41  ;;  %15949 = vmatpush3.msra.mxu0 %v351_v42 }
 0x2a0   :  { %15953 = vmatprep.subr.mxu0 %v17304_v9 }
 0x2a2   :  { %v427_v43 = vpop.permute.xlu1 %426 }
 0x2a6   :  { %v505_v44 = vpop.permute.xlu1 %504 }
 0x2a8   :  { %v16987_v45 = vpop.eup %16986 }
 0x2a9   :  { %v340_v46 = vsel %vm327_vm5, %v16987_v45, 0.0 }
 0x2aa   :  { %341 = vadd.xlane.f32.xlu0 %v340_v46  ;;  %v583_v47 = vpop.permute.xlu1 %582 }
 0x2ab   :  { %15964 = vmatpush3.xpose.msk.msra.mxu1 %vm173_vm2, %v583_v47 }
 0x2ac   :  { %v16989_v48 = vpop.eup %16988  ;;  %15973 = vmatprep.subr.mxu1 %v17304_v9 }
 0x2ad   :  { %v343_v49 = vsel %vm327_vm5, %v16989_v48, 0.0 }
 0x2ae   :  { %344 = vadd.xlane.f32.xlu1 %v343_v49 }
 0x2bf   :  { %580 = vrot.lane.b32.xlu1 %v17465_v18, %s19572_s17 }
 0x2c0   :  { %502 = vrot.lane.b32.xlu0 %v17456_v16, %s19572_s17 }
 0x333   :  { %v342_v50 = vpop.xlane.xlu0 %341 }
 0x334   :  { %16990 = vrcp.f32 %v342_v50 }
 0x337   :  { %v345_v51 = vpop.xlane.xlu1 %344  ;;  %v503_v57 = vpop.permute.xlu0 %502 }
 0x338   :  { %16992 = vrcp.f32 %v345_v51 }
 0x33b   :  { %v581_v52 = vpop.permute.xlu1 %580 }
 0x33c   :  { %15966 = vmatmul.mubr.msk.f32.vlgmr.msra.gmra.mxu1 %vm173_vm2, %v581_v52 }
 0x33d   :  { %15975 = vmatprep.mubr.msk.f32.mxu1 %vm17305_vm1, %v17304_v9 }
 0x341   :  { %v16991_v53 = vpop.eup %16990 }
 0x342   :  { %v347_v54 = vmul.f32 %v16991_v53, %v16987_v45 }
 0x344   :  { %15951 = vmatmul.mubr.msk.f32.vlgmr.msra.gmra.mxu0 %vm327_vm5, %v347_v54 }
 0x345   :  { %v16993_v55 = vpop.eup %16992  ;;  %15954 = vmatpush3.msra.mxu0 %v427_v43  ;;  %15955 = vmatprep.mubr.msk.f32.mxu0 %vm17305_vm1, %v17304_v9 }
 0x346   :  { %15958 = vmatprep.subr.mxu0 %v17304_v9  ;;  %v349_v56 = vmul.f32 %v16993_v55, %v16989_v48 }
 0x348   :  { %15956 = vmatmul.mubr.msk.f32.vlgmr.msra.gmra.mxu0 %vm327_vm5, %v349_v56 }
 0x349   :  { %15959 = vmatpush3.xpose.msk.msra.mxu0 %vm173_vm2, %v505_v44  ;;  %15960 = vmatprep.mubr.msk.f32.mxu0 %vm17305_vm1, %v17304_v9 }
 0x34a   :  { %15968 = vmatprep.subr.mxu0 %v17304_v9 }
 0x34c   :  { %15961 = vmatmul.mubr.msk.f32.vlgmr.msra.gmra.mxu0 %vm173_vm2, %v503_v57 }
 0x34d   :  { %15970 = vmatprep.mubr.msk.f32.mxu0 %vm17305_vm1, %v17304_v9 }
 0x3fc   :  { %v654_v58 = vpop.f32.mrf.mxu1 }
 0x3fd   :  { %v655_v59 = vadd.f32 %v654_v58, %v17490_v29 }
 0x3fe   :  { %v15967_v60 = vpop.f32.mrf.mxu1 }
 0x3ff   :  { %v661_v61 = vsel %vm327_vm5, %v655_v59, -inf }
 0x400   :  { %662 = vmax.xlane.f32.xlu0 %v661_v61 }
 0x404   :  { %v422_v62 = vpop.f32.mrf.mxu0 }
 0x406   :  { %v15952_v63 = vpop.f32.mrf.mxu0 }
 0x408   :  { %v498_v0 = vpop.f32.mrf.mxu0 }
 0x40a   :  { %v15957_v1 = vpop.f32.mrf.mxu0 }
 0x40c   :  { %v576_v2 = vpop.f32.mrf.mxu0 }
 0x40d   :  { %v577_v3 = vadd.f32 %v576_v2, %v17485_v25 }
 0x40e   :  { %v15962_v4 = vpop.f32.mrf.mxu0 }
 0x40f   :  { %v658_v5 = vsel %vm327_vm5, %v577_v3, -inf }
 0x410   :  { %659 = vmax.xlane.f32.xlu1 %v658_v5 }
 0x416   :  { %756 = vrot.lane.b32.xlu0 %v17450_v14, %s19570_s18 }
 0x41a   :  { %1001 = vrot.lane.b32.xlu0 %v17456_v16, %s19566_s19 }
 0x489   :  { %v663_v7 = vpop.xlane.xlu0 %662 }
 0x48a   :  { %v665_v10 = vsub.f32 %v655_v59, %v663_v7 }
 0x48c   :  { %v668_v11 = vmul.f32 1.442695, %v665_v10 }
 0x48d   :  { %v757_v12 = vpop.permute.xlu0 %756 }
 0x48e   :  { %16994 = vpow2.f32 %v668_v11  ;;  %15974 = vmatpush3.msra.mxu1 %v757_v12 }
 0x48f   :  { %15983 = vmatprep.subr.msk.mxu1 %vm840_vm6, %v154_v27 }
 0x491   :  { %v1002_v50 = vpop.permute.xlu0 %1001 }
 0x499   :  { %v660_v15 = vpop.xlane.xlu1 %659 }
 0x49a   :  { %v664_v17 = vsub.f32 %v577_v3, %v660_v15 }
 0x49b   :  { %v16995_v19 = vpop.eup %16994 }
 0x49c   :  { %v666_v20 = vmul.f32 1.442695, %v664_v17  ;;  %v673_v22 = vsel %vm327_vm5, %v16995_v19, 0.0 }
 0x49d   :  { %674 = vadd.xlane.f32.xlu1 %v673_v22 }
 0x49e   :  { %16996 = vpow2.f32 %v666_v20  ;;  %v155_v20 = vld [vmem:[%s19525_s6 + $0x8] sm:$0xff] }
 0x4ab   :  { %v16997_v24 = vpop.eup %16996 }
 0x4ac   :  { %v670_v26 = vsel %vm327_vm5, %v16997_v24, 0.0 }
 0x4ad   :  { %671 = vadd.xlane.f32.xlu1 %v670_v26 }
 0x4be   :  { %680 = vrot.lane.b32.xlu1 %v17446_v13, %s19570_s18 }
 0x4c2   :  { %1003 = vrot.lane.b32.xlu1 %v17446_v13, %s19568_s22 }
 0x4c6   :  { %1081 = vrot.lane.b32.xlu1 %v17450_v14, %s19568_s22 }
 0x4ca   :  { %1079 = vrot.lane.b32.xlu1 %v17465_v18, %s19566_s19 }
 0x526   :  { %v675_v28 = vpop.xlane.xlu1 %674 }
 0x527   :  { %16998 = vrcp.f32 %v675_v28 }
 0x534   :  { %v16999_v30 = vpop.eup %16998 }
 0x535   :  { %v679_v31 = vmul.f32 %v16999_v30, %v16995_v19 }
 0x536   :  { %v672_v32 = vpop.xlane.xlu1 %671 }
 0x537   :  { %17000 = vrcp.f32 %v672_v32  ;;  %15976 = vmatmul.mubr.msk.f32.vlgmr.msra.gmra.mxu1 %vm327_vm5, %v679_v31 }
 0x538   :  { %15985 = vmatprep.mubr.msk.f32.mxu1 %vm173_vm2, %v422_v62  ;;  %15984 = vmatpush3.msk.msra.mxu1 %vm840_vm6, %v154_v27 }
 0x539   :  { %15993 = vmatprep.subr.mxu1 %v17304_v9 }
 0x53a   :  { %v681_v34 = vpop.permute.xlu1 %680 }
 0x53b   :  { %15969 = vmatpush3.msra.mxu0 %v681_v34  ;;  %15986 = vmatmul.mubr.msk.f32.vlgmr.msra.gmra.mxu1 %vm173_vm2, %v498_v0 }
 0x53c   :  { %15995 = vmatprep.mubr.msk.f32.mxu1 %vm17305_vm1, %v17304_v9  ;;  %15978 = vmatprep.subr.msk.mxu0 %vm840_vm6, %v833_v33 }
 0x53e   :  { %v1004_v35 = vpop.permute.xlu1 %1003 }
 0x542   :  { %v1082_v36 = vpop.permute.xlu1 %1081 }
 0x543   :  { %15994 = vmatpush3.xpose.msk.msra.mxu1 %vm173_vm2, %v1082_v36 }
 0x544   :  { %v17001_v37 = vpop.eup %17000  ;;  %16003 = vmatprep.subr.mxu1 %v17304_v9 }
 0x545   :  { %v677_v38 = vmul.f32 %v17001_v37, %v16997_v24 }
 0x546   :  { %v1080_v39 = vpop.permute.xlu1 %1079 }
 0x547   :  { %15971 = vmatmul.mubr.msk.f32.vlgmr.msra.gmra.mxu0 %vm327_vm5, %v677_v38  ;;  %15996 = vmatmul.mubr.msk.f32.vlgmr.msra.gmra.mxu1 %vm173_vm2, %v1080_v39 }
 0x548   :  { %15979 = vmatpush3.msk.msra.mxu0 %vm840_vm6, %v833_v33  ;;  %16005 = vmatprep.mubr.msk.f32.mxu1 %vm17305_vm1, %v17304_v9 }
 0x549   :  { %15988 = vmatprep.subr.mxu0 %v17304_v9 }
 0x5f7   :  { %v828_v40 = vpop.f32.mrf.mxu1 }
 0x5f9   :  { %v15977_v41 = vpop.f32.mrf.mxu1 }
 0x5fb   :  { %v17565_v42 = vpop.f32.mrf.mxu1 }
 0x5fd   :  { %v17567_v43 = vpop.f32.mrf.mxu1 }
 0x607   :  { %v752_v44 = vpop.f32.mrf.mxu0  ;;  %v1153_v45 = vpop.f32.mrf.mxu1 }
 0x608   :  { %v1154_v46 = vadd.f32 %v1153_v45, %v17490_v29  ;;  %15980 = vmatprep.mubr.msk.f32.mxu0 %vm173_vm2, %v752_v44 }
 0x609   :  { %v15972_v47 = vpop.f32.mrf.mxu0  ;;  %15981 = vmatmul.mubr.msk.f32.vlgmr.msra.gmra.mxu0 %vm173_vm2, %v828_v40  ;;  %v15997_v48 = vpop.f32.mrf.mxu1 }
 0x60a   :  { %15989 = vmatpush3.xpose.msk.msra.mxu0 %vm173_vm2, %v1004_v35  ;;  %v1160_v49 = vsel %vm327_vm5, %v1154_v46, -inf  ;;  %15990 = vmatprep.mubr.msk.f32.mxu0 %vm17305_vm1, %v17304_v9 }
 0x60b   :  { %1161 = vmax.xlane.f32.xlu1 %v1160_v49  ;;  %15998 = vmatprep.subr.mxu0 %v17304_v9 }
 0x60d   :  { %15991 = vmatmul.mubr.msk.f32.vlgmr.msra.gmra.mxu0 %vm173_vm2, %v1002_v50 }
 0x60e   :  { %16000 = vmatprep.mubr.msk.f32.mxu0 %vm17305_vm1, %v17304_v9 }
 0x61c   :  { %1179 = vrot.lane.b32.xlu1 %v17446_v13, %s19564_s23 }
 0x620   :  { %1419 = vrot.lane.b32.xlu1 %v17446_v13, %s19562_s24 }
 0x624   :  { %1497 = vrot.lane.b32.xlu1 %v17450_v14, %s19562_s24 }
 0x628   :  { %1495 = vrot.lane.b32.xlu1 %v17465_v18, %s19560_s25 }
 0x694   :  { %v1162_v51 = vpop.xlane.xlu1 %1161 }
 0x695   :  { %v1164_v53 = vsub.f32 %v1154_v46, %v1162_v51 }
 0x697   :  { %v1167_v54 = vmul.f32 1.442695, %v1164_v53  ;;  %v1747_v53 = vrot.slane %v155_v20, 4 }
 0x698   :  { %v1180_v52 = vpop.permute.xlu1 %1179 }
 0x699   :  { %15999 = vmatpush3.msra.mxu0 %v1180_v52  ;;  %17002 = vpow2.f32 %v1167_v54 }
 0x69a   :  { %16008 = vmatprep.subr.msk.mxu0 %vm840_vm6, %v155_v20 }
 0x69c   :  { %v1420_v12 = vpop.permute.xlu1 %1419 }
 0x6a0   :  { %v1498_v31 = vpop.permute.xlu1 %1497 }
 0x6a4   :  { %v1496_v34 = vpop.permute.xlu1 %1495 }
 0x6a6   :  { %v17003_v61 = vpop.eup %17002 }
 0x6a7   :  { %v1172_v62 = vsel %vm327_vm5, %v17003_v61, 0.0 }
 0x6c9   :  { %v17588_v55 = vpop.f32.mrf.mxu0 }
 0x6ca   :  { %v998_v40 = vadd.f32 %v17565_v42, %v17588_v55 }
 0x6cb   :  { %v17590_v56 = vpop.f32.mrf.mxu0 }
 0x6cd   :  { %v1075_v57 = vpop.f32.mrf.mxu0 }
 0x6ce   :  { %v1076_v58 = vadd.f32 %v1075_v57, %v17485_v25 }
 0x6cf   :  { %v15992_v59 = vpop.f32.mrf.mxu0 }
 0x6d0   :  { %v1157_v60 = vsel %vm327_vm5, %v1076_v58, -inf }
 0x6d1   :  { %1158 = vmax.xlane.f32.xlu0 %v1157_v60 }
 0x6d5   :  { %1173 = vadd.xlane.f32.xlu0 %v1172_v62 }
 0x75a   :  { %v1159_v63 = vpop.xlane.xlu0 %1158 }
 0x75b   :  { %v1163_v0 = vsub.f32 %v1076_v58, %v1159_v63 }
 0x75d   :  { %v1165_v1 = vmul.f32 1.442695, %v1163_v0 }
 0x75e   :  { %v1174_v4 = vpop.xlane.xlu0 %1173 }
 0x75f   :  { %17004 = vpow2.f32 %v1165_v1 }
 0x760   :  { %17006 = vrcp.f32 %v1174_v4 }
 0x76c   :  { %v17005_v2 = vpop.eup %17004 }
 0x76d   :  { %v1169_v3 = vsel %vm327_vm5, %v17005_v2, 0.0  ;;  %v17007_v7 = vpop.eup %17006 }
 0x76e   :  { %1170 = vadd.xlane.f32.xlu0 %v1169_v3  ;;  %v1178_v11 = vmul.f32 %v17007_v7, %v17003_v61 }
 0x784   :  { %1255 = vrot.lane.b32.xlu0 %v17450_v14, %s19564_s23 }
 0x788   :  { %1417 = vrot.lane.b32.xlu0 %v17456_v16, %s19560_s25 }
 0x7f7   :  { %v1171_v5 = vpop.xlane.xlu0 %1170 }
 0x7f8   :  { %17008 = vrcp.f32 %v1171_v5 }
 0x7fb   :  { %v1256_v10 = vpop.permute.xlu0 %1255 }
 0x7fc   :  { %16004 = vmatpush3.msra.mxu1 %v1256_v10 }
 0x7fd   :  { %16006 = vmatmul.mubr.msk.f32.vlgmr.msra.gmra.mxu1 %vm327_vm5, %v1178_v11  ;;  %16013 = vmatprep.subr.mxu1 %v17304_v9 }
 0x7fe   :  { %16014 = vmatpush3.xpose.msk.msra.mxu1 %vm173_vm2, %v1420_v12  ;;  %16015 = vmatprep.mubr.msk.f32.mxu1 %vm17305_vm1, %v17304_v9 }
 0x7ff   :  { %v1418_v15 = vpop.permute.xlu0 %1417  ;;  %16023 = vmatprep.subr.mxu1 %v17304_v9 }
 0x801   :  { %16016 = vmatmul.mubr.msk.f32.vlgmr.msra.gmra.mxu1 %vm173_vm2, %v1418_v15 }
 0x802   :  { %16025 = vmatprep.mubr.msk.f32.mxu1 %vm17305_vm1, %v17304_v9 }
 0x805   :  { %v17009_v17 = vpop.eup %17008 }
 0x806   :  { %v1176_v19 = vmul.f32 %v17009_v17, %v17005_v2 }
 0x808   :  { %16001 = vmatmul.mubr.msk.f32.vlgmr.msra.gmra.mxu0 %vm327_vm5, %v1176_v19 }
 0x809   :  { %16009 = vmatpush3.msk.msra.mxu0 %vm840_vm6, %v155_v20 }
 0x80a   :  { %16018 = vmatprep.subr.mxu0 %v17304_v9 }
 0x8bd   :  { %v1327_v22 = vpop.f32.mrf.mxu1 }
 0x8bf   :  { %v16007_v24 = vpop.f32.mrf.mxu1 }
 0x8c1   :  { %v1491_v26 = vpop.f32.mrf.mxu1 }
 0x8c2   :  { %v1492_v27 = vadd.f32 %v1491_v26, %v17485_v25 }
 0x8c3   :  { %v16017_v28 = vpop.f32.mrf.mxu1 }
 0x8c4   :  { %v1573_v30 = vsel %vm327_vm5, %v1492_v27, -inf }
 0x8c5   :  { %1574 = vmax.xlane.f32.xlu0 %v1573_v30 }
 0x8c8   :  { %v1251_v32 = vpop.f32.mrf.mxu0 }
 0x8c9   :  { %16010 = vmatprep.mubr.msk.f32.mxu0 %vm173_vm2, %v1251_v32 }
 0x8ca   :  { %v16002_v33 = vpop.f32.mrf.mxu0  ;;  %16011 = vmatmul.mubr.msk.f32.vlgmr.msra.gmra.mxu0 %vm173_vm2, %v1327_v22 }
 0x8cb   :  { %16019 = vmatpush3.xpose.msk.msra.mxu0 %vm173_vm2, %v1498_v31  ;;  %16020 = vmatprep.mubr.msk.f32.mxu0 %vm17305_vm1, %v17304_v9 }
 0x8cc   :  { %16028 = vmatprep.subr.mxu0 %v17304_v9 }
 0x8ce   :  { %16021 = vmatmul.mubr.msk.f32.vlgmr.msra.gmra.mxu0 %vm173_vm2, %v1496_v34 }
 0x8cf   :  { %16030 = vmatprep.mubr.msk.f32.mxu0 %vm17305_vm1, %v17304_v9 }
 0x94e   :  { %v1575_v35 = vpop.xlane.xlu0 %1574 }
 0x94f   :  { %v1579_v36 = vsub.f32 %v1492_v27, %v1575_v35 }
 0x951   :  { %v1581_v37 = vmul.f32 1.442695, %v1579_v36 }
 0x953   :  { %17010 = vpow2.f32 %v1581_v37 }
 0x960   :  { %v17011_v38 = vpop.eup %17010 }
 0x961   :  { %v1585_v39 = vsel %vm327_vm5, %v17011_v38, 0.0 }
 0x962   :  { %1586 = vadd.xlane.f32.xlu0 %v1585_v39 }
 0x98a   :  { %v16012_v41 = vpop.f32.mrf.mxu0 }
 0x98b   :  { %v17630_v44 = vadd.f32 %v16012_v41, %v998_v40 }
 0x98c   :  { %v17632_v45 = vpop.f32.mrf.mxu0 }
 0x98e   :  { %v1569_v46 = vpop.f32.mrf.mxu0 }
 0x98f   :  { %v1570_v47 = vadd.f32 %v1569_v46, %v17490_v29 }
 0x990   :  { %v16022_v48 = vpop.f32.mrf.mxu0 }
 0x991   :  { %v1576_v49 = vsel %vm327_vm5, %v1570_v47, -inf }
 0x992   :  { %1577 = vmax.xlane.f32.xlu1 %v1576_v49 }
 0x9a3   :  { %1595 = vrot.lane.b32.xlu1 %v17446_v13, %s19558_s3 }
 0x9a7   :  { %1835 = vrot.lane.b32.xlu1 %v17446_v13, %s19556_s28 }
 0x9ab   :  { %1913 = vrot.lane.b32.xlu1 %v17450_v14, %s19556_s28  ;;  %s19596_s28 = smov 48  }
 0x9af   :  { %1911 = vrot.lane.b32.xlu1 %v17465_v18, %s19554_s29 }
 0x9eb   :  { %v1587_v42 = vpop.xlane.xlu0 %1586 }
 0x9ec   :  { %17012 = vrcp.f32 %v1587_v42 }
 0x9f9   :  { %v17013_v51 = vpop.eup %17012 }
 0x9fa   :  { %v1592_v57 = vmul.f32 %v17013_v51, %v17011_v38 }
 0xa1b   :  { %v1578_v50 = vpop.xlane.xlu1 %1577 }
 0xa1c   :  { %v1580_v52 = vsub.f32 %v1570_v47, %v1578_v50  ;;  %v17698_v47 = vld [vmem:[%s19525_s6 + $0x10] sm:$0xff] }
 0xa1e   :  { %v1583_v54 = vmul.f32 1.442695, %v1580_v52 }
 0xa1f   :  { %v1596_v55 = vpop.permute.xlu1 %1595 }
 0xa20   :  { %17014 = vpow2.f32 %v1583_v54  ;;  %16024 = vmatpush3.msra.mxu1 %v1596_v55 }
 0xa21   :  { %16026 = vmatmul.mubr.msk.f32.vlgmr.msra.gmra.mxu1 %vm327_vm5, %v1592_v57  ;;  %16033 = vmatprep.subr.msk.mxu1 %vm840_vm6, %v1747_v53 }
 0xa22   :  { %16034 = vmatpush3.msk.msra.mxu1 %vm840_vm6, %v1747_v53 }
 0xa23   :  { %16043 = vmatprep.subr.mxu1 %v17304_v9  ;;  %v1836_v0 = vpop.permute.xlu1 %1835 }
 0xa27   :  { %v1914_v4 = vpop.permute.xlu1 %1913 }
 0xa2b   :  { %v1912_v10 = vpop.permute.xlu1 %1911 }
 0xa2d   :  { %v17015_v58 = vpop.eup %17014 }
 0xa2e   :  { %v1588_v59 = vsel %vm327_vm5, %v17015_v58, 0.0 }
 0xa2f   :  { %1589 = vadd.xlane.f32.xlu0 %v1588_v59 }
 0xa45   :  { %1671 = vrot.lane.b32.xlu0 %v17450_v14, %s19558_s3 }
 0xa49   :  { %1833 = vrot.lane.b32.xlu0 %v17456_v16, %s19554_s29  ;;  %s19597_s29 = smov 76  }
 0xab8   :  { %v1590_v60 = vpop.xlane.xlu0 %1589 }
 0xab9   :  { %17016 = vrcp.f32 %v1590_v60 }
 0xabc   :  { %v1672_v61 = vpop.permute.xlu0 %1671 }
 0xabd   :  { %16029 = vmatpush3.msra.mxu0 %v1672_v61 }
 0xabe   :  { %16038 = vmatprep.subr.mxu0 %v17304_v9 }
 0xac0   :  { %v1834_v1 = vpop.permute.xlu0 %1833 }
 0xac6   :  { %v17017_v62 = vpop.eup %17016 }
 0xac7   :  { %v1594_v63 = vmul.f32 %v17017_v62, %v17015_v58 }
 0xac9   :  { %16031 = vmatmul.mubr.msk.f32.vlgmr.msra.gmra.mxu0 %vm327_vm5, %v1594_v63 }
 0xaca   :  { %16039 = vmatpush3.xpose.msk.msra.mxu0 %vm173_vm2, %v1836_v0  ;;  %16040 = vmatprep.mubr.msk.f32.mxu0 %vm17305_vm1, %v17304_v9 }
 0xacb   :  { %16048 = vmatprep.subr.mxu0 %v17304_v9 }
 0xacd   :  { %16041 = vmatmul.mubr.msk.f32.vlgmr.msra.gmra.mxu0 %vm173_vm2, %v1834_v1 }
 0xace   :  { %16050 = vmatprep.mubr.msk.f32.mxu0 %vm17305_vm1, %v17304_v9 }
 0xae1   :  { %v1667_v2 = vpop.f32.mrf.mxu1 }
 0xae2   :  { %16035 = vmatprep.mubr.msk.f32.mxu1 %vm173_vm2, %v1667_v2 }
 0xae3   :  { %v16027_v3 = vpop.f32.mrf.mxu1 }
 0xb89   :  { %v1743_v5 = vpop.f32.mrf.mxu0 }
 0xb8a   :  { %16036 = vmatmul.mubr.msk.f32.vlgmr.msra.gmra.mxu1 %vm173_vm2, %v1743_v5 }
 0xb8b   :  { %16044 = vmatpush3.xpose.msk.msra.mxu1 %vm173_vm2, %v1914_v4  ;;  %v16032_v7 = vpop.f32.mrf.mxu0  ;;  %16045 = vmatprep.mubr.msk.f32.mxu1 %vm17305_vm1, %v17304_v9 }
 0xb8c   :  { %16053 = vmatprep.subr.mxu1 %v17304_v9 }
 0xb8d   :  { %v1907_v11 = vpop.f32.mrf.mxu0 }
 0xb8e   :  { %v1908_v12 = vadd.f32 %v1907_v11, %v17485_v25  ;;  %16046 = vmatmul.mubr.msk.f32.vlgmr.msra.gmra.mxu1 %vm173_vm2, %v1912_v10 }
 0xb8f   :  { %v16042_v15 = vpop.f32.mrf.mxu0  ;;  %16055 = vmatprep.mubr.msk.f32.mxu1 %vm17305_vm1, %v17304_v9 }
 0xb90   :  { %v1989_v17 = vsel %vm327_vm5, %v1908_v12, -inf }
 0xb91   :  { %1990 = vmax.xlane.f32.xlu0 %v1989_v17 }
 0xc1a   :  { %v1991_v19 = vpop.xlane.xlu0 %1990 }
 0xc1b   :  { %v1995_v20 = vsub.f32 %v1908_v12, %v1991_v19 }
 0xc1d   :  { %v1997_v22 = vmul.f32 1.442695, %v1995_v20 }
 0xc1f   :  { %17018 = vpow2.f32 %v1997_v22 }
 0xc2c   :  { %v17019_v24 = vpop.eup %17018 }
 0xc2d   :  { %v2001_v26 = vsel %vm327_vm5, %v17019_v24, 0.0 }
 0xc2e   :  { %2002 = vadd.xlane.f32.xlu0 %v2001_v26  ;;  %v2579_v26 = vrot.slane %v17698_v47, 4 }
 0xc4a   :  { %v16037_v27 = vpop.f32.mrf.mxu1 }
 0xc4b   :  { %v17675_v28 = vadd.f32 %v16037_v27, %v17630_v44 }
 0xc4c   :  { %v17677_v30 = vpop.f32.mrf.mxu1 }
 0xc4e   :  { %v1985_v31 = vpop.f32.mrf.mxu1 }
 0xc4f   :  { %v1986_v32 = vadd.f32 %v1985_v31, %v17490_v29 }
 0xc50   :  { %v16047_v33 = vpop.f32.mrf.mxu1 }
 0xc51   :  { %v1992_v34 = vsel %vm327_vm5, %v1986_v32, -inf }
 0xc52   :  { %1993 = vmax.xlane.f32.xlu1 %v1992_v34 }
 0xc63   :  { %2011 = vrot.lane.b32.xlu1 %v17446_v13, %s19552_s30 }
 0xc67   :  { %2251 = vrot.lane.b32.xlu1 %v17446_v13, %s19550_s15 }
 0xc6b   :  { %2329 = vrot.lane.b32.xlu1 %v17450_v14, %s19550_s15  ;;  %s19595_s15 = smov 112  }
 0xc6f   :  { %2327 = vrot.lane.b32.xlu1 %v17465_v18, %s19542_s20 }
 0xcb7   :  { %v2003_v35 = vpop.xlane.xlu0 %2002 }
 0xcb8   :  { %17020 = vrcp.f32 %v2003_v35 }
 0xcc5   :  { %v17021_v37 = vpop.eup %17020 }
 0xcc6   :  { %v2008_v41 = vmul.f32 %v17021_v37, %v17019_v24 }
 0xcdb   :  { %v1994_v36 = vpop.xlane.xlu1 %1993 }
 0xcdc   :  { %v1996_v38 = vsub.f32 %v1986_v32, %v1994_v36 }
 0xcde   :  { %v1999_v39 = vmul.f32 1.442695, %v1996_v38 }
 0xcdf   :  { %v2012_v40 = vpop.permute.xlu1 %2011 }
 0xce0   :  { %17022 = vpow2.f32 %v1999_v39  ;;  %16049 = vmatpush3.msra.mxu0 %v2012_v40 }
 0xce1   :  { %16051 = vmatmul.mubr.msk.f32.vlgmr.msra.gmra.mxu0 %vm327_vm5, %v2008_v41  ;;  %16058 = vmatprep.subr.msk.mxu0 %vm840_vm6, %v17698_v47 }
 0xce2   :  { %16059 = vmatpush3.msk.msra.mxu0 %vm840_vm6, %v17698_v47 }
 0xce3   :  { %16068 = vmatprep.subr.mxu0 %v17304_v9  ;;  %v2252_v51 = vpop.permute.xlu1 %2251 }
 0xce7   :  { %v2330_v55 = vpop.permute.xlu1 %2329 }
 0xceb   :  { %v2328_v59 = vpop.permute.xlu1 %2327 }
 0xced   :  { %v17023_v44 = vpop.eup %17022 }
 0xcee   :  { %v2004_v46 = vsel %vm327_vm5, %v17023_v44, 0.0 }
 0xcef   :  { %2005 = vadd.xlane.f32.xlu0 %v2004_v46 }
 0xd05   :  { %2087 = vrot.lane.b32.xlu0 %v17450_v14, %s19552_s30  ;;  %s19594_s30 = smov 80  }
 0xd09   :  { %2249 = vrot.lane.b32.xlu0 %v17456_v16, %s19542_s20  ;;  %s19544_s20 = smov 36  }
 0xd78   :  { %v2006_v48 = vpop.xlane.xlu0 %2005 }
 0xd79   :  { %17024 = vrcp.f32 %v2006_v48 }
 0xd7c   :  { %v2088_v49 = vpop.permute.xlu0 %2087 }
 0xd7d   :  { %16054 = vmatpush3.msra.mxu1 %v2088_v49 }
 0xd7e   :  { %16063 = vmatprep.subr.mxu1 %v17304_v9 }
 0xd80   :  { %v2250_v52 = vpop.permute.xlu0 %2249 }
 0xd86   :  { %v17025_v42 = vpop.eup %17024 }
 0xd87   :  { %v2010_v50 = vmul.f32 %v17025_v42, %v17023_v44 }
 0xd89   :  { %16056 = vmatmul.mubr.msk.f32.vlgmr.msra.gmra.mxu1 %vm327_vm5, %v2010_v50 }
 0xd8a   :  { %16064 = vmatpush3.xpose.msk.msra.mxu1 %vm173_vm2, %v2252_v51  ;;  %16065 = vmatprep.mubr.msk.f32.mxu1 %vm17305_vm1, %v17304_v9 }
 0xd8b   :  { %16073 = vmatprep.subr.mxu1 %v17304_v9 }
 0xd8d   :  { %16066 = vmatmul.mubr.msk.f32.vlgmr.msra.gmra.mxu1 %vm173_vm2, %v2250_v52 }
 0xd8e   :  { %16075 = vmatprep.mubr.msk.f32.mxu1 %vm17305_vm1, %v17304_v9 }
 0xda1   :  { %v2083_v53 = vpop.f32.mrf.mxu0 }
 0xda2   :  { %16060 = vmatprep.mubr.msk.f32.mxu0 %vm173_vm2, %v2083_v53 }
 0xda3   :  { %v16052_v54 = vpop.f32.mrf.mxu0 }
 0xe49   :  { %v2159_v57 = vpop.f32.mrf.mxu1 }
 0xe4a   :  { %16061 = vmatmul.mubr.msk.f32.vlgmr.msra.gmra.mxu0 %vm173_vm2, %v2159_v57 }
 0xe4b   :  { %16069 = vmatpush3.xpose.msk.msra.mxu0 %vm173_vm2, %v2330_v55  ;;  %v16057_v58 = vpop.f32.mrf.mxu1  ;;  %16070 = vmatprep.mubr.msk.f32.mxu0 %vm17305_vm1, %v17304_v9 }
 0xe4c   :  { %16078 = vmatprep.subr.mxu0 %v17304_v9 }
 0xe4d   :  { %v2323_v60 = vpop.f32.mrf.mxu1 }
 0xe4e   :  { %v2324_v61 = vadd.f32 %v2323_v60, %v17485_v25  ;;  %16071 = vmatmul.mubr.msk.f32.vlgmr.msra.gmra.mxu0 %vm173_vm2, %v2328_v59 }
 0xe4f   :  { %v16067_v62 = vpop.f32.mrf.mxu1  ;;  %16080 = vmatprep.mubr.msk.f32.mxu0 %vm17305_vm1, %v17304_v9 }
 0xe50   :  { %v2405_v63 = vsel %vm327_vm5, %v2324_v61, -inf }
 0xe51   :  { %2406 = vmax.xlane.f32.xlu0 %v2405_v63 }
 0xeda   :  { %v2407_v0 = vpop.xlane.xlu0 %2406 }
 0xedb   :  { %v2411_v1 = vsub.f32 %v2324_v61, %v2407_v0 }
 0xedd   :  { %v2413_v2 = vmul.f32 1.442695, %v2411_v1 }
 0xedf   :  { %17026 = vpow2.f32 %v2413_v2 }
 0xeec   :  { %v17027_v3 = vpop.eup %17026 }
 0xeed   :  { %v2417_v4 = vsel %vm327_vm5, %v17027_v3, 0.0 }
 0xeee   :  { %2418 = vadd.xlane.f32.xlu0 %v2417_v4 }
 0xf0a   :  { %v16062_v5 = vpop.f32.mrf.mxu0 }
 0xf0b   :  { %v17727_v7 = vadd.f32 %v16062_v5, %v17675_v28 }
 0xf0c   :  { %v17729_v10 = vpop.f32.mrf.mxu0 }
 0xf0e   :  { %v2401_v11 = vpop.f32.mrf.mxu0 }
 0xf0f   :  { %v2402_v12 = vadd.f32 %v2401_v11, %v17490_v29 }
 0xf10   :  { %v16072_v15 = vpop.f32.mrf.mxu0 }
 0xf11   :  { %v2408_v17 = vsel %vm327_vm5, %v2402_v12, -inf }
 0xf12   :  { %2409 = vmax.xlane.f32.xlu1 %v2408_v17 }
 0xf23   :  { %2427 = vrot.lane.b32.xlu1 %v17446_v13, %s19538_s0 }
 0xf27   :  { %2667 = vrot.lane.b32.xlu1 %v17446_v13, %s19536_s21 }
 0xf2b   :  { %2745 = vrot.lane.b32.xlu1 %v17450_v14, %s19536_s21  ;;  %s19540_s21 = smov 68  }
 0xf2f   :  { %2743 = vrot.lane.b32.xlu1 %v17465_v18, %s19534_s26 }
 0xf77   :  { %v2419_v19 = vpop.xlane.xlu0 %2418 }
 0xf78   :  { %17028 = vrcp.f32 %v2419_v19 }
 0xf85   :  { %v17029_v22 = vpop.eup %17028 }
 0xf86   :  { %v2424_v31 = vmul.f32 %v17029_v22, %v17027_v3 }
 0xf9b   :  { %v2410_v20 = vpop.xlane.xlu1 %2409 }
 0xf9c   :  { %v2412_v24 = vsub.f32 %v2402_v12, %v2410_v20 }
 0xf9e   :  { %v2415_v27 = vmul.f32 1.442695, %v2412_v24 }
 0xf9f   :  { %v2428_v28 = vpop.permute.xlu1 %2427 }
 0xfa0   :  { %17030 = vpow2.f32 %v2415_v27  ;;  %16074 = vmatpush3.msra.mxu1 %v2428_v28 }
 0xfa1   :  { %16076 = vmatmul.mubr.msk.f32.vlgmr.msra.gmra.mxu1 %vm327_vm5, %v2424_v31  ;;  %16083 = vmatprep.subr.msk.mxu1 %vm840_vm6, %v2579_v26 }
 0xfa2   :  { %16084 = vmatpush3.msk.msra.mxu1 %vm840_vm6, %v2579_v26 }
 0xfa3   :  { %16093 = vmatprep.subr.mxu1 %v17304_v9  ;;  %v2668_v38 = vpop.permute.xlu1 %2667 }
 0xfa7   :  { %v2746_v44 = vpop.permute.xlu1 %2745 }
 0xfab   :  { %v2744_v48 = vpop.permute.xlu1 %2743 }
 0xfad   :  { %v17031_v32 = vpop.eup %17030 }
 0xfae   :  { %v2420_v33 = vsel %vm327_vm5, %v17031_v32, 0.0 }
 0xfaf   :  { %2421 = vadd.xlane.f32.xlu0 %v2420_v33 }
 0xfc5   :  { %2503 = vrot.lane.b32.xlu0 %v17450_v14, %s19538_s0  ;;  %s19546_s0 = smov 100  }
 0xfc9   :  { %2665 = vrot.lane.b32.xlu0 %v17456_v16, %s19534_s26  ;;  %s19548_s26 = smov 40  }
0x1038   :  { %v2422_v34 = vpop.xlane.xlu0 %2421 }
0x1039   :  { %17032 = vrcp.f32 %v2422_v34 }
0x103c   :  { %v2504_v35 = vpop.permute.xlu0 %2503 }
0x103d   :  { %16079 = vmatpush3.msra.mxu0 %v2504_v35 }
0x103e   :  { %16088 = vmatprep.subr.mxu0 %v17304_v9 }
0x1040   :  { %v2666_v39 = vpop.permute.xlu0 %2665 }
0x1046   :  { %v17033_v36 = vpop.eup %17032 }
0x1047   :  { %v2426_v37 = vmul.f32 %v17033_v36, %v17031_v32 }
0x1049   :  { %16081 = vmatmul.mubr.msk.f32.vlgmr.msra.gmra.mxu0 %vm327_vm5, %v2426_v37 }
0x104a   :  { %16089 = vmatpush3.xpose.msk.msra.mxu0 %vm173_vm2, %v2668_v38  ;;  %16090 = vmatprep.mubr.msk.f32.mxu0 %vm17305_vm1, %v17304_v9 }
0x104b   :  { %16098 = vmatprep.subr.mxu0 %v17304_v9 }
0x104d   :  { %16091 = vmatmul.mubr.msk.f32.vlgmr.msra.gmra.mxu0 %vm173_vm2, %v2666_v39 }
0x104e   :  { %16100 = vmatprep.mubr.msk.f32.mxu0 %vm17305_vm1, %v17304_v9 }
0x1061   :  { %v2499_v40 = vpop.f32.mrf.mxu1 }
0x1062   :  { %16085 = vmatprep.mubr.msk.f32.mxu1 %vm173_vm2, %v2499_v40 }
0x1063   :  { %v16077_v41 = vpop.f32.mrf.mxu1 }
0x1109   :  { %v2575_v46 = vpop.f32.mrf.mxu0 }
0x110a   :  { %16086 = vmatmul.mubr.msk.f32.vlgmr.msra.gmra.mxu1 %vm173_vm2, %v2575_v46 }
0x110b   :  { %16094 = vmatpush3.xpose.msk.msra.mxu1 %vm173_vm2, %v2746_v44  ;;  %v16082_v47 = vpop.f32.mrf.mxu0  ;;  %16095 = vmatprep.mubr.msk.f32.mxu1 %vm17305_vm1, %v17304_v9 }
0x110c   :  { %16103 = vmatprep.subr.mxu1 %v17304_v9 }
0x110d   :  { %v2739_v49 = vpop.f32.mrf.mxu0 }
0x110e   :  { %v2740_v42 = vadd.f32 %v2739_v49, %v17485_v25  ;;  %16096 = vmatmul.mubr.msk.f32.vlgmr.msra.gmra.mxu1 %vm173_vm2, %v2744_v48 }
0x110f   :  { %v16092_v50 = vpop.f32.mrf.mxu0  ;;  %16105 = vmatprep.mubr.msk.f32.mxu1 %vm17305_vm1, %v17304_v9 }
0x1110   :  { %v2821_v51 = vsel %vm327_vm5, %v2740_v42, -inf }
0x1111   :  { %2822 = vmax.xlane.f32.xlu0 %v2821_v51 }
0x119a   :  { %v2823_v52 = vpop.xlane.xlu0 %2822 }
0x119b   :  { %v2827_v53 = vsub.f32 %v2740_v42, %v2823_v52 }
0x119d   :  { %v2829_v54 = vmul.f32 1.442695, %v2827_v53 }
0x119f   :  { %17034 = vpow2.f32 %v2829_v54 }
0x11ac   :  { %v17035_v55 = vpop.eup %17034 }
0x11ad   :  { %v2833_v57 = vsel %vm327_vm5, %v17035_v55, 0.0 }
0x11ae   :  { %2834 = vadd.xlane.f32.xlu0 %v2833_v57 }
0x11ca   :  { %v16087_v58 = vpop.f32.mrf.mxu1 }
0x11cb   :  { %v17773_v59 = vadd.f32 %v16087_v58, %v17727_v7 }
0x11cc   :  { %v17775_v60 = vpop.f32.mrf.mxu1 }
0x11ce   :  { %v2817_v61 = vpop.f32.mrf.mxu1 }
0x11cf   :  { %v2818_v62 = vadd.f32 %v2817_v61, %v17490_v29 }
0x11d0   :  { %v16097_v63 = vpop.f32.mrf.mxu1 }
0x11d1   :  { %v2824_v0 = vsel %vm327_vm5, %v2818_v62, -inf }
0x11d2   :  { %2825 = vmax.xlane.f32.xlu1 %v2824_v0 }
0x11e3   :  { %2843 = vrot.lane.b32.xlu1 %v17446_v13, %s19548_s26 }
0x11e7   :  { %3083 = vrot.lane.b32.xlu1 %v17446_v13, %s19540_s21 }
0x11eb   :  { %3161 = vrot.lane.b32.xlu1 %v17450_v14, %s19540_s21  ;;  %s19600_s21 = smov 72  }
0x11ef   :  { %3159 = vrot.lane.b32.xlu1 %v17465_v18, %s19546_s0  ;;  %v17796_v18 = vld [vmem:[%s19525_s6 + $0x18] sm:$0xff] }
0x11f0   :  { %v3411_v57 = vrot.slane %v17796_v18, 4 }
0x1237   :  { %v2835_v1 = vpop.xlane.xlu0 %2834 }
0x1238   :  { %17036 = vrcp.f32 %v2835_v1 }
0x1245   :  { %v17037_v3 = vpop.eup %17036 }
0x1246   :  { %v2840_v11 = vmul.f32 %v17037_v3, %v17035_v55 }
0x125b   :  { %v2826_v2 = vpop.xlane.xlu1 %2825 }
0x125c   :  { %v2828_v4 = vsub.f32 %v2818_v62, %v2826_v2 }
0x125e   :  { %v2831_v5 = vmul.f32 1.442695, %v2828_v4 }
0x125f   :  { %v2844_v7 = vpop.permute.xlu1 %2843 }
0x1260   :  { %17038 = vpow2.f32 %v2831_v5  ;;  %16099 = vmatpush3.msra.mxu0 %v2844_v7 }
0x1261   :  { %16101 = vmatmul.mubr.msk.f32.vlgmr.msra.gmra.mxu0 %vm327_vm5, %v2840_v11  ;;  %16108 = vmatprep.subr.msk.mxu0 %vm840_vm6, %v17796_v18  ;;  %v993_v11 = vadd.f32 %v17567_v43, %v17590_v56 }
0x1262   :  { %16109 = vmatpush3.msk.msra.mxu0 %vm840_vm6, %v17796_v18 }
0x1263   :  { %16118 = vmatprep.subr.mxu0 %v17304_v9  ;;  %v3084_v22 = vpop.permute.xlu1 %3083 }
0x1267   :  { %v3162_v28 = vpop.permute.xlu1 %3161 }
0x126b   :  { %v3160_v33 = vpop.permute.xlu1 %3159 }
0x126d   :  { %v17039_v12 = vpop.eup %17038 }
0x126e   :  { %v2836_v15 = vsel %vm327_vm5, %v17039_v12, 0.0 }
0x126f   :  { %2837 = vadd.xlane.f32.xlu0 %v2836_v15 }
0x1285   :  { %2919 = vrot.lane.b32.xlu0 %v17450_v14, %s19548_s26  ;;  %s19599_s26 = smov 44  }
0x1289   :  { %3081 = vrot.lane.b32.xlu0 %v17456_v16, %s19546_s0  ;;  %s19601_s0 = smov 104  }
0x12f8   :  { %v2838_v17 = vpop.xlane.xlu0 %2837 }
0x12f9   :  { %17040 = vrcp.f32 %v2838_v17 }
0x12fc   :  { %v2920_v19 = vpop.permute.xlu0 %2919 }
0x12fd   :  { %16104 = vmatpush3.msra.mxu1 %v2920_v19  ;;  %v15111_v19 = vld [vmem:[%s19526_s7] ss:$0 sm:$0xff] }
0x12fe   :  { %16113 = vmatprep.subr.mxu1 %v17304_v9 }
0x1300   :  { %v3082_v24 = vpop.permute.xlu0 %3081 }
0x1306   :  { %v17041_v16 = vpop.eup %17040 }
0x1307   :  { %v2842_v20 = vmul.f32 %v17041_v16, %v17039_v12 }
0x1309   :  { %16106 = vmatmul.mubr.msk.f32.vlgmr.msra.gmra.mxu1 %vm327_vm5, %v2842_v20 }
0x130a   :  { %16114 = vmatpush3.xpose.msk.msra.mxu1 %vm173_vm2, %v3084_v22  ;;  %16115 = vmatprep.mubr.msk.f32.mxu1 %vm17305_vm1, %v17304_v9 }
0x130b   :  { %16123 = vmatprep.subr.mxu1 %v17304_v9 }
0x130d   :  { %16116 = vmatmul.mubr.msk.f32.vlgmr.msra.gmra.mxu1 %vm173_vm2, %v3082_v24 }
0x130e   :  { %16125 = vmatprep.mubr.msk.f32.mxu1 %vm17305_vm1, %v17304_v9 }
0x1321   :  { %v2915_v26 = vpop.f32.mrf.mxu0 }
0x1322   :  { %16110 = vmatprep.mubr.msk.f32.mxu0 %vm173_vm2, %v2915_v26 }
0x1323   :  { %v16102_v27 = vpop.f32.mrf.mxu0 }
0x13c9   :  { %v2991_v31 = vpop.f32.mrf.mxu1 }
0x13ca   :  { %16111 = vmatmul.mubr.msk.f32.vlgmr.msra.gmra.mxu0 %vm173_vm2, %v2991_v31 }
0x13cb   :  { %16119 = vmatpush3.xpose.msk.msra.mxu0 %vm173_vm2, %v3162_v28  ;;  %v16107_v32 = vpop.f32.mrf.mxu1  ;;  %16120 = vmatprep.mubr.msk.f32.mxu0 %vm17305_vm1, %v17304_v9 }
0x13cc   :  { %16128 = vmatprep.subr.mxu0 %v17304_v9 }
0x13cd   :  { %v3155_v34 = vpop.f32.mrf.mxu1 }
0x13ce   :  { %v3156_v35 = vadd.f32 %v3155_v34, %v17485_v25  ;;  %16121 = vmatmul.mubr.msk.f32.vlgmr.msra.gmra.mxu0 %vm173_vm2, %v3160_v33 }
0x13cf   :  { %v16117_v36 = vpop.f32.mrf.mxu1  ;;  %16130 = vmatprep.mubr.msk.f32.mxu0 %vm17305_vm1, %v17304_v9 }
0x13d0   :  { %v3237_v37 = vsel %vm327_vm5, %v3156_v35, -inf  ;;  %v3551_v36 = vld [vmem:[%s19527_s8 + $0x18] sm:$0xff] }
0x13d1   :  { %3238 = vmax.xlane.f32.xlu0 %v3237_v37  ;;  %v3550_v37 = vld [vmem:[%s19527_s8 + $0x10] sm:$0xff] }
0x145a   :  { %v3239_v38 = vpop.xlane.xlu0 %3238 }
0x145b   :  { %v3243_v39 = vsub.f32 %v3156_v35, %v3239_v38  ;;  %v3549_v38 = vld [vmem:[%s19527_s8 + $0x8] sm:$0xff] }
0x145d   :  { %v3245_v40 = vmul.f32 1.442695, %v3243_v39  ;;  %v3548_v39 = vld [vmem:[%s19527_s8] sm:$0xff] }
0x145f   :  { %17042 = vpow2.f32 %v3245_v40  ;;  %v3657_v40 = vld [vmem:[%s19529_s10 + $0x78] sm:$0xff] }
0x146c   :  { %v17043_v41 = vpop.eup %17042 }
0x146d   :  { %v3249_v44 = vsel %vm327_vm5, %v17043_v41, 0.0 }
0x146e   :  { %3250 = vadd.xlane.f32.xlu0 %v3249_v44  ;;  %v3655_v44 = vld [vmem:[%s19529_s10 + $0x68] sm:$0xff] }
0x148a   :  { %v16112_v46 = vpop.f32.mrf.mxu0 }
0x148b   :  { %v3080_v47 = vadd.f32 %v16112_v46, %v17773_v59  ;;  %v3654_v46 = vld [vmem:[%s19529_s10 + $0x60] sm:$0xff] }
0x148c   :  { %v3070_v48 = vpop.f32.mrf.mxu0 }
0x148e   :  { %v3233_v49 = vpop.f32.mrf.mxu0 }
0x148f   :  { %v3234_v42 = vadd.f32 %v3233_v49, %v17490_v29  ;;  %v3651_v49 = vld [vmem:[%s19529_s10 + $0x48] sm:$0xff] }
0x1490   :  { %v16122_v50 = vpop.f32.mrf.mxu0 }
0x1491   :  { %v3240_v51 = vsel %vm327_vm5, %v3234_v42, -inf  ;;  %v3649_v50 = vld [vmem:[%s19529_s10 + $0x38] sm:$0xff] }
0x1492   :  { %3241 = vmax.xlane.f32.xlu1 %v3240_v51  ;;  %v3648_v51 = vld [vmem:[%s19529_s10 + $0x30] sm:$0xff] }
0x14a3   :  { %3259 = vrot.lane.b32.xlu1 %v17446_v13, %s19544_s20 }
0x14f7   :  { %v3251_v52 = vpop.xlane.xlu0 %3250 }
0x14f8   :  { %17044 = vrcp.f32 %v3251_v52  ;;  %v3647_v52 = vld [vmem:[%s19529_s10 + $0x28] sm:$0xff] }
0x1505   :  { %v17045_v54 = vpop.eup %17044 }
0x1506   :  { %v3256_v61 = vmul.f32 %v17045_v54, %v17043_v41  ;;  %v3656_v41 = vld [vmem:[%s19529_s10 + $0x70] sm:$0xff] }
0x151b   :  { %v3242_v53 = vpop.xlane.xlu1 %3241 }
0x151c   :  { %v3244_v55 = vsub.f32 %v3234_v42, %v3242_v53  ;;  %v3650_v42 = vld [vmem:[%s19529_s10 + $0x40] sm:$0xff] }
0x151d   :  { %v3646_v53 = vld [vmem:[%s19529_s10 + $0x20] sm:$0xff] }
0x151e   :  { %v3247_v58 = vmul.f32 1.442695, %v3244_v55 }
0x151f   :  { %v3260_v59 = vpop.permute.xlu1 %3259 }
0x1520   :  { %17046 = vpow2.f32 %v3247_v58  ;;  %16124 = vmatpush3.msra.mxu1 %v3260_v59 }
0x1521   :  { %16126 = vmatmul.mubr.msk.f32.vlgmr.msra.gmra.mxu1 %vm327_vm5, %v3256_v61  ;;  %16133 = vmatprep.subr.msk.mxu1 %vm840_vm6, %v3411_v57 }
0x1522   :  { %16134 = vmatpush3.msk.msra.mxu1 %vm840_vm6, %v3411_v57 }
0x1523   :  { %16149 = vmatprep.subr.mxu1 %v3657_v40 }
0x152d   :  { %v17047_v62 = vpop.eup %17046 }
0x152e   :  { %v3252_v13 = vsel %vm327_vm5, %v17047_v62, 0.0 }
0x152f   :  { %3253 = vadd.xlane.f32.xlu0 %v3252_v13 }
0x1545   :  { %3335 = vrot.lane.b32.xlu0 %v17450_v14, %s19544_s20  ;;  %v1415_v14 = vadd.f32 %v17632_v45, %v993_v11  ;;  %s19598_s20 = smov 108  }
0x1547   :  { %v1831_v12 = vadd.f32 %v17677_v30, %v1415_v14 }
0x1549   :  { %v2247_v15 = vadd.f32 %v17729_v10, %v1831_v12  ;;  %v3645_v12 = vld [vmem:[%s19529_s10 + $0x18] sm:$0xff] }
0x154b   :  { %v2663_v18 = vadd.f32 %v17775_v60, %v2247_v15  ;;  %v3644_v15 = vld [vmem:[%s19529_s10 + $0x10] sm:$0xff] }
0x154d   :  { %v3079_v16 = vadd.f32 %v3070_v48, %v2663_v18  ;;  %v3652_v48 = vld [vmem:[%s19529_s10 + $0x50] sm:$0xff]  ;;  %v3643_v18 = vld [vmem:[%s19529_s10 + $0x8] sm:$0xff] }
0x15b8   :  { %v3254_v63 = vpop.xlane.xlu0 %3253 }
0x15b9   :  { %17048 = vrcp.f32 %v3254_v63 }
0x15bc   :  { %v3336_v0 = vpop.permute.xlu0 %3335 }
0x15bd   :  { %16129 = vmatpush3.msra.mxu0 %v3336_v0  ;;  %v17918_v0 = vsub.s32 1, %v17475_v21 }
0x15be   :  { %16138 = vmatprep.subr.mxu0 %v3551_v36 }
0x15c6   :  { %v17049_v1 = vpop.eup %17048 }
0x15c7   :  { %v3258_v2 = vmul.f32 %v17049_v1, %v17047_v62  ;;  %v17913_v62 = vld [vmem:[%s19531_s12] sm:$0xf] }
0x15c8   :  { %v3539_v63 = vrot.slane %v17913_v62, %v17481_v23 }
0x15c9   :  { %16131 = vmatmul.mubr.msk.f32.vlgmr.msra.gmra.mxu0 %vm327_vm5, %v3258_v2 }
0x15ca   :  { %16139 = vmatpush3.msra.mxu0 %v3551_v36 }
0x15cb   :  { %16140 = vmatprep.subr.mxu0 %v3550_v37 }
0x15cc   :  { %16141 = vmatpush3.msra.mxu0 %v3550_v37 }
0x15cd   :  { %16142 = vmatprep.subr.mxu0 %v3549_v38 }
0x15ce   :  { %16143 = vmatpush3.msra.mxu0 %v3549_v38 }
0x15cf   :  { %16144 = vmatprep.subr.mxu0 %v3548_v39 }
0x15d0   :  { %16145 = vmatpush3.msra.mxu0 %v3548_v39 }
0x15e1   :  { %v3331_v3 = vpop.f32.mrf.mxu1 }
0x15e2   :  { %16135 = vmatprep.mubr.msk.f32.mxu1 %vm173_vm2, %v3331_v3 }
0x15e3   :  { %v16127_v4 = vpop.f32.mrf.mxu1 }
0x1689   :  { %v3407_v5 = vpop.f32.mrf.mxu0 }
0x168a   :  { %16136 = vmatmul.mubr.msk.f32.vlgmr.msra.gmra.mxu1 %vm173_vm2, %v3407_v5  ;;  %v3545_v5 = vrot.slane %v17913_v62, %v17918_v0 }
0x168b   :  { %v16132_v7 = vpop.f32.mrf.mxu0  ;;  %16150 = vmatpush3.msra.mxu1 %v3657_v40 }
0x168c   :  { %16151 = vmatprep.subr.mxu1 %v3656_v41 }
0x168d   :  { %16152 = vmatpush3.msra.mxu1 %v3656_v41  ;;  %v15119_v41 = vld [vmem:[%s19523_s4 + $0x38] sm:$0xff] }
0x168e   :  { %16153 = vmatprep.subr.mxu1 %v3655_v44  ;;  %16184 = vmatprep.subr.mxu0 %v15119_v41 }
0x168f   :  { %16154 = vmatpush3.msra.mxu1 %v3655_v44  ;;  %v15118_v44 = vld [vmem:[%s19523_s4 + $0x30] sm:$0xff] }
0x1690   :  { %16155 = vmatprep.subr.mxu1 %v3654_v46 }
0x1691   :  { %16156 = vmatpush3.msra.mxu1 %v3654_v46  ;;  %v15117_v46 = vld [vmem:[%s19523_s4 + $0x28] sm:$0xff] }
0x174a   :  { %v16137_v17 = vpop.f32.mrf.mxu1 }
0x174b   :  { %v3496_v20 = vadd.f32 %v16137_v17, %v3080_v47  ;;  %v3653_v47 = vld [vmem:[%s19529_s10 + $0x58] sm:$0xff]  ;;  %v3642_v17 = vld [vmem:[%s19529_s10] sm:$0xff] }
0x174c   :  { %v3486_v22 = vpop.f32.mrf.mxu1  ;;  %16157 = vmatprep.subr.mxu1 %v3653_v47 }
0x174d   :  { %v3505_v24 = vadd.f32 %v15111_v19, %v3496_v20  ;;  %v3495_v26 = vadd.f32 %v3486_v22, %v3079_v16  ;;  %16158 = vmatpush3.msra.mxu1 %v3653_v47  ;;  %v15116_v47 = vld [vmem:[%s19523_s4 + $0x20] sm:$0xff] }
0x174e   :  { %16159 = vmatprep.subr.mxu1 %v3652_v48 }
0x174f   :  { %v3504_v27 = vadd.f32 %v15111_v19, %v3495_v26  ;;  %v3508_v43 = vadd.f32 %v3505_v24, %v17431_v8  ;;  %16160 = vmatpush3.msra.mxu1 %v3652_v48  ;;  %v15112_v19 = vld [vmem:[%s19528_s9] ss:$0 sm:$0xff] }
0x1750   :  { %16161 = vmatprep.subr.mxu1 %v3651_v49 }
0x1751   :  { %v3512_v56 = vsel %vm70_vm0, %v3508_v43, 0.0  ;;  %v3507_v45 = vadd.f32 %v3504_v27, %v17426_v6  ;;  %16162 = vmatpush3.msra.mxu1 %v3651_v49 }
0x1752   :  { %3513 = vadd.xlane.f32.xlu0 %v3512_v56  ;;  %16163 = vmatprep.subr.mxu1 %v3650_v42 }
0x1753   :  { %v3509_v30 = vsel %vm70_vm0, %v3507_v45, 0.0  ;;  %16164 = vmatpush3.msra.mxu1 %v3650_v42 }
0x1754   :  { %3510 = vadd.xlane.f32.xlu1 %v3509_v30  ;;  %16165 = vmatprep.subr.mxu1 %v3649_v50 }
0x1755   :  { %16166 = vmatpush3.msra.mxu1 %v3649_v50 }
0x1756   :  { %16167 = vmatprep.subr.mxu1 %v3648_v51 }
0x1757   :  { %16168 = vmatpush3.msra.mxu1 %v3648_v51 }
0x1758   :  { %16169 = vmatprep.subr.mxu1 %v3647_v52 }
0x1759   :  { %16170 = vmatpush3.msra.mxu1 %v3647_v52 }
0x175a   :  { %16171 = vmatprep.subr.mxu1 %v3646_v53 }
0x175b   :  { %16172 = vmatpush3.msra.mxu1 %v3646_v53  ;;  %v17965_v53 = vsub.s32 2, %v17475_v21 }
0x175c   :  { %16173 = vmatprep.subr.mxu1 %v3645_v12 }
0x175d   :  { %16174 = vmatpush3.msra.mxu1 %v3645_v12 }
0x175e   :  { %16175 = vmatprep.subr.mxu1 %v3644_v15 }
0x175f   :  { %16176 = vmatpush3.msra.mxu1 %v3644_v15 }
0x1760   :  { %16177 = vmatprep.subr.mxu1 %v3643_v18 }
0x1761   :  { %16178 = vmatpush3.msra.mxu1 %v3643_v18 }
0x1762   :  { %16179 = vmatprep.subr.mxu1 %v3642_v17 }
0x1763   :  { %16180 = vmatpush3.msra.mxu1 %v3642_v17 }
0x1764   :  { %16220 = vmatprep.subr.mxu1 %v17304_v9 }
0x17db   :  { %v3514_v10 = vpop.xlane.xlu0 %3513 }
0x17dc   :  { %v3517_v60 = vmul.f32 0.03125, %v3514_v10 }
0x17dd   :  { %v3511_v28 = vpop.xlane.xlu1 %3510 }
0x17de   :  { %v17852_v31 = vsub.f32 %v3508_v43, %v3517_v60  ;;  %v3516_v32 = vmul.f32 0.03125, %v3511_v28  ;;  %v15115_v43 = vld [vmem:[%s19530_s11] ss:$0 sm:$0xff] }
0x17e0   :  { %v17854_v33 = vsub.f32 %v3507_v45, %v3516_v32  ;;  %v3521_v34 = vmul.f32 %v17852_v31, %v17852_v31 }
0x17e2   :  { %v3525_v8 = vsel %vm70_vm0, %v3521_v34, 0.0  ;;  %v3520_v6 = vmul.f32 %v17854_v33, %v17854_v33 }
0x17e3   :  { %3526 = vadd.xlane.f32.xlu0 %v3525_v8 }
0x17e4   :  { %v3522_v35 = vsel %vm70_vm0, %v3520_v6, 0.0 }
0x17e5   :  { %3523 = vadd.xlane.f32.xlu1 %v3522_v35 }
0x186c   :  { %v3527_v54 = vpop.xlane.xlu0 %3526 }
0x186d   :  { %v3529_v55 = vmul.f32 0.03125, %v3527_v54 }
0x186e   :  { %v3524_v57 = vpop.xlane.xlu1 %3523 }
0x186f   :  { %v3531_v58 = vadd.f32 1e-05, %v3529_v55  ;;  %v3528_v59 = vmul.f32 0.03125, %v3524_v57  ;;  %v3771_v55 = vrot.slane %v17913_v62, %v17965_v53  ;;  %v17970_v57 = vsub.s32 3, %v17475_v21  ;;  %v15121_v21 = vld [vmem:[%s19524_s5 + $0x1] ss:$0 sm:$0xff] }
0x1871   :  { %17050 = vrsqrt.f32 %v3531_v58  ;;  %v3530_v61 = vadd.f32 1e-05, %v3528_v59 }
0x1873   :  { %17052 = vrsqrt.f32 %v3530_v61 }
0x187e   :  { %v17051_v13 = vpop.eup %17050 }
0x187f   :  { %v3535_v1 = vmul.f32 %v17051_v13, %v17852_v31 }
0x1880   :  { %v17053_v2 = vpop.eup %17052 }
0x1881   :  { %v3534_v3 = vmul.f32 %v17053_v2, %v17854_v33  ;;  %v3541_v4 = vmul.f32 %v3539_v63, %v3535_v1 }
0x1883   :  { %v3540_v7 = vmul.f32 %v3539_v63, %v3534_v3  ;;  %v3547_v14 = vadd.f32 %v3545_v5, %v3541_v4  ;;  %v3777_v63 = vrot.slane %v17913_v62, %v17970_v57 }
0x1885   :  { %v3546_v11 = vadd.f32 %v3545_v5, %v3540_v7 }
0x1887   :  { %16146 = vmatprep.mubr.msk.f32.mxu0 %vm70_vm0, %v3546_v11 }
0x1888   :  { %16147 = vmatmul.mubr.msk.f32.vlgmr.msra.gmra.mxu0 %vm70_vm0, %v3547_v14 }
0x1889   :  { %16185 = vmatpush3.msra.mxu0 %v15119_v41 }
0x188a   :  { %16186 = vmatprep.subr.mxu0 %v15118_v44 }
0x188b   :  { %16187 = vmatpush3.msra.mxu0 %v15118_v44 }
0x188c   :  { %16188 = vmatprep.subr.mxu0 %v15117_v46 }
0x188d   :  { %16189 = vmatpush3.msra.mxu0 %v15117_v46 }
0x188e   :  { %16190 = vmatprep.subr.mxu0 %v15116_v47 }
0x188f   :  { %16191 = vmatpush3.msra.mxu0 %v15116_v47 }
0x1890   :  { %16195 = vmatprep.subr.mxu0 %v17304_v9 }
0x1948   :  { %v16148_v16 = vpop.f32.mrf.mxu0 }
0x1949   :  { %v3637_v20 = vadd.f32 %v16148_v16, %v15112_v19 }
0x194a   :  { %v3631_v22 = vpop.f32.mrf.mxu0 }
0x194b   :  { %v3632_v24 = vadd.f32 %v15112_v19, %v3631_v22  ;;  %v3641_v27 = vmax.f32 %v3637_v20, 0.0 }
0x194d   :  { %v3640_v26 = vmax.f32 %v3632_v24, 0.0 }
0x194f   :  { %16181 = vmatprep.mubr.f32.mxu1 %v3640_v26 }
0x1950   :  { %16182 = vmatmul.mubr.f32.vlgmr.msra.gmra.mxu1 %v3641_v27 }
0x1951   :  { %16222 = vmatprep.mubr.msk.f32.mxu1 %vm17305_vm1, %v17304_v9 }
0x1a10   :  { %v16183_v56 = vpop.f32.mrf.mxu1 }
0x1a11   :  { %v3737_v45 = vadd.f32 %v16183_v56, %v15115_v43 }
0x1a12   :  { %v3731_v30 = vpop.f32.mrf.mxu1 }
0x1a13   :  { %v3732_v10 = vadd.f32 %v15115_v43, %v3731_v30  ;;  %v3741_v60 = vadd.f32 %v3737_v45, %v3547_v14 }
0x1a15   :  { %v3745_v28 = vsel %vm70_vm0, %v3741_v60, 0.0  ;;  %v3740_v31 = vadd.f32 %v3732_v10, %v3546_v11 }
0x1a16   :  { %3746 = vadd.xlane.f32.xlu0 %v3745_v28 }
0x1a17   :  { %v3742_v32 = vsel %vm70_vm0, %v3740_v31, 0.0 }
0x1a18   :  { %3743 = vadd.xlane.f32.xlu1 %v3742_v32 }
0x1a9f   :  { %v3747_v33 = vpop.xlane.xlu0 %3746 }
0x1aa0   :  { %v3749_v34 = vmul.f32 0.03125, %v3747_v33 }
0x1aa1   :  { %v3744_v8 = vpop.xlane.xlu1 %3743 }
0x1aa2   :  { %v3751_v6 = vsub.f32 %v3741_v60, %v3749_v34  ;;  %v3748_v35 = vmul.f32 0.03125, %v3744_v8 }
0x1aa4   :  { %v3750_v36 = vsub.f32 %v3740_v31, %v3748_v35  ;;  %v3753_v37 = vmul.f32 %v3751_v6, %v3751_v6 }
0x1aa6   :  { %v3757_v38 = vsel %vm70_vm0, %v3753_v37, 0.0  ;;  %v3752_v39 = vmul.f32 %v3750_v36, %v3750_v36 }
0x1aa7   :  { %3758 = vadd.xlane.f32.xlu0 %v3757_v38 }
0x1aa8   :  { %v3754_v40 = vsel %vm70_vm0, %v3752_v39, 0.0 }
0x1aa9   :  { %3755 = vadd.xlane.f32.xlu1 %v3754_v40 }
0x1b30   :  { %v3759_v48 = vpop.xlane.xlu0 %3758 }
0x1b31   :  { %v3761_v49 = vmul.f32 0.03125, %v3759_v48 }
0x1b32   :  { %v3756_v42 = vpop.xlane.xlu1 %3755 }
0x1b33   :  { %v3763_v50 = vadd.f32 1e-05, %v3761_v49  ;;  %v3760_v51 = vmul.f32 0.03125, %v3756_v42 }
0x1b35   :  { %17054 = vrsqrt.f32 %v3763_v50  ;;  %v3762_v52 = vadd.f32 1e-05, %v3760_v51 }
0x1b37   :  { %17056 = vrsqrt.f32 %v3762_v52 }
0x1b42   :  { %v17055_v54 = vpop.eup %17054 }
0x1b43   :  { %v3767_v58 = vmul.f32 %v17055_v54, %v3751_v6 }
0x1b44   :  { %v17057_v59 = vpop.eup %17056 }
0x1b45   :  { %v3766_v61 = vmul.f32 %v17057_v59, %v3750_v36  ;;  %v3773_v13 = vmul.f32 %v3771_v55, %v3767_v58 }
0x1b47   :  { %v3772_v1 = vmul.f32 %v3771_v55, %v3766_v61  ;;  %v17976_v3 = vadd.f32 %v3777_v63, %v3773_v13 }
0x1b49   :  { %v17974_v2 = vadd.f32 %v3777_v63, %v3772_v1 }
0x1b4b   :  { %16192 = vmatprep.mubr.msk.f32.mxu0 %vm70_vm0, %v17974_v2 }
0x1b4c   :  { %16193 = vmatmul.mubr.msk.f32.vlgmr.msra.gmra.mxu0 %vm70_vm0, %v17976_v3 }
0x1b4d   :  { %16197 = vmatprep.mubr.msk.f32.mxu0 %vm17305_vm1, %v17304_v9 }
0x1c0c   :  { %v16194_v4 = vpop.f32.mrf.mxu0 }
0x1c0d   :  { %v17987_v62 = vadd.f32 %v16194_v4, %v15121_v21 }
0x1c0e   :  { %v3865_v5 = vpop.f32.mrf.mxu0 }
0x1c0f   :  { %v17989_v7 = vadd.f32 %v15121_v21, %v3865_v5  ;;  %3960 = vrot.lane.b32.xlu0 %v17987_v62, %s19578_s27  ;;  %v18006_v15 = vmul.f32 0.5, %v17987_v62 }
0x1c11   :  { %3882 = vrot.lane.b32.xlu1 %v17989_v7, %s19578_s27  ;;  %v17997_v14 = vmul.f32 0.5, %v17989_v7  ;;  %s19614_s27 = smov 84  }
0x1c81   :  { %v3961_v12 = vpop.permute.xlu0 %3960 }
0x1c83   :  { %v3883_v11 = vpop.permute.xlu1 %3882 }
0x1c84   :  { %16196 = vmatpush3.xpose.msk.msra.mxu0 %vm173_vm2, %v3883_v11 }
0x1c85   :  { %16200 = vmatprep.subr.mxu0 %v17304_v9 }
0x1c87   :  { %16198 = vmatmul.mubr.msk.f32.vlgmr.msra.gmra.mxu0 %vm173_vm2, %v17997_v14 }
0x1c88   :  { %16201 = vmatpush3.xpose.msk.msra.mxu0 %vm173_vm2, %v3961_v12  ;;  %16202 = vmatprep.mubr.msk.f32.mxu0 %vm17305_vm1, %v17304_v9 }
0x1c89   :  { %16205 = vmatprep.subr.mxu0 %v17304_v9 }
0x1c8b   :  { %16203 = vmatmul.mubr.msk.f32.vlgmr.msra.gmra.mxu0 %vm173_vm2, %v18006_v15 }
0x1c8c   :  { %16207 = vmatprep.mubr.msk.f32.mxu0 %vm17305_vm1, %v17304_v9 }
0x1d47   :  { %v3955_v18 = vpop.f32.mrf.mxu0 }
0x1d48   :  { %v3956_v17 = vadd.f32 %v3955_v18, %v17485_v25 }
0x1d49   :  { %v16199_v19 = vpop.f32.mrf.mxu0 }
0x1d4a   :  { %v4037_v16 = vsel %vm327_vm5, %v3956_v17, -inf  ;;  %v15124_v19 = vld [vmem:[%s19525_s6 + $0x20] sm:$0xff] }
0x1d4b   :  { %4038 = vmax.xlane.f32.xlu1 %v4037_v16  ;;  %v4033_v20 = vpop.f32.mrf.mxu0  ;;  %v4542_v16 = vrot.slane %v15124_v19, 4 }
0x1d4c   :  { %v4034_v22 = vadd.f32 %v4033_v20, %v17490_v29 }
0x1d4d   :  { %v16204_v24 = vpop.f32.mrf.mxu0 }
0x1d4e   :  { %v4040_v26 = vsel %vm327_vm5, %v4034_v22, -inf }
0x1d4f   :  { %4041 = vmax.xlane.f32.xlu0 %v4040_v26 }
0x1d5c   :  { %4059 = vrot.lane.b32.xlu1 %v17989_v7, %s19576_s1 }
0x1dd4   :  { %v4039_v27 = vpop.xlane.xlu1 %4038 }
0x1dd5   :  { %v4043_v43 = vsub.f32 %v3956_v17, %v4039_v27 }
0x1dd7   :  { %v4045_v56 = vmul.f32 1.442695, %v4043_v43 }
0x1dd8   :  { %v4060_v45 = vpop.permute.xlu1 %4059  ;;  %v4042_v30 = vpop.xlane.xlu0 %4041 }
0x1dd9   :  { %17058 = vpow2.f32 %v4045_v56  ;;  %v4044_v10 = vsub.f32 %v4034_v22, %v4042_v30  ;;  %16206 = vmatpush3.msra.mxu0 %v4060_v45 }
0x1dda   :  { %16210 = vmatprep.subr.mxu0 %v17304_v9 }
0x1ddb   :  { %v4047_v60 = vmul.f32 1.442695, %v4044_v10 }
0x1ddd   :  { %17060 = vpow2.f32 %v4047_v60 }
0x1de6   :  { %v17059_v28 = vpop.eup %17058 }
0x1de7   :  { %v4049_v31 = vsel %vm327_vm5, %v17059_v28, 0.0 }
0x1de8   :  { %4050 = vadd.xlane.f32.xlu1 %v4049_v31 }
0x1dea   :  { %v17061_v32 = vpop.eup %17060 }
0x1deb   :  { %v4052_v33 = vsel %vm327_vm5, %v17061_v32, 0.0 }
0x1dec   :  { %4053 = vadd.xlane.f32.xlu0 %v4052_v33 }
0x1df9   :  { %4213 = vrot.lane.b32.xlu1 %v17989_v7, %s19574_s16 }
0x1dfd   :  { %4291 = vrot.lane.b32.xlu1 %v17987_v62, %s19574_s16  ;;  %s19611_s16 = smov 88  }
0x1e01   :  { %4289 = vrot.lane.b32.xlu1 %v18006_v15, %s19572_s17 }
0x1e02   :  { %4135 = vrot.lane.b32.xlu0 %v17987_v62, %s19576_s1  ;;  %s19610_s1 = smov 60  }
0x1e06   :  { %4211 = vrot.lane.b32.xlu0 %v17997_v14, %s19572_s17  ;;  %s19608_s17 = smov 92  }
0x1e71   :  { %v4051_v34 = vpop.xlane.xlu1 %4050 }
0x1e72   :  { %17062 = vrcp.f32 %v4051_v34 }
0x1e75   :  { %v4214_v8 = vpop.permute.xlu1 %4213  ;;  %v4054_v6 = vpop.xlane.xlu0 %4053 }
0x1e76   :  { %17064 = vrcp.f32 %v4054_v6 }
0x1e79   :  { %v4292_v35 = vpop.permute.xlu1 %4291  ;;  %v4136_v39 = vpop.permute.xlu0 %4135 }
0x1e7a   :  { %16221 = vmatpush3.xpose.msk.msra.mxu1 %vm173_vm2, %v4292_v35 }
0x1e7b   :  { %16230 = vmatprep.subr.mxu1 %v17304_v9 }
0x1e7d   :  { %v4290_v36 = vpop.permute.xlu1 %4289  ;;  %v4212_v44 = vpop.permute.xlu0 %4211 }
0x1e7e   :  { %16223 = vmatmul.mubr.msk.f32.vlgmr.msra.gmra.mxu1 %vm173_vm2, %v4290_v36 }
0x1e7f   :  { %v17063_v37 = vpop.eup %17062  ;;  %16232 = vmatprep.mubr.msk.f32.mxu1 %vm17305_vm1, %v17304_v9 }
0x1e80   :  { %v4056_v38 = vmul.f32 %v17063_v37, %v17059_v28 }
0x1e82   :  { %16208 = vmatmul.mubr.msk.f32.vlgmr.msra.gmra.mxu0 %vm327_vm5, %v4056_v38 }
0x1e83   :  { %v17065_v40 = vpop.eup %17064  ;;  %16211 = vmatpush3.msra.mxu0 %v4136_v39  ;;  %16212 = vmatprep.mubr.msk.f32.mxu0 %vm17305_vm1, %v17304_v9 }
0x1e84   :  { %16215 = vmatprep.subr.mxu0 %v17304_v9  ;;  %v4058_v41 = vmul.f32 %v17065_v40, %v17061_v32 }
0x1e86   :  { %16213 = vmatmul.mubr.msk.f32.vlgmr.msra.gmra.mxu0 %vm327_vm5, %v4058_v41 }
0x1e87   :  { %16216 = vmatpush3.xpose.msk.msra.mxu0 %vm173_vm2, %v4214_v8  ;;  %16217 = vmatprep.mubr.msk.f32.mxu0 %vm17305_vm1, %v17304_v9 }
0x1e88   :  { %16225 = vmatprep.subr.mxu0 %v17304_v9 }
0x1e8a   :  { %16218 = vmatmul.mubr.msk.f32.vlgmr.msra.gmra.mxu0 %vm173_vm2, %v4212_v44 }
0x1e8b   :  { %16227 = vmatprep.mubr.msk.f32.mxu0 %vm17305_vm1, %v17304_v9 }
0x1f3e   :  { %v4363_v46 = vpop.f32.mrf.mxu1 }
0x1f3f   :  { %v4364_v47 = vadd.f32 %v4363_v46, %v17490_v29 }
0x1f40   :  { %v16224_v48 = vpop.f32.mrf.mxu1 }
0x1f41   :  { %v4370_v49 = vsel %vm327_vm5, %v4364_v47, -inf }
0x1f42   :  { %4371 = vmax.xlane.f32.xlu1 %v4370_v49  ;;  %v4131_v42 = vpop.f32.mrf.mxu0 }
0x1f44   :  { %v16209_v50 = vpop.f32.mrf.mxu0 }
0x1f46   :  { %v4207_v51 = vpop.f32.mrf.mxu0 }
0x1f48   :  { %v16214_v52 = vpop.f32.mrf.mxu0 }
0x1f4a   :  { %v4285_v54 = vpop.f32.mrf.mxu0 }
0x1f4b   :  { %v4286_v55 = vadd.f32 %v4285_v54, %v17485_v25 }
0x1f4c   :  { %v16219_v58 = vpop.f32.mrf.mxu0 }
0x1f4d   :  { %v4367_v59 = vsel %vm327_vm5, %v4286_v55, -inf }
0x1f4e   :  { %4368 = vmax.xlane.f32.xlu0 %v4367_v59 }
0x1f53   :  { %4389 = vrot.lane.b32.xlu1 %v17989_v7, %s19570_s18 }
0x1f57   :  { %4711 = vrot.lane.b32.xlu1 %v17989_v7, %s19568_s22 }
0x1f5b   :  { %4789 = vrot.lane.b32.xlu1 %v17987_v62, %s19568_s22  ;;  %s19606_s22 = smov 96  }
0x1f5f   :  { %4787 = vrot.lane.b32.xlu1 %v18006_v15, %s19566_s19 }
0x1fcb   :  { %v4372_v61 = vpop.xlane.xlu1 %4371 }
0x1fcc   :  { %v4374_v13 = vsub.f32 %v4364_v47, %v4372_v61 }
0x1fce   :  { %v4377_v63 = vmul.f32 1.442695, %v4374_v13 }
0x1fcf   :  { %v4390_v1 = vpop.permute.xlu1 %4389 }
0x1fd0   :  { %17066 = vpow2.f32 %v4377_v63  ;;  %16226 = vmatpush3.msra.mxu0 %v4390_v1 }
0x1fd1   :  { %16235 = vmatprep.subr.msk.mxu0 %vm840_vm6, %v4542_v16 }
0x1fd3   :  { %v4712_v24 = vpop.permute.xlu1 %4711 }
0x1fd7   :  { %v4369_v21 = vpop.xlane.xlu0 %4368  ;;  %v4790_v56 = vpop.permute.xlu1 %4789 }
0x1fd8   :  { %v4373_v4 = vsub.f32 %v4286_v55, %v4369_v21 }
0x1fda   :  { %v4375_v5 = vmul.f32 1.442695, %v4373_v4 }
0x1fdb   :  { %v4788_v45 = vpop.permute.xlu1 %4787 }
0x1fdc   :  { %17068 = vpow2.f32 %v4375_v5 }
0x1fdd   :  { %v17067_v11 = vpop.eup %17066 }
0x1fde   :  { %v4382_v12 = vsel %vm327_vm5, %v17067_v11, 0.0 }
0x1fdf   :  { %4383 = vadd.xlane.f32.xlu0 %v4382_v12 }
0x1fe9   :  { %v17069_v18 = vpop.eup %17068 }
0x1fea   :  { %v4379_v17 = vsel %vm327_vm5, %v17069_v18, 0.0 }
0x1feb   :  { %4380 = vadd.xlane.f32.xlu0 %v4379_v17 }
0x2001   :  { %4465 = vrot.lane.b32.xlu0 %v17987_v62, %s19570_s18  ;;  %s19609_s18 = smov 124  }
0x2005   :  { %4709 = vrot.lane.b32.xlu0 %v17997_v14, %s19566_s19  ;;  %s19605_s19 = smov 36  }
0x2068   :  { %v4384_v20 = vpop.xlane.xlu0 %4383 }
0x2069   :  { %17070 = vrcp.f32 %v4384_v20 }
0x2074   :  { %v4381_v22 = vpop.xlane.xlu0 %4380 }
0x2075   :  { %17072 = vrcp.f32 %v4381_v22 }
0x2076   :  { %v17071_v26 = vpop.eup %17070 }
0x2077   :  { %v4388_v27 = vmul.f32 %v17071_v26, %v17067_v11 }
0x2078   :  { %v4466_v43 = vpop.permute.xlu0 %4465 }
0x2079   :  { %16231 = vmatpush3.msra.mxu1 %v4466_v43 }
0x207a   :  { %16233 = vmatmul.mubr.msk.f32.vlgmr.msra.gmra.mxu1 %vm327_vm5, %v4388_v27  ;;  %16240 = vmatprep.subr.msk.mxu1 %vm840_vm6, %v15124_v19 }
0x207b   :  { %16242 = vmatprep.mubr.msk.f32.mxu1 %vm173_vm2, %v4131_v42  ;;  %16241 = vmatpush3.msk.msra.mxu1 %vm840_vm6, %v15124_v19 }
0x207c   :  { %16250 = vmatprep.subr.mxu1 %v17304_v9  ;;  %v4710_v37 = vpop.permute.xlu0 %4709 }
0x207e   :  { %16243 = vmatmul.mubr.msk.f32.vlgmr.msra.gmra.mxu1 %vm173_vm2, %v4207_v51 }
0x207f   :  { %16251 = vmatpush3.xpose.msk.msra.mxu1 %vm173_vm2, %v4790_v56  ;;  %16252 = vmatprep.mubr.msk.f32.mxu1 %vm17305_vm1, %v17304_v9 }
0x2080   :  { %16260 = vmatprep.subr.mxu1 %v17304_v9 }
0x2082   :  { %v17073_v30 = vpop.eup %17072  ;;  %16253 = vmatmul.mubr.msk.f32.vlgmr.msra.gmra.mxu1 %vm173_vm2, %v4788_v45 }
0x2083   :  { %v4386_v10 = vmul.f32 %v17073_v30, %v17069_v18  ;;  %16262 = vmatprep.mubr.msk.f32.mxu1 %vm17305_vm1, %v17304_v9  ;;  %v15125_v18 = vld [vmem:[%s19525_s6 + $0x28] sm:$0xff] }
0x2085   :  { %16228 = vmatmul.mubr.msk.f32.vlgmr.msra.gmra.mxu0 %vm327_vm5, %v4386_v10 }
0x2086   :  { %16236 = vmatpush3.msk.msra.mxu0 %vm840_vm6, %v4542_v16 }
0x2087   :  { %16245 = vmatprep.subr.mxu0 %v17304_v9 }
0x213a   :  { %v4537_v60 = vpop.f32.mrf.mxu1 }
0x213c   :  { %v16234_v28 = vpop.f32.mrf.mxu1 }
0x213e   :  { %v18087_v31 = vpop.f32.mrf.mxu1 }
0x2140   :  { %v18089_v32 = vpop.f32.mrf.mxu1 }
0x2142   :  { %v4861_v33 = vpop.f32.mrf.mxu1 }
0x2143   :  { %v4862_v34 = vadd.f32 %v4861_v33, %v17490_v29 }
0x2144   :  { %v16254_v8 = vpop.f32.mrf.mxu1 }
0x2145   :  { %v4461_v6 = vpop.f32.mrf.mxu0  ;;  %v4868_v35 = vsel %vm327_vm5, %v4862_v34, -inf }
0x2146   :  { %4869 = vmax.xlane.f32.xlu1 %v4868_v35  ;;  %16237 = vmatprep.mubr.msk.f32.mxu0 %vm173_vm2, %v4461_v6 }
0x2147   :  { %v16229_v36 = vpop.f32.mrf.mxu0  ;;  %16238 = vmatmul.mubr.msk.f32.vlgmr.msra.gmra.mxu0 %vm173_vm2, %v4537_v60 }
0x2148   :  { %16246 = vmatpush3.xpose.msk.msra.mxu0 %vm173_vm2, %v4712_v24  ;;  %16247 = vmatprep.mubr.msk.f32.mxu0 %vm17305_vm1, %v17304_v9 }
0x2149   :  { %16255 = vmatprep.subr.mxu0 %v17304_v9 }
0x214b   :  { %16248 = vmatmul.mubr.msk.f32.vlgmr.msra.gmra.mxu0 %vm173_vm2, %v4710_v37 }
0x214c   :  { %16257 = vmatprep.mubr.msk.f32.mxu0 %vm17305_vm1, %v17304_v9 }
0x2157   :  { %4887 = vrot.lane.b32.xlu1 %v17989_v7, %s19564_s23 }
0x215b   :  { %5127 = vrot.lane.b32.xlu1 %v17989_v7, %s19562_s24 }
0x215f   :  { %5205 = vrot.lane.b32.xlu1 %v17987_v62, %s19562_s24  ;;  %s19604_s24 = smov 100  }
0x2163   :  { %5203 = vrot.lane.b32.xlu1 %v18006_v15, %s19560_s25 }
0x21cf   :  { %v4870_v38 = vpop.xlane.xlu1 %4869 }
0x21d0   :  { %v4872_v40 = vsub.f32 %v4862_v34, %v4870_v38 }
0x21d2   :  { %v4875_v41 = vmul.f32 1.442695, %v4872_v40 }
0x21d3   :  { %v4888_v39 = vpop.permute.xlu1 %4887 }
0x21d4   :  { %16256 = vmatpush3.msra.mxu0 %v4888_v39  ;;  %17074 = vpow2.f32 %v4875_v41 }
0x21d5   :  { %16265 = vmatprep.subr.msk.mxu0 %vm840_vm6, %v15125_v18 }
0x21d7   :  { %v5128_v4 = vpop.permute.xlu1 %5127 }
0x21db   :  { %v5206_v26 = vpop.permute.xlu1 %5205 }
0x21df   :  { %v5204_v56 = vpop.permute.xlu1 %5203 }
0x21e1   :  { %v17075_v50 = vpop.eup %17074 }
0x21e2   :  { %v4880_v51 = vsel %vm327_vm5, %v17075_v50, 0.0 }
0x2207   :  { %v18110_v44 = vpop.f32.mrf.mxu0 }
0x2208   :  { %v4706_v33 = vadd.f32 %v18087_v31, %v18110_v44  ;;  %v5455_v44 = vrot.slane %v15125_v18, 4 }
0x2209   :  { %v18112_v46 = vpop.f32.mrf.mxu0 }
0x220b   :  { %v4783_v47 = vpop.f32.mrf.mxu0 }
0x220c   :  { %v4784_v48 = vadd.f32 %v4783_v47, %v17485_v25 }
0x220d   :  { %v16249_v49 = vpop.f32.mrf.mxu0 }
0x220e   :  { %v4865_v42 = vsel %vm327_vm5, %v4784_v48, -inf }
0x220f   :  { %4866 = vmax.xlane.f32.xlu0 %v4865_v42 }
0x2213   :  { %4881 = vadd.xlane.f32.xlu0 %v4880_v51 }
0x2298   :  { %v4867_v52 = vpop.xlane.xlu0 %4866 }
0x2299   :  { %v4871_v54 = vsub.f32 %v4784_v48, %v4867_v52 }
0x229b   :  { %v4873_v55 = vmul.f32 1.442695, %v4871_v54 }
0x229c   :  { %v4882_v61 = vpop.xlane.xlu0 %4881 }
0x229d   :  { %17076 = vpow2.f32 %v4873_v55 }
0x229e   :  { %17078 = vrcp.f32 %v4882_v61 }
0x22aa   :  { %v17077_v58 = vpop.eup %17076 }
0x22ab   :  { %v4877_v59 = vsel %vm327_vm5, %v17077_v58, 0.0  ;;  %v17079_v63 = vpop.eup %17078 }
0x22ac   :  { %4878 = vadd.xlane.f32.xlu0 %v4877_v59  ;;  %v4886_v21 = vmul.f32 %v17079_v63, %v17075_v50 }
0x22c2   :  { %4963 = vrot.lane.b32.xlu0 %v17987_v62, %s19564_s23  ;;  %s19607_s23 = smov 64  }
0x22c6   :  { %5125 = vrot.lane.b32.xlu0 %v17997_v14, %s19560_s25  ;;  %s19603_s25 = smov 68  }
0x2335   :  { %v4879_v13 = vpop.xlane.xlu0 %4878 }
0x2336   :  { %17080 = vrcp.f32 %v4879_v13 }
0x2339   :  { %v4964_v1 = vpop.permute.xlu0 %4963 }
0x233a   :  { %16261 = vmatpush3.msra.mxu1 %v4964_v1 }
0x233b   :  { %16263 = vmatmul.mubr.msk.f32.vlgmr.msra.gmra.mxu1 %vm327_vm5, %v4886_v21  ;;  %16270 = vmatprep.subr.mxu1 %v17304_v9 }
0x233c   :  { %16271 = vmatpush3.xpose.msk.msra.mxu1 %vm173_vm2, %v5128_v4  ;;  %16272 = vmatprep.mubr.msk.f32.mxu1 %vm17305_vm1, %v17304_v9 }
0x233d   :  { %v5126_v5 = vpop.permute.xlu0 %5125  ;;  %16280 = vmatprep.subr.mxu1 %v17304_v9 }
0x233f   :  { %16273 = vmatmul.mubr.msk.f32.vlgmr.msra.gmra.mxu1 %vm173_vm2, %v5126_v5 }
0x2340   :  { %16282 = vmatprep.mubr.msk.f32.mxu1 %vm17305_vm1, %v17304_v9 }
0x2343   :  { %v17081_v11 = vpop.eup %17080 }
0x2344   :  { %v4884_v12 = vmul.f32 %v17081_v11, %v17077_v58 }
0x2346   :  { %16258 = vmatmul.mubr.msk.f32.vlgmr.msra.gmra.mxu0 %vm327_vm5, %v4884_v12 }
0x2347   :  { %16266 = vmatpush3.msk.msra.mxu0 %vm840_vm6, %v15125_v18 }
0x2348   :  { %16275 = vmatprep.subr.mxu0 %v17304_v9 }
0x23fb   :  { %v5035_v17 = vpop.f32.mrf.mxu1 }
0x23fd   :  { %v16264_v19 = vpop.f32.mrf.mxu1 }
0x23ff   :  { %v5199_v16 = vpop.f32.mrf.mxu1 }
0x2400   :  { %v5200_v20 = vadd.f32 %v5199_v16, %v17485_v25 }
0x2401   :  { %v16274_v22 = vpop.f32.mrf.mxu1 }
0x2402   :  { %v5281_v24 = vsel %vm327_vm5, %v5200_v20, -inf }
0x2403   :  { %5282 = vmax.xlane.f32.xlu0 %v5281_v24 }
0x2406   :  { %v4959_v27 = vpop.f32.mrf.mxu0 }
0x2407   :  { %16267 = vmatprep.mubr.msk.f32.mxu0 %vm173_vm2, %v4959_v27 }
0x2408   :  { %v16259_v43 = vpop.f32.mrf.mxu0  ;;  %16268 = vmatmul.mubr.msk.f32.vlgmr.msra.gmra.mxu0 %vm173_vm2, %v5035_v17 }
0x2409   :  { %16276 = vmatpush3.xpose.msk.msra.mxu0 %vm173_vm2, %v5206_v26  ;;  %16277 = vmatprep.mubr.msk.f32.mxu0 %vm17305_vm1, %v17304_v9 }
0x240a   :  { %16285 = vmatprep.subr.mxu0 %v17304_v9 }
0x240c   :  { %16278 = vmatmul.mubr.msk.f32.vlgmr.msra.gmra.mxu0 %vm173_vm2, %v5204_v56 }
0x240d   :  { %16287 = vmatprep.mubr.msk.f32.mxu0 %vm17305_vm1, %v17304_v9 }
0x248c   :  { %v5283_v45 = vpop.xlane.xlu0 %5282 }
0x248d   :  { %v5287_v30 = vsub.f32 %v5200_v20, %v5283_v45 }
0x248f   :  { %v5289_v10 = vmul.f32 1.442695, %v5287_v30 }
0x2491   :  { %17082 = vpow2.f32 %v5289_v10 }
0x249e   :  { %v17083_v60 = vpop.eup %17082 }
0x249f   :  { %v5293_v28 = vsel %vm327_vm5, %v17083_v60, 0.0 }
0x24a0   :  { %5294 = vadd.xlane.f32.xlu0 %v5293_v28 }
0x24c8   :  { %v16269_v34 = vpop.f32.mrf.mxu0 }
0x24c9   :  { %v18152_v8 = vadd.f32 %v16269_v34, %v4706_v33 }
0x24ca   :  { %v18154_v6 = vpop.f32.mrf.mxu0 }
0x24cc   :  { %v5277_v35 = vpop.f32.mrf.mxu0 }
0x24cd   :  { %v5278_v36 = vadd.f32 %v5277_v35, %v17490_v29 }
0x24ce   :  { %v16279_v37 = vpop.f32.mrf.mxu0 }
0x24cf   :  { %v5284_v38 = vsel %vm327_vm5, %v5278_v36, -inf }
0x24d0   :  { %5285 = vmax.xlane.f32.xlu1 %v5284_v38  ;;  %v18220_v38 = vld [vmem:[%s19525_s6 + $0x30] sm:$0xff] }
0x24e1   :  { %5303 = vrot.lane.b32.xlu1 %v17989_v7, %s19558_s3 }
0x24e5   :  { %5543 = vrot.lane.b32.xlu1 %v17989_v7, %s19594_s30 }
0x24e9   :  { %5621 = vrot.lane.b32.xlu1 %v17987_v62, %s19594_s30 }
0x24ed   :  { %5619 = vrot.lane.b32.xlu1 %v18006_v15, %s19595_s15 }
0x2529   :  { %v5295_v31 = vpop.xlane.xlu0 %5294 }
0x252a   :  { %17084 = vrcp.f32 %v5295_v31 }
0x2537   :  { %v17085_v40 = vpop.eup %17084 }
0x2538   :  { %v5300_v49 = vmul.f32 %v17085_v40, %v17083_v60 }
0x2559   :  { %v5286_v39 = vpop.xlane.xlu1 %5285 }
0x255a   :  { %v5288_v41 = vsub.f32 %v5278_v36, %v5286_v39 }
0x255c   :  { %v5291_v47 = vmul.f32 1.442695, %v5288_v41 }
0x255d   :  { %v5304_v48 = vpop.permute.xlu1 %5303 }
0x255e   :  { %17086 = vpow2.f32 %v5291_v47  ;;  %16281 = vmatpush3.msra.mxu1 %v5304_v48 }
0x255f   :  { %16283 = vmatmul.mubr.msk.f32.vlgmr.msra.gmra.mxu1 %vm327_vm5, %v5300_v49  ;;  %16290 = vmatprep.subr.msk.mxu1 %vm840_vm6, %v5455_v44 }
0x2560   :  { %16291 = vmatpush3.msk.msra.mxu1 %vm840_vm6, %v5455_v44 }
0x2561   :  { %16300 = vmatprep.subr.mxu1 %v17304_v9  ;;  %v5544_v58 = vpop.permute.xlu1 %5543 }
0x2565   :  { %v5622_v63 = vpop.permute.xlu1 %5621 }
0x2569   :  { %v5620_v4 = vpop.permute.xlu1 %5619 }
0x256b   :  { %v17087_v42 = vpop.eup %17086 }
0x256c   :  { %v5296_v50 = vsel %vm327_vm5, %v17087_v42, 0.0 }
0x256d   :  { %5297 = vadd.xlane.f32.xlu0 %v5296_v50 }
0x2583   :  { %5379 = vrot.lane.b32.xlu0 %v17987_v62, %s19558_s3  ;;  %s19602_s3 = smov 40  }
0x2587   :  { %5541 = vrot.lane.b32.xlu0 %v17997_v14, %s19595_s15 }
0x25f6   :  { %v5298_v51 = vpop.xlane.xlu0 %5297 }
0x25f7   :  { %17088 = vrcp.f32 %v5298_v51 }
0x25fa   :  { %v5380_v52 = vpop.permute.xlu0 %5379 }
0x25fb   :  { %16286 = vmatpush3.msra.mxu0 %v5380_v52 }
0x25fc   :  { %16295 = vmatprep.subr.mxu0 %v17304_v9 }
0x25fe   :  { %v5542_v59 = vpop.permute.xlu0 %5541 }
0x2604   :  { %v17089_v54 = vpop.eup %17088 }
0x2605   :  { %v5302_v55 = vmul.f32 %v17089_v54, %v17087_v42 }
0x2607   :  { %16288 = vmatmul.mubr.msk.f32.vlgmr.msra.gmra.mxu0 %vm327_vm5, %v5302_v55 }
0x2608   :  { %16296 = vmatpush3.xpose.msk.msra.mxu0 %vm173_vm2, %v5544_v58  ;;  %16297 = vmatprep.mubr.msk.f32.mxu0 %vm17305_vm1, %v17304_v9 }
0x2609   :  { %16305 = vmatprep.subr.mxu0 %v17304_v9 }
0x260b   :  { %16298 = vmatmul.mubr.msk.f32.vlgmr.msra.gmra.mxu0 %vm173_vm2, %v5542_v59 }
0x260c   :  { %16307 = vmatprep.mubr.msk.f32.mxu0 %vm17305_vm1, %v17304_v9 }
0x261f   :  { %v5375_v61 = vpop.f32.mrf.mxu1 }
0x2620   :  { %16292 = vmatprep.mubr.msk.f32.mxu1 %vm173_vm2, %v5375_v61 }
0x2621   :  { %v16284_v13 = vpop.f32.mrf.mxu1 }
0x26c7   :  { %v5451_v1 = vpop.f32.mrf.mxu0 }
0x26c8   :  { %16293 = vmatmul.mubr.msk.f32.vlgmr.msra.gmra.mxu1 %vm173_vm2, %v5451_v1 }
0x26c9   :  { %16301 = vmatpush3.xpose.msk.msra.mxu1 %vm173_vm2, %v5622_v63  ;;  %v16289_v21 = vpop.f32.mrf.mxu0  ;;  %16302 = vmatprep.mubr.msk.f32.mxu1 %vm17305_vm1, %v17304_v9 }
0x26ca   :  { %16310 = vmatprep.subr.mxu1 %v17304_v9 }
0x26cb   :  { %v5615_v5 = vpop.f32.mrf.mxu0 }
0x26cc   :  { %v5616_v11 = vadd.f32 %v5615_v5, %v17485_v25  ;;  %16303 = vmatmul.mubr.msk.f32.vlgmr.msra.gmra.mxu1 %vm173_vm2, %v5620_v4 }
0x26cd   :  { %v16299_v12 = vpop.f32.mrf.mxu0  ;;  %16312 = vmatprep.mubr.msk.f32.mxu1 %vm17305_vm1, %v17304_v9 }
0x26ce   :  { %v5697_v18 = vsel %vm327_vm5, %v5616_v11, -inf }
0x26cf   :  { %5698 = vmax.xlane.f32.xlu0 %v5697_v18 }
0x2758   :  { %v5699_v17 = vpop.xlane.xlu0 %5698 }
0x2759   :  { %v5703_v19 = vsub.f32 %v5616_v11, %v5699_v17 }
0x275b   :  { %v5705_v16 = vmul.f32 1.442695, %v5703_v19 }
0x275d   :  { %17090 = vpow2.f32 %v5705_v16 }
0x276a   :  { %v17091_v20 = vpop.eup %17090 }
0x276b   :  { %v5709_v22 = vsel %vm327_vm5, %v17091_v20, 0.0 }
0x276c   :  { %5710 = vadd.xlane.f32.xlu0 %v5709_v22 }
0x2788   :  { %v16294_v24 = vpop.f32.mrf.mxu1 }
0x2789   :  { %v18197_v26 = vadd.f32 %v16294_v24, %v18152_v8 }
0x278a   :  { %v18199_v27 = vpop.f32.mrf.mxu1 }
0x278c   :  { %v5693_v43 = vpop.f32.mrf.mxu1 }
0x278d   :  { %v5694_v56 = vadd.f32 %v5693_v43, %v17490_v29 }
0x278e   :  { %v16304_v45 = vpop.f32.mrf.mxu1 }
0x278f   :  { %v5700_v30 = vsel %vm327_vm5, %v5694_v56, -inf }
0x2790   :  { %5701 = vmax.xlane.f32.xlu1 %v5700_v30 }
0x27a1   :  { %5719 = vrot.lane.b32.xlu1 %v17989_v7, %s19596_s28 }
0x27a5   :  { %5959 = vrot.lane.b32.xlu1 %v17989_v7, %s19597_s29 }
0x27a9   :  { %6037 = vrot.lane.b32.xlu1 %v17987_v62, %s19597_s29 }
0x27ad   :  { %6035 = vrot.lane.b32.xlu1 %v18006_v15, %s19598_s20 }
0x27f5   :  { %v5711_v10 = vpop.xlane.xlu0 %5710 }
0x27f6   :  { %17092 = vrcp.f32 %v5711_v10 }
0x2803   :  { %v17093_v28 = vpop.eup %17092 }
0x2804   :  { %v5716_v35 = vmul.f32 %v17093_v28, %v17091_v20 }
0x2819   :  { %v5702_v60 = vpop.xlane.xlu1 %5701 }
0x281a   :  { %v5704_v33 = vsub.f32 %v5694_v56, %v5702_v60 }
0x281c   :  { %v5707_v34 = vmul.f32 1.442695, %v5704_v33 }
0x281d   :  { %v5720_v8 = vpop.permute.xlu1 %5719 }
0x281e   :  { %17094 = vpow2.f32 %v5707_v34  ;;  %16306 = vmatpush3.msra.mxu0 %v5720_v8 }
0x281f   :  { %16308 = vmatmul.mubr.msk.f32.vlgmr.msra.gmra.mxu0 %vm327_vm5, %v5716_v35  ;;  %16315 = vmatprep.subr.msk.mxu0 %vm840_vm6, %v18220_v38 }
0x2820   :  { %16316 = vmatpush3.msk.msra.mxu0 %vm840_vm6, %v18220_v38 }
0x2821   :  { %16325 = vmatprep.subr.mxu0 %v17304_v9  ;;  %v5960_v44 = vpop.permute.xlu1 %5959 }
0x2825   :  { %v6038_v42 = vpop.permute.xlu1 %6037 }
0x2829   :  { %v6036_v52 = vpop.permute.xlu1 %6035 }
0x282b   :  { %v17095_v36 = vpop.eup %17094 }
0x282c   :  { %v5712_v37 = vsel %vm327_vm5, %v17095_v36, 0.0 }
0x282d   :  { %5713 = vadd.xlane.f32.xlu0 %v5712_v37 }
0x2843   :  { %5795 = vrot.lane.b32.xlu0 %v17987_v62, %s19596_s28 }
0x2847   :  { %5957 = vrot.lane.b32.xlu0 %v17997_v14, %s19598_s20 }
0x28b6   :  { %v5714_v31 = vpop.xlane.xlu0 %5713 }
0x28b7   :  { %17096 = vrcp.f32 %v5714_v31 }
0x28ba   :  { %v5796_v39 = vpop.permute.xlu0 %5795 }
0x28bb   :  { %16311 = vmatpush3.msra.mxu1 %v5796_v39 }
0x28bc   :  { %16320 = vmatprep.subr.mxu1 %v17304_v9 }
0x28be   :  { %v5958_v47 = vpop.permute.xlu0 %5957 }
0x28c4   :  { %v17097_v40 = vpop.eup %17096 }
0x28c5   :  { %v5718_v41 = vmul.f32 %v17097_v40, %v17095_v36 }
0x28c7   :  { %16313 = vmatmul.mubr.msk.f32.vlgmr.msra.gmra.mxu1 %vm327_vm5, %v5718_v41 }
0x28c8   :  { %16321 = vmatpush3.xpose.msk.msra.mxu1 %vm173_vm2, %v5960_v44  ;;  %16322 = vmatprep.mubr.msk.f32.mxu1 %vm17305_vm1, %v17304_v9 }
0x28c9   :  { %16330 = vmatprep.subr.mxu1 %v17304_v9 }
0x28cb   :  { %16323 = vmatmul.mubr.msk.f32.vlgmr.msra.gmra.mxu1 %vm173_vm2, %v5958_v47 }
0x28cc   :  { %16332 = vmatprep.mubr.msk.f32.mxu1 %vm17305_vm1, %v17304_v9 }
0x28df   :  { %v5791_v48 = vpop.f32.mrf.mxu0 }
0x28e0   :  { %16317 = vmatprep.mubr.msk.f32.mxu0 %vm173_vm2, %v5791_v48 }
0x28e1   :  { %v16309_v49 = vpop.f32.mrf.mxu0 }
0x2987   :  { %v5867_v50 = vpop.f32.mrf.mxu1 }
0x2988   :  { %16318 = vmatmul.mubr.msk.f32.vlgmr.msra.gmra.mxu0 %vm173_vm2, %v5867_v50 }
0x2989   :  { %16326 = vmatpush3.xpose.msk.msra.mxu0 %vm173_vm2, %v6038_v42  ;;  %v16314_v51 = vpop.f32.mrf.mxu1  ;;  %16327 = vmatprep.mubr.msk.f32.mxu0 %vm17305_vm1, %v17304_v9 }
0x298a   :  { %16335 = vmatprep.subr.mxu0 %v17304_v9 }
0x298b   :  { %v6031_v54 = vpop.f32.mrf.mxu1 }
0x298c   :  { %v6032_v55 = vadd.f32 %v6031_v54, %v17485_v25  ;;  %16328 = vmatmul.mubr.msk.f32.vlgmr.msra.gmra.mxu0 %vm173_vm2, %v6036_v52  ;;  %v4701_v54 = vadd.f32 %v18089_v32, %v18112_v46 }
0x298d   :  { %v16324_v58 = vpop.f32.mrf.mxu1  ;;  %16337 = vmatprep.mubr.msk.f32.mxu0 %vm17305_vm1, %v17304_v9 }
0x298e   :  { %v6113_v59 = vsel %vm327_vm5, %v6032_v55, -inf }
0x298f   :  { %6114 = vmax.xlane.f32.xlu0 %v6113_v59 }
0x2a18   :  { %v6115_v61 = vpop.xlane.xlu0 %6114 }
0x2a19   :  { %v6119_v13 = vsub.f32 %v6032_v55, %v6115_v61  ;;  %v5123_v55 = vadd.f32 %v18154_v6, %v4701_v54 }
0x2a1b   :  { %v6121_v63 = vmul.f32 1.442695, %v6119_v13  ;;  %v5539_v58 = vadd.f32 %v18199_v27, %v5123_v55 }
0x2a1d   :  { %17098 = vpow2.f32 %v6121_v63 }
0x2a2a   :  { %v17099_v1 = vpop.eup %17098 }
0x2a2b   :  { %v6125_v21 = vsel %vm327_vm5, %v17099_v1, 0.0 }
0x2a2c   :  { %6126 = vadd.xlane.f32.xlu0 %v6125_v21 }
0x2a48   :  { %v16319_v4 = vpop.f32.mrf.mxu0 }
0x2a49   :  { %v18249_v5 = vadd.f32 %v16319_v4, %v18197_v26  ;;  %v6287_v26 = vrot.slane %v18220_v38, 4 }
0x2a4a   :  { %v18251_v11 = vpop.f32.mrf.mxu0 }
0x2a4b   :  { %v5955_v61 = vadd.f32 %v18251_v11, %v5539_v58 }
0x2a4c   :  { %v6109_v12 = vpop.f32.mrf.mxu0 }
0x2a4d   :  { %v6110_v18 = vadd.f32 %v6109_v12, %v17490_v29 }
0x2a4e   :  { %v16329_v17 = vpop.f32.mrf.mxu0 }
0x2a4f   :  { %v6116_v19 = vsel %vm327_vm5, %v6110_v18, -inf }
0x2a50   :  { %6117 = vmax.xlane.f32.xlu1 %v6116_v19 }
0x2a61   :  { %6135 = vrot.lane.b32.xlu1 %v17989_v7, %s19599_s26 }
0x2a65   :  { %6375 = vrot.lane.b32.xlu1 %v17989_v7, %s19600_s21 }
0x2a69   :  { %6453 = vrot.lane.b32.xlu1 %v17987_v62, %s19600_s21 }
0x2a6d   :  { %6451 = vrot.lane.b32.xlu1 %v18006_v15, %s19601_s0 }
0x2ab5   :  { %v6127_v16 = vpop.xlane.xlu0 %6126 }
0x2ab6   :  { %17100 = vrcp.f32 %v6127_v16 }
0x2ac3   :  { %v17101_v22 = vpop.eup %17100 }
0x2ac4   :  { %v6132_v45 = vmul.f32 %v17101_v22, %v17099_v1 }
0x2ad9   :  { %v6118_v20 = vpop.xlane.xlu1 %6117 }
0x2ada   :  { %v6120_v24 = vsub.f32 %v6110_v18, %v6118_v20 }
0x2adc   :  { %v6123_v43 = vmul.f32 1.442695, %v6120_v24 }
0x2add   :  { %v6136_v56 = vpop.permute.xlu1 %6135 }
0x2ade   :  { %17102 = vpow2.f32 %v6123_v43  ;;  %16331 = vmatpush3.msra.mxu1 %v6136_v56 }
0x2adf   :  { %16333 = vmatmul.mubr.msk.f32.vlgmr.msra.gmra.mxu1 %vm327_vm5, %v6132_v45  ;;  %16340 = vmatprep.subr.msk.mxu1 %vm840_vm6, %v6287_v26 }
0x2ae0   :  { %16341 = vmatpush3.msk.msra.mxu1 %vm840_vm6, %v6287_v26 }
0x2ae1   :  { %16350 = vmatprep.subr.mxu1 %v17304_v9  ;;  %v6376_v8 = vpop.permute.xlu1 %6375 }
0x2ae5   :  { %v6454_v38 = vpop.permute.xlu1 %6453 }
0x2ae9   :  { %v6452_v40 = vpop.permute.xlu1 %6451 }
0x2aeb   :  { %v17103_v30 = vpop.eup %17102 }
0x2aec   :  { %v6128_v10 = vsel %vm327_vm5, %v17103_v30, 0.0 }
0x2aed   :  { %6129 = vadd.xlane.f32.xlu0 %v6128_v10 }
0x2b03   :  { %6211 = vrot.lane.b32.xlu0 %v17987_v62, %s19599_s26 }
0x2b07   :  { %6373 = vrot.lane.b32.xlu0 %v17997_v14, %s19601_s0 }
0x2b76   :  { %v6130_v60 = vpop.xlane.xlu0 %6129 }
0x2b77   :  { %17104 = vrcp.f32 %v6130_v60 }
0x2b7a   :  { %v6212_v28 = vpop.permute.xlu0 %6211 }
0x2b7b   :  { %16336 = vmatpush3.msra.mxu0 %v6212_v28 }
0x2b7c   :  { %16345 = vmatprep.subr.mxu0 %v17304_v9 }
0x2b7e   :  { %v6374_v35 = vpop.permute.xlu0 %6373 }
0x2b84   :  { %v17105_v33 = vpop.eup %17104 }
0x2b85   :  { %v6134_v34 = vmul.f32 %v17105_v33, %v17103_v30 }
0x2b87   :  { %16338 = vmatmul.mubr.msk.f32.vlgmr.msra.gmra.mxu0 %vm327_vm5, %v6134_v34 }
0x2b88   :  { %16346 = vmatpush3.xpose.msk.msra.mxu0 %vm173_vm2, %v6376_v8  ;;  %16347 = vmatprep.mubr.msk.f32.mxu0 %vm17305_vm1, %v17304_v9 }
0x2b89   :  { %16355 = vmatprep.subr.mxu0 %v17304_v9 }
0x2b8b   :  { %16348 = vmatmul.mubr.msk.f32.vlgmr.msra.gmra.mxu0 %vm173_vm2, %v6374_v35 }
0x2b8c   :  { %16357 = vmatprep.mubr.msk.f32.mxu0 %vm17305_vm1, %v17304_v9 }
0x2b9f   :  { %v6207_v36 = vpop.f32.mrf.mxu1 }
0x2ba0   :  { %16342 = vmatprep.mubr.msk.f32.mxu1 %vm173_vm2, %v6207_v36 }
0x2ba1   :  { %v16334_v37 = vpop.f32.mrf.mxu1 }
0x2c47   :  { %v6283_v31 = vpop.f32.mrf.mxu0 }
0x2c48   :  { %16343 = vmatmul.mubr.msk.f32.vlgmr.msra.gmra.mxu1 %vm173_vm2, %v6283_v31 }
0x2c49   :  { %16351 = vmatpush3.xpose.msk.msra.mxu1 %vm173_vm2, %v6454_v38  ;;  %v16339_v39 = vpop.f32.mrf.mxu0  ;;  %16352 = vmatprep.mubr.msk.f32.mxu1 %vm17305_vm1, %v17304_v9 }
0x2c4a   :  { %16360 = vmatprep.subr.mxu1 %v17304_v9 }
0x2c4b   :  { %v6447_v41 = vpop.f32.mrf.mxu0 }
0x2c4c   :  { %v6448_v44 = vadd.f32 %v6447_v41, %v17485_v25  ;;  %16353 = vmatmul.mubr.msk.f32.vlgmr.msra.gmra.mxu1 %vm173_vm2, %v6452_v40 }
0x2c4d   :  { %v16349_v47 = vpop.f32.mrf.mxu0  ;;  %16362 = vmatprep.mubr.msk.f32.mxu1 %vm17305_vm1, %v17304_v9 }
0x2c4e   :  { %v6529_v48 = vsel %vm327_vm5, %v6448_v44, -inf }
0x2c4f   :  { %6530 = vmax.xlane.f32.xlu0 %v6529_v48 }
0x2cd8   :  { %v6531_v49 = vpop.xlane.xlu0 %6530 }
0x2cd9   :  { %v6535_v42 = vsub.f32 %v6448_v44, %v6531_v49 }
0x2cdb   :  { %v6537_v50 = vmul.f32 1.442695, %v6535_v42 }
0x2cdd   :  { %17106 = vpow2.f32 %v6537_v50 }
0x2cea   :  { %v17107_v51 = vpop.eup %17106 }
0x2ceb   :  { %v6541_v52 = vsel %vm327_vm5, %v17107_v51, 0.0 }
0x2cec   :  { %6542 = vadd.xlane.f32.xlu0 %v6541_v52 }
0x2d08   :  { %v16344_v59 = vpop.f32.mrf.mxu1 }
0x2d09   :  { %v18300_v13 = vadd.f32 %v16344_v59, %v18249_v5 }
0x2d0a   :  { %v6362_v63 = vpop.f32.mrf.mxu1 }
0x2d0b   :  { %v18302_v1 = vadd.f32 %v6362_v63, %v5955_v61 }
0x2d0c   :  { %v6525_v21 = vpop.f32.mrf.mxu1 }
0x2d0d   :  { %v6526_v4 = vadd.f32 %v6525_v21, %v17490_v29 }
0x2d0e   :  { %v16354_v12 = vpop.f32.mrf.mxu1 }
0x2d0f   :  { %v6532_v18 = vsel %vm327_vm5, %v6526_v4, -inf }
0x2d10   :  { %6533 = vmax.xlane.f32.xlu1 %v6532_v18 }
0x2d21   :  { %6551 = vrot.lane.b32.xlu1 %v17989_v7, %s19602_s3 }
0x2d25   :  { %6791 = vrot.lane.b32.xlu1 %v17989_v7, %s19603_s25 }
0x2d29   :  { %6869 = vrot.lane.b32.xlu1 %v17987_v62, %s19603_s25 }
0x2d2d   :  { %6867 = vrot.lane.b32.xlu1 %v18006_v15, %s19604_s24  ;;  %v18323_v15 = vld [vmem:[%s19525_s6 + $0x38] sm:$0xff] }
0x2d2e   :  { %v7119_v58 = vrot.slane %v18323_v15, 4 }
0x2d75   :  { %v6543_v32 = vpop.xlane.xlu0 %6542 }
0x2d76   :  { %17108 = vrcp.f32 %v6543_v32 }
0x2d83   :  { %v17109_v6 = vpop.eup %17108 }
0x2d84   :  { %v6548_v17 = vmul.f32 %v17109_v6, %v17107_v51 }
0x2d99   :  { %v6534_v46 = vpop.xlane.xlu1 %6533 }
0x2d9a   :  { %v6536_v27 = vsub.f32 %v6526_v4, %v6534_v46 }
0x2d9c   :  { %v6539_v5 = vmul.f32 1.442695, %v6536_v27 }
0x2d9d   :  { %v6552_v11 = vpop.permute.xlu1 %6551 }
0x2d9e   :  { %17110 = vpow2.f32 %v6539_v5  ;;  %16356 = vmatpush3.msra.mxu0 %v6552_v11 }
0x2d9f   :  { %16358 = vmatmul.mubr.msk.f32.vlgmr.msra.gmra.mxu0 %vm327_vm5, %v6548_v17  ;;  %16365 = vmatprep.subr.msk.mxu0 %vm840_vm6, %v18323_v15 }
0x2da0   :  { %16366 = vmatpush3.msk.msra.mxu0 %vm840_vm6, %v18323_v15 }
0x2da1   :  { %16375 = vmatprep.subr.mxu0 %v17304_v9  ;;  %v6792_v26 = vpop.permute.xlu1 %6791 }
0x2da5   :  { %v6870_v30 = vpop.permute.xlu1 %6869 }
0x2da9   :  { %v6868_v28 = vpop.permute.xlu1 %6867 }
0x2dab   :  { %v17111_v19 = vpop.eup %17110 }
0x2dac   :  { %v6544_v16 = vsel %vm327_vm5, %v17111_v19, 0.0 }
0x2dad   :  { %6545 = vadd.xlane.f32.xlu0 %v6544_v16 }
0x2dc3   :  { %6627 = vrot.lane.b32.xlu0 %v17987_v62, %s19602_s3 }
0x2dc7   :  { %6789 = vrot.lane.b32.xlu0 %v17997_v14, %s19604_s24 }
0x2e36   :  { %v6546_v20 = vpop.xlane.xlu0 %6545 }
0x2e37   :  { %17112 = vrcp.f32 %v6546_v20 }
0x2e3a   :  { %v6628_v22 = vpop.permute.xlu0 %6627 }
0x2e3b   :  { %16361 = vmatpush3.msra.mxu1 %v6628_v22 }
0x2e3c   :  { %16370 = vmatprep.subr.mxu1 %v17304_v9 }
0x2e3e   :  { %v6790_v43 = vpop.permute.xlu0 %6789 }
0x2e44   :  { %v17113_v14 = vpop.eup %17112 }
0x2e45   :  { %v6550_v24 = vmul.f32 %v17113_v14, %v17111_v19 }
0x2e47   :  { %16363 = vmatmul.mubr.msk.f32.vlgmr.msra.gmra.mxu1 %vm327_vm5, %v6550_v24 }
0x2e48   :  { %16371 = vmatpush3.xpose.msk.msra.mxu1 %vm173_vm2, %v6792_v26  ;;  %16372 = vmatprep.mubr.msk.f32.mxu1 %vm17305_vm1, %v17304_v9 }
0x2e49   :  { %16380 = vmatprep.subr.mxu1 %v17304_v9 }
0x2e4b   :  { %16373 = vmatmul.mubr.msk.f32.vlgmr.msra.gmra.mxu1 %vm173_vm2, %v6790_v43 }
0x2e4c   :  { %16382 = vmatprep.mubr.msk.f32.mxu1 %vm17305_vm1, %v17304_v9 }
0x2e5f   :  { %v6623_v56 = vpop.f32.mrf.mxu0 }
0x2e60   :  { %16367 = vmatprep.mubr.msk.f32.mxu0 %vm173_vm2, %v6623_v56 }
0x2e61   :  { %v16359_v45 = vpop.f32.mrf.mxu0 }
0x2f07   :  { %v6699_v10 = vpop.f32.mrf.mxu1 }
0x2f08   :  { %16368 = vmatmul.mubr.msk.f32.vlgmr.msra.gmra.mxu0 %vm173_vm2, %v6699_v10 }
0x2f09   :  { %16376 = vmatpush3.xpose.msk.msra.mxu0 %vm173_vm2, %v6870_v30  ;;  %v16364_v60 = vpop.f32.mrf.mxu1  ;;  %16377 = vmatprep.mubr.msk.f32.mxu0 %vm17305_vm1, %v17304_v9 }
0x2f0a   :  { %16385 = vmatprep.subr.mxu0 %v17304_v9 }
0x2f0b   :  { %v6863_v33 = vpop.f32.mrf.mxu1 }
0x2f0c   :  { %v6864_v34 = vadd.f32 %v6863_v33, %v17485_v25  ;;  %16378 = vmatmul.mubr.msk.f32.vlgmr.msra.gmra.mxu0 %vm173_vm2, %v6868_v28  ;;  %v15206_v28 = vld [vmem:[%s19527_s8 + $0x38] sm:$0xff]  ;;  %v15205_v33 = vld [vmem:[%s19527_s8 + $0x30] sm:$0xff] }
0x2f0d   :  { %v16374_v8 = vpop.f32.mrf.mxu1  ;;  %16387 = vmatprep.mubr.msk.f32.mxu0 %vm17305_vm1, %v17304_v9 }
0x2f0e   :  { %v6945_v35 = vsel %vm327_vm5, %v6864_v34, -inf  ;;  %v15203_v8 = vld [vmem:[%s19527_s8 + $0x20] sm:$0xff] }
0x2f0f   :  { %6946 = vmax.xlane.f32.xlu0 %v6945_v35  ;;  %v15226_v35 = vld [vmem:[%s19529_s10 + $0xf8] sm:$0xff] }
0x2f98   :  { %v6947_v36 = vpop.xlane.xlu0 %6946 }
0x2f99   :  { %v6951_v37 = vsub.f32 %v6864_v34, %v6947_v36  ;;  %v15204_v34 = vld [vmem:[%s19527_s8 + $0x28] sm:$0xff]  ;;  %v15225_v36 = vld [vmem:[%s19529_s10 + $0xf0] sm:$0xff] }
0x2f9b   :  { %v6953_v38 = vmul.f32 1.442695, %v6951_v37  ;;  %v15224_v37 = vld [vmem:[%s19529_s10 + $0xe8] sm:$0xff] }
0x2f9d   :  { %17114 = vpow2.f32 %v6953_v38  ;;  %v15223_v38 = vld [vmem:[%s19529_s10 + $0xe0] sm:$0xff] }
0x2faa   :  { %v17115_v31 = vpop.eup %17114 }
0x2fab   :  { %v6957_v39 = vsel %vm327_vm5, %v17115_v31, 0.0 }
0x2fac   :  { %6958 = vadd.xlane.f32.xlu0 %v6957_v39  ;;  %v15221_v39 = vld [vmem:[%s19529_s10 + $0xd0] sm:$0xff] }
0x2fc8   :  { %v16369_v40 = vpop.f32.mrf.mxu0 }
0x2fc9   :  { %v6788_v41 = vadd.f32 %v16369_v40, %v18300_v13  ;;  %v15220_v40 = vld [vmem:[%s19529_s10 + $0xc8] sm:$0xff] }
0x2fca   :  { %v6778_v44 = vpop.f32.mrf.mxu0 }
0x2fcb   :  { %v6787_v47 = vadd.f32 %v6778_v44, %v18302_v1  ;;  %v15218_v44 = vld [vmem:[%s19529_s10 + $0xb8] sm:$0xff] }
0x2fcc   :  { %v6941_v48 = vpop.f32.mrf.mxu0 }
0x2fcd   :  { %v6942_v49 = vadd.f32 %v6941_v48, %v17490_v29  ;;  %v15216_v48 = vld [vmem:[%s19529_s10 + $0xa8] sm:$0xff] }
0x2fce   :  { %v16379_v42 = vpop.f32.mrf.mxu0 }
0x2fcf   :  { %v6948_v50 = vsel %vm327_vm5, %v6942_v49, -inf }
0x2fd0   :  { %6949 = vmax.xlane.f32.xlu1 %v6948_v50 }
0x2fe1   :  { %6967 = vrot.lane.b32.xlu1 %v17989_v7, %s19605_s19 }
0x3035   :  { %v6959_v51 = vpop.xlane.xlu0 %6958 }
0x3036   :  { %17116 = vrcp.f32 %v6959_v51 }
0x3043   :  { %v17117_v54 = vpop.eup %17116 }
0x3044   :  { %v6964_v13 = vmul.f32 %v17117_v54, %v17115_v31  ;;  %v15222_v31 = vld [vmem:[%s19529_s10 + $0xd8] sm:$0xff] }
0x3059   :  { %v6950_v52 = vpop.xlane.xlu1 %6949 }
0x305a   :  { %v6952_v55 = vsub.f32 %v6942_v49, %v6950_v52  ;;  %v15215_v49 = vld [vmem:[%s19529_s10 + $0xa0] sm:$0xff] }
0x305c   :  { %v6955_v59 = vmul.f32 1.442695, %v6952_v55 }
0x305d   :  { %v6968_v61 = vpop.permute.xlu1 %6967 }
0x305e   :  { %17118 = vpow2.f32 %v6955_v59  ;;  %16381 = vmatpush3.msra.mxu1 %v6968_v61 }
0x305f   :  { %16383 = vmatmul.mubr.msk.f32.vlgmr.msra.gmra.mxu1 %vm327_vm5, %v6964_v13  ;;  %16390 = vmatprep.subr.msk.mxu1 %vm840_vm6, %v7119_v58 }
0x3060   :  { %16391 = vmatpush3.msk.msra.mxu1 %vm840_vm6, %v7119_v58  ;;  %v18435_v58 = vld [vmem:[%s19531_s12 + $0x4] sm:$0xf] }
0x3061   :  { %16406 = vmatprep.subr.mxu1 %v15226_v35  ;;  %v7248_v61 = vrot.slane %v18435_v58, %v17481_v23 }
0x306b   :  { %v17119_v63 = vpop.eup %17118 }
0x306c   :  { %v6960_v7 = vsel %vm327_vm5, %v17119_v63, 0.0 }
0x306d   :  { %6961 = vadd.xlane.f32.xlu0 %v6960_v7 }
0x3083   :  { %7043 = vrot.lane.b32.xlu0 %v17987_v62, %s19605_s19  ;;  %v15201_v62 = vld [vmem:[%s19526_s7 + $0x1] ss:$0 sm:$0xff] }
0x30f6   :  { %v6962_v1 = vpop.xlane.xlu0 %6961 }
0x30f7   :  { %17120 = vrcp.f32 %v6962_v1 }
0x30fa   :  { %v7044_v21 = vpop.permute.xlu0 %7043 }
0x30fb   :  { %16386 = vmatpush3.msra.mxu0 %v7044_v21  ;;  %v7254_v21 = vrot.slane %v18435_v58, %v17918_v0 }
0x30fc   :  { %16395 = vmatprep.subr.mxu0 %v15206_v28 }
0x3104   :  { %v17121_v4 = vpop.eup %17120 }
0x3105   :  { %v6966_v12 = vmul.f32 %v17121_v4, %v17119_v63 }
0x3107   :  { %16388 = vmatmul.mubr.msk.f32.vlgmr.msra.gmra.mxu0 %vm327_vm5, %v6966_v12 }
0x3108   :  { %16396 = vmatpush3.msra.mxu0 %v15206_v28 }
0x3109   :  { %16397 = vmatprep.subr.mxu0 %v15205_v33 }
0x310a   :  { %16398 = vmatpush3.msra.mxu0 %v15205_v33 }
0x310b   :  { %16399 = vmatprep.subr.mxu0 %v15204_v34 }
0x310c   :  { %16400 = vmatpush3.msra.mxu0 %v15204_v34 }
0x310d   :  { %16401 = vmatprep.subr.mxu0 %v15203_v8 }
0x310e   :  { %16402 = vmatpush3.msra.mxu0 %v15203_v8 }
0x311f   :  { %v7039_v18 = vpop.f32.mrf.mxu1 }
0x3120   :  { %16392 = vmatprep.mubr.msk.f32.mxu1 %vm173_vm2, %v7039_v18 }
0x3121   :  { %v16384_v32 = vpop.f32.mrf.mxu1 }
0x3122   :  { %v15214_v32 = vld [vmem:[%s19529_s10 + $0x98] sm:$0xff] }
0x31c7   :  { %v7115_v46 = vpop.f32.mrf.mxu0 }
0x31c8   :  { %16393 = vmatmul.mubr.msk.f32.vlgmr.msra.gmra.mxu1 %vm173_vm2, %v7115_v46  ;;  %v15213_v46 = vld [vmem:[%s19529_s10 + $0x90] sm:$0xff] }
0x31c9   :  { %v16389_v6 = vpop.f32.mrf.mxu0  ;;  %16407 = vmatpush3.msra.mxu1 %v15226_v35 }
0x31ca   :  { %16408 = vmatprep.subr.mxu1 %v15225_v36  ;;  %v15212_v6 = vld [vmem:[%s19529_s10 + $0x88] sm:$0xff] }
0x31cb   :  { %16409 = vmatpush3.msra.mxu1 %v15225_v36 }
0x31cc   :  { %16410 = vmatprep.subr.mxu1 %v15224_v37 }
0x31cd   :  { %16411 = vmatpush3.msra.mxu1 %v15224_v37  ;;  %v15232_v37 = vld [vmem:[%s19523_s4 + $0x58] sm:$0xff] }
0x31ce   :  { %16412 = vmatprep.subr.mxu1 %v15223_v38  ;;  %16441 = vmatprep.subr.mxu0 %v15232_v37 }
0x31cf   :  { %16413 = vmatpush3.msra.mxu1 %v15223_v38  ;;  %v15231_v38 = vld [vmem:[%s19523_s4 + $0x50] sm:$0xff] }
0x31d0   :  { %16414 = vmatprep.subr.mxu1 %v15222_v31 }
0x31d1   :  { %16415 = vmatpush3.msra.mxu1 %v15222_v31  ;;  %v15230_v31 = vld [vmem:[%s19523_s4 + $0x48] sm:$0xff] }
0x31d2   :  { %16416 = vmatprep.subr.mxu1 %v15221_v39 }
0x31d3   :  { %16417 = vmatpush3.msra.mxu1 %v15221_v39  ;;  %v15229_v39 = vld [vmem:[%s19523_s4 + $0x40] sm:$0xff] }
0x31d4   :  { %16418 = vmatprep.subr.mxu1 %v15220_v40 }
0x31d5   :  { %16419 = vmatpush3.msra.mxu1 %v15220_v40 }
0x3288   :  { %v16394_v27 = vpop.f32.mrf.mxu1 }
0x3289   :  { %v7204_v5 = vadd.f32 %v16394_v27, %v6788_v41  ;;  %v15219_v41 = vld [vmem:[%s19529_s10 + $0xc0] sm:$0xff] }
0x328a   :  { %v7194_v11 = vpop.f32.mrf.mxu1  ;;  %16420 = vmatprep.subr.mxu1 %v15219_v41  ;;  %v15211_v27 = vld [vmem:[%s19529_s10 + $0x80] sm:$0xff] }
0x328b   :  { %v7214_v17 = vadd.f32 %v15201_v62, %v7204_v5  ;;  %v7203_v19 = vadd.f32 %v7194_v11, %v6787_v47  ;;  %16421 = vmatpush3.msra.mxu1 %v15219_v41  ;;  %v15217_v47 = vld [vmem:[%s19529_s10 + $0xb0] sm:$0xff] }
0x328c   :  { %16422 = vmatprep.subr.mxu1 %v15218_v44 }
0x328d   :  { %v7213_v16 = vadd.f32 %v15201_v62, %v7203_v19  ;;  %v7218_v15 = vadd.f32 %v7214_v17, %v17976_v3  ;;  %16423 = vmatpush3.msra.mxu1 %v15218_v44  ;;  %v15208_v62 = vld [vmem:[%s19528_s9 + $0x1] ss:$0 sm:$0xff] }
0x328e   :  { %16424 = vmatprep.subr.mxu1 %v15217_v47 }
0x328f   :  { %v7222_v20 = vsel %vm70_vm0, %v7218_v15, 0.0  ;;  %v7217_v22 = vadd.f32 %v7213_v16, %v17974_v2  ;;  %16425 = vmatpush3.msra.mxu1 %v15217_v47 }
0x3290   :  { %7223 = vadd.xlane.f32.xlu0 %v7222_v20  ;;  %16426 = vmatprep.subr.mxu1 %v15216_v48  ;;  %v15228_v20 = vld [vmem:[%s19530_s11 + $0x1] ss:$0 sm:$0xff] }
0x3291   :  { %v7219_v14 = vsel %vm70_vm0, %v7217_v22, 0.0  ;;  %16427 = vmatpush3.msra.mxu1 %v15216_v48 }
0x3292   :  { %7220 = vadd.xlane.f32.xlu1 %v7219_v14  ;;  %16428 = vmatprep.subr.mxu1 %v15215_v49 }
0x3293   :  { %16429 = vmatpush3.msra.mxu1 %v15215_v49 }
0x3294   :  { %16430 = vmatprep.subr.mxu1 %v15214_v32 }
0x3295   :  { %16431 = vmatpush3.msra.mxu1 %v15214_v32 }
0x3296   :  { %16432 = vmatprep.subr.mxu1 %v15213_v46 }
0x3297   :  { %16433 = vmatpush3.msra.mxu1 %v15213_v46 }
0x3298   :  { %16434 = vmatprep.subr.mxu1 %v15212_v6 }
0x3299   :  { %16435 = vmatpush3.msra.mxu1 %v15212_v6 }
0x329a   :  { %16436 = vmatprep.subr.mxu1 %v15211_v27 }
0x329b   :  { %16437 = vmatpush3.msra.mxu1 %v15211_v27 }
0x329c   :  { %16477 = vmatprep.subr.mxu1 %v17304_v9 }
0x3319   :  { %v7224_v24 = vpop.xlane.xlu0 %7223 }
0x331a   :  { %v7226_v26 = vmul.f32 0.03125, %v7224_v24 }
0x331b   :  { %v7221_v43 = vpop.xlane.xlu1 %7220 }
0x331c   :  { %v18374_v56 = vsub.f32 %v7218_v15, %v7226_v26  ;;  %v7225_v45 = vmul.f32 0.03125, %v7221_v43 }
0x331e   :  { %v18376_v30 = vsub.f32 %v7217_v22, %v7225_v45  ;;  %v7230_v10 = vmul.f32 %v18374_v56, %v18374_v56 }
0x3320   :  { %v7234_v3 = vsel %vm70_vm0, %v7230_v10, 0.0  ;;  %v7229_v2 = vmul.f32 %v18376_v30, %v18376_v30 }
0x3321   :  { %7235 = vadd.xlane.f32.xlu0 %v7234_v3 }
0x3322   :  { %v7231_v60 = vsel %vm70_vm0, %v7229_v2, 0.0 }
0x3323   :  { %7232 = vadd.xlane.f32.xlu1 %v7231_v60 }
0x33aa   :  { %v7236_v42 = vpop.xlane.xlu0 %7235 }
0x33ab   :  { %v7238_v50 = vmul.f32 0.03125, %v7236_v42 }
0x33ac   :  { %v7233_v51 = vpop.xlane.xlu1 %7232 }
0x33ad   :  { %v7240_v52 = vadd.f32 1e-05, %v7238_v50  ;;  %v7237_v54 = vmul.f32 0.03125, %v7233_v51  ;;  %v7484_v50 = vrot.slane %v18435_v58, %v17965_v53 }
0x33af   :  { %17122 = vrsqrt.f32 %v7240_v52  ;;  %v7239_v55 = vadd.f32 1e-05, %v7237_v54 }
0x33b1   :  { %17124 = vrsqrt.f32 %v7239_v55 }
0x33bc   :  { %v17123_v59 = vpop.eup %17122 }
0x33bd   :  { %v7244_v13 = vmul.f32 %v17123_v59, %v18374_v56  ;;  %v7490_v59 = vrot.slane %v18435_v58, %v17970_v57 }
0x33be   :  { %v17125_v63 = vpop.eup %17124 }
0x33bf   :  { %v7243_v7 = vmul.f32 %v17125_v63, %v18376_v30  ;;  %v7250_v1 = vmul.f32 %v7248_v61, %v7244_v13 }
0x33c1   :  { %v7249_v4 = vmul.f32 %v7248_v61, %v7243_v7  ;;  %v7256_v18 = vadd.f32 %v7254_v21, %v7250_v1  ;;  %v15234_v7 = vld [vmem:[%s19524_s5 + $0x2] ss:$0 sm:$0xff] }
0x33c3   :  { %v7255_v12 = vadd.f32 %v7254_v21, %v7249_v4 }
0x33c5   :  { %16403 = vmatprep.mubr.msk.f32.mxu0 %vm70_vm0, %v7255_v12 }
0x33c6   :  { %16404 = vmatmul.mubr.msk.f32.vlgmr.msra.gmra.mxu0 %vm70_vm0, %v7256_v18 }
0x33c7   :  { %16442 = vmatpush3.msra.mxu0 %v15232_v37 }
0x33c8   :  { %16443 = vmatprep.subr.mxu0 %v15231_v38 }
0x33c9   :  { %16444 = vmatpush3.msra.mxu0 %v15231_v38 }
0x33ca   :  { %16445 = vmatprep.subr.mxu0 %v15230_v31 }
0x33cb   :  { %16446 = vmatpush3.msra.mxu0 %v15230_v31 }
0x33cc   :  { %16447 = vmatprep.subr.mxu0 %v15229_v39 }
0x33cd   :  { %16448 = vmatpush3.msra.mxu0 %v15229_v39 }
0x33ce   :  { %16452 = vmatprep.subr.mxu0 %v17304_v9 }
0x3486   :  { %v16405_v5 = vpop.f32.mrf.mxu0 }
0x3487   :  { %v7348_v11 = vadd.f32 %v16405_v5, %v15208_v62 }
0x3488   :  { %v7342_v17 = vpop.f32.mrf.mxu0 }
0x3489   :  { %v7343_v19 = vadd.f32 %v15208_v62, %v7342_v17  ;;  %v7352_v15 = vmax.f32 %v7348_v11, 0.0 }
0x348b   :  { %v7351_v16 = vmax.f32 %v7343_v19, 0.0 }
0x348d   :  { %16438 = vmatprep.mubr.f32.mxu1 %v7351_v16 }
0x348e   :  { %16439 = vmatmul.mubr.f32.vlgmr.msra.gmra.mxu1 %v7352_v15 }
0x348f   :  { %16479 = vmatprep.mubr.msk.f32.mxu1 %vm17305_vm1, %v17304_v9 }
0x354e   :  { %v16440_v22 = vpop.f32.mrf.mxu1 }
0x354f   :  { %v7450_v14 = vadd.f32 %v16440_v22, %v15228_v20 }
0x3550   :  { %v7444_v24 = vpop.f32.mrf.mxu1 }
0x3551   :  { %v7454_v26 = vadd.f32 %v7450_v14, %v7256_v18  ;;  %v7445_v43 = vadd.f32 %v15228_v20, %v7444_v24 }
0x3553   :  { %v7453_v56 = vadd.f32 %v7445_v43, %v7255_v12  ;;  %v7458_v45 = vsel %vm70_vm0, %v7454_v26, 0.0 }
0x3554   :  { %7459 = vadd.xlane.f32.xlu0 %v7458_v45 }
0x3555   :  { %v7455_v30 = vsel %vm70_vm0, %v7453_v56, 0.0 }
0x3556   :  { %7456 = vadd.xlane.f32.xlu1 %v7455_v30 }
0x35dd   :  { %v7460_v10 = vpop.xlane.xlu0 %7459 }
0x35de   :  { %v7462_v3 = vmul.f32 0.03125, %v7460_v10 }
0x35df   :  { %v7457_v2 = vpop.xlane.xlu1 %7456 }
0x35e0   :  { %v7464_v60 = vsub.f32 %v7454_v26, %v7462_v3  ;;  %v7461_v28 = vmul.f32 0.03125, %v7457_v2 }
0x35e2   :  { %v7463_v33 = vsub.f32 %v7453_v56, %v7461_v28  ;;  %v7466_v34 = vmul.f32 %v7464_v60, %v7464_v60 }
0x35e4   :  { %v7470_v8 = vsel %vm70_vm0, %v7466_v34, 0.0  ;;  %v7465_v35 = vmul.f32 %v7463_v33, %v7463_v33 }
0x35e5   :  { %7471 = vadd.xlane.f32.xlu0 %v7470_v8 }
0x35e6   :  { %v7467_v36 = vsel %vm70_vm0, %v7465_v35, 0.0 }
0x35e7   :  { %7468 = vadd.xlane.f32.xlu1 %v7467_v36 }
0x366e   :  { %v7472_v40 = vpop.xlane.xlu0 %7471 }
0x366f   :  { %v7474_v41 = vmul.f32 0.03125, %v7472_v40 }
0x3670   :  { %v7469_v44 = vpop.xlane.xlu1 %7468 }
0x3671   :  { %v7476_v47 = vadd.f32 1e-05, %v7474_v41  ;;  %v7473_v48 = vmul.f32 0.03125, %v7469_v44 }
0x3673   :  { %17126 = vrsqrt.f32 %v7476_v47  ;;  %v7475_v49 = vadd.f32 1e-05, %v7473_v48 }
0x3675   :  { %17128 = vrsqrt.f32 %v7475_v49 }
0x3680   :  { %v17127_v42 = vpop.eup %17126 }
0x3681   :  { %v7480_v51 = vmul.f32 %v17127_v42, %v7464_v60 }
0x3682   :  { %v17129_v52 = vpop.eup %17128 }
0x3683   :  { %v7479_v54 = vmul.f32 %v17129_v52, %v7463_v33  ;;  %v7486_v55 = vmul.f32 %v7484_v50, %v7480_v51 }
0x3685   :  { %v7485_v61 = vmul.f32 %v7484_v50, %v7479_v54  ;;  %v18489_v63 = vadd.f32 %v7490_v59, %v7486_v55 }
0x3687   :  { %v18487_v13 = vadd.f32 %v7490_v59, %v7485_v61 }
0x3689   :  { %16449 = vmatprep.mubr.msk.f32.mxu0 %vm70_vm0, %v18487_v13 }
0x368a   :  { %16450 = vmatmul.mubr.msk.f32.vlgmr.msra.gmra.mxu0 %vm70_vm0, %v18489_v63 }
0x368b   :  { %16454 = vmatprep.mubr.msk.f32.mxu0 %vm17305_vm1, %v17304_v9 }
0x374a   :  { %v16451_v1 = vpop.f32.mrf.mxu0 }
0x374b   :  { %v18500_v58 = vadd.f32 %v16451_v1, %v15234_v7 }
0x374c   :  { %v7578_v21 = vpop.f32.mrf.mxu0 }
0x374d   :  { %v18502_v4 = vadd.f32 %v15234_v7, %v7578_v21  ;;  %7673 = vrot.lane.b32.xlu0 %v18500_v58, %s19606_s22  ;;  %v18519_v46 = vmul.f32 0.5, %v18500_v58 }
0x374f   :  { %7595 = vrot.lane.b32.xlu1 %v18502_v4, %s19606_s22  ;;  %v18510_v18 = vmul.f32 0.5, %v18502_v4 }
0x37bf   :  { %v7674_v32 = vpop.permute.xlu0 %7673 }
0x37c1   :  { %v7596_v12 = vpop.permute.xlu1 %7595 }
0x37c2   :  { %16453 = vmatpush3.xpose.msk.msra.mxu0 %vm173_vm2, %v7596_v12 }
0x37c3   :  { %16457 = vmatprep.subr.mxu0 %v17304_v9 }
0x37c5   :  { %16455 = vmatmul.mubr.msk.f32.vlgmr.msra.gmra.mxu0 %vm173_vm2, %v18510_v18 }
0x37c6   :  { %16458 = vmatpush3.xpose.msk.msra.mxu0 %vm173_vm2, %v7674_v32  ;;  %16459 = vmatprep.mubr.msk.f32.mxu0 %vm17305_vm1, %v17304_v9 }
0x37c7   :  { %16462 = vmatprep.subr.mxu0 %v17304_v9 }
0x37c9   :  { %16460 = vmatmul.mubr.msk.f32.vlgmr.msra.gmra.mxu0 %vm173_vm2, %v18519_v46 }
0x37ca   :  { %16464 = vmatprep.mubr.msk.f32.mxu0 %vm17305_vm1, %v17304_v9 }
0x3885   :  { %v7668_v6 = vpop.f32.mrf.mxu0 }
0x3886   :  { %v7669_v27 = vadd.f32 %v7668_v6, %v17485_v25 }
0x3887   :  { %v16456_v62 = vpop.f32.mrf.mxu0 }
0x3888   :  { %v7750_v5 = vsel %vm327_vm5, %v7669_v27, -inf  ;;  %v15237_v62 = vld [vmem:[%s19525_s6 + $0x40] sm:$0xff] }
0x3889   :  { %7751 = vmax.xlane.f32.xlu1 %v7750_v5  ;;  %v7746_v11 = vpop.f32.mrf.mxu0  ;;  %v8255_v5 = vrot.slane %v15237_v62, 4 }
0x388a   :  { %v7747_v17 = vadd.f32 %v7746_v11, %v17490_v29 }
0x388b   :  { %v16461_v19 = vpop.f32.mrf.mxu0 }
0x388c   :  { %v7753_v16 = vsel %vm327_vm5, %v7747_v17, -inf }
0x388d   :  { %7754 = vmax.xlane.f32.xlu0 %v7753_v16 }
0x389a   :  { %7772 = vrot.lane.b32.xlu1 %v18502_v4, %s19607_s23 }
0x3912   :  { %v7752_v15 = vpop.xlane.xlu1 %7751 }
0x3913   :  { %v7756_v20 = vsub.f32 %v7669_v27, %v7752_v15 }
0x3915   :  { %v7758_v22 = vmul.f32 1.442695, %v7756_v20 }
0x3916   :  { %v7773_v14 = vpop.permute.xlu1 %7772  ;;  %v7755_v24 = vpop.xlane.xlu0 %7754 }
0x3917   :  { %17130 = vpow2.f32 %v7758_v22  ;;  %v7757_v26 = vsub.f32 %v7747_v17, %v7755_v24  ;;  %16463 = vmatpush3.msra.mxu0 %v7773_v14 }
0x3918   :  { %16467 = vmatprep.subr.mxu0 %v17304_v9 }
0x3919   :  { %v7760_v43 = vmul.f32 1.442695, %v7757_v26 }
0x391b   :  { %17132 = vpow2.f32 %v7760_v43 }
0x3924   :  { %v17131_v56 = vpop.eup %17130 }
0x3925   :  { %v7762_v45 = vsel %vm327_vm5, %v17131_v56, 0.0 }
0x3926   :  { %7763 = vadd.xlane.f32.xlu1 %v7762_v45 }
0x3928   :  { %v17133_v30 = vpop.eup %17132 }
0x3929   :  { %v7765_v10 = vsel %vm327_vm5, %v17133_v30, 0.0 }
0x392a   :  { %7766 = vadd.xlane.f32.xlu0 %v7765_v10 }
0x3937   :  { %7926 = vrot.lane.b32.xlu1 %v18502_v4, %s19608_s17 }
0x393b   :  { %8004 = vrot.lane.b32.xlu1 %v18500_v58, %s19608_s17 }
0x393f   :  { %8002 = vrot.lane.b32.xlu1 %v18519_v46, %s19609_s18 }
0x3940   :  { %7848 = vrot.lane.b32.xlu0 %v18500_v58, %s19607_s23 }
0x3944   :  { %7924 = vrot.lane.b32.xlu0 %v18510_v18, %s19609_s18 }
0x39af   :  { %v7764_v3 = vpop.xlane.xlu1 %7763 }
0x39b0   :  { %17134 = vrcp.f32 %v7764_v3 }
0x39b3   :  { %v7927_v2 = vpop.permute.xlu1 %7926  ;;  %v7767_v60 = vpop.xlane.xlu0 %7766 }
0x39b4   :  { %17136 = vrcp.f32 %v7767_v60 }
0x39b7   :  { %v8005_v28 = vpop.permute.xlu1 %8004  ;;  %v7849_v35 = vpop.permute.xlu0 %7848 }
0x39b8   :  { %16478 = vmatpush3.xpose.msk.msra.mxu1 %vm173_vm2, %v8005_v28 }
0x39b9   :  { %16487 = vmatprep.subr.mxu1 %v17304_v9 }
0x39bb   :  { %v8003_v33 = vpop.permute.xlu1 %8002  ;;  %v7925_v38 = vpop.permute.xlu0 %7924 }
0x39bc   :  { %16480 = vmatmul.mubr.msk.f32.vlgmr.msra.gmra.mxu1 %vm173_vm2, %v8003_v33 }
0x39bd   :  { %v17135_v34 = vpop.eup %17134  ;;  %16489 = vmatprep.mubr.msk.f32.mxu1 %vm17305_vm1, %v17304_v9 }
0x39be   :  { %v7769_v8 = vmul.f32 %v17135_v34, %v17131_v56 }
0x39c0   :  { %16465 = vmatmul.mubr.msk.f32.vlgmr.msra.gmra.mxu0 %vm327_vm5, %v7769_v8 }
0x39c1   :  { %v17137_v36 = vpop.eup %17136  ;;  %16468 = vmatpush3.msra.mxu0 %v7849_v35  ;;  %16469 = vmatprep.mubr.msk.f32.mxu0 %vm17305_vm1, %v17304_v9 }
0x39c2   :  { %16472 = vmatprep.subr.mxu0 %v17304_v9  ;;  %v7771_v37 = vmul.f32 %v17137_v36, %v17133_v30 }
0x39c4   :  { %16470 = vmatmul.mubr.msk.f32.vlgmr.msra.gmra.mxu0 %vm327_vm5, %v7771_v37 }
0x39c5   :  { %16473 = vmatpush3.xpose.msk.msra.mxu0 %vm173_vm2, %v7927_v2  ;;  %16474 = vmatprep.mubr.msk.f32.mxu0 %vm17305_vm1, %v17304_v9 }
0x39c6   :  { %16482 = vmatprep.subr.mxu0 %v17304_v9 }
0x39c8   :  { %16475 = vmatmul.mubr.msk.f32.vlgmr.msra.gmra.mxu0 %vm173_vm2, %v7925_v38 }
0x39c9   :  { %16484 = vmatprep.mubr.msk.f32.mxu0 %vm17305_vm1, %v17304_v9 }
0x3a7c   :  { %v8076_v31 = vpop.f32.mrf.mxu1 }
0x3a7d   :  { %v8077_v39 = vadd.f32 %v8076_v31, %v17490_v29 }
0x3a7e   :  { %v16481_v40 = vpop.f32.mrf.mxu1 }
0x3a7f   :  { %v8083_v41 = vsel %vm327_vm5, %v8077_v39, -inf }
0x3a80   :  { %8084 = vmax.xlane.f32.xlu1 %v8083_v41  ;;  %v7844_v44 = vpop.f32.mrf.mxu0 }
0x3a82   :  { %v16466_v47 = vpop.f32.mrf.mxu0 }
0x3a84   :  { %v7920_v48 = vpop.f32.mrf.mxu0 }
0x3a86   :  { %v16471_v49 = vpop.f32.mrf.mxu0 }
0x3a88   :  { %v7998_v42 = vpop.f32.mrf.mxu0 }
0x3a89   :  { %v7999_v50 = vadd.f32 %v7998_v42, %v17485_v25 }
0x3a8a   :  { %v16476_v51 = vpop.f32.mrf.mxu0 }
0x3a8b   :  { %v8080_v52 = vsel %vm327_vm5, %v7999_v50, -inf }
0x3a8c   :  { %8081 = vmax.xlane.f32.xlu0 %v8080_v52 }
0x3a91   :  { %8102 = vrot.lane.b32.xlu1 %v18502_v4, %s19610_s1 }
0x3a95   :  { %8424 = vrot.lane.b32.xlu1 %v18502_v4, %s19611_s16 }
0x3a99   :  { %8502 = vrot.lane.b32.xlu1 %v18500_v58, %s19611_s16 }
0x3a9d   :  { %8500 = vrot.lane.b32.xlu1 %v18519_v46, %s19612_s14 }
0x3b09   :  { %v8085_v54 = vpop.xlane.xlu1 %8084 }
0x3b0a   :  { %v8087_v55 = vsub.f32 %v8077_v39, %v8085_v54 }
0x3b0c   :  { %v8090_v59 = vmul.f32 1.442695, %v8087_v55 }
0x3b0d   :  { %v8103_v61 = vpop.permute.xlu1 %8102 }
0x3b0e   :  { %17138 = vpow2.f32 %v8090_v59  ;;  %16483 = vmatpush3.msra.mxu0 %v8103_v61 }
0x3b0f   :  { %16492 = vmatprep.subr.msk.mxu0 %vm840_vm6, %v8255_v5 }
0x3b11   :  { %v8425_v19 = vpop.permute.xlu1 %8424 }
0x3b15   :  { %v8082_v7 = vpop.xlane.xlu0 %8081  ;;  %v8503_v22 = vpop.permute.xlu1 %8502 }
0x3b16   :  { %v8086_v1 = vsub.f32 %v7999_v50, %v8082_v7 }
0x3b18   :  { %v8088_v21 = vmul.f32 1.442695, %v8086_v1 }
0x3b19   :  { %v8501_v14 = vpop.permute.xlu1 %8500 }
0x3b1a   :  { %17140 = vpow2.f32 %v8088_v21 }
0x3b1b   :  { %v17139_v12 = vpop.eup %17138 }
0x3b1c   :  { %v8095_v32 = vsel %vm327_vm5, %v17139_v12, 0.0 }
0x3b1d   :  { %8096 = vadd.xlane.f32.xlu0 %v8095_v32 }
0x3b27   :  { %v17141_v6 = vpop.eup %17140 }
0x3b28   :  { %v8092_v27 = vsel %vm327_vm5, %v17141_v6, 0.0 }
0x3b29   :  { %8093 = vadd.xlane.f32.xlu0 %v8092_v27 }
0x3b3f   :  { %8178 = vrot.lane.b32.xlu0 %v18500_v58, %s19610_s1 }
0x3b43   :  { %8422 = vrot.lane.b32.xlu0 %v18510_v18, %s19612_s14 }
0x3ba6   :  { %v8097_v11 = vpop.xlane.xlu0 %8096 }
0x3ba7   :  { %17142 = vrcp.f32 %v8097_v11 }
0x3bb2   :  { %v8094_v17 = vpop.xlane.xlu0 %8093 }
0x3bb3   :  { %17144 = vrcp.f32 %v8094_v17 }
0x3bb4   :  { %v17143_v16 = vpop.eup %17142 }
0x3bb5   :  { %v8101_v15 = vmul.f32 %v17143_v16, %v17139_v12 }
0x3bb6   :  { %v8179_v20 = vpop.permute.xlu0 %8178 }
0x3bb7   :  { %16488 = vmatpush3.msra.mxu1 %v8179_v20 }
0x3bb8   :  { %16490 = vmatmul.mubr.msk.f32.vlgmr.msra.gmra.mxu1 %vm327_vm5, %v8101_v15  ;;  %16497 = vmatprep.subr.msk.mxu1 %vm840_vm6, %v15237_v62 }
0x3bb9   :  { %16499 = vmatprep.mubr.msk.f32.mxu1 %vm173_vm2, %v7844_v44  ;;  %16498 = vmatpush3.msk.msra.mxu1 %vm840_vm6, %v15237_v62 }
0x3bba   :  { %16507 = vmatprep.subr.mxu1 %v17304_v9  ;;  %v8423_v34 = vpop.permute.xlu0 %8422 }
0x3bbc   :  { %16500 = vmatmul.mubr.msk.f32.vlgmr.msra.gmra.mxu1 %vm173_vm2, %v7920_v48 }
0x3bbd   :  { %16508 = vmatpush3.xpose.msk.msra.mxu1 %vm173_vm2, %v8503_v22  ;;  %16509 = vmatprep.mubr.msk.f32.mxu1 %vm17305_vm1, %v17304_v9 }
0x3bbe   :  { %16517 = vmatprep.subr.mxu1 %v17304_v9 }
0x3bc0   :  { %v17145_v24 = vpop.eup %17144  ;;  %16510 = vmatmul.mubr.msk.f32.vlgmr.msra.gmra.mxu1 %vm173_vm2, %v8501_v14 }
0x3bc1   :  { %v8099_v26 = vmul.f32 %v17145_v24, %v17141_v6  ;;  %16519 = vmatprep.mubr.msk.f32.mxu1 %vm17305_vm1, %v17304_v9  ;;  %v15238_v6 = vld [vmem:[%s19525_s6 + $0x48] sm:$0xff] }
0x3bc3   :  { %16485 = vmatmul.mubr.msk.f32.vlgmr.msra.gmra.mxu0 %vm327_vm5, %v8099_v26 }
0x3bc4   :  { %16493 = vmatpush3.msk.msra.mxu0 %vm840_vm6, %v8255_v5 }
0x3bc5   :  { %16502 = vmatprep.subr.mxu0 %v17304_v9 }
0x3c78   :  { %v8250_v43 = vpop.f32.mrf.mxu1 }
0x3c7a   :  { %v16491_v56 = vpop.f32.mrf.mxu1 }
0x3c7c   :  { %v18600_v45 = vpop.f32.mrf.mxu1 }
0x3c7e   :  { %v18602_v30 = vpop.f32.mrf.mxu1 }
0x3c80   :  { %v8574_v10 = vpop.f32.mrf.mxu1 }
0x3c81   :  { %v8575_v3 = vadd.f32 %v8574_v10, %v17490_v29 }
0x3c82   :  { %v16511_v2 = vpop.f32.mrf.mxu1 }
0x3c83   :  { %v8174_v60 = vpop.f32.mrf.mxu0  ;;  %v8581_v28 = vsel %vm327_vm5, %v8575_v3, -inf }
0x3c84   :  { %8582 = vmax.xlane.f32.xlu1 %v8581_v28  ;;  %16494 = vmatprep.mubr.msk.f32.mxu0 %vm173_vm2, %v8174_v60 }
0x3c85   :  { %v16486_v33 = vpop.f32.mrf.mxu0  ;;  %16495 = vmatmul.mubr.msk.f32.vlgmr.msra.gmra.mxu0 %vm173_vm2, %v8250_v43 }
0x3c86   :  { %16503 = vmatpush3.xpose.msk.msra.mxu0 %vm173_vm2, %v8425_v19  ;;  %16504 = vmatprep.mubr.msk.f32.mxu0 %vm17305_vm1, %v17304_v9 }
0x3c87   :  { %16512 = vmatprep.subr.mxu0 %v17304_v9 }
0x3c89   :  { %16505 = vmatmul.mubr.msk.f32.vlgmr.msra.gmra.mxu0 %vm173_vm2, %v8423_v34 }
0x3c8a   :  { %16514 = vmatprep.mubr.msk.f32.mxu0 %vm17305_vm1, %v17304_v9 }
0x3c95   :  { %8600 = vrot.lane.b32.xlu1 %v18502_v4, %s19613_s13 }
0x3c99   :  { %8840 = vrot.lane.b32.xlu1 %v18502_v4, %s19614_s27 }
0x3c9d   :  { %8918 = vrot.lane.b32.xlu1 %v18500_v58, %s19614_s27 }
0x3ca1   :  { %8916 = vrot.lane.b32.xlu1 %v18519_v46, %s19615_s2 }
0x3d0d   :  { %v8583_v8 = vpop.xlane.xlu1 %8582 }
0x3d0e   :  { %v8585_v36 = vsub.f32 %v8575_v3, %v8583_v8 }
0x3d10   :  { %v8588_v37 = vmul.f32 1.442695, %v8585_v36 }
0x3d11   :  { %v8601_v35 = vpop.permute.xlu1 %8600 }
0x3d12   :  { %16513 = vmatpush3.msra.mxu0 %v8601_v35  ;;  %17146 = vpow2.f32 %v8588_v37 }
0x3d13   :  { %16522 = vmatprep.subr.msk.mxu0 %vm840_vm6, %v15238_v6 }
0x3d15   :  { %v8841_v1 = vpop.permute.xlu1 %8840 }
0x3d19   :  { %v8919_v16 = vpop.permute.xlu1 %8918 }
0x3d1d   :  { %v8917_v22 = vpop.permute.xlu1 %8916 }
0x3d1f   :  { %v17147_v47 = vpop.eup %17146 }
0x3d20   :  { %v8593_v48 = vsel %vm327_vm5, %v17147_v47, 0.0 }
0x3d45   :  { %v18623_v38 = vpop.f32.mrf.mxu0 }
0x3d46   :  { %v8419_v10 = vadd.f32 %v18600_v45, %v18623_v38 }
0x3d47   :  { %v18625_v31 = vpop.f32.mrf.mxu0 }
0x3d48   :  { %v8414_v2 = vadd.f32 %v18602_v30, %v18625_v31  ;;  %v9168_v31 = vrot.slane %v15238_v6, 4 }
0x3d49   :  { %v8496_v39 = vpop.f32.mrf.mxu0 }
0x3d4a   :  { %v8497_v40 = vadd.f32 %v8496_v39, %v17485_v25 }
0x3d4b   :  { %v16506_v41 = vpop.f32.mrf.mxu0 }
0x3d4c   :  { %v8578_v44 = vsel %vm327_vm5, %v8497_v40, -inf }
0x3d4d   :  { %8579 = vmax.xlane.f32.xlu0 %v8578_v44 }
0x3d51   :  { %8594 = vadd.xlane.f32.xlu0 %v8593_v48 }
0x3dd6   :  { %v8580_v49 = vpop.xlane.xlu0 %8579 }
0x3dd7   :  { %v8584_v42 = vsub.f32 %v8497_v40, %v8580_v49 }
0x3dd9   :  { %v8586_v50 = vmul.f32 1.442695, %v8584_v42 }
0x3dda   :  { %v8595_v54 = vpop.xlane.xlu0 %8594 }
0x3ddb   :  { %17148 = vpow2.f32 %v8586_v50 }
0x3ddc   :  { %17150 = vrcp.f32 %v8595_v54 }
0x3de8   :  { %v17149_v51 = vpop.eup %17148 }
0x3de9   :  { %v8590_v52 = vsel %vm327_vm5, %v17149_v51, 0.0  ;;  %v17151_v59 = vpop.eup %17150 }
0x3dea   :  { %8591 = vadd.xlane.f32.xlu0 %v8590_v52  ;;  %v8599_v7 = vmul.f32 %v17151_v59, %v17147_v47 }
0x3e00   :  { %8676 = vrot.lane.b32.xlu0 %v18500_v58, %s19613_s13 }
0x3e04   :  { %8838 = vrot.lane.b32.xlu0 %v18510_v18, %s19615_s2  ;;  %s19616_s2 = smov 52  }
0x3e73   :  { %v8592_v55 = vpop.xlane.xlu0 %8591 }
0x3e74   :  { %17152 = vrcp.f32 %v8592_v55 }
0x3e77   :  { %v8677_v61 = vpop.permute.xlu0 %8676 }
0x3e78   :  { %16518 = vmatpush3.msra.mxu1 %v8677_v61 }
0x3e79   :  { %16520 = vmatmul.mubr.msk.f32.vlgmr.msra.gmra.mxu1 %vm327_vm5, %v8599_v7  ;;  %16527 = vmatprep.subr.mxu1 %v17304_v9 }
0x3e7a   :  { %16528 = vmatpush3.xpose.msk.msra.mxu1 %vm173_vm2, %v8841_v1  ;;  %16529 = vmatprep.mubr.msk.f32.mxu1 %vm17305_vm1, %v17304_v9 }
0x3e7b   :  { %v8839_v21 = vpop.permute.xlu0 %8838  ;;  %16537 = vmatprep.subr.mxu1 %v17304_v9 }
0x3e7d   :  { %16530 = vmatmul.mubr.msk.f32.vlgmr.msra.gmra.mxu1 %vm173_vm2, %v8839_v21 }
0x3e7e   :  { %16539 = vmatprep.mubr.msk.f32.mxu1 %vm17305_vm1, %v17304_v9 }
0x3e81   :  { %v17153_v12 = vpop.eup %17152 }
0x3e82   :  { %v8597_v32 = vmul.f32 %v17153_v12, %v17149_v51 }
0x3e84   :  { %16515 = vmatmul.mubr.msk.f32.vlgmr.msra.gmra.mxu0 %vm327_vm5, %v8597_v32 }
0x3e85   :  { %16523 = vmatpush3.msk.msra.mxu0 %vm840_vm6, %v15238_v6 }
0x3e86   :  { %16532 = vmatprep.subr.mxu0 %v17304_v9 }
0x3f39   :  { %v8748_v27 = vpop.f32.mrf.mxu1 }
0x3f3b   :  { %v16521_v62 = vpop.f32.mrf.mxu1 }
0x3f3d   :  { %v8912_v5 = vpop.f32.mrf.mxu1 }
0x3f3e   :  { %v8913_v11 = vadd.f32 %v8912_v5, %v17485_v25 }
0x3f3f   :  { %v16531_v17 = vpop.f32.mrf.mxu1 }
0x3f40   :  { %v8994_v19 = vsel %vm327_vm5, %v8913_v11, -inf }
0x3f41   :  { %8995 = vmax.xlane.f32.xlu0 %v8994_v19 }
0x3f44   :  { %v8672_v15 = vpop.f32.mrf.mxu0 }
0x3f45   :  { %16524 = vmatprep.mubr.msk.f32.mxu0 %vm173_vm2, %v8672_v15 }
0x3f46   :  { %v16516_v20 = vpop.f32.mrf.mxu0  ;;  %16525 = vmatmul.mubr.msk.f32.vlgmr.msra.gmra.mxu0 %vm173_vm2, %v8748_v27 }
0x3f47   :  { %16533 = vmatpush3.xpose.msk.msra.mxu0 %vm173_vm2, %v8919_v16  ;;  %16534 = vmatprep.mubr.msk.f32.mxu0 %vm17305_vm1, %v17304_v9 }
0x3f48   :  { %16542 = vmatprep.subr.mxu0 %v17304_v9 }
0x3f4a   :  { %16535 = vmatmul.mubr.msk.f32.vlgmr.msra.gmra.mxu0 %vm173_vm2, %v8917_v22 }
0x3f4b   :  { %16544 = vmatprep.mubr.msk.f32.mxu0 %vm17305_vm1, %v17304_v9 }
0x3fca   :  { %v8996_v14 = vpop.xlane.xlu0 %8995 }
0x3fcb   :  { %v9000_v24 = vsub.f32 %v8913_v11, %v8996_v14 }
0x3fcd   :  { %v9002_v26 = vmul.f32 1.442695, %v9000_v24 }
0x3fcf   :  { %17154 = vpow2.f32 %v9002_v26 }
0x3fdc   :  { %v17155_v43 = vpop.eup %17154 }
0x3fdd   :  { %v9006_v56 = vsel %vm327_vm5, %v17155_v43, 0.0 }
0x3fde   :  { %9007 = vadd.xlane.f32.xlu0 %v9006_v56 }
0x4006   :  { %v16526_v3 = vpop.f32.mrf.mxu0 }
0x4007   :  { %v18667_v60 = vadd.f32 %v16526_v3, %v8419_v10 }
0x4008   :  { %v8827_v28 = vpop.f32.mrf.mxu0 }
0x4009   :  { %v18669_v33 = vadd.f32 %v8827_v28, %v8414_v2 }
0x400a   :  { %v8990_v34 = vpop.f32.mrf.mxu0 }
0x400b   :  { %v8991_v8 = vadd.f32 %v8990_v34, %v17490_v29 }
0x400c   :  { %v16536_v35 = vpop.f32.mrf.mxu0 }
0x400d   :  { %v8997_v36 = vsel %vm327_vm5, %v8991_v8, -inf }
0x400e   :  { %8998 = vmax.xlane.f32.xlu1 %v8997_v36 }
0x401f   :  { %9016 = vrot.lane.b32.xlu1 %v18502_v4, %s19616_s2 }
0x4023   :  { %9256 = vrot.lane.b32.xlu1 %v18502_v4, %s19594_s30 }
0x4027   :  { %9334 = vrot.lane.b32.xlu1 %v18500_v58, %s19594_s30 }
0x402b   :  { %9332 = vrot.lane.b32.xlu1 %v18519_v46, %s19595_s15 }
0x4067   :  { %v9008_v45 = vpop.xlane.xlu0 %9007 }
0x4068   :  { %17156 = vrcp.f32 %v9008_v45 }
0x4075   :  { %v17157_v37 = vpop.eup %17156 }
0x4076   :  { %v9013_v41 = vmul.f32 %v17157_v37, %v17155_v43 }
0x4097   :  { %v8999_v30 = vpop.xlane.xlu1 %8998 }
0x4098   :  { %v9001_v38 = vsub.f32 %v8991_v8, %v8999_v30  ;;  %v18736_v8 = vld [vmem:[%s19525_s6 + $0x50] sm:$0xff] }
0x409a   :  { %v9004_v39 = vmul.f32 1.442695, %v9001_v38 }
0x409b   :  { %v9017_v40 = vpop.permute.xlu1 %9016 }
0x409c   :  { %17158 = vpow2.f32 %v9004_v39  ;;  %16538 = vmatpush3.msra.mxu1 %v9017_v40 }
0x409d   :  { %16540 = vmatmul.mubr.msk.f32.vlgmr.msra.gmra.mxu1 %vm327_vm5, %v9013_v41  ;;  %16547 = vmatprep.subr.msk.mxu1 %vm840_vm6, %v9168_v31 }
0x409e   :  { %16548 = vmatpush3.msk.msra.mxu1 %vm840_vm6, %v9168_v31 }
0x409f   :  { %16557 = vmatprep.subr.mxu1 %v17304_v9  ;;  %v9257_v51 = vpop.permute.xlu1 %9256 }
0x40a3   :  { %v9335_v59 = vpop.permute.xlu1 %9334 }
0x40a7   :  { %v9333_v1 = vpop.permute.xlu1 %9332 }
0x40a9   :  { %v17159_v44 = vpop.eup %17158 }
0x40aa   :  { %v9009_v47 = vsel %vm327_vm5, %v17159_v44, 0.0 }
0x40ab   :  { %9010 = vadd.xlane.f32.xlu0 %v9009_v47 }
0x40c1   :  { %9092 = vrot.lane.b32.xlu0 %v18500_v58, %s19616_s2 }
0x40c5   :  { %9254 = vrot.lane.b32.xlu0 %v18510_v18, %s19595_s15 }
0x4134   :  { %v9011_v48 = vpop.xlane.xlu0 %9010 }
0x4135   :  { %17160 = vrcp.f32 %v9011_v48 }
0x4138   :  { %v9093_v49 = vpop.permute.xlu0 %9092 }
0x4139   :  { %16543 = vmatpush3.msra.mxu0 %v9093_v49 }
0x413a   :  { %16552 = vmatprep.subr.mxu0 %v17304_v9 }
0x413c   :  { %v9255_v52 = vpop.permute.xlu0 %9254 }
0x4142   :  { %v17161_v42 = vpop.eup %17160 }
0x4143   :  { %v9015_v50 = vmul.f32 %v17161_v42, %v17159_v44 }
0x4145   :  { %16545 = vmatmul.mubr.msk.f32.vlgmr.msra.gmra.mxu0 %vm327_vm5, %v9015_v50 }
0x4146   :  { %16553 = vmatpush3.xpose.msk.msra.mxu0 %vm173_vm2, %v9257_v51  ;;  %16554 = vmatprep.mubr.msk.f32.mxu0 %vm17305_vm1, %v17304_v9 }
0x4147   :  { %16562 = vmatprep.subr.mxu0 %v17304_v9 }
0x4149   :  { %16555 = vmatmul.mubr.msk.f32.vlgmr.msra.gmra.mxu0 %vm173_vm2, %v9255_v52 }
0x414a   :  { %16564 = vmatprep.mubr.msk.f32.mxu0 %vm17305_vm1, %v17304_v9 }
0x415d   :  { %v9088_v54 = vpop.f32.mrf.mxu1 }
0x415e   :  { %16549 = vmatprep.mubr.msk.f32.mxu1 %vm173_vm2, %v9088_v54 }
0x415f   :  { %v16541_v55 = vpop.f32.mrf.mxu1 }
0x4205   :  { %v9164_v61 = vpop.f32.mrf.mxu0 }
0x4206   :  { %16550 = vmatmul.mubr.msk.f32.vlgmr.msra.gmra.mxu1 %vm173_vm2, %v9164_v61 }
0x4207   :  { %16558 = vmatpush3.xpose.msk.msra.mxu1 %vm173_vm2, %v9335_v59  ;;  %v16546_v7 = vpop.f32.mrf.mxu0  ;;  %16559 = vmatprep.mubr.msk.f32.mxu1 %vm17305_vm1, %v17304_v9 }
0x4208   :  { %16567 = vmatprep.subr.mxu1 %v17304_v9 }
0x4209   :  { %v9328_v21 = vpop.f32.mrf.mxu0 }
0x420a   :  { %v9329_v12 = vadd.f32 %v9328_v21, %v17485_v25  ;;  %16560 = vmatmul.mubr.msk.f32.vlgmr.msra.gmra.mxu1 %vm173_vm2, %v9333_v1 }
0x420b   :  { %v16556_v32 = vpop.f32.mrf.mxu0  ;;  %16569 = vmatprep.mubr.msk.f32.mxu1 %vm17305_vm1, %v17304_v9 }
0x420c   :  { %v9410_v6 = vsel %vm327_vm5, %v9329_v12, -inf }
0x420d   :  { %9411 = vmax.xlane.f32.xlu0 %v9410_v6 }
0x4296   :  { %v9412_v27 = vpop.xlane.xlu0 %9411 }
0x4297   :  { %v9416_v62 = vsub.f32 %v9329_v12, %v9412_v27 }
0x4299   :  { %v9418_v5 = vmul.f32 1.442695, %v9416_v62 }
0x429b   :  { %17162 = vpow2.f32 %v9418_v5 }
0x42a8   :  { %v17163_v11 = vpop.eup %17162 }
0x42a9   :  { %v9422_v17 = vsel %vm327_vm5, %v17163_v11, 0.0 }
0x42aa   :  { %9423 = vadd.xlane.f32.xlu0 %v9422_v17 }
0x42c6   :  { %v16551_v19 = vpop.f32.mrf.mxu1 }
0x42c7   :  { %v18712_v16 = vadd.f32 %v16551_v19, %v18667_v60  ;;  %v10000_v19 = vrot.slane %v18736_v8, 4 }
0x42c8   :  { %v9243_v15 = vpop.f32.mrf.mxu1 }
0x42c9   :  { %v18715_v20 = vadd.f32 %v9243_v15, %v18669_v33 }
0x42ca   :  { %v9406_v22 = vpop.f32.mrf.mxu1 }
0x42cb   :  { %v9407_v14 = vadd.f32 %v9406_v22, %v17490_v29 }
0x42cc   :  { %v16561_v24 = vpop.f32.mrf.mxu1 }
0x42cd   :  { %v9413_v26 = vsel %vm327_vm5, %v9407_v14, -inf }
0x42ce   :  { %9414 = vmax.xlane.f32.xlu1 %v9413_v26 }
0x42df   :  { %9432 = vrot.lane.b32.xlu1 %v18502_v4, %s19596_s28 }
0x42e3   :  { %9672 = vrot.lane.b32.xlu1 %v18502_v4, %s19597_s29 }
0x42e7   :  { %9750 = vrot.lane.b32.xlu1 %v18500_v58, %s19597_s29  ;;  %s19625_s29 = sld [smem:[#allocation6_spill]] }
0x42eb   :  { %9748 = vrot.lane.b32.xlu1 %v18519_v46, %s19598_s20 }
0x4333   :  { %v9424_v43 = vpop.xlane.xlu0 %9423 }
0x4334   :  { %17164 = vrcp.f32 %v9424_v43 }
0x4341   :  { %v17165_v10 = vpop.eup %17164 }
0x4342   :  { %v9429_v60 = vmul.f32 %v17165_v10, %v17163_v11 }
0x4357   :  { %v9415_v56 = vpop.xlane.xlu1 %9414 }
0x4358   :  { %v9417_v3 = vsub.f32 %v9407_v14, %v9415_v56 }
0x435a   :  { %v9420_v2 = vmul.f32 1.442695, %v9417_v3 }
0x435b   :  { %v9433_v28 = vpop.permute.xlu1 %9432 }
0x435c   :  { %17166 = vpow2.f32 %v9420_v2  ;;  %16563 = vmatpush3.msra.mxu0 %v9433_v28 }
0x435d   :  { %16565 = vmatmul.mubr.msk.f32.vlgmr.msra.gmra.mxu0 %vm327_vm5, %v9429_v60  ;;  %16572 = vmatprep.subr.msk.mxu0 %vm840_vm6, %v18736_v8 }
0x435e   :  { %16573 = vmatpush3.msk.msra.mxu0 %vm840_vm6, %v18736_v8 }
0x435f   :  { %16582 = vmatprep.subr.mxu0 %v17304_v9  ;;  %v9673_v37 = vpop.permute.xlu1 %9672 }
0x4363   :  { %v9751_v40 = vpop.permute.xlu1 %9750 }
0x4367   :  { %v9749_v47 = vpop.permute.xlu1 %9748 }
0x4369   :  { %v17167_v33 = vpop.eup %17166 }
0x436a   :  { %v9425_v34 = vsel %vm327_vm5, %v17167_v33, 0.0 }
0x436b   :  { %9426 = vadd.xlane.f32.xlu0 %v9425_v34 }
0x4381   :  { %9508 = vrot.lane.b32.xlu0 %v18500_v58, %s19596_s28 }
0x4385   :  { %9670 = vrot.lane.b32.xlu0 %v18510_v18, %s19598_s20 }
0x43f4   :  { %v9427_v35 = vpop.xlane.xlu0 %9426 }
0x43f5   :  { %17168 = vrcp.f32 %v9427_v35 }
0x43f8   :  { %v9509_v36 = vpop.permute.xlu0 %9508 }
0x43f9   :  { %16568 = vmatpush3.msra.mxu1 %v9509_v36 }
0x43fa   :  { %16577 = vmatprep.subr.mxu1 %v17304_v9 }
0x43fc   :  { %v9671_v38 = vpop.permute.xlu0 %9670 }
0x4402   :  { %v17169_v45 = vpop.eup %17168 }
0x4403   :  { %v9431_v30 = vmul.f32 %v17169_v45, %v17167_v33 }
0x4405   :  { %16570 = vmatmul.mubr.msk.f32.vlgmr.msra.gmra.mxu1 %vm327_vm5, %v9431_v30 }
0x4406   :  { %16578 = vmatpush3.xpose.msk.msra.mxu1 %vm173_vm2, %v9673_v37  ;;  %16579 = vmatprep.mubr.msk.f32.mxu1 %vm17305_vm1, %v17304_v9 }
0x4407   :  { %16587 = vmatprep.subr.mxu1 %v17304_v9 }
0x4409   :  { %16580 = vmatmul.mubr.msk.f32.vlgmr.msra.gmra.mxu1 %vm173_vm2, %v9671_v38 }
0x440a   :  { %16589 = vmatprep.mubr.msk.f32.mxu1 %vm17305_vm1, %v17304_v9 }
0x441d   :  { %v9504_v31 = vpop.f32.mrf.mxu0 }
0x441e   :  { %16574 = vmatprep.mubr.msk.f32.mxu0 %vm173_vm2, %v9504_v31 }
0x441f   :  { %v16566_v39 = vpop.f32.mrf.mxu0 }
0x44c5   :  { %v9580_v41 = vpop.f32.mrf.mxu1 }
0x44c6   :  { %16575 = vmatmul.mubr.msk.f32.vlgmr.msra.gmra.mxu0 %vm173_vm2, %v9580_v41 }
0x44c7   :  { %16583 = vmatpush3.xpose.msk.msra.mxu0 %vm173_vm2, %v9751_v40  ;;  %v16571_v44 = vpop.f32.mrf.mxu1  ;;  %16584 = vmatprep.mubr.msk.f32.mxu0 %vm17305_vm1, %v17304_v9 }
0x44c8   :  { %16592 = vmatprep.subr.mxu0 %v17304_v9 }
0x44c9   :  { %v9744_v48 = vpop.f32.mrf.mxu1 }
0x44ca   :  { %v9745_v49 = vadd.f32 %v9744_v48, %v17485_v25  ;;  %16585 = vmatmul.mubr.msk.f32.vlgmr.msra.gmra.mxu0 %vm173_vm2, %v9749_v47 }
0x44cb   :  { %v16581_v42 = vpop.f32.mrf.mxu1  ;;  %16594 = vmatprep.mubr.msk.f32.mxu0 %vm17305_vm1, %v17304_v9 }
0x44cc   :  { %v9826_v50 = vsel %vm327_vm5, %v9745_v49, -inf }
0x44cd   :  { %9827 = vmax.xlane.f32.xlu0 %v9826_v50 }
0x4556   :  { %v9828_v51 = vpop.xlane.xlu0 %9827 }
0x4557   :  { %v9832_v52 = vsub.f32 %v9745_v49, %v9828_v51 }
0x4559   :  { %v9834_v54 = vmul.f32 1.442695, %v9832_v52 }
0x455b   :  { %17170 = vpow2.f32 %v9834_v54 }
0x4568   :  { %v17171_v55 = vpop.eup %17170 }
0x4569   :  { %v9838_v59 = vsel %vm327_vm5, %v17171_v55, 0.0 }
0x456a   :  { %9839 = vadd.xlane.f32.xlu0 %v9838_v59 }
0x4586   :  { %v16576_v61 = vpop.f32.mrf.mxu0 }
0x4587   :  { %v18765_v7 = vadd.f32 %v16576_v61, %v18712_v16 }
0x4588   :  { %v9659_v1 = vpop.f32.mrf.mxu0 }
0x4589   :  { %v18768_v21 = vadd.f32 %v9659_v1, %v18715_v20 }
0x458a   :  { %v9822_v12 = vpop.f32.mrf.mxu0 }
0x458b   :  { %v9823_v32 = vadd.f32 %v9822_v12, %v17490_v29 }
0x458c   :  { %v16586_v6 = vpop.f32.mrf.mxu0 }
0x458d   :  { %v9829_v27 = vsel %vm327_vm5, %v9823_v32, -inf }
0x458e   :  { %9830 = vmax.xlane.f32.xlu1 %v9829_v27 }
0x459f   :  { %9848 = vrot.lane.b32.xlu1 %v18502_v4, %s19599_s26 }
0x45a3   :  { %10088 = vrot.lane.b32.xlu1 %v18502_v4, %s19600_s21 }
0x45a7   :  { %10166 = vrot.lane.b32.xlu1 %v18500_v58, %s19600_s21 }
0x45ab   :  { %10164 = vrot.lane.b32.xlu1 %v18519_v46, %s19601_s0 }
0x45f3   :  { %v9840_v62 = vpop.xlane.xlu0 %9839 }
0x45f4   :  { %17172 = vrcp.f32 %v9840_v62 }
0x4601   :  { %v17173_v11 = vpop.eup %17172 }
0x4602   :  { %v9845_v20 = vmul.f32 %v17173_v11, %v17171_v55 }
0x4617   :  { %v9831_v5 = vpop.xlane.xlu1 %9830 }
0x4618   :  { %v9833_v17 = vsub.f32 %v9823_v32, %v9831_v5 }
0x461a   :  { %v9836_v16 = vmul.f32 1.442695, %v9833_v17 }
0x461b   :  { %v9849_v15 = vpop.permute.xlu1 %9848 }
0x461c   :  { %17174 = vpow2.f32 %v9836_v16  ;;  %16588 = vmatpush3.msra.mxu1 %v9849_v15 }
0x461d   :  { %16590 = vmatmul.mubr.msk.f32.vlgmr.msra.gmra.mxu1 %vm327_vm5, %v9845_v20  ;;  %16597 = vmatprep.subr.msk.mxu1 %vm840_vm6, %v10000_v19 }
0x461e   :  { %16598 = vmatpush3.msk.msra.mxu1 %vm840_vm6, %v10000_v19 }
0x461f   :  { %16607 = vmatprep.subr.mxu1 %v17304_v9  ;;  %v10089_v10 = vpop.permute.xlu1 %10088 }
0x4623   :  { %v10167_v28 = vpop.permute.xlu1 %10166 }
0x4627   :  { %v10165_v8 = vpop.permute.xlu1 %10164 }
0x4629   :  { %v17175_v22 = vpop.eup %17174 }
0x462a   :  { %v9841_v14 = vsel %vm327_vm5, %v17175_v22, 0.0 }
0x462b   :  { %9842 = vadd.xlane.f32.xlu0 %v9841_v14 }
0x4641   :  { %9924 = vrot.lane.b32.xlu0 %v18500_v58, %s19599_s26 }
0x4645   :  { %10086 = vrot.lane.b32.xlu0 %v18510_v18, %s19601_s0 }
0x46b4   :  { %v9843_v24 = vpop.xlane.xlu0 %9842 }
0x46b5   :  { %17176 = vrcp.f32 %v9843_v24 }
0x46b8   :  { %v9925_v26 = vpop.permute.xlu0 %9924 }
0x46b9   :  { %16593 = vmatpush3.msra.mxu0 %v9925_v26 }
0x46ba   :  { %16602 = vmatprep.subr.mxu0 %v17304_v9 }
0x46bc   :  { %v10087_v3 = vpop.permute.xlu0 %10086 }
0x46c2   :  { %v17177_v43 = vpop.eup %17176 }
0x46c3   :  { %v9847_v56 = vmul.f32 %v17177_v43, %v17175_v22 }
0x46c5   :  { %16595 = vmatmul.mubr.msk.f32.vlgmr.msra.gmra.mxu0 %vm327_vm5, %v9847_v56 }
0x46c6   :  { %16603 = vmatpush3.xpose.msk.msra.mxu0 %vm173_vm2, %v10089_v10  ;;  %16604 = vmatprep.mubr.msk.f32.mxu0 %vm17305_vm1, %v17304_v9 }
0x46c7   :  { %16612 = vmatprep.subr.mxu0 %v17304_v9 }
0x46c9   :  { %16605 = vmatmul.mubr.msk.f32.vlgmr.msra.gmra.mxu0 %vm173_vm2, %v10087_v3 }
0x46ca   :  { %16614 = vmatprep.mubr.msk.f32.mxu0 %vm17305_vm1, %v17304_v9 }
0x46dd   :  { %v9920_v2 = vpop.f32.mrf.mxu1 }
0x46de   :  { %16599 = vmatprep.mubr.msk.f32.mxu1 %vm173_vm2, %v9920_v2 }
0x46df   :  { %v16591_v60 = vpop.f32.mrf.mxu1 }
0x4785   :  { %v9996_v33 = vpop.f32.mrf.mxu0 }
0x4786   :  { %16600 = vmatmul.mubr.msk.f32.vlgmr.msra.gmra.mxu1 %vm173_vm2, %v9996_v33 }
0x4787   :  { %16608 = vmatpush3.xpose.msk.msra.mxu1 %vm173_vm2, %v10167_v28  ;;  %v16596_v34 = vpop.f32.mrf.mxu0  ;;  %16609 = vmatprep.mubr.msk.f32.mxu1 %vm17305_vm1, %v17304_v9 }
0x4788   :  { %16617 = vmatprep.subr.mxu1 %v17304_v9 }
0x4789   :  { %v10160_v35 = vpop.f32.mrf.mxu0 }
0x478a   :  { %v10161_v36 = vadd.f32 %v10160_v35, %v17485_v25  ;;  %16610 = vmatmul.mubr.msk.f32.vlgmr.msra.gmra.mxu1 %vm173_vm2, %v10165_v8 }
0x478b   :  { %v16606_v45 = vpop.f32.mrf.mxu0  ;;  %16619 = vmatprep.mubr.msk.f32.mxu1 %vm17305_vm1, %v17304_v9 }
0x478c   :  { %v10242_v30 = vsel %vm327_vm5, %v10161_v36, -inf }
0x478d   :  { %10243 = vmax.xlane.f32.xlu0 %v10242_v30 }
0x4816   :  { %v10244_v37 = vpop.xlane.xlu0 %10243 }
0x4817   :  { %v10248_v38 = vsub.f32 %v10161_v36, %v10244_v37 }
0x4819   :  { %v10250_v31 = vmul.f32 1.442695, %v10248_v38 }
0x481b   :  { %17178 = vpow2.f32 %v10250_v31 }
0x4828   :  { %v17179_v39 = vpop.eup %17178 }
0x4829   :  { %v10254_v40 = vsel %vm327_vm5, %v17179_v39, 0.0 }
0x482a   :  { %10255 = vadd.xlane.f32.xlu0 %v10254_v40 }
0x4846   :  { %v16601_v41 = vpop.f32.mrf.mxu1 }
0x4847   :  { %v18812_v44 = vadd.f32 %v16601_v41, %v18765_v7 }
0x4848   :  { %v10075_v47 = vpop.f32.mrf.mxu1 }
0x4849   :  { %v18815_v48 = vadd.f32 %v10075_v47, %v18768_v21 }
0x484a   :  { %v10238_v49 = vpop.f32.mrf.mxu1 }
0x484b   :  { %v10239_v42 = vadd.f32 %v10238_v49, %v17490_v29 }
0x484c   :  { %v16611_v50 = vpop.f32.mrf.mxu1 }
0x484d   :  { %v10245_v51 = vsel %vm327_vm5, %v10239_v42, -inf }
0x484e   :  { %10246 = vmax.xlane.f32.xlu1 %v10245_v51 }
0x485f   :  { %10264 = vrot.lane.b32.xlu1 %v18502_v4, %s19602_s3 }
0x4863   :  { %10504 = vrot.lane.b32.xlu1 %v18502_v4, %s19603_s25 }
0x4867   :  { %10582 = vrot.lane.b32.xlu1 %v18500_v58, %s19603_s25 }
0x486b   :  { %10580 = vrot.lane.b32.xlu1 %v18519_v46, %s19604_s24  ;;  %v18836_v46 = vld [vmem:[%s19525_s6 + $0x58] sm:$0xff] }
0x48b3   :  { %v10256_v52 = vpop.xlane.xlu0 %10255 }
0x48b4   :  { %17180 = vrcp.f32 %v10256_v52 }
0x48c1   :  { %v17181_v55 = vpop.eup %17180 }
0x48c2   :  { %v10261_v7 = vmul.f32 %v17181_v55, %v17179_v39  ;;  %v10832_v39 = vrot.slane %v18836_v46, 4 }
0x48d7   :  { %v10247_v54 = vpop.xlane.xlu1 %10246 }
0x48d8   :  { %v10249_v59 = vsub.f32 %v10239_v42, %v10247_v54 }
0x48da   :  { %v10252_v61 = vmul.f32 1.442695, %v10249_v59 }
0x48db   :  { %v10265_v1 = vpop.permute.xlu1 %10264 }
0x48dc   :  { %17182 = vpow2.f32 %v10252_v61  ;;  %16613 = vmatpush3.msra.mxu0 %v10265_v1 }
0x48dd   :  { %16615 = vmatmul.mubr.msk.f32.vlgmr.msra.gmra.mxu0 %vm327_vm5, %v10261_v7  ;;  %16622 = vmatprep.subr.msk.mxu0 %vm840_vm6, %v18836_v46 }
0x48de   :  { %16623 = vmatpush3.msk.msra.mxu0 %vm840_vm6, %v18836_v46 }
0x48df   :  { %16632 = vmatprep.subr.mxu0 %v17304_v9  ;;  %v10505_v62 = vpop.permute.xlu1 %10504 }
0x48e3   :  { %v10583_v19 = vpop.permute.xlu1 %10582 }
0x48e7   :  { %v10581_v20 = vpop.permute.xlu1 %10580 }
0x48e9   :  { %v17183_v21 = vpop.eup %17182 }
0x48ea   :  { %v10257_v12 = vsel %vm327_vm5, %v17183_v21, 0.0 }
0x48eb   :  { %10258 = vadd.xlane.f32.xlu0 %v10257_v12 }
0x4901   :  { %10340 = vrot.lane.b32.xlu0 %v18500_v58, %s19602_s3 }
0x4905   :  { %10502 = vrot.lane.b32.xlu0 %v18510_v18, %s19604_s24 }
0x4974   :  { %v10259_v32 = vpop.xlane.xlu0 %10258 }
0x4975   :  { %17184 = vrcp.f32 %v10259_v32 }
0x4978   :  { %v10341_v6 = vpop.permute.xlu0 %10340 }
0x4979   :  { %16618 = vmatpush3.msra.mxu1 %v10341_v6 }
0x497a   :  { %16627 = vmatprep.subr.mxu1 %v17304_v9 }
0x497c   :  { %v10503_v5 = vpop.permute.xlu0 %10502 }
0x4982   :  { %v17185_v18 = vpop.eup %17184 }
0x4983   :  { %v10263_v27 = vmul.f32 %v17185_v18, %v17183_v21 }
0x4985   :  { %16620 = vmatmul.mubr.msk.f32.vlgmr.msra.gmra.mxu1 %vm327_vm5, %v10263_v27 }
0x4986   :  { %16628 = vmatpush3.xpose.msk.msra.mxu1 %vm173_vm2, %v10505_v62  ;;  %16629 = vmatprep.mubr.msk.f32.mxu1 %vm17305_vm1, %v17304_v9 }
0x4987   :  { %16637 = vmatprep.subr.mxu1 %v17304_v9 }
0x4989   :  { %16630 = vmatmul.mubr.msk.f32.vlgmr.msra.gmra.mxu1 %vm173_vm2, %v10503_v5 }
0x498a   :  { %16639 = vmatprep.mubr.msk.f32.mxu1 %vm17305_vm1, %v17304_v9 }
0x499d   :  { %v10336_v11 = vpop.f32.mrf.mxu0 }
0x499e   :  { %16624 = vmatprep.mubr.msk.f32.mxu0 %vm173_vm2, %v10336_v11 }
0x499f   :  { %v16616_v17 = vpop.f32.mrf.mxu0 }
0x4a45   :  { %v10412_v16 = vpop.f32.mrf.mxu1 }
0x4a46   :  { %16625 = vmatmul.mubr.msk.f32.vlgmr.msra.gmra.mxu0 %vm173_vm2, %v10412_v16 }
0x4a47   :  { %16633 = vmatpush3.xpose.msk.msra.mxu0 %vm173_vm2, %v10583_v19  ;;  %v16621_v15 = vpop.f32.mrf.mxu1  ;;  %16634 = vmatprep.mubr.msk.f32.mxu0 %vm17305_vm1, %v17304_v9 }
0x4a48   :  { %16642 = vmatprep.subr.mxu0 %v17304_v9 }
0x4a49   :  { %v10576_v22 = vpop.f32.mrf.mxu1 }
0x4a4a   :  { %v10577_v14 = vadd.f32 %v10576_v22, %v17485_v25  ;;  %16635 = vmatmul.mubr.msk.f32.vlgmr.msra.gmra.mxu0 %vm173_vm2, %v10581_v20  ;;  %v15319_v20 = vld [vmem:[%s19527_s8 + $0x58] sm:$0xff]  ;;  %v15318_v22 = vld [vmem:[%s19527_s8 + $0x50] sm:$0xff] }
0x4a4b   :  { %v16631_v24 = vpop.f32.mrf.mxu1  ;;  %16644 = vmatprep.mubr.msk.f32.mxu0 %vm17305_vm1, %v17304_v9 }
0x4a4c   :  { %v10658_v26 = vsel %vm327_vm5, %v10577_v14, -inf  ;;  %v15316_v24 = vld [vmem:[%s19527_s8 + $0x40] sm:$0xff] }
0x4a4d   :  { %10659 = vmax.xlane.f32.xlu0 %v10658_v26  ;;  %v15339_v26 = vld [vmem:[%s19529_s10 + $0x178] sm:$0xff] }
0x4ad6   :  { %v10660_v43 = vpop.xlane.xlu0 %10659 }
0x4ad7   :  { %v10664_v56 = vsub.f32 %v10577_v14, %v10660_v43  ;;  %v15317_v14 = vld [vmem:[%s19527_s8 + $0x48] sm:$0xff]  ;;  %v15338_v43 = vld [vmem:[%s19529_s10 + $0x170] sm:$0xff] }
0x4ad9   :  { %v10666_v10 = vmul.f32 1.442695, %v10664_v56  ;;  %v15337_v56 = vld [vmem:[%s19529_s10 + $0x168] sm:$0xff] }
0x4adb   :  { %17186 = vpow2.f32 %v10666_v10  ;;  %v15336_v10 = vld [vmem:[%s19529_s10 + $0x160] sm:$0xff] }
0x4ae8   :  { %v17187_v3 = vpop.eup %17186 }
0x4ae9   :  { %v10670_v2 = vsel %vm327_vm5, %v17187_v3, 0.0 }
0x4aea   :  { %10671 = vadd.xlane.f32.xlu0 %v10670_v2  ;;  %v15334_v2 = vld [vmem:[%s19529_s10 + $0x150] sm:$0xff] }
0x4b06   :  { %v16626_v60 = vpop.f32.mrf.mxu0 }
0x4b07   :  { %v10501_v28 = vadd.f32 %v16626_v60, %v18812_v44  ;;  %v15333_v60 = vld [vmem:[%s19529_s10 + $0x148] sm:$0xff] }
0x4b08   :  { %v10491_v33 = vpop.f32.mrf.mxu0 }
0x4b09   :  { %v10500_v34 = vadd.f32 %v10491_v33, %v18815_v48  ;;  %v15331_v33 = vld [vmem:[%s19529_s10 + $0x138] sm:$0xff] }
0x4b0a   :  { %v10654_v8 = vpop.f32.mrf.mxu0 }
0x4b0b   :  { %v10655_v35 = vadd.f32 %v10654_v8, %v17490_v29  ;;  %v15329_v8 = vld [vmem:[%s19529_s10 + $0x128] sm:$0xff] }
0x4b0c   :  { %v16636_v36 = vpop.f32.mrf.mxu0 }
0x4b0d   :  { %v10661_v45 = vsel %vm327_vm5, %v10655_v35, -inf }
0x4b0e   :  { %10662 = vmax.xlane.f32.xlu1 %v10661_v45 }
0x4b1f   :  { %10680 = vrot.lane.b32.xlu1 %v18502_v4, %s19605_s19 }
0x4b73   :  { %v10672_v30 = vpop.xlane.xlu0 %10671 }
0x4b74   :  { %17188 = vrcp.f32 %v10672_v30 }
0x4b81   :  { %v17189_v38 = vpop.eup %17188 }
0x4b82   :  { %v10677_v44 = vmul.f32 %v17189_v38, %v17187_v3  ;;  %v15335_v3 = vld [vmem:[%s19529_s10 + $0x158] sm:$0xff] }
0x4b97   :  { %v10663_v37 = vpop.xlane.xlu1 %10662 }
0x4b98   :  { %v10665_v31 = vsub.f32 %v10655_v35, %v10663_v37  ;;  %v15328_v35 = vld [vmem:[%s19529_s10 + $0x120] sm:$0xff] }
0x4b9a   :  { %v10668_v40 = vmul.f32 1.442695, %v10665_v31 }
0x4b9b   :  { %v10681_v41 = vpop.permute.xlu1 %10680 }
0x4b9c   :  { %17190 = vpow2.f32 %v10668_v40  ;;  %16638 = vmatpush3.msra.mxu1 %v10681_v41 }
0x4b9d   :  { %16640 = vmatmul.mubr.msk.f32.vlgmr.msra.gmra.mxu1 %vm327_vm5, %v10677_v44  ;;  %16647 = vmatprep.subr.msk.mxu1 %vm840_vm6, %v10832_v39 }
0x4b9e   :  { %16648 = vmatpush3.msk.msra.mxu1 %vm840_vm6, %v10832_v39  ;;  %v18948_v39 = vld [vmem:[%s19531_s12 + $0x8] sm:$0xf] }
0x4b9f   :  { %16663 = vmatprep.subr.mxu1 %v15339_v26  ;;  %v10961_v41 = vrot.slane %v18948_v39, %v17481_v23 }
0x4ba9   :  { %v17191_v47 = vpop.eup %17190 }
0x4baa   :  { %v10673_v4 = vsel %vm327_vm5, %v17191_v47, 0.0 }
0x4bab   :  { %10674 = vadd.xlane.f32.xlu0 %v10673_v4 }
0x4bc1   :  { %10756 = vrot.lane.b32.xlu0 %v18500_v58, %s19605_s19  ;;  %v15314_v58 = vld [vmem:[%s19526_s7 + $0x2] ss:$0 sm:$0xff] }
0x4c34   :  { %v10675_v48 = vpop.xlane.xlu0 %10674 }
0x4c35   :  { %17192 = vrcp.f32 %v10675_v48 }
0x4c38   :  { %v10757_v49 = vpop.permute.xlu0 %10756 }
0x4c39   :  { %16643 = vmatpush3.msra.mxu0 %v10757_v49  ;;  %v10967_v49 = vrot.slane %v18948_v39, %v17918_v0 }
0x4c3a   :  { %16652 = vmatprep.subr.mxu0 %v15319_v20 }
0x4c42   :  { %v17193_v42 = vpop.eup %17192 }
0x4c43   :  { %v10679_v50 = vmul.f32 %v17193_v42, %v17191_v47 }
0x4c45   :  { %16645 = vmatmul.mubr.msk.f32.vlgmr.msra.gmra.mxu0 %vm327_vm5, %v10679_v50 }
0x4c46   :  { %16653 = vmatpush3.msra.mxu0 %v15319_v20 }
0x4c47   :  { %16654 = vmatprep.subr.mxu0 %v15318_v22 }
0x4c48   :  { %16655 = vmatpush3.msra.mxu0 %v15318_v22 }
0x4c49   :  { %16656 = vmatprep.subr.mxu0 %v15317_v14 }
0x4c4a   :  { %16657 = vmatpush3.msra.mxu0 %v15317_v14 }
0x4c4b   :  { %16658 = vmatprep.subr.mxu0 %v15316_v24 }
0x4c4c   :  { %16659 = vmatpush3.msra.mxu0 %v15316_v24 }
0x4c5d   :  { %v10752_v51 = vpop.f32.mrf.mxu1 }
0x4c5e   :  { %16649 = vmatprep.mubr.msk.f32.mxu1 %vm173_vm2, %v10752_v51 }
0x4c5f   :  { %v16641_v52 = vpop.f32.mrf.mxu1 }
0x4c60   :  { %v15327_v52 = vld [vmem:[%s19529_s10 + $0x118] sm:$0xff] }
0x4d05   :  { %v10828_v54 = vpop.f32.mrf.mxu0 }
0x4d06   :  { %16650 = vmatmul.mubr.msk.f32.vlgmr.msra.gmra.mxu1 %vm173_vm2, %v10828_v54  ;;  %v15326_v54 = vld [vmem:[%s19529_s10 + $0x110] sm:$0xff] }
0x4d07   :  { %v16646_v55 = vpop.f32.mrf.mxu0  ;;  %16664 = vmatpush3.msra.mxu1 %v15339_v26 }
0x4d08   :  { %16665 = vmatprep.subr.mxu1 %v15338_v43  ;;  %v15325_v55 = vld [vmem:[%s19529_s10 + $0x108] sm:$0xff] }
0x4d09   :  { %16666 = vmatpush3.msra.mxu1 %v15338_v43 }
0x4d0a   :  { %16667 = vmatprep.subr.mxu1 %v15337_v56 }
0x4d0b   :  { %16668 = vmatpush3.msra.mxu1 %v15337_v56  ;;  %v15345_v56 = vld [vmem:[%s19523_s4 + $0x78] sm:$0xff] }
0x4d0c   :  { %16669 = vmatprep.subr.mxu1 %v15336_v10  ;;  %16698 = vmatprep.subr.mxu0 %v15345_v56 }
0x4d0d   :  { %16670 = vmatpush3.msra.mxu1 %v15336_v10  ;;  %v15344_v10 = vld [vmem:[%s19523_s4 + $0x70] sm:$0xff] }
0x4d0e   :  { %16671 = vmatprep.subr.mxu1 %v15335_v3 }
0x4d0f   :  { %16672 = vmatpush3.msra.mxu1 %v15335_v3  ;;  %v15343_v3 = vld [vmem:[%s19523_s4 + $0x68] sm:$0xff] }
0x4d10   :  { %16673 = vmatprep.subr.mxu1 %v15334_v2 }
0x4d11   :  { %16674 = vmatpush3.msra.mxu1 %v15334_v2  ;;  %v15342_v2 = vld [vmem:[%s19523_s4 + $0x60] sm:$0xff] }
0x4d12   :  { %16675 = vmatprep.subr.mxu1 %v15333_v60 }
0x4d13   :  { %16676 = vmatpush3.msra.mxu1 %v15333_v60 }
0x4dc6   :  { %v16651_v59 = vpop.f32.mrf.mxu1 }
0x4dc7   :  { %v10917_v61 = vadd.f32 %v16651_v59, %v10501_v28  ;;  %v15332_v28 = vld [vmem:[%s19529_s10 + $0x140] sm:$0xff] }
0x4dc8   :  { %v10907_v7 = vpop.f32.mrf.mxu1  ;;  %16677 = vmatprep.subr.mxu1 %v15332_v28  ;;  %v15324_v59 = vld [vmem:[%s19529_s10 + $0x100] sm:$0xff] }
0x4dc9   :  { %v10927_v1 = vadd.f32 %v15314_v58, %v10917_v61  ;;  %v10916_v21 = vadd.f32 %v10907_v7, %v10500_v34  ;;  %16678 = vmatpush3.msra.mxu1 %v15332_v28  ;;  %v15330_v34 = vld [vmem:[%s19529_s10 + $0x130] sm:$0xff] }
0x4dca   :  { %16679 = vmatprep.subr.mxu1 %v15331_v33 }
0x4dcb   :  { %v10926_v12 = vadd.f32 %v15314_v58, %v10916_v21  ;;  %v10931_v46 = vadd.f32 %v10927_v1, %v18489_v63  ;;  %16680 = vmatpush3.msra.mxu1 %v15331_v33  ;;  %v15321_v58 = vld [vmem:[%s19528_s9 + $0x2] ss:$0 sm:$0xff] }
0x4dcc   :  { %16681 = vmatprep.subr.mxu1 %v15330_v34 }
0x4dcd   :  { %v10935_v32 = vsel %vm70_vm0, %v10931_v46, 0.0  ;;  %v10930_v6 = vadd.f32 %v10926_v12, %v18487_v13  ;;  %16682 = vmatpush3.msra.mxu1 %v15330_v34 }
0x4dce   :  { %10936 = vadd.xlane.f32.xlu0 %v10935_v32  ;;  %16683 = vmatprep.subr.mxu1 %v15329_v8  ;;  %v15341_v32 = vld [vmem:[%s19530_s11 + $0x2] ss:$0 sm:$0xff] }
0x4dcf   :  { %v10932_v18 = vsel %vm70_vm0, %v10930_v6, 0.0  ;;  %16684 = vmatpush3.msra.mxu1 %v15329_v8 }
0x4dd0   :  { %10933 = vadd.xlane.f32.xlu1 %v10932_v18  ;;  %16685 = vmatprep.subr.mxu1 %v15328_v35 }
0x4dd1   :  { %16686 = vmatpush3.msra.mxu1 %v15328_v35 }
0x4dd2   :  { %16687 = vmatprep.subr.mxu1 %v15327_v52 }
0x4dd3   :  { %16688 = vmatpush3.msra.mxu1 %v15327_v52 }
0x4dd4   :  { %16689 = vmatprep.subr.mxu1 %v15326_v54 }
0x4dd5   :  { %16690 = vmatpush3.msra.mxu1 %v15326_v54 }
0x4dd6   :  { %16691 = vmatprep.subr.mxu1 %v15325_v55 }
0x4dd7   :  { %16692 = vmatpush3.msra.mxu1 %v15325_v55 }
0x4dd8   :  { %16693 = vmatprep.subr.mxu1 %v15324_v59 }
0x4dd9   :  { %16694 = vmatpush3.msra.mxu1 %v15324_v59 }
0x4dda   :  { %16734 = vmatprep.subr.mxu1 %v17304_v9 }
0x4e57   :  { %v10937_v27 = vpop.xlane.xlu0 %10936 }
0x4e58   :  { %v10939_v62 = vmul.f32 0.03125, %v10937_v27 }
0x4e59   :  { %v10934_v5 = vpop.xlane.xlu1 %10933 }
0x4e5a   :  { %v18887_v11 = vsub.f32 %v10931_v46, %v10939_v62  ;;  %v10938_v17 = vmul.f32 0.03125, %v10934_v5 }
0x4e5c   :  { %v18889_v19 = vsub.f32 %v10930_v6, %v10938_v17  ;;  %v10943_v16 = vmul.f32 %v18887_v11, %v18887_v11 }
0x4e5e   :  { %v10947_v63 = vsel %vm70_vm0, %v10943_v16, 0.0  ;;  %v10942_v13 = vmul.f32 %v18889_v19, %v18889_v19 }
0x4e5f   :  { %10948 = vadd.xlane.f32.xlu0 %v10947_v63 }
0x4e60   :  { %v10944_v15 = vsel %vm70_vm0, %v10942_v13, 0.0 }
0x4e61   :  { %10945 = vadd.xlane.f32.xlu1 %v10944_v15 }
0x4ee8   :  { %v10949_v36 = vpop.xlane.xlu0 %10948 }
0x4ee9   :  { %v10951_v45 = vmul.f32 0.03125, %v10949_v36 }
0x4eea   :  { %v10946_v30 = vpop.xlane.xlu1 %10945 }
0x4eeb   :  { %v10953_v37 = vadd.f32 1e-05, %v10951_v45  ;;  %v10950_v38 = vmul.f32 0.03125, %v10946_v30  ;;  %v11197_v45 = vrot.slane %v18948_v39, %v17965_v53 }
0x4eed   :  { %17194 = vrsqrt.f32 %v10953_v37  ;;  %v10952_v31 = vadd.f32 1e-05, %v10950_v38 }
0x4eef   :  { %17196 = vrsqrt.f32 %v10952_v31 }
0x4efa   :  { %v17195_v40 = vpop.eup %17194 }
0x4efb   :  { %v10957_v44 = vmul.f32 %v17195_v40, %v18887_v11  ;;  %v11203_v40 = vrot.slane %v18948_v39, %v17970_v57 }
0x4efc   :  { %v17197_v47 = vpop.eup %17196 }
0x4efd   :  { %v10956_v4 = vmul.f32 %v17197_v47, %v18889_v19  ;;  %v10963_v48 = vmul.f32 %v10961_v41, %v10957_v44 }
0x4eff   :  { %v10962_v42 = vmul.f32 %v10961_v41, %v10956_v4  ;;  %v10969_v51 = vadd.f32 %v10967_v49, %v10963_v48  ;;  %v15347_v4 = vld [vmem:[%s19524_s5 + $0x3] ss:$0 sm:$0xff] }
0x4f01   :  { %v10968_v50 = vadd.f32 %v10967_v49, %v10962_v42 }
0x4f03   :  { %16660 = vmatprep.mubr.msk.f32.mxu0 %vm70_vm0, %v10968_v50 }
0x4f04   :  { %16661 = vmatmul.mubr.msk.f32.vlgmr.msra.gmra.mxu0 %vm70_vm0, %v10969_v51 }
0x4f05   :  { %16699 = vmatpush3.msra.mxu0 %v15345_v56 }
0x4f06   :  { %16700 = vmatprep.subr.mxu0 %v15344_v10 }
0x4f07   :  { %16701 = vmatpush3.msra.mxu0 %v15344_v10 }
0x4f08   :  { %16702 = vmatprep.subr.mxu0 %v15343_v3 }
0x4f09   :  { %16703 = vmatpush3.msra.mxu0 %v15343_v3 }
0x4f0a   :  { %16704 = vmatprep.subr.mxu0 %v15342_v2 }
0x4f0b   :  { %16705 = vmatpush3.msra.mxu0 %v15342_v2 }
0x4f0c   :  { %16709 = vmatprep.subr.mxu0 %v17304_v9 }
0x4fc4   :  { %v16662_v61 = vpop.f32.mrf.mxu0 }
0x4fc5   :  { %v11061_v7 = vadd.f32 %v16662_v61, %v15321_v58 }
0x4fc6   :  { %v11055_v1 = vpop.f32.mrf.mxu0 }
0x4fc7   :  { %v11056_v21 = vadd.f32 %v15321_v58, %v11055_v1  ;;  %v11065_v46 = vmax.f32 %v11061_v7, 0.0 }
0x4fc9   :  { %v11064_v12 = vmax.f32 %v11056_v21, 0.0 }
0x4fcb   :  { %16695 = vmatprep.mubr.f32.mxu1 %v11064_v12 }
0x4fcc   :  { %16696 = vmatmul.mubr.f32.vlgmr.msra.gmra.mxu1 %v11065_v46 }
0x4fcd   :  { %16736 = vmatprep.mubr.msk.f32.mxu1 %vm17305_vm1, %v17304_v9 }
0x508c   :  { %v16697_v6 = vpop.f32.mrf.mxu1 }
0x508d   :  { %v11163_v18 = vadd.f32 %v16697_v6, %v15341_v32 }
0x508e   :  { %v11157_v27 = vpop.f32.mrf.mxu1 }
0x508f   :  { %v11167_v62 = vadd.f32 %v11163_v18, %v10969_v51  ;;  %v11158_v5 = vadd.f32 %v15341_v32, %v11157_v27 }
0x5091   :  { %v11166_v11 = vadd.f32 %v11158_v5, %v10968_v50  ;;  %v11171_v17 = vsel %vm70_vm0, %v11167_v62, 0.0 }
0x5092   :  { %11172 = vadd.xlane.f32.xlu0 %v11171_v17 }
0x5093   :  { %v11168_v19 = vsel %vm70_vm0, %v11166_v11, 0.0 }
0x5094   :  { %11169 = vadd.xlane.f32.xlu1 %v11168_v19 }
0x511b   :  { %v11173_v16 = vpop.xlane.xlu0 %11172 }
0x511c   :  { %v11175_v63 = vmul.f32 0.03125, %v11173_v16 }
0x511d   :  { %v11170_v13 = vpop.xlane.xlu1 %11169 }
0x511e   :  { %v11177_v15 = vsub.f32 %v11167_v62, %v11175_v63  ;;  %v11174_v20 = vmul.f32 0.03125, %v11170_v13 }
0x5120   :  { %v11176_v22 = vsub.f32 %v11166_v11, %v11174_v20  ;;  %v11179_v14 = vmul.f32 %v11177_v15, %v11177_v15 }
0x5122   :  { %v11183_v24 = vsel %vm70_vm0, %v11179_v14, 0.0  ;;  %v11178_v26 = vmul.f32 %v11176_v22, %v11176_v22 }
0x5123   :  { %11184 = vadd.xlane.f32.xlu0 %v11183_v24 }
0x5124   :  { %v11180_v43 = vsel %vm70_vm0, %v11178_v26, 0.0 }
0x5125   :  { %11181 = vadd.xlane.f32.xlu1 %v11180_v43 }
0x51ac   :  { %v11185_v60 = vpop.xlane.xlu0 %11184 }
0x51ad   :  { %v11187_v28 = vmul.f32 0.03125, %v11185_v60 }
0x51ae   :  { %v11182_v33 = vpop.xlane.xlu1 %11181 }
0x51af   :  { %v11189_v34 = vadd.f32 1e-05, %v11187_v28  ;;  %v11186_v8 = vmul.f32 0.03125, %v11182_v33 }
0x51b1   :  { %17198 = vrsqrt.f32 %v11189_v34  ;;  %v11188_v35 = vadd.f32 1e-05, %v11186_v8 }
0x51b3   :  { %17200 = vrsqrt.f32 %v11188_v35 }
0x51be   :  { %v17199_v36 = vpop.eup %17198 }
0x51bf   :  { %v11193_v30 = vmul.f32 %v17199_v36, %v11177_v15 }
0x51c0   :  { %v17201_v37 = vpop.eup %17200 }
0x51c1   :  { %v11192_v38 = vmul.f32 %v17201_v37, %v11176_v22  ;;  %v11199_v31 = vmul.f32 %v11197_v45, %v11193_v30 }
0x51c3   :  { %v11198_v41 = vmul.f32 %v11197_v45, %v11192_v38  ;;  %v19002_v47 = vadd.f32 %v11203_v40, %v11199_v31 }
0x51c5   :  { %v19000_v44 = vadd.f32 %v11203_v40, %v11198_v41 }
0x51c7   :  { %16706 = vmatprep.mubr.msk.f32.mxu0 %vm70_vm0, %v19000_v44 }
0x51c8   :  { %16707 = vmatmul.mubr.msk.f32.vlgmr.msra.gmra.mxu0 %vm70_vm0, %v19002_v47 }
0x51c9   :  { %16711 = vmatprep.mubr.msk.f32.mxu0 %vm17305_vm1, %v17304_v9 }
0x5288   :  { %v16708_v48 = vpop.f32.mrf.mxu0 }
0x5289   :  { %v19013_v39 = vadd.f32 %v16708_v48, %v15347_v4 }
0x528a   :  { %v11291_v49 = vpop.f32.mrf.mxu0 }
0x528b   :  { %v19015_v42 = vadd.f32 %v15347_v4, %v11291_v49  ;;  %11386 = vrot.lane.b32.xlu0 %v19013_v39, %s19606_s22  ;;  %v19032_v54 = vmul.f32 0.5, %v19013_v39 }
0x528d   :  { %11308 = vrot.lane.b32.xlu1 %v19015_v42, %s19606_s22  ;;  %v19023_v51 = vmul.f32 0.5, %v19015_v42 }
0x52fd   :  { %v11387_v52 = vpop.permute.xlu0 %11386 }
0x52ff   :  { %v11309_v50 = vpop.permute.xlu1 %11308 }
0x5300   :  { %16710 = vmatpush3.xpose.msk.msra.mxu0 %vm173_vm2, %v11309_v50 }
0x5301   :  { %16714 = vmatprep.subr.mxu0 %v17304_v9 }
0x5303   :  { %16712 = vmatmul.mubr.msk.f32.vlgmr.msra.gmra.mxu0 %vm173_vm2, %v19023_v51 }
0x5304   :  { %16715 = vmatpush3.xpose.msk.msra.mxu0 %vm173_vm2, %v11387_v52  ;;  %16716 = vmatprep.mubr.msk.f32.mxu0 %vm17305_vm1, %v17304_v9 }
0x5305   :  { %16719 = vmatprep.subr.mxu0 %v17304_v9 }
0x5307   :  { %16717 = vmatmul.mubr.msk.f32.vlgmr.msra.gmra.mxu0 %vm173_vm2, %v19032_v54 }
0x5308   :  { %16721 = vmatprep.mubr.msk.f32.mxu0 %vm17305_vm1, %v17304_v9 }
0x53c3   :  { %v11381_v55 = vpop.f32.mrf.mxu0 }
0x53c4   :  { %v11382_v59 = vadd.f32 %v11381_v55, %v17485_v25 }
0x53c5   :  { %v16713_v58 = vpop.f32.mrf.mxu0 }
0x53c6   :  { %v11463_v61 = vsel %vm327_vm5, %v11382_v59, -inf  ;;  %v15350_v58 = vld [vmem:[%s19525_s6 + $0x60] sm:$0xff] }
0x53c7   :  { %11464 = vmax.xlane.f32.xlu1 %v11463_v61  ;;  %v11459_v7 = vpop.f32.mrf.mxu0  ;;  %v11968_v61 = vrot.slane %v15350_v58, 4 }
0x53c8   :  { %v11460_v1 = vadd.f32 %v11459_v7, %v17490_v29 }
0x53c9   :  { %v16718_v21 = vpop.f32.mrf.mxu0 }
0x53ca   :  { %v11466_v12 = vsel %vm327_vm5, %v11460_v1, -inf }
0x53cb   :  { %11467 = vmax.xlane.f32.xlu0 %v11466_v12 }
0x53d8   :  { %11485 = vrot.lane.b32.xlu1 %v19015_v42, %s19607_s23 }
0x5450   :  { %v11465_v46 = vpop.xlane.xlu1 %11464 }
0x5451   :  { %v11469_v32 = vsub.f32 %v11382_v59, %v11465_v46 }
0x5453   :  { %v11471_v6 = vmul.f32 1.442695, %v11469_v32 }
0x5454   :  { %v11486_v18 = vpop.permute.xlu1 %11485  ;;  %v11468_v27 = vpop.xlane.xlu0 %11467 }
0x5455   :  { %17202 = vpow2.f32 %v11471_v6  ;;  %v11470_v62 = vsub.f32 %v11460_v1, %v11468_v27  ;;  %16720 = vmatpush3.msra.mxu0 %v11486_v18 }
0x5456   :  { %16724 = vmatprep.subr.mxu0 %v17304_v9 }
0x5457   :  { %v11473_v5 = vmul.f32 1.442695, %v11470_v62 }
0x5459   :  { %17204 = vpow2.f32 %v11473_v5 }
0x5462   :  { %v17203_v11 = vpop.eup %17202 }
0x5463   :  { %v11475_v17 = vsel %vm327_vm5, %v17203_v11, 0.0 }
0x5464   :  { %11476 = vadd.xlane.f32.xlu1 %v11475_v17 }
0x5466   :  { %v17205_v19 = vpop.eup %17204 }
0x5467   :  { %v11478_v16 = vsel %vm327_vm5, %v17205_v19, 0.0 }
0x5468   :  { %11479 = vadd.xlane.f32.xlu0 %v11478_v16 }
0x5475   :  { %11639 = vrot.lane.b32.xlu1 %v19015_v42, %s19608_s17 }
0x5479   :  { %11717 = vrot.lane.b32.xlu1 %v19013_v39, %s19608_s17  ;;  %s19618_s17 = smov 116  }
0x547d   :  { %11715 = vrot.lane.b32.xlu1 %v19032_v54, %s19609_s18 }
0x547e   :  { %11561 = vrot.lane.b32.xlu0 %v19013_v39, %s19607_s23  ;;  %s19617_s23 = smov 84  }
0x5482   :  { %11637 = vrot.lane.b32.xlu0 %v19023_v51, %s19609_s18 }
0x54ed   :  { %v11477_v63 = vpop.xlane.xlu1 %11476 }
0x54ee   :  { %17206 = vrcp.f32 %v11477_v63 }
0x54f1   :  { %v11640_v13 = vpop.permute.xlu1 %11639  ;;  %v11480_v15 = vpop.xlane.xlu0 %11479 }
0x54f2   :  { %17208 = vrcp.f32 %v11480_v15 }
0x54f5   :  { %v11718_v20 = vpop.permute.xlu1 %11717  ;;  %v11562_v26 = vpop.permute.xlu0 %11561 }
0x54f6   :  { %16735 = vmatpush3.xpose.msk.msra.mxu1 %vm173_vm2, %v11718_v20 }
0x54f7   :  { %16744 = vmatprep.subr.mxu1 %v17304_v9 }
0x54f9   :  { %v11716_v22 = vpop.permute.xlu1 %11715  ;;  %v11638_v10 = vpop.permute.xlu0 %11637 }
0x54fa   :  { %16737 = vmatmul.mubr.msk.f32.vlgmr.msra.gmra.mxu1 %vm173_vm2, %v11716_v22 }
0x54fb   :  { %v17207_v14 = vpop.eup %17206  ;;  %16746 = vmatprep.mubr.msk.f32.mxu1 %vm17305_vm1, %v17304_v9 }
0x54fc   :  { %v11482_v24 = vmul.f32 %v17207_v14, %v17203_v11 }
0x54fe   :  { %16722 = vmatmul.mubr.msk.f32.vlgmr.msra.gmra.mxu0 %vm327_vm5, %v11482_v24 }
0x54ff   :  { %v17209_v43 = vpop.eup %17208  ;;  %16725 = vmatpush3.msra.mxu0 %v11562_v26  ;;  %16726 = vmatprep.mubr.msk.f32.mxu0 %vm17305_vm1, %v17304_v9 }
0x5500   :  { %v11484_v56 = vmul.f32 %v17209_v43, %v17205_v19  ;;  %16729 = vmatprep.subr.mxu0 %v17304_v9 }
0x5502   :  { %16727 = vmatmul.mubr.msk.f32.vlgmr.msra.gmra.mxu0 %vm327_vm5, %v11484_v56 }
0x5503   :  { %16730 = vmatpush3.xpose.msk.msra.mxu0 %vm173_vm2, %v11640_v13  ;;  %16731 = vmatprep.mubr.msk.f32.mxu0 %vm17305_vm1, %v17304_v9 }
0x5504   :  { %16739 = vmatprep.subr.mxu0 %v17304_v9 }
0x5506   :  { %16732 = vmatmul.mubr.msk.f32.vlgmr.msra.gmra.mxu0 %vm173_vm2, %v11638_v10 }
0x5507   :  { %16741 = vmatprep.mubr.msk.f32.mxu0 %vm17305_vm1, %v17304_v9 }
0x55ba   :  { %v11789_v3 = vpop.f32.mrf.mxu1 }
0x55bb   :  { %v11790_v2 = vadd.f32 %v11789_v3, %v17490_v29 }
0x55bc   :  { %v16738_v60 = vpop.f32.mrf.mxu1 }
0x55bd   :  { %v11796_v28 = vsel %vm327_vm5, %v11790_v2, -inf }
0x55be   :  { %11797 = vmax.xlane.f32.xlu1 %v11796_v28  ;;  %v11557_v33 = vpop.f32.mrf.mxu0 }
0x55c0   :  { %v16723_v34 = vpop.f32.mrf.mxu0 }
0x55c2   :  { %v11633_v8 = vpop.f32.mrf.mxu0 }
0x55c4   :  { %v16728_v35 = vpop.f32.mrf.mxu0 }
0x55c6   :  { %v11711_v36 = vpop.f32.mrf.mxu0 }
0x55c7   :  { %v11712_v45 = vadd.f32 %v11711_v36, %v17485_v25 }
0x55c8   :  { %v16733_v30 = vpop.f32.mrf.mxu0 }
0x55c9   :  { %v11793_v37 = vsel %vm327_vm5, %v11712_v45, -inf }
0x55ca   :  { %11794 = vmax.xlane.f32.xlu0 %v11793_v37 }
0x55cf   :  { %11815 = vrot.lane.b32.xlu1 %v19015_v42, %s19610_s1 }
0x55d3   :  { %12137 = vrot.lane.b32.xlu1 %v19015_v42, %s19611_s16 }
0x55d7   :  { %12215 = vrot.lane.b32.xlu1 %v19013_v39, %s19611_s16 }
0x55db   :  { %12213 = vrot.lane.b32.xlu1 %v19032_v54, %s19612_s14 }
0x5647   :  { %v11798_v38 = vpop.xlane.xlu1 %11797 }
0x5648   :  { %v11800_v31 = vsub.f32 %v11790_v2, %v11798_v38 }
0x564a   :  { %v11803_v40 = vmul.f32 1.442695, %v11800_v31 }
0x564b   :  { %v11816_v41 = vpop.permute.xlu1 %11815 }
0x564c   :  { %17210 = vpow2.f32 %v11803_v40  ;;  %16740 = vmatpush3.msra.mxu0 %v11816_v41 }
0x564d   :  { %16749 = vmatprep.subr.msk.mxu0 %vm840_vm6, %v11968_v61 }
0x564f   :  { %v12138_v21 = vpop.permute.xlu1 %12137 }
0x5653   :  { %v11795_v4 = vpop.xlane.xlu0 %11794  ;;  %v12216_v6 = vpop.permute.xlu1 %12215 }
0x5654   :  { %v11799_v48 = vsub.f32 %v11712_v45, %v11795_v4 }
0x5656   :  { %v11801_v49 = vmul.f32 1.442695, %v11799_v48 }
0x5657   :  { %v12214_v18 = vpop.permute.xlu1 %12213 }
0x5658   :  { %17212 = vpow2.f32 %v11801_v49 }
0x5659   :  { %v17211_v50 = vpop.eup %17210 }
0x565a   :  { %v11808_v52 = vsel %vm327_vm5, %v17211_v50, 0.0 }
0x565b   :  { %11809 = vadd.xlane.f32.xlu0 %v11808_v52 }
0x5665   :  { %v17213_v55 = vpop.eup %17212 }
0x5666   :  { %v11805_v59 = vsel %vm327_vm5, %v17213_v55, 0.0 }
0x5667   :  { %11806 = vadd.xlane.f32.xlu0 %v11805_v59 }
0x567d   :  { %11891 = vrot.lane.b32.xlu0 %v19013_v39, %s19610_s1 }
0x5681   :  { %12135 = vrot.lane.b32.xlu0 %v19023_v51, %s19612_s14 }
0x56e4   :  { %v11810_v7 = vpop.xlane.xlu0 %11809 }
0x56e5   :  { %17214 = vrcp.f32 %v11810_v7 }
0x56f0   :  { %v11807_v1 = vpop.xlane.xlu0 %11806 }
0x56f1   :  { %17216 = vrcp.f32 %v11807_v1 }
0x56f2   :  { %v17215_v12 = vpop.eup %17214 }
0x56f3   :  { %v11814_v46 = vmul.f32 %v17215_v12, %v17211_v50 }
0x56f4   :  { %v11892_v32 = vpop.permute.xlu0 %11891 }
0x56f5   :  { %16745 = vmatpush3.msra.mxu1 %v11892_v32 }
0x56f6   :  { %16747 = vmatmul.mubr.msk.f32.vlgmr.msra.gmra.mxu1 %vm327_vm5, %v11814_v46  ;;  %16754 = vmatprep.subr.msk.mxu1 %vm840_vm6, %v15350_v58 }
0x56f7   :  { %16756 = vmatprep.mubr.msk.f32.mxu1 %vm173_vm2, %v11557_v33  ;;  %16755 = vmatpush3.msk.msra.mxu1 %vm840_vm6, %v15350_v58 }
0x56f8   :  { %16764 = vmatprep.subr.mxu1 %v17304_v9  ;;  %v12136_v14 = vpop.permute.xlu0 %12135 }
0x56fa   :  { %16757 = vmatmul.mubr.msk.f32.vlgmr.msra.gmra.mxu1 %vm173_vm2, %v11633_v8 }
0x56fb   :  { %16765 = vmatpush3.xpose.msk.msra.mxu1 %vm173_vm2, %v12216_v6  ;;  %16766 = vmatprep.mubr.msk.f32.mxu1 %vm17305_vm1, %v17304_v9 }
0x56fc   :  { %16774 = vmatprep.subr.mxu1 %v17304_v9 }
0x56fe   :  { %v17217_v27 = vpop.eup %17216  ;;  %16767 = vmatmul.mubr.msk.f32.vlgmr.msra.gmra.mxu1 %vm173_vm2, %v12214_v18 }
0x56ff   :  { %v11812_v62 = vmul.f32 %v17217_v27, %v17213_v55  ;;  %16776 = vmatprep.mubr.msk.f32.mxu1 %vm17305_vm1, %v17304_v9  ;;  %v15351_v55 = vld [vmem:[%s19525_s6 + $0x68] sm:$0xff] }
0x5701   :  { %16742 = vmatmul.mubr.msk.f32.vlgmr.msra.gmra.mxu0 %vm327_vm5, %v11812_v62 }
0x5702   :  { %16750 = vmatpush3.msk.msra.mxu0 %vm840_vm6, %v11968_v61 }
0x5703   :  { %16759 = vmatprep.subr.mxu0 %v17304_v9 }
0x57b6   :  { %v11963_v5 = vpop.f32.mrf.mxu1 }
0x57b8   :  { %v16748_v11 = vpop.f32.mrf.mxu1 }
0x57ba   :  { %v19113_v17 = vpop.f32.mrf.mxu1 }
0x57bc   :  { %v19115_v19 = vpop.f32.mrf.mxu1 }
0x57be   :  { %v12287_v16 = vpop.f32.mrf.mxu1 }
0x57bf   :  { %v12288_v63 = vadd.f32 %v12287_v16, %v17490_v29 }
0x57c0   :  { %v16768_v13 = vpop.f32.mrf.mxu1 }
0x57c1   :  { %v11887_v15 = vpop.f32.mrf.mxu0  ;;  %v12294_v20 = vsel %vm327_vm5, %v12288_v63, -inf }
0x57c2   :  { %12295 = vmax.xlane.f32.xlu1 %v12294_v20  ;;  %16751 = vmatprep.mubr.msk.f32.mxu0 %vm173_vm2, %v11887_v15 }
0x57c3   :  { %v16743_v22 = vpop.f32.mrf.mxu0  ;;  %16752 = vmatmul.mubr.msk.f32.vlgmr.msra.gmra.mxu0 %vm173_vm2, %v11963_v5 }
0x57c4   :  { %16760 = vmatpush3.xpose.msk.msra.mxu0 %vm173_vm2, %v12138_v21  ;;  %16761 = vmatprep.mubr.msk.f32.mxu0 %vm17305_vm1, %v17304_v9 }
0x57c5   :  { %16769 = vmatprep.subr.mxu0 %v17304_v9 }
0x57c7   :  { %16762 = vmatmul.mubr.msk.f32.vlgmr.msra.gmra.mxu0 %vm173_vm2, %v12136_v14 }
0x57c8   :  { %16771 = vmatprep.mubr.msk.f32.mxu0 %vm17305_vm1, %v17304_v9 }
0x57d3   :  { %12313 = vrot.lane.b32.xlu1 %v19015_v42, %s19613_s13 }
0x57d7   :  { %12553 = vrot.lane.b32.xlu1 %v19015_v42, %s19617_s23 }
0x57db   :  { %12631 = vrot.lane.b32.xlu1 %v19013_v39, %s19617_s23 }
0x57df   :  { %12629 = vrot.lane.b32.xlu1 %v19032_v54, %s19618_s17 }
0x584b   :  { %v12296_v24 = vpop.xlane.xlu1 %12295 }
0x584c   :  { %v12298_v43 = vsub.f32 %v12288_v63, %v12296_v24 }
0x584e   :  { %v12301_v56 = vmul.f32 1.442695, %v12298_v43 }
0x584f   :  { %v12314_v26 = vpop.permute.xlu1 %12313 }
0x5850   :  { %16770 = vmatpush3.msra.mxu0 %v12314_v26  ;;  %17218 = vpow2.f32 %v12301_v56 }
0x5851   :  { %16779 = vmatprep.subr.msk.mxu0 %vm840_vm6, %v15351_v55 }
0x5853   :  { %v12554_v48 = vpop.permute.xlu1 %12553 }
0x5857   :  { %v12632_v12 = vpop.permute.xlu1 %12631 }
0x585b   :  { %v12630_v6 = vpop.permute.xlu1 %12629 }
0x585d   :  { %v17219_v34 = vpop.eup %17218 }
0x585e   :  { %v12306_v8 = vsel %vm327_vm5, %v17219_v34, 0.0 }
0x5883   :  { %v19136_v10 = vpop.f32.mrf.mxu0 }
0x5884   :  { %v12132_v16 = vadd.f32 %v19113_v17, %v19136_v10 }
0x5885   :  { %v19138_v3 = vpop.f32.mrf.mxu0 }
0x5886   :  { %v12127_v13 = vadd.f32 %v19115_v19, %v19138_v3  ;;  %v12881_v3 = vrot.slane %v15351_v55, 4 }
0x5887   :  { %v12209_v2 = vpop.f32.mrf.mxu0 }
0x5888   :  { %v12210_v60 = vadd.f32 %v12209_v2, %v17485_v25 }
0x5889   :  { %v16763_v28 = vpop.f32.mrf.mxu0 }
0x588a   :  { %v12291_v33 = vsel %vm327_vm5, %v12210_v60, -inf }
0x588b   :  { %12292 = vmax.xlane.f32.xlu0 %v12291_v33 }
0x588f   :  { %12307 = vadd.xlane.f32.xlu0 %v12306_v8 }
0x5914   :  { %v12293_v35 = vpop.xlane.xlu0 %12292 }
0x5915   :  { %v12297_v36 = vsub.f32 %v12210_v60, %v12293_v35 }
0x5917   :  { %v12299_v45 = vmul.f32 1.442695, %v12297_v36 }
0x5918   :  { %v12308_v38 = vpop.xlane.xlu0 %12307 }
0x5919   :  { %17220 = vpow2.f32 %v12299_v45 }
0x591a   :  { %17222 = vrcp.f32 %v12308_v38 }
0x5926   :  { %v17221_v30 = vpop.eup %17220 }
0x5927   :  { %v12303_v37 = vsel %vm327_vm5, %v17221_v30, 0.0  ;;  %v17223_v40 = vpop.eup %17222 }
0x5928   :  { %12304 = vadd.xlane.f32.xlu0 %v12303_v37  ;;  %v12312_v41 = vmul.f32 %v17223_v40, %v17219_v34 }
0x593e   :  { %12389 = vrot.lane.b32.xlu0 %v19013_v39, %s19613_s13  ;;  %s19627_s13 = sld [smem:[#allocation7_spill]] }
0x5942   :  { %12551 = vrot.lane.b32.xlu0 %v19023_v51, %s19618_s17 }
0x59b1   :  { %v12305_v31 = vpop.xlane.xlu0 %12304 }
0x59b2   :  { %17224 = vrcp.f32 %v12305_v31 }
0x59b5   :  { %v12390_v4 = vpop.permute.xlu0 %12389 }
0x59b6   :  { %16775 = vmatpush3.msra.mxu1 %v12390_v4 }
0x59b7   :  { %16777 = vmatmul.mubr.msk.f32.vlgmr.msra.gmra.mxu1 %vm327_vm5, %v12312_v41  ;;  %16784 = vmatprep.subr.mxu1 %v17304_v9 }
0x59b8   :  { %16785 = vmatpush3.xpose.msk.msra.mxu1 %vm173_vm2, %v12554_v48  ;;  %16786 = vmatprep.mubr.msk.f32.mxu1 %vm17305_vm1, %v17304_v9 }
0x59b9   :  { %v12552_v49 = vpop.permute.xlu0 %12551  ;;  %16794 = vmatprep.subr.mxu1 %v17304_v9 }
0x59bb   :  { %16787 = vmatmul.mubr.msk.f32.vlgmr.msra.gmra.mxu1 %vm173_vm2, %v12552_v49 }
0x59bc   :  { %16796 = vmatprep.mubr.msk.f32.mxu1 %vm17305_vm1, %v17304_v9 }
0x59bf   :  { %v17225_v50 = vpop.eup %17224 }
0x59c0   :  { %v12310_v52 = vmul.f32 %v17225_v50, %v17221_v30 }
0x59c2   :  { %16772 = vmatmul.mubr.msk.f32.vlgmr.msra.gmra.mxu0 %vm327_vm5, %v12310_v52 }
0x59c3   :  { %16780 = vmatpush3.msk.msra.mxu0 %vm840_vm6, %v15351_v55 }
0x59c4   :  { %16789 = vmatprep.subr.mxu0 %v17304_v9 }
0x5a77   :  { %v12461_v59 = vpop.f32.mrf.mxu1 }
0x5a79   :  { %v16778_v58 = vpop.f32.mrf.mxu1 }
0x5a7b   :  { %v12625_v61 = vpop.f32.mrf.mxu1 }
0x5a7c   :  { %v12626_v7 = vadd.f32 %v12625_v61, %v17485_v25 }
0x5a7d   :  { %v16788_v1 = vpop.f32.mrf.mxu1 }
0x5a7e   :  { %v12707_v21 = vsel %vm327_vm5, %v12626_v7, -inf }
0x5a7f   :  { %12708 = vmax.xlane.f32.xlu0 %v12707_v21 }
0x5a82   :  { %v12385_v46 = vpop.f32.mrf.mxu0 }
0x5a83   :  { %16781 = vmatprep.mubr.msk.f32.mxu0 %vm173_vm2, %v12385_v46 }
0x5a84   :  { %v16773_v32 = vpop.f32.mrf.mxu0  ;;  %16782 = vmatmul.mubr.msk.f32.vlgmr.msra.gmra.mxu0 %vm173_vm2, %v12461_v59 }
0x5a85   :  { %16790 = vmatpush3.xpose.msk.msra.mxu0 %vm173_vm2, %v12632_v12  ;;  %16791 = vmatprep.mubr.msk.f32.mxu0 %vm17305_vm1, %v17304_v9 }
0x5a86   :  { %16799 = vmatprep.subr.mxu0 %v17304_v9 }
0x5a88   :  { %16792 = vmatmul.mubr.msk.f32.vlgmr.msra.gmra.mxu0 %vm173_vm2, %v12630_v6 }
0x5a89   :  { %16801 = vmatprep.mubr.msk.f32.mxu0 %vm17305_vm1, %v17304_v9 }
0x5b08   :  { %v12709_v18 = vpop.xlane.xlu0 %12708 }
0x5b09   :  { %v12713_v27 = vsub.f32 %v12626_v7, %v12709_v18 }
0x5b0b   :  { %v12715_v62 = vmul.f32 1.442695, %v12713_v27 }
0x5b0d   :  { %17226 = vpow2.f32 %v12715_v62 }
0x5b1a   :  { %v17227_v5 = vpop.eup %17226 }
0x5b1b   :  { %v12719_v11 = vsel %vm327_vm5, %v17227_v5, 0.0 }
0x5b1c   :  { %12720 = vadd.xlane.f32.xlu0 %v12719_v11 }
0x5b44   :  { %v16783_v63 = vpop.f32.mrf.mxu0 }
0x5b45   :  { %v19180_v15 = vadd.f32 %v16783_v63, %v12132_v16 }
0x5b46   :  { %v12540_v20 = vpop.f32.mrf.mxu0 }
0x5b47   :  { %v19182_v22 = vadd.f32 %v12540_v20, %v12127_v13 }
0x5b48   :  { %v12703_v14 = vpop.f32.mrf.mxu0 }
0x5b49   :  { %v12704_v24 = vadd.f32 %v12703_v14, %v17490_v29 }
0x5b4a   :  { %v16793_v26 = vpop.f32.mrf.mxu0 }
0x5b4b   :  { %v12710_v43 = vsel %vm327_vm5, %v12704_v24, -inf }
0x5b4c   :  { %12711 = vmax.xlane.f32.xlu1 %v12710_v43 }
0x5b5d   :  { %12729 = vrot.lane.b32.xlu1 %v19015_v42, %s19616_s2 }
0x5b61   :  { %12969 = vrot.lane.b32.xlu1 %v19015_v42, %s19594_s30 }
0x5b65   :  { %13047 = vrot.lane.b32.xlu1 %v19013_v39, %s19594_s30  ;;  %s19619_s30 = smov 76  }
0x5b69   :  { %13045 = vrot.lane.b32.xlu1 %v19032_v54, %s19595_s15 }
0x5ba5   :  { %v12721_v17 = vpop.xlane.xlu0 %12720 }
0x5ba6   :  { %17228 = vrcp.f32 %v12721_v17 }
0x5bb3   :  { %v17229_v56 = vpop.eup %17228 }
0x5bb4   :  { %v12726_v60 = vmul.f32 %v17229_v56, %v17227_v5 }
0x5bd5   :  { %v12712_v19 = vpop.xlane.xlu1 %12711 }
0x5bd6   :  { %v12714_v10 = vsub.f32 %v12704_v24, %v12712_v19  ;;  %v19249_v24 = vld [vmem:[%s19525_s6 + $0x70] sm:$0xff] }
0x5bd8   :  { %v12717_v2 = vmul.f32 1.442695, %v12714_v10 }
0x5bd9   :  { %v12730_v28 = vpop.permute.xlu1 %12729 }
0x5bda   :  { %17230 = vpow2.f32 %v12717_v2  ;;  %16795 = vmatpush3.msra.mxu1 %v12730_v28 }
0x5bdb   :  { %16797 = vmatmul.mubr.msk.f32.vlgmr.msra.gmra.mxu1 %vm327_vm5, %v12726_v60  ;;  %16804 = vmatprep.subr.msk.mxu1 %vm840_vm6, %v12881_v3 }
0x5bdc   :  { %16805 = vmatpush3.msk.msra.mxu1 %vm840_vm6, %v12881_v3 }
0x5bdd   :  { %16814 = vmatprep.subr.mxu1 %v17304_v9  ;;  %v12970_v30 = vpop.permute.xlu1 %12969 }
0x5be1   :  { %v13048_v40 = vpop.permute.xlu1 %13047 }
0x5be5   :  { %v13046_v48 = vpop.permute.xlu1 %13045 }
0x5be7   :  { %v17231_v33 = vpop.eup %17230 }
0x5be8   :  { %v12722_v34 = vsel %vm327_vm5, %v17231_v33, 0.0 }
0x5be9   :  { %12723 = vadd.xlane.f32.xlu0 %v12722_v34 }
0x5bff   :  { %12805 = vrot.lane.b32.xlu0 %v19013_v39, %s19616_s2 }
0x5c03   :  { %12967 = vrot.lane.b32.xlu0 %v19023_v51, %s19595_s15 }
0x5c72   :  { %v12724_v8 = vpop.xlane.xlu0 %12723 }
0x5c73   :  { %17232 = vrcp.f32 %v12724_v8 }
0x5c76   :  { %v12806_v35 = vpop.permute.xlu0 %12805 }
0x5c77   :  { %16800 = vmatpush3.msra.mxu0 %v12806_v35 }
0x5c78   :  { %16809 = vmatprep.subr.mxu0 %v17304_v9 }
0x5c7a   :  { %v12968_v37 = vpop.permute.xlu0 %12967 }
0x5c80   :  { %v17233_v36 = vpop.eup %17232 }
0x5c81   :  { %v12728_v45 = vmul.f32 %v17233_v36, %v17231_v33 }
0x5c83   :  { %16802 = vmatmul.mubr.msk.f32.vlgmr.msra.gmra.mxu0 %vm327_vm5, %v12728_v45 }
0x5c84   :  { %16810 = vmatpush3.xpose.msk.msra.mxu0 %vm173_vm2, %v12970_v30  ;;  %16811 = vmatprep.mubr.msk.f32.mxu0 %vm17305_vm1, %v17304_v9 }
0x5c85   :  { %16819 = vmatprep.subr.mxu0 %v17304_v9 }
0x5c87   :  { %16812 = vmatmul.mubr.msk.f32.vlgmr.msra.gmra.mxu0 %vm173_vm2, %v12968_v37 }
0x5c88   :  { %16821 = vmatprep.mubr.msk.f32.mxu0 %vm17305_vm1, %v17304_v9 }
0x5c9b   :  { %v12801_v38 = vpop.f32.mrf.mxu1 }
0x5c9c   :  { %16806 = vmatprep.mubr.msk.f32.mxu1 %vm173_vm2, %v12801_v38 }
0x5c9d   :  { %v16798_v31 = vpop.f32.mrf.mxu1 }
0x5d43   :  { %v12877_v41 = vpop.f32.mrf.mxu0 }
0x5d44   :  { %16807 = vmatmul.mubr.msk.f32.vlgmr.msra.gmra.mxu1 %vm173_vm2, %v12877_v41 }
0x5d45   :  { %16815 = vmatpush3.xpose.msk.msra.mxu1 %vm173_vm2, %v13048_v40  ;;  %v16803_v4 = vpop.f32.mrf.mxu0  ;;  %16816 = vmatprep.mubr.msk.f32.mxu1 %vm17305_vm1, %v17304_v9 }
0x5d46   :  { %16824 = vmatprep.subr.mxu1 %v17304_v9 }
0x5d47   :  { %v13041_v49 = vpop.f32.mrf.mxu0 }
0x5d48   :  { %v13042_v50 = vadd.f32 %v13041_v49, %v17485_v25  ;;  %16817 = vmatmul.mubr.msk.f32.vlgmr.msra.gmra.mxu1 %vm173_vm2, %v13046_v48 }
0x5d49   :  { %v16813_v52 = vpop.f32.mrf.mxu0  ;;  %16826 = vmatprep.mubr.msk.f32.mxu1 %vm17305_vm1, %v17304_v9 }
0x5d4a   :  { %v13123_v55 = vsel %vm327_vm5, %v13042_v50, -inf }
0x5d4b   :  { %13124 = vmax.xlane.f32.xlu0 %v13123_v55 }
0x5dd4   :  { %v13125_v59 = vpop.xlane.xlu0 %13124 }
0x5dd5   :  { %v13129_v58 = vsub.f32 %v13042_v50, %v13125_v59 }
0x5dd7   :  { %v13131_v61 = vmul.f32 1.442695, %v13129_v58 }
0x5dd9   :  { %17234 = vpow2.f32 %v13131_v61 }
0x5de6   :  { %v17235_v7 = vpop.eup %17234 }
0x5de7   :  { %v13135_v1 = vsel %vm327_vm5, %v17235_v7, 0.0 }
0x5de8   :  { %13136 = vadd.xlane.f32.xlu0 %v13135_v1 }
0x5e04   :  { %v16808_v21 = vpop.f32.mrf.mxu1 }
0x5e05   :  { %v19225_v12 = vadd.f32 %v16808_v21, %v19180_v15  ;;  %v13713_v21 = vrot.slane %v19249_v24, 4 }
0x5e06   :  { %v12956_v46 = vpop.f32.mrf.mxu1 }
0x5e07   :  { %v19228_v32 = vadd.f32 %v12956_v46, %v19182_v22 }
0x5e08   :  { %v13119_v6 = vpop.f32.mrf.mxu1 }
0x5e09   :  { %v13120_v18 = vadd.f32 %v13119_v6, %v17490_v29 }
0x5e0a   :  { %v16818_v27 = vpop.f32.mrf.mxu1 }
0x5e0b   :  { %v13126_v62 = vsel %vm327_vm5, %v13120_v18, -inf }
0x5e0c   :  { %13127 = vmax.xlane.f32.xlu1 %v13126_v62 }
0x5e1d   :  { %13145 = vrot.lane.b32.xlu1 %v19015_v42, %s19596_s28 }
0x5e21   :  { %13385 = vrot.lane.b32.xlu1 %v19015_v42, %s19619_s30 }
0x5e25   :  { %13463 = vrot.lane.b32.xlu1 %v19013_v39, %s19619_s30 }
0x5e29   :  { %13461 = vrot.lane.b32.xlu1 %v19032_v54, %s19598_s20 }
0x5e71   :  { %v13137_v5 = vpop.xlane.xlu0 %13136 }
0x5e72   :  { %17236 = vrcp.f32 %v13137_v5 }
0x5e7f   :  { %v17237_v16 = vpop.eup %17236 }
0x5e80   :  { %v13142_v15 = vmul.f32 %v17237_v16, %v17235_v7 }
0x5e95   :  { %v13128_v11 = vpop.xlane.xlu1 %13127 }
0x5e96   :  { %v13130_v63 = vsub.f32 %v13120_v18, %v13128_v11 }
0x5e98   :  { %v13133_v13 = vmul.f32 1.442695, %v13130_v63 }
0x5e99   :  { %v13146_v20 = vpop.permute.xlu1 %13145 }
0x5e9a   :  { %17238 = vpow2.f32 %v13133_v13  ;;  %16820 = vmatpush3.msra.mxu0 %v13146_v20 }
0x5e9b   :  { %16822 = vmatmul.mubr.msk.f32.vlgmr.msra.gmra.mxu0 %vm327_vm5, %v13142_v15  ;;  %16829 = vmatprep.subr.msk.mxu0 %vm840_vm6, %v19249_v24 }
0x5e9c   :  { %16830 = vmatpush3.msk.msra.mxu0 %vm840_vm6, %v19249_v24 }
0x5e9d   :  { %16839 = vmatprep.subr.mxu0 %v17304_v9  ;;  %v13386_v56 = vpop.permute.xlu1 %13385 }
0x5ea1   :  { %v13464_v60 = vpop.permute.xlu1 %13463 }
0x5ea5   :  { %v13462_v34 = vpop.permute.xlu1 %13461 }
0x5ea7   :  { %v17239_v22 = vpop.eup %17238 }
0x5ea8   :  { %v13138_v14 = vsel %vm327_vm5, %v17239_v22, 0.0 }
0x5ea9   :  { %13139 = vadd.xlane.f32.xlu0 %v13138_v14 }
0x5ebf   :  { %13221 = vrot.lane.b32.xlu0 %v19013_v39, %s19596_s28  ;;  %s19620_s28 = smov 104  }
0x5ec3   :  { %13383 = vrot.lane.b32.xlu0 %v19023_v51, %s19598_s20  ;;  %s19621_s20 = smov 40  }
0x5f32   :  { %v13140_v26 = vpop.xlane.xlu0 %13139 }
0x5f33   :  { %17240 = vrcp.f32 %v13140_v26 }
0x5f36   :  { %v13222_v43 = vpop.permute.xlu0 %13221 }
0x5f37   :  { %16825 = vmatpush3.msra.mxu1 %v13222_v43 }
0x5f38   :  { %16834 = vmatprep.subr.mxu1 %v17304_v9 }
0x5f3a   :  { %v13384_v10 = vpop.permute.xlu0 %13383 }
0x5f40   :  { %v17241_v17 = vpop.eup %17240 }
0x5f41   :  { %v13144_v19 = vmul.f32 %v17241_v17, %v17239_v22 }
0x5f43   :  { %16827 = vmatmul.mubr.msk.f32.vlgmr.msra.gmra.mxu1 %vm327_vm5, %v13144_v19 }
0x5f44   :  { %16835 = vmatpush3.xpose.msk.msra.mxu1 %vm173_vm2, %v13386_v56  ;;  %16836 = vmatprep.mubr.msk.f32.mxu1 %vm17305_vm1, %v17304_v9 }
0x5f45   :  { %16844 = vmatprep.subr.mxu1 %v17304_v9 }
0x5f47   :  { %16837 = vmatmul.mubr.msk.f32.vlgmr.msra.gmra.mxu1 %vm173_vm2, %v13384_v10 }
0x5f48   :  { %16846 = vmatprep.mubr.msk.f32.mxu1 %vm17305_vm1, %v17304_v9 }
0x5f5b   :  { %v13217_v3 = vpop.f32.mrf.mxu0 }
0x5f5c   :  { %16831 = vmatprep.mubr.msk.f32.mxu0 %vm173_vm2, %v13217_v3 }
0x5f5d   :  { %v16823_v2 = vpop.f32.mrf.mxu0 }
0x6003   :  { %v13293_v28 = vpop.f32.mrf.mxu1 }
0x6004   :  { %16832 = vmatmul.mubr.msk.f32.vlgmr.msra.gmra.mxu0 %vm173_vm2, %v13293_v28 }
0x6005   :  { %16840 = vmatpush3.xpose.msk.msra.mxu0 %vm173_vm2, %v13464_v60  ;;  %v16828_v33 = vpop.f32.mrf.mxu1  ;;  %16841 = vmatprep.mubr.msk.f32.mxu0 %vm17305_vm1, %v17304_v9 }
0x6006   :  { %16849 = vmatprep.subr.mxu0 %v17304_v9 }
0x6007   :  { %v13457_v8 = vpop.f32.mrf.mxu1 }
0x6008   :  { %v13458_v35 = vadd.f32 %v13457_v8, %v17485_v25  ;;  %16842 = vmatmul.mubr.msk.f32.vlgmr.msra.gmra.mxu0 %vm173_vm2, %v13462_v34 }
0x6009   :  { %v16838_v36 = vpop.f32.mrf.mxu1  ;;  %16851 = vmatprep.mubr.msk.f32.mxu0 %vm17305_vm1, %v17304_v9 }
0x600a   :  { %v13539_v45 = vsel %vm327_vm5, %v13458_v35, -inf }
0x600b   :  { %13540 = vmax.xlane.f32.xlu0 %v13539_v45 }
0x6094   :  { %v13541_v30 = vpop.xlane.xlu0 %13540 }
0x6095   :  { %v13545_v37 = vsub.f32 %v13458_v35, %v13541_v30 }
0x6097   :  { %v13547_v38 = vmul.f32 1.442695, %v13545_v37 }
0x6099   :  { %17242 = vpow2.f32 %v13547_v38 }
0x60a6   :  { %v17243_v31 = vpop.eup %17242 }
0x60a7   :  { %v13551_v40 = vsel %vm327_vm5, %v17243_v31, 0.0 }
0x60a8   :  { %13552 = vadd.xlane.f32.xlu0 %v13551_v40 }
0x60c4   :  { %v16833_v41 = vpop.f32.mrf.mxu0 }
0x60c5   :  { %v19278_v4 = vadd.f32 %v16833_v41, %v19225_v12 }
0x60c6   :  { %v13372_v48 = vpop.f32.mrf.mxu0 }
0x60c7   :  { %v19281_v49 = vadd.f32 %v13372_v48, %v19228_v32 }
0x60c8   :  { %v13535_v50 = vpop.f32.mrf.mxu0 }
0x60c9   :  { %v13536_v52 = vadd.f32 %v13535_v50, %v17490_v29 }
0x60ca   :  { %v16843_v55 = vpop.f32.mrf.mxu0 }
0x60cb   :  { %v13542_v59 = vsel %vm327_vm5, %v13536_v52, -inf }
0x60cc   :  { %13543 = vmax.xlane.f32.xlu1 %v13542_v59 }
0x60dd   :  { %13561 = vrot.lane.b32.xlu1 %v19015_v42, %s19599_s26 }
0x60e1   :  { %13801 = vrot.lane.b32.xlu1 %v19015_v42, %s19600_s21 }
0x60e5   :  { %13879 = vrot.lane.b32.xlu1 %v19013_v39, %s19600_s21  ;;  %s19623_s21 = smov 100  }
0x60e9   :  { %13877 = vrot.lane.b32.xlu1 %v19032_v54, %s19620_s28 }
0x6131   :  { %v13553_v58 = vpop.xlane.xlu0 %13552 }
0x6132   :  { %17244 = vrcp.f32 %v13553_v58 }
0x613f   :  { %v17245_v7 = vpop.eup %17244 }
0x6140   :  { %v13558_v46 = vmul.f32 %v17245_v7, %v17243_v31 }
0x6155   :  { %v13544_v61 = vpop.xlane.xlu1 %13543 }
0x6156   :  { %v13546_v1 = vsub.f32 %v13536_v52, %v13544_v61 }
0x6158   :  { %v13549_v12 = vmul.f32 1.442695, %v13546_v1 }
0x6159   :  { %v13562_v32 = vpop.permute.xlu1 %13561 }
0x615a   :  { %17246 = vpow2.f32 %v13549_v12  ;;  %16845 = vmatpush3.msra.mxu1 %v13562_v32 }
0x615b   :  { %16847 = vmatmul.mubr.msk.f32.vlgmr.msra.gmra.mxu1 %vm327_vm5, %v13558_v46  ;;  %16854 = vmatprep.subr.msk.mxu1 %vm840_vm6, %v13713_v21 }
0x615c   :  { %16855 = vmatpush3.msk.msra.mxu1 %vm840_vm6, %v13713_v21 }
0x615d   :  { %16864 = vmatprep.subr.mxu1 %v17304_v9  ;;  %v13802_v16 = vpop.permute.xlu1 %13801 }
0x6161   :  { %v13880_v20 = vpop.permute.xlu1 %13879 }
0x6165   :  { %v13878_v24 = vpop.permute.xlu1 %13877 }
0x6167   :  { %v17247_v6 = vpop.eup %17246 }
0x6168   :  { %v13554_v18 = vsel %vm327_vm5, %v17247_v6, 0.0 }
0x6169   :  { %13555 = vadd.xlane.f32.xlu0 %v13554_v18 }
0x617f   :  { %13637 = vrot.lane.b32.xlu0 %v19013_v39, %s19599_s26  ;;  %s19622_s26 = smov 68  }
0x6183   :  { %13799 = vrot.lane.b32.xlu0 %v19023_v51, %s19620_s28 }
0x61f2   :  { %v13556_v27 = vpop.xlane.xlu0 %13555 }
0x61f3   :  { %17248 = vrcp.f32 %v13556_v27 }
0x61f6   :  { %v13638_v62 = vpop.permute.xlu0 %13637 }
0x61f7   :  { %16850 = vmatpush3.msra.mxu0 %v13638_v62 }
0x61f8   :  { %16859 = vmatprep.subr.mxu0 %v17304_v9 }
0x61fa   :  { %v13800_v63 = vpop.permute.xlu0 %13799 }
0x6200   :  { %v17249_v5 = vpop.eup %17248 }
0x6201   :  { %v13560_v11 = vmul.f32 %v17249_v5, %v17247_v6 }
0x6203   :  { %16852 = vmatmul.mubr.msk.f32.vlgmr.msra.gmra.mxu0 %vm327_vm5, %v13560_v11 }
0x6204   :  { %16860 = vmatpush3.xpose.msk.msra.mxu0 %vm173_vm2, %v13802_v16  ;;  %16861 = vmatprep.mubr.msk.f32.mxu0 %vm17305_vm1, %v17304_v9 }
0x6205   :  { %16869 = vmatprep.subr.mxu0 %v17304_v9 }
0x6207   :  { %16862 = vmatmul.mubr.msk.f32.vlgmr.msra.gmra.mxu0 %vm173_vm2, %v13800_v63 }
0x6208   :  { %16871 = vmatprep.mubr.msk.f32.mxu0 %vm17305_vm1, %v17304_v9 }
0x621b   :  { %v13633_v13 = vpop.f32.mrf.mxu1 }
0x621c   :  { %16856 = vmatprep.mubr.msk.f32.mxu1 %vm173_vm2, %v13633_v13 }
0x621d   :  { %v16848_v15 = vpop.f32.mrf.mxu1 }
0x62c3   :  { %v13709_v22 = vpop.f32.mrf.mxu0 }
0x62c4   :  { %16857 = vmatmul.mubr.msk.f32.vlgmr.msra.gmra.mxu1 %vm173_vm2, %v13709_v22 }
0x62c5   :  { %16865 = vmatpush3.xpose.msk.msra.mxu1 %vm173_vm2, %v13880_v20  ;;  %v16853_v14 = vpop.f32.mrf.mxu0  ;;  %16866 = vmatprep.mubr.msk.f32.mxu1 %vm17305_vm1, %v17304_v9 }
0x62c6   :  { %16874 = vmatprep.subr.mxu1 %v17304_v9 }
0x62c7   :  { %v13873_v26 = vpop.f32.mrf.mxu0 }
0x62c8   :  { %v13874_v43 = vadd.f32 %v13873_v26, %v17485_v25  ;;  %16867 = vmatmul.mubr.msk.f32.vlgmr.msra.gmra.mxu1 %vm173_vm2, %v13878_v24 }
0x62c9   :  { %v16863_v17 = vpop.f32.mrf.mxu0  ;;  %16876 = vmatprep.mubr.msk.f32.mxu1 %vm17305_vm1, %v17304_v9 }
0x62ca   :  { %v13955_v19 = vsel %vm327_vm5, %v13874_v43, -inf }
0x62cb   :  { %13956 = vmax.xlane.f32.xlu0 %v13955_v19 }
0x6354   :  { %v13957_v56 = vpop.xlane.xlu0 %13956 }
0x6355   :  { %v13961_v10 = vsub.f32 %v13874_v43, %v13957_v56 }
0x6357   :  { %v13963_v3 = vmul.f32 1.442695, %v13961_v10 }
0x6359   :  { %17250 = vpow2.f32 %v13963_v3 }
0x6366   :  { %v17251_v2 = vpop.eup %17250 }
0x6367   :  { %v13967_v60 = vsel %vm327_vm5, %v17251_v2, 0.0 }
0x6368   :  { %13968 = vadd.xlane.f32.xlu0 %v13967_v60 }
0x6384   :  { %v16858_v28 = vpop.f32.mrf.mxu1 }
0x6385   :  { %v19325_v33 = vadd.f32 %v16858_v28, %v19278_v4 }
0x6386   :  { %v13788_v34 = vpop.f32.mrf.mxu1 }
0x6387   :  { %v19328_v8 = vadd.f32 %v13788_v34, %v19281_v49 }
0x6388   :  { %v13951_v35 = vpop.f32.mrf.mxu1 }
0x6389   :  { %v13952_v36 = vadd.f32 %v13951_v35, %v17490_v29 }
0x638a   :  { %v16868_v45 = vpop.f32.mrf.mxu1 }
0x638b   :  { %v13958_v30 = vsel %vm327_vm5, %v13952_v36, -inf }
0x638c   :  { %13959 = vmax.xlane.f32.xlu1 %v13958_v30 }
0x639d   :  { %13977 = vrot.lane.b32.xlu1 %v19015_v42, %s19621_s20 }
0x63a1   :  { %14217 = vrot.lane.b32.xlu1 %v19015_v42, %s19622_s26 }
0x63a5   :  { %14295 = vrot.lane.b32.xlu1 %v19013_v39, %s19622_s26 }
0x63a9   :  { %14293 = vrot.lane.b32.xlu1 %v19032_v54, %s19623_s21  ;;  %v19349_v54 = vld [vmem:[%s19525_s6 + $0x78] sm:$0xff]  ;;  %s19624_s6 = smov 36  }
0x63aa   :  { %v14545_v10 = vrot.slane %v19349_v54, 4 }
0x63f1   :  { %v13969_v37 = vpop.xlane.xlu0 %13968 }
0x63f2   :  { %17252 = vrcp.f32 %v13969_v37 }
0x63ff   :  { %v17253_v31 = vpop.eup %17252 }
0x6400   :  { %v13974_v4 = vmul.f32 %v17253_v31, %v17251_v2 }
0x6415   :  { %v13960_v38 = vpop.xlane.xlu1 %13959 }
0x6416   :  { %v13962_v40 = vsub.f32 %v13952_v36, %v13960_v38 }
0x6418   :  { %v13965_v41 = vmul.f32 1.442695, %v13962_v40 }
0x6419   :  { %v13978_v48 = vpop.permute.xlu1 %13977 }
0x641a   :  { %17254 = vpow2.f32 %v13965_v41  ;;  %16870 = vmatpush3.msra.mxu0 %v13978_v48 }
0x641b   :  { %16872 = vmatmul.mubr.msk.f32.vlgmr.msra.gmra.mxu0 %vm327_vm5, %v13974_v4  ;;  %16879 = vmatprep.subr.msk.mxu0 %vm840_vm6, %v19349_v54 }
0x641c   :  { %16880 = vmatpush3.msk.msra.mxu0 %vm840_vm6, %v19349_v54 }
0x641d   :  { %16889 = vmatprep.subr.mxu0 %v17304_v9  ;;  %v14218_v58 = vpop.permute.xlu1 %14217 }
0x6421   :  { %v14296_v21 = vpop.permute.xlu1 %14295 }
0x6425   :  { %v14294_v32 = vpop.permute.xlu1 %14293 }
0x6427   :  { %v17255_v49 = vpop.eup %17254 }
0x6428   :  { %v13970_v50 = vsel %vm327_vm5, %v17255_v49, 0.0 }
0x6429   :  { %13971 = vadd.xlane.f32.xlu0 %v13970_v50 }
0x643f   :  { %14053 = vrot.lane.b32.xlu0 %v19013_v39, %s19621_s20 }
0x6443   :  { %14215 = vrot.lane.b32.xlu0 %v19023_v51, %s19623_s21 }
0x64b2   :  { %v13972_v52 = vpop.xlane.xlu0 %13971 }
0x64b3   :  { %17256 = vrcp.f32 %v13972_v52 }
0x64b6   :  { %v14054_v55 = vpop.permute.xlu0 %14053 }
0x64b7   :  { %16875 = vmatpush3.msra.mxu1 %v14054_v55 }
0x64b8   :  { %16884 = vmatprep.subr.mxu1 %v17304_v9 }
0x64ba   :  { %v14216_v61 = vpop.permute.xlu0 %14215 }
0x64c0   :  { %v17257_v51 = vpop.eup %17256 }
0x64c1   :  { %v13976_v59 = vmul.f32 %v17257_v51, %v17255_v49 }
0x64c3   :  { %16877 = vmatmul.mubr.msk.f32.vlgmr.msra.gmra.mxu1 %vm327_vm5, %v13976_v59 }
0x64c4   :  { %16885 = vmatpush3.xpose.msk.msra.mxu1 %vm173_vm2, %v14218_v58  ;;  %16886 = vmatprep.mubr.msk.f32.mxu1 %vm17305_vm1, %v17304_v9 }
0x64c5   :  { %16894 = vmatprep.subr.mxu1 %v17304_v9 }
0x64c7   :  { %16887 = vmatmul.mubr.msk.f32.vlgmr.msra.gmra.mxu1 %vm173_vm2, %v14216_v61 }
0x64c8   :  { %16896 = vmatprep.mubr.msk.f32.mxu1 %vm17305_vm1, %v17304_v9 }
0x64db   :  { %v14049_v7 = vpop.f32.mrf.mxu0 }
0x64dc   :  { %16881 = vmatprep.mubr.msk.f32.mxu0 %vm173_vm2, %v14049_v7 }
0x64dd   :  { %v16873_v1 = vpop.f32.mrf.mxu0 }
0x6583   :  { %v14125_v12 = vpop.f32.mrf.mxu1 }
0x6584   :  { %16882 = vmatmul.mubr.msk.f32.vlgmr.msra.gmra.mxu0 %vm173_vm2, %v14125_v12  ;;  %v15431_v12 = vld [vmem:[%s19527_s8 + $0x70] sm:$0xff] }
0x6585   :  { %16890 = vmatpush3.xpose.msk.msra.mxu0 %vm173_vm2, %v14296_v21  ;;  %v16878_v46 = vpop.f32.mrf.mxu1  ;;  %16891 = vmatprep.mubr.msk.f32.mxu0 %vm17305_vm1, %v17304_v9  ;;  %v15432_v21 = vld [vmem:[%s19527_s8 + $0x78] sm:$0xff] }
0x6586   :  { %16899 = vmatprep.subr.mxu0 %v17304_v9  ;;  %v15430_v46 = vld [vmem:[%s19527_s8 + $0x68] sm:$0xff] }
0x6587   :  { %v14289_v6 = vpop.f32.mrf.mxu1 }
0x6588   :  { %v14290_v18 = vadd.f32 %v14289_v6, %v17485_v25  ;;  %16892 = vmatmul.mubr.msk.f32.vlgmr.msra.gmra.mxu0 %vm173_vm2, %v14294_v32  ;;  %v15429_v32 = vld [vmem:[%s19527_s8 + $0x60] sm:$0xff]  ;;  %v15452_v6 = vld [vmem:[%s19529_s10 + $0x1f8] sm:$0xff] }
0x6589   :  { %v16888_v27 = vpop.f32.mrf.mxu1  ;;  %16901 = vmatprep.mubr.msk.f32.mxu0 %vm17305_vm1, %v17304_v9 }
0x658a   :  { %v14371_v62 = vsel %vm327_vm5, %v14290_v18, -inf  ;;  %v15450_v27 = vld [vmem:[%s19529_s10 + $0x1e8] sm:$0xff] }
0x658b   :  { %14372 = vmax.xlane.f32.xlu0 %v14371_v62  ;;  %v15449_v62 = vld [vmem:[%s19529_s10 + $0x1e0] sm:$0xff] }
0x6614   :  { %v14373_v5 = vpop.xlane.xlu0 %14372 }
0x6615   :  { %v14377_v11 = vsub.f32 %v14290_v18, %v14373_v5  ;;  %v15451_v18 = vld [vmem:[%s19529_s10 + $0x1f0] sm:$0xff]  ;;  %v15448_v5 = vld [vmem:[%s19529_s10 + $0x1d8] sm:$0xff] }
0x6617   :  { %v14379_v16 = vmul.f32 1.442695, %v14377_v11  ;;  %v15447_v11 = vld [vmem:[%s19529_s10 + $0x1d0] sm:$0xff] }
0x6619   :  { %17258 = vpow2.f32 %v14379_v16  ;;  %v15446_v16 = vld [vmem:[%s19529_s10 + $0x1c8] sm:$0xff] }
0x6626   :  { %v17259_v63 = vpop.eup %17258 }
0x6627   :  { %v14383_v13 = vsel %vm327_vm5, %v17259_v63, 0.0 }
0x6628   :  { %14384 = vadd.xlane.f32.xlu0 %v14383_v13  ;;  %v15444_v13 = vld [vmem:[%s19529_s10 + $0x1b8] sm:$0xff] }
0x6644   :  { %v16883_v15 = vpop.f32.mrf.mxu0 }
0x6645   :  { %v14214_v25 = vadd.f32 %v16883_v15, %v19325_v33  ;;  %v15443_v15 = vld [vmem:[%s19529_s10 + $0x1b0] sm:$0xff] }
0x6646   :  { %v14204_v20 = vpop.f32.mrf.mxu0 }
0x6647   :  { %v14213_v22 = vadd.f32 %v14204_v20, %v19328_v8  ;;  %v15441_v20 = vld [vmem:[%s19529_s10 + $0x1a0] sm:$0xff] }
0x6648   :  { %v14367_v14 = vpop.f32.mrf.mxu0 }
0x6649   :  { %v14368_v9 = vadd.f32 %v14367_v14, %v17490_v29 }
0x664a   :  { %v16893_v24 = vpop.f32.mrf.mxu0 }
0x664b   :  { %v14374_v26 = vsel %vm327_vm5, %v14368_v9, -inf }
0x664c   :  { %14375 = vmax.xlane.f32.xlu1 %v14374_v26 }
0x665d   :  { %14393 = vrot.lane.b32.xlu1 %v19015_v42, %s19624_s6 }
0x66b1   :  { %v14385_v43 = vpop.xlane.xlu0 %14384 }
0x66b2   :  { %17260 = vrcp.f32 %v14385_v43 }
0x66bf   :  { %v17261_v19 = vpop.eup %17260 }
0x66c0   :  { %v14390_v2 = vmul.f32 %v17261_v19, %v17259_v63  ;;  %v15445_v63 = vld [vmem:[%s19529_s10 + $0x1c0] sm:$0xff] }
0x66d5   :  { %v14376_v17 = vpop.xlane.xlu1 %14375 }
0x66d6   :  { %v14378_v56 = vsub.f32 %v14368_v9, %v14376_v17  ;;  %v19461_v17 = vld [vmem:[%s19531_s12 + $0xc] sm:$0xf] }
0x66d8   :  { %v14381_v3 = vmul.f32 1.442695, %v14378_v56  ;;  %v14674_v56 = vrot.slane %v19461_v17, %v17481_v23 }
0x66d9   :  { %v14394_v60 = vpop.permute.xlu1 %14393 }
0x66da   :  { %17262 = vpow2.f32 %v14381_v3  ;;  %16895 = vmatpush3.msra.mxu1 %v14394_v60 }
0x66db   :  { %16897 = vmatmul.mubr.msk.f32.vlgmr.msra.gmra.mxu1 %vm327_vm5, %v14390_v2  ;;  %16904 = vmatprep.subr.msk.mxu1 %vm840_vm6, %v14545_v10 }
0x66dc   :  { %16905 = vmatpush3.msk.msra.mxu1 %vm840_vm6, %v14545_v10 }
0x66dd   :  { %16920 = vmatprep.subr.mxu1 %v15452_v6 }
0x66e7   :  { %v17263_v29 = vpop.eup %17262 }
0x66e8   :  { %v14386_v42 = vsel %vm327_vm5, %v17263_v29, 0.0 }
0x66e9   :  { %14387 = vadd.xlane.f32.xlu0 %v14386_v42 }
0x66ff   :  { %14469 = vrot.lane.b32.xlu0 %v19013_v39, %s19624_s6  ;;  %v15427_v39 = vld [vmem:[%s19625_s29 + $0x3] ss:$0 sm:$0xff]  ;;  %s17330_s6 = smov [#allocation2]  }
0x6700   :  { %s15025_s2 = sshll.u32 %s17330_s6, 4  ;;  %s15026_s2 = int_to_ptr.vmem [resolvable:$true] %s15025_s2 }
0x6701   :  { %s17282_s0 = scalar_lea.vmem %s15026_s2, 32  ;;  %p17287_p1 = scmp.lt.s32.totalorder %s15026_s2, %s15026_s2 }
0x6702   :  { %p17283_p0 = scmp.ne.s32.totalorder %s15026_s2, %s17282_s0  ;;  %p17288_p2 = scmp.lt.s32.totalorder %s17282_s0, %s17282_s0 }
0x6704   :  { %p17289_p3 = por %p17288_p2, %p17287_p1 }
0x6706   :  { %p17290_p4 = pnand %p17289_p3, %p17283_p0 }
0x6772   :  { %v14388_v28 = vpop.xlane.xlu0 %14387 }
0x6773   :  { %17264 = vrcp.f32 %v14388_v28 }
0x6776   :  { %v14470_v33 = vpop.permute.xlu0 %14469 }
0x6777   :  { %16900 = vmatpush3.msra.mxu0 %v14470_v33 }
0x6778   :  { %16909 = vmatprep.subr.mxu0 %v15432_v21 }
0x6780   :  { %v17265_v34 = vpop.eup %17264 }
0x6781   :  { %v14392_v8 = vmul.f32 %v17265_v34, %v17263_v29  ;;  %v14680_v29 = vrot.slane %v19461_v17, %v17918_v0  ;;  %v15440_v34 = vld [vmem:[%s19529_s10 + $0x198] sm:$0xff] }
0x6783   :  { %16902 = vmatmul.mubr.msk.f32.vlgmr.msra.gmra.mxu0 %vm327_vm5, %v14392_v8  ;;  %v15439_v8 = vld [vmem:[%s19529_s10 + $0x190] sm:$0xff] }
0x6784   :  { %16910 = vmatpush3.msra.mxu0 %v15432_v21 }
0x6785   :  { %16911 = vmatprep.subr.mxu0 %v15431_v12 }
0x6786   :  { %16912 = vmatpush3.msra.mxu0 %v15431_v12 }
0x6787   :  { %16913 = vmatprep.subr.mxu0 %v15430_v46 }
0x6788   :  { %16914 = vmatpush3.msra.mxu0 %v15430_v46 }
0x6789   :  { %16915 = vmatprep.subr.mxu0 %v15429_v32 }
0x678a   :  { %16916 = vmatpush3.msra.mxu0 %v15429_v32  ;;  %v17329_v32 = vmov 0  }
0x678b   :  { %16984 = vset.pattern.permute.xlu1 %v17329_v32  ;;  %16985 = vset.pattern.permute.xlu0 %v17329_v32 }
0x679b   :  { %v14465_v35 = vpop.f32.mrf.mxu1 }
0x679c   :  { %16906 = vmatprep.mubr.msk.f32.mxu1 %vm173_vm2, %v14465_v35  ;;  %v15438_v35 = vld [vmem:[%s19529_s10 + $0x188] sm:$0xff] }
0x679d   :  { %v16898_v36 = vpop.f32.mrf.mxu1 }
0x679e   :  { %v15437_v36 = vld [vmem:[%s19529_s10 + $0x180] sm:$0xff] }
0x6843   :  { %v14541_v45 = vpop.f32.mrf.mxu0 }
0x6844   :  { %16907 = vmatmul.mubr.msk.f32.vlgmr.msra.gmra.mxu1 %vm173_vm2, %v14541_v45  ;;  %v15434_v45 = vld [vmem:[%s19528_s9 + $0x3] ss:$0 sm:$0xff] }
0x6845   :  { %v16903_v30 = vpop.f32.mrf.mxu0  ;;  %16921 = vmatpush3.msra.mxu1 %v15452_v6 }
0x6846   :  { %16922 = vmatprep.subr.mxu1 %v15451_v18 }
0x6847   :  { %16923 = vmatpush3.msra.mxu1 %v15451_v18 }
0x6848   :  { %16924 = vmatprep.subr.mxu1 %v15450_v27 }
0x6849   :  { %16925 = vmatpush3.msra.mxu1 %v15450_v27 }
0x684a   :  { %16926 = vmatprep.subr.mxu1 %v15449_v62 }
0x684b   :  { %16927 = vmatpush3.msra.mxu1 %v15449_v62 }
0x684c   :  { %16928 = vmatprep.subr.mxu1 %v15448_v5 }
0x684d   :  { %16929 = vmatpush3.msra.mxu1 %v15448_v5 }
0x684e   :  { %16930 = vmatprep.subr.mxu1 %v15447_v11 }
0x684f   :  { %16931 = vmatpush3.msra.mxu1 %v15447_v11 }
0x6850   :  { %16932 = vmatprep.subr.mxu1 %v15446_v16 }
0x6851   :  { %16933 = vmatpush3.msra.mxu1 %v15446_v16 }
0x6852   :  { %16934 = vmatprep.subr.mxu1 %v15445_v63 }
0x6853   :  { %16935 = vmatpush3.msra.mxu1 %v15445_v63  ;;  %v14910_v63 = vrot.slane %v19461_v17, %v17965_v53 }
0x6854   :  { %16936 = vmatprep.subr.mxu1 %v15444_v13 }
0x6855   :  { %16937 = vmatpush3.msra.mxu1 %v15444_v13 }
0x6856   :  { %16938 = vmatprep.subr.mxu1 %v15443_v15 }
0x6857   :  { %16939 = vmatpush3.msra.mxu1 %v15443_v15 }
0x6904   :  { %v16908_v37 = vpop.f32.mrf.mxu1 }
0x6905   :  { %v14630_v38 = vadd.f32 %v16908_v37, %v14214_v25  ;;  %v15442_v25 = vld [vmem:[%s19529_s10 + $0x1a8] sm:$0xff] }
0x6906   :  { %v14620_v31 = vpop.f32.mrf.mxu1  ;;  %16940 = vmatprep.subr.mxu1 %v15442_v25 }
0x6907   :  { %v14640_v40 = vadd.f32 %v15427_v39, %v14630_v38  ;;  %v14629_v41 = vadd.f32 %v14620_v31, %v14213_v22  ;;  %16941 = vmatpush3.msra.mxu1 %v15442_v25 }
0x6908   :  { %16942 = vmatprep.subr.mxu1 %v15441_v20 }
0x6909   :  { %v14639_v4 = vadd.f32 %v15427_v39, %v14629_v41  ;;  %v14644_v48 = vadd.f32 %v14640_v40, %v19002_v47  ;;  %16943 = vmatpush3.msra.mxu1 %v15441_v20  ;;  %v15454_v41 = vld [vmem:[%s19530_s11 + $0x3] ss:$0 sm:$0xff]  ;;  %s19626_s11 = sld [smem:[#allocation5_spill]]  ;;  %v14916_v20 = vrot.slane %v19461_v17, %v17970_v57 }
0x690a   :  { %16944 = vmatprep.subr.mxu1 %v15440_v34 }
0x690b   :  { %v14648_v49 = vsel %vm70_vm0, %v14644_v48, 0.0  ;;  %v14643_v50 = vadd.f32 %v14639_v4, %v19000_v44  ;;  %16945 = vmatpush3.msra.mxu1 %v15440_v34 }
0x690c   :  { %14649 = vadd.xlane.f32.xlu0 %v14648_v49  ;;  %16946 = vmatprep.subr.mxu1 %v15439_v8 }
0x690d   :  { %v14645_v54 = vsel %vm70_vm0, %v14643_v50, 0.0  ;;  %16947 = vmatpush3.msra.mxu1 %v15439_v8 }
0x690e   :  { %14646 = vadd.xlane.f32.xlu1 %v14645_v54  ;;  %16948 = vmatprep.subr.mxu1 %v15438_v35 }
0x690f   :  { %16949 = vmatpush3.msra.mxu1 %v15438_v35  ;;  %v14958_v16 = vld [vmem:[%s19626_s11] sm:$0xff]  ;;  %v14959_v17 = vld [vmem:[%s19626_s11 + $0x8] sm:$0xff] }
0x6910   :  { %16950 = vmatprep.subr.mxu1 %v15437_v36  ;;  %v14987_v15 = vsel %vm14986_vm7, %v14958_v16, 0.0 }
0x6911   :  { %16951 = vmatpush3.msra.mxu1 %v15437_v36 }
0x6995   :  { %v14650_v52 = vpop.xlane.xlu0 %14649 }
0x6996   :  { %v14652_v55 = vmul.f32 0.03125, %v14650_v52 }
0x6997   :  { %v14647_v51 = vpop.xlane.xlu1 %14646 }
0x6998   :  { %v19400_v59 = vsub.f32 %v14644_v48, %v14652_v55  ;;  %v14651_v58 = vmul.f32 0.03125, %v14647_v51 }
0x699a   :  { %v19402_v61 = vsub.f32 %v14643_v50, %v14651_v58  ;;  %v14656_v7 = vmul.f32 %v19400_v59, %v19400_v59 }
0x699c   :  { %v14660_v47 = vsel %vm70_vm0, %v14656_v7, 0.0  ;;  %v14655_v44 = vmul.f32 %v19402_v61, %v19402_v61 }
0x699d   :  { %14661 = vadd.xlane.f32.xlu0 %v14660_v47 }
0x699e   :  { %v14657_v1 = vsel %vm70_vm0, %v14655_v44, 0.0 }
0x699f   :  { %14658 = vadd.xlane.f32.xlu1 %v14657_v1 }
0x6a26   :  { %v14662_v22 = vpop.xlane.xlu0 %14661 }
0x6a27   :  { %v14664_v14 = vmul.f32 0.03125, %v14662_v22 }
0x6a28   :  { %v14659_v9 = vpop.xlane.xlu1 %14658 }
0x6a29   :  { %v14666_v24 = vadd.f32 1e-05, %v14664_v14  ;;  %v14663_v26 = vmul.f32 0.03125, %v14659_v9 }
0x6a2b   :  { %17266 = vrsqrt.f32 %v14666_v24  ;;  %v14665_v43 = vadd.f32 1e-05, %v14663_v26  ;;  %v14988_v24 = vrot.slane %v14987_v15, 4 }
0x6a2d   :  { %17268 = vrsqrt.f32 %v14665_v43 }
0x6a38   :  { %v17267_v19 = vpop.eup %17266 }
0x6a39   :  { %v14670_v10 = vmul.f32 %v17267_v19, %v19400_v59 }
0x6a3a   :  { %v17269_v3 = vpop.eup %17268 }
0x6a3b   :  { %v14669_v2 = vmul.f32 %v17269_v3, %v19402_v61  ;;  %v14676_v60 = vmul.f32 %v14674_v56, %v14670_v10  ;;  %v14989_v10 = vadd.f32 %v14988_v24, %v14987_v15 }
0x6a3d   :  { %v14675_v42 = vmul.f32 %v14674_v56, %v14669_v2  ;;  %v14682_v33 = vadd.f32 %v14680_v29, %v14676_v60  ;;  %v14990_v3 = vrot.slane %v14989_v10, 2 }
0x6a3f   :  { %v14681_v28 = vadd.f32 %v14680_v29, %v14675_v42  ;;  %v14991_v2 = vadd.f32 %v14990_v3, %v14989_v10  ;;  %v14994_v42 = vsel %vm14986_vm7, %v14959_v17, 0.0 }
0x6a41   :  { %16917 = vmatprep.mubr.msk.f32.mxu0 %vm70_vm0, %v14681_v28  ;;  %v14992_v60 = vrot.slane %v14991_v2, 1 }
0x6a42   :  { %16918 = vmatmul.mubr.msk.f32.vlgmr.msra.gmra.mxu0 %vm70_vm0, %v14682_v33 }
0x6a43   :  { %v14993_v29 = vadd.f32 %v14992_v60, %v14991_v2 }
0x6a45   :  { %v15001_v57 = vmax.f32 %v14993_v29, 1e-09 }
0x6b02   :  { %v16919_v30 = vpop.f32.mrf.mxu0 }
0x6b03   :  { %v14774_v37 = vadd.f32 %v16919_v30, %v15434_v45 }
0x6b04   :  { %v14768_v39 = vpop.f32.mrf.mxu0 }
0x6b05   :  { %v14769_v38 = vadd.f32 %v15434_v45, %v14768_v39  ;;  %v14778_v40 = vmax.f32 %v14774_v37, 0.0 }
0x6b07   :  { %v14777_v31 = vmax.f32 %v14769_v38, 0.0 }
0x6b09   :  { %16952 = vmatprep.mubr.f32.mxu1 %v14777_v31 }
0x6b0a   :  { %16953 = vmatmul.mubr.f32.vlgmr.msra.gmra.mxu1 %v14778_v40 }
0x6bca   :  { %v16954_v4 = vpop.f32.mrf.mxu1 }
0x6bcb   :  { %v14876_v48 = vadd.f32 %v16954_v4, %v15454_v41 }
0x6bcc   :  { %v14870_v49 = vpop.f32.mrf.mxu1 }
0x6bcd   :  { %v14880_v50 = vadd.f32 %v14876_v48, %v14682_v33  ;;  %v14871_v54 = vadd.f32 %v15454_v41, %v14870_v49 }
0x6bcf   :  { %v14879_v52 = vadd.f32 %v14871_v54, %v14681_v28  ;;  %v14884_v55 = vsel %vm70_vm0, %v14880_v50, 0.0  ;;  %v14995_v28 = vrot.slane %v14994_v42, 4 }
0x6bd0   :  { %14885 = vadd.xlane.f32.xlu0 %v14884_v55 }
0x6bd1   :  { %v14881_v51 = vsel %vm70_vm0, %v14879_v52, 0.0  ;;  %v14996_v35 = vadd.f32 %v14995_v28, %v14994_v42 }
0x6bd2   :  { %14882 = vadd.xlane.f32.xlu1 %v14881_v51 }
0x6bd3   :  { %v14997_v39 = vrot.slane %v14996_v35, 2 }
0x6bd5   :  { %v14998_v41 = vadd.f32 %v14997_v39, %v14996_v35 }
0x6bd7   :  { %v14999_v4 = vrot.slane %v14998_v41, 1 }
0x6bd9   :  { %v15000_v48 = vadd.f32 %v14999_v4, %v14998_v41 }
0x6bdb   :  { %v15002_v49 = vmax.f32 %v15000_v48, 1e-09 }
0x6c59   :  { %v14886_v59 = vpop.xlane.xlu0 %14885 }
0x6c5a   :  { %v14888_v58 = vmul.f32 0.03125, %v14886_v59 }
0x6c5b   :  { %v14883_v61 = vpop.xlane.xlu1 %14882 }
0x6c5c   :  { %v14890_v7 = vsub.f32 %v14880_v50, %v14888_v58  ;;  %v14887_v47 = vmul.f32 0.03125, %v14883_v61 }
0x6c5e   :  { %v14889_v44 = vsub.f32 %v14879_v52, %v14887_v47  ;;  %v14892_v1 = vmul.f32 %v14890_v7, %v14890_v7 }
0x6c60   :  { %v14896_v21 = vsel %vm70_vm0, %v14892_v1, 0.0  ;;  %v14891_v12 = vmul.f32 %v14889_v44, %v14889_v44 }
0x6c61   :  { %14897 = vadd.xlane.f32.xlu0 %v14896_v21 }
0x6c62   :  { %v14893_v46 = vsel %vm70_vm0, %v14891_v12, 0.0 }
0x6c63   :  { %14894 = vadd.xlane.f32.xlu1 %v14893_v46 }
0x6cea   :  { %v14898_v6 = vpop.xlane.xlu0 %14897 }
0x6ceb   :  { %v14900_v18 = vmul.f32 0.03125, %v14898_v6 }
0x6cec   :  { %v14895_v27 = vpop.xlane.xlu1 %14894 }
0x6ced   :  { %v14902_v62 = vadd.f32 1e-05, %v14900_v18  ;;  %v14899_v5 = vmul.f32 0.03125, %v14895_v27 }
0x6cef   :  { %17270 = vrsqrt.f32 %v14902_v62  ;;  %v14901_v11 = vadd.f32 1e-05, %v14899_v5 }
0x6cf1   :  { %17272 = vrsqrt.f32 %v14901_v11 }
0x6cfc   :  { %v17271_v13 = vpop.eup %17270 }
0x6cfd   :  { %v14906_v25 = vmul.f32 %v17271_v13, %v14890_v7  ;;  %v14919_v7 = vld [vmem:[%s19627_s13] sm:$0x3] }
0x6cfe   :  { %v17273_v22 = vpop.eup %17272  ;;  %v14949_v47 = vrot.slane %v14919_v7, %v17481_v23  ;;  %v14955_v21 = vrot.slane %v14919_v7, %v17918_v0 }
0x6cff   :  { %v14912_v14 = vmul.f32 %v14910_v63, %v14906_v25  ;;  %v14905_v9 = vmul.f32 %v17273_v22, %v14889_v44 }
0x6d01   :  { %v14918_v26 = vadd.f32 %v14916_v20, %v14912_v14  ;;  %v14911_v43 = vmul.f32 %v14910_v63, %v14905_v9 }
0x6d03   :  { %v14923_v19 = vsel %vm70_vm0, %v14918_v26, 0.0  ;;  %v14917_v56 = vadd.f32 %v14916_v20, %v14911_v43 }
0x6d04   :  { %14924 = vadd.xlane.f32.xlu0 %v14923_v19 }
0x6d05   :  { %v14920_v53 = vsel %vm70_vm0, %v14917_v56, 0.0 }
0x6d06   :  { %14921 = vadd.xlane.f32.xlu1 %v14920_v53 }
0x6d17   :  { %14962 = vperm.xlu1 %16984, %v14958_v16  }
0x6d1b   :  { %15005 = vperm.xlu1 %16984, %v15001_v57  }
0x6d8d   :  { %v14925_v33 = vpop.xlane.xlu0 %14924 }
0x6d8e   :  { %v14927_v34 = vmul.f32 0.03125, %v14925_v33 }
0x6d8f   :  { %v14922_v8 = vpop.xlane.xlu1 %14921 }
0x6d90   :  { %v14929_v36 = vsub.f32 %v14918_v26, %v14927_v34  ;;  %v14926_v45 = vmul.f32 0.03125, %v14922_v8 }
0x6d92   :  { %v14928_v30 = vsub.f32 %v14917_v56, %v14926_v45  ;;  %v14931_v37 = vmul.f32 %v14929_v36, %v14929_v36 }
0x6d93   :  { %v14963_v50 = vpop.permute.xlu1 %14962 }
0x6d94   :  { %v14935_v38 = vsel %vm70_vm0, %v14931_v37, 0.0  ;;  %v14930_v31 = vmul.f32 %v14928_v30, %v14928_v30 }
0x6d95   :  { %14936 = vadd.xlane.f32.xlu0 %v14935_v38 }
0x6d96   :  { %v14932_v40 = vsel %vm70_vm0, %v14930_v31, 0.0 }
0x6d97   :  { %14933 = vadd.xlane.f32.xlu1 %v14932_v40  ;;  %v15006_v54 = vpop.permute.xlu1 %15005 }
0x6da8   :  { %15010 = vperm.xlu1 %16984, %v15002_v49  }
0x6dab   :  { %14967 = vperm.xlu0 %16985, %v14959_v17  }
0x6e1e   :  { %v14937_v52 = vpop.xlane.xlu0 %14936 }
0x6e1f   :  { %v14939_v55 = vmul.f32 0.03125, %v14937_v52 }
0x6e20   :  { %v14934_v51 = vpop.xlane.xlu1 %14933 }
0x6e21   :  { %v14941_v59 = vadd.f32 1e-05, %v14939_v55  ;;  %v14938_v58 = vmul.f32 0.03125, %v14934_v51 }
0x6e23   :  { %17274 = vrsqrt.f32 %v14941_v59  ;;  %v14940_v61 = vadd.f32 1e-05, %v14938_v58 }
0x6e24   :  { %v15011_v18 = vpop.permute.xlu1 %15010 }
0x6e25   :  { %17276 = vrsqrt.f32 %v14940_v61 }
0x6e26   :  { %v14968_v6 = vpop.permute.xlu0 %14967  ;;  %17278 = vrcp.f32 %v15011_v18 }
0x6e27   :  { %17280 = vrcp.f32 %v15006_v54 }
0x6e30   :  { %v17275_v44 = vpop.eup %17274 }
0x6e31   :  { %v14945_v1 = vmul.f32 %v17275_v44, %v14929_v36 }
0x6e32   :  { %v17277_v12 = vpop.eup %17276 }
0x6e33   :  { %v14951_v46 = vmul.f32 %v14949_v47, %v14945_v1  ;;  %v14944_v32 = vmul.f32 %v17277_v12, %v14928_v30  ;;  %v17279_v19 = vpop.eup %17278 }
0x6e34   :  { %v17281_v53 = vpop.eup %17280 }
0x6e35   :  { %v14957_v27 = vadd.f32 %v14955_v21, %v14951_v46  ;;  %v14950_v62 = vmul.f32 %v14949_v47, %v14944_v32 }
0x6e37   :  { %v14956_v5 = vadd.f32 %v14955_v21, %v14950_v62  ;;  %v14971_v11 = vmul.f32 %v14968_v6, %v14957_v27 }
0x6e39   :  { %v14970_v16 = vmul.f32 %v14963_v50, %v14956_v5  ;;  %v14979_v63 = vsel %vm70_vm0, %v14971_v11, 0.0 }
0x6e3a   :  { %v14980_v13 = vrot.slane %v14979_v63, 4 }
0x6e3b   :  { %v14972_v23 = vsel %vm70_vm0, %v14970_v16, 0.0 }
0x6e3c   :  { %v14973_v15 = vrot.slane %v14972_v23, 4  ;;  %v14981_v25 = vadd.f32 %v14980_v13, %v14979_v63 }
0x6e3e   :  { %v14974_v0 = vadd.f32 %v14973_v15, %v14972_v23  ;;  %v14982_v20 = vrot.slane %v14981_v25, 2 }
0x6e40   :  { %v14975_v22 = vrot.slane %v14974_v0, 2  ;;  %v14983_v14 = vadd.f32 %v14982_v20, %v14981_v25 }
0x6e42   :  { %v14976_v9 = vadd.f32 %v14975_v22, %v14974_v0  ;;  %v14984_v24 = vrot.slane %v14983_v14, 1 }
0x6e44   :  { %v14985_v26 = vadd.f32 %v14984_v24, %v14983_v14  ;;  %v14977_v43 = vrot.slane %v14976_v9, 1 }
0x6e46   :  { %v15016_v56 = vmul.f32 %v17279_v19, %v14985_v26  ;;  %v14978_v10 = vadd.f32 %v14977_v43, %v14976_v9 }
0x6e48   :  { %v15014_v3 = vmul.f32 %v17281_v53, %v14978_v10  ;;  %15019 = vst.msk [vmem:[#allocation2 + $0x1] sm:$0x1] %vm15017_vm8, %v15016_v56 }
0x6e4a   :  { %15018 = vst.msk [vmem:[#allocation2] sm:$0x1] %vm15017_vm8, %v15014_v3 }
0x6e4b   :  { %17293 = shalt.err (!%p17290_p4)
}
0x6e4c   :  { %s17331_s29 = smov 16   ;;  %s17332_s27 = smov 1  }
0x6e4d   :  { %s19628_s24 = sld [smem:[#allocation8_spill]] }
0x6e53   :  { %15031 = dma.vmem_to_hbm [thread:$0]  %s15026_s2, 32, %s19628_s24, [#allocation3], %s17331_s29, %s17331_s29, %s17332_s27  }
0x6e54   :  { %17302 = dma.done.wait [#allocation3], 32  }
0x6e55   :  { %17303 = vsyncadd [#allocation3], 4294967264 }
0x6e56   :  { %15035 = vsyncpa [#allocation3], 1 }

</bundles_post_ra>
